<compile_context>
chip_gen: v7x
topology: tpu7x:2x2x1
jax: 0.10.0
libtpu: 0.0.40
codegen_flags: <defaults>
</compile_context>

<pallas_src>
import functools

import jax
import jax.numpy as jnp
import numpy as np
from jax import lax
from jax.experimental import pallas as pl
from jax.experimental.pallas import tpu as pltpu


# ----------------------------- Pallas kernel --------------------------------

def _dw_conv_kernel(x_ref, w_ref, b_ref, o_ref, xpad_ref, *, K, H, W):
    # x_ref   : (H, W, TC)          unpadded input block (compute dtype)
    # w_ref   : (K, K, TC)          merged depthwise taps (compute dtype)
    # b_ref   : (1, TC)             merged bias (f32)
    # o_ref   : (H, W, TC)          f32 output block (one write per kh row)
    # xpad_ref: (H+2p, W+2p, TC)    VMEM halo scratch (compute dtype)
    p = K // 2
    Hp, Wp, TC = xpad_ref.shape
    dt = xpad_ref.dtype

    # Build the "same"-padding halo entirely in VMEM: zero the thin border
    # strips, then stage the current (unpadded, auto-pipelined) block into the
    # interior.  No padded tensor is ever materialized in HBM.
    # (The border strips are re-zeroed every step: with both grid axes
    # "parallel" there is no reliable "first step on this core" to gate on,
    # and the strips are tiny next to the tap loop.)
    xpad_ref[0:p, :, :] = jnp.zeros((p, Wp, TC), dt)
    xpad_ref[p + H:, :, :] = jnp.zeros((p, Wp, TC), dt)
    xpad_ref[p:p + H, 0:p, :] = jnp.zeros((H, p, TC), dt)
    xpad_ref[p:p + H, p + W:, :] = jnp.zeros((H, p, TC), dt)
    xpad_ref[p:p + H, p:p + W, :] = x_ref[...].astype(dt)

    # ---- kh = 0 (peeled): accumulate the K taps of the first row in vregs
    # (compute dtype), cast once, and fuse the bias seed into the first write.
    row = xpad_ref[0:H, 0:W, :] * w_ref[0, 0, :]
    for kw in range(1, K):
        row = row + xpad_ref[0:H, kw:kw + W, :] * w_ref[0, kw, :]
    o_ref[...] = row.astype(jnp.float32) + b_ref[0, :]

    if K <= 9:
        # Small kernels: fully static tap loop (simplest, best scheduling).
        for kh in range(1, K):
            row = xpad_ref[kh:kh + H, 0:W, :] * w_ref[kh, 0, :]
            for kw in range(1, K):
                row = row + xpad_ref[kh:kh + H, kw:kw + W, :] * w_ref[kh, kw, :]
            o_ref[...] += row.astype(jnp.float32)     # one RMW per row
    else:
        # K = 11..17: keep the kh loop rolled so 169-289 taps don't blow up
        # code size / live ranges; kw stays statically unrolled.
        def kh_body(kh, carry):
            w_row = w_ref[kh]                          # (K, TC) taps of this row
            row = xpad_ref[pl.ds(kh, H), pl.ds(0, W), :] * w_row[0, :]
            for kw in range(1, K):
                row = row + (xpad_ref[pl.ds(kh, H), pl.ds(kw, W), :]
                             * w_row[kw, :])
            o_ref[...] += row.astype(jnp.float32)      # one RMW per row
            return carry

        lax.fori_loop(1, K, kh_body, 0)


# ------------------------------ host wrappers --------------------------------

@functools.lru_cache(maxsize=None)
def _supports_bf16_valu():
    """True on v6e / v7x (packed bf16 VALU); False on v5e and older."""
    try:
        kind = jax.devices()[0].device_kind.lower()
    except Exception:
        return False
    return not any(tag in kind for tag in ("v2", "v3", "v4", "v5"))


@functools.lru_cache(maxsize=None)
def _vmem_capacity_bytes():
    try:
        return int(pltpu.get_tpu_info().vmem_capacity_bytes)
    except Exception:
        return 64 << 20     # conservative fallback (v7x-sized)


def depthwise_conv_same_pallas(x_nhwc, w_kkc, bias_c, *,
                               compute_dtype=jnp.float32, c_tile=None):
    """Depthwise conv, stride 1, 'same' padding. x: (N,H,W,C), w: (K,K,C).

    Returns f32 NHWC (caller casts back to its dtype).
    """
    N, H, W, C = x_nhwc.shape
    K = w_kkc.shape[0]
    assert w_kkc.shape == (K, K, C) and K % 2 == 1, "expect odd square kernel"
    p = K // 2
    Hp, Wp = H + 2 * p, W + 2 * p

    # v5e and older have no bf16 VALU: bf16 taps would be upconverted
    # (a pessimization) -- enforce f32 there.
    if jnp.dtype(compute_dtype) == jnp.dtype(jnp.bfloat16) and not _supports_bf16_valu():
        compute_dtype = jnp.float32

    # Lane-dense channels: pad C up to a multiple of 128 (zero weights/bias ->
    # zero padded outputs, sliced off below).  Lane-sparse output blocks force
    # masked vst on every accumulator write -- the biggest measured store lever.
    C_pad = ((C + 127) // 128) * 128
    if c_tile is None:
        c_tile = 128
    assert C_pad % c_tile == 0, "c_tile must divide the 128-padded channel count"
    TC = c_tile

    x_in = x_nhwc.astype(compute_dtype)
    w_in = w_kkc.astype(compute_dtype)
    b_in = bias_c.reshape(1, C).astype(jnp.float32)
    if C_pad != C:
        pc = C_pad - C
        x_in = jnp.pad(x_in, ((0, 0), (0, 0), (0, 0), (0, pc)))
        w_in = jnp.pad(w_in, ((0, 0), (0, 0), (0, pc)))
        b_in = jnp.pad(b_in, ((0, 0), (0, pc)))

    # Generation-aware VMEM budget: cap at 80% of physical capacity so the
    # compiler keeps headroom for internal scratch/semaphores.
    cd = np.dtype(compute_dtype).itemsize
    blk_in = H * W * TC * cd
    blk_out = H * W * TC * 4
    est = (2 * blk_in                 # double-buffered input blocks
           + 2 * blk_out              # double-buffered output blocks
           + Hp * Wp * TC * cd        # halo scratch
           + 2 * K * K * TC * cd      # double-buffered taps
           + (2 << 20))               # bias + compiler slack
    vmem_cap = int(_vmem_capacity_bytes() * 0.8)
    vmem_limit = int(min(max(est * 5 // 4, 32 << 20), vmem_cap))

    kernel = functools.partial(_dw_conv_kernel, K=K, H=H, W=W)

    out = pl.pallas_call(
        kernel,
        out_shape=jax.ShapeDtypeStruct((N, H, W, C_pad), jnp.float32),
        grid_spec=pltpu.PrefetchScalarGridSpec(
            num_scalar_prefetch=0,
            grid=(N, C_pad // TC),
            in_specs=[
                pl.BlockSpec((None, H, W, TC), lambda n, c: (n, 0, 0, c)),
                pl.BlockSpec((K, K, TC), lambda n, c: (0, 0, c)),
                pl.BlockSpec((1, TC), lambda n, c: (0, c)),
            ],
            out_specs=pl.BlockSpec((None, H, W, TC), lambda n, c: (n, 0, 0, c)),
            scratch_shapes=[pltpu.VMEM((Hp, Wp, TC), compute_dtype)],
        ),
        compiler_params=pltpu.CompilerParams(
            dimension_semantics=("parallel", "parallel"),
            vmem_limit_bytes=vmem_limit,
        ),
    )(x_in, w_in, b_in)

    return out[..., :C] if C_pad != C else out


# --------------------- reparam / BN-fusion glue (plain JAX) ------------------

def _branch_config(kernel_size):
    cfg = {
        17: ([5, 9, 3, 3, 3], [1, 2, 4, 5, 7]),
        15: ([5, 7, 3, 3, 3], [1, 2, 3, 5, 7]),
        13: ([5, 7, 3, 3, 3], [1, 2, 3, 4, 5]),
        11: ([5, 5, 3, 3, 3], [1, 2, 3, 4, 5]),
        9:  ([5, 5, 3, 3],    [1, 2, 3, 4]),
        7:  ([5, 3, 3],       [1, 2, 3]),
        5:  ([3, 3],          [1, 2]),
    }
    return cfg[kernel_size]


def _fuse_bn(w, gamma, beta, mean, var, eps=1e-5):
    # w: (C, 1, k, k) depthwise weight, conv bias is None (0).
    std = jnp.sqrt(var + eps)
    scale = gamma / std
    return w * scale[:, None, None, None], beta - mean * scale


def _dilate_kernel(w, r):
    # Insert r-1 zeros between taps: (C,1,k,k) -> (C,1, r*(k-1)+1, r*(k-1)+1)
    if r == 1:
        return w
    C, _, k, _ = w.shape
    eq = r * (k - 1) + 1
    out = jnp.zeros((C, 1, eq, eq), w.dtype)
    return out.at[:, :, ::r, ::r].set(w)


def _merge_into_large(large_k, small_k, r):
    K_large = large_k.shape[-1]
    k_small = small_k.shape[-1]
    eq_size = r * (k_small - 1) + 1
    assert K_large % 2 == 1 and k_small % 2 == 1, "kernels must be odd"
    assert eq_size <= K_large, "dilated-equivalent kernel exceeds large kernel"
    eq = _dilate_kernel(small_k, r)
    pad = K_large // 2 - eq_size // 2
    return large_k + jnp.pad(eq, ((0, 0), (0, 0), (pad, pad), (pad, pad)))


def make_params(key, channels, kernel_size):
    """Deterministic synthetic parameters with the module's __init__ shapes."""
    kernel_sizes, dilates = _branch_config(kernel_size)
    n_branches = len(kernel_sizes)
    keys = jax.random.split(key, 2 + 5 * (n_branches + 1))
    ki = iter(keys)

    def conv_w(k):
        return 0.1 * jax.random.normal(next(ki), (channels, 1, k, k), jnp.float32)

    def bn_params():
        gamma = 1.0 + 0.1 * jax.random.normal(next(ki), (channels,), jnp.float32)
        beta = 0.1 * jax.random.normal(next(ki), (channels,), jnp.float32)
        mean = 0.1 * jax.random.normal(next(ki), (channels,), jnp.float32)
        var = 0.5 + jax.random.uniform(next(ki), (channels,), jnp.float32)
        return gamma, beta, mean, var

    params = {
        "lk_origin_w": conv_w(kernel_size),      # bias=deploy=False -> no bias
        "origin_bn": bn_params(),
        "branches": [],
        "kernel_sizes": kernel_sizes,
        "dilates": dilates,
    }
    for k in kernel_sizes:
        params["branches"].append({"w": conv_w(k), "bn": bn_params()})
    return params


def reparam_merged_kernel(params):
    """Fold BNs and fold dilated branches into one (K,K,C) kernel + (C,) bias.

    Call once per weight update (hoisted out of the per-call forward).
    """
    g, b, m, v = params["origin_bn"]
    merged_w, merged_b = _fuse_bn(params["lk_origin_w"], g, b, m, v)
    for br, r in zip(params["branches"], params["dilates"]):
        g, b, m, v = br["bn"]
        bw, bb = _fuse_bn(br["w"], g, b, m, v)
        merged_w = _merge_into_large(merged_w, bw, r)
        merged_b = merged_b + bb
    # (C, 1, K, K) -> (K, K, C) for the NHWC Pallas kernel
    w_kkc = jnp.transpose(merged_w[:, 0], (1, 2, 0))
    return w_kkc, merged_b


@functools.partial(jax.jit, static_argnames=("compute_dtype", "c_tile"))
def dilated_reparam_block_apply_nhwc(x_nhwc, w_kkc, bias_c, *,
                                     compute_dtype=jnp.float32, c_tile=None):
    """NHWC in / NHWC out (input dtype). Preferred end-to-end entry point."""
    out = depthwise_conv_same_pallas(
        x_nhwc, w_kkc, bias_c, compute_dtype=compute_dtype, c_tile=c_tile)
    return out.astype(x_nhwc.dtype)


@functools.partial(jax.jit, static_argnames=("compute_dtype", "c_tile"))
def dilated_reparam_block_apply(x_nchw, w_kkc, bias_c, *,
                                compute_dtype=jnp.float32, c_tile=None):
    """NCHW in / NCHW out to match the PyTorch module.

    Each transpose is a full HBM pass; prefer the NHWC entry point when the
    surrounding model can stay NHWC.
    """
    x_nhwc = jnp.transpose(x_nchw, (0, 2, 3, 1))
    out_nhwc = dilated_reparam_block_apply_nhwc(
        x_nhwc, w_kkc, bias_c, compute_dtype=compute_dtype, c_tile=c_tile)
    return jnp.transpose(out_nhwc, (0, 3, 1, 2))


def dilated_reparam_block_forward(x_nchw, params, **kwargs):
    """Convenience wrapper: merge (once) + apply. Hoist the merge for reuse."""
    w_kkc, bias = reparam_merged_kernel(params)
    return dilated_reparam_block_apply(x_nchw, w_kkc, bias, **kwargs)


# -------------------------- pure-JAX reference -------------------------------

def _dw_conv_ref(x_nchw, w_c1kk, bias_c, dilation, padding):
    C = x_nchw.shape[1]
    out = jax.lax.conv_general_dilated(
        x_nchw, w_c1kk, window_strides=(1, 1),
        padding=((padding, padding), (padding, padding)),
        rhs_dilation=(dilation, dilation),
        dimension_numbers=("NCHW", "OIHW", "NCHW"),
        feature_group_count=C)
    return out + bias_c[None, :, None, None]


def forward_ref(x_nchw, params, kernel_size):
    g, b, m, v = params["origin_bn"]
    w, bias = _fuse_bn(params["lk_origin_w"], g, b, m, v)
    out = _dw_conv_ref(x_nchw, w, bias, 1, kernel_size // 2)
    for br, k, r in zip(params["branches"], params["kernel_sizes"], params["dilates"]):
        g, b, m, v = br["bn"]
        w, bias = _fuse_bn(br["w"], g, b, m, v)
        out = out + _dw_conv_ref(x_nchw, w, bias, r, (r * (k - 1) + 1) // 2)
    return out


# --------------------------------- main --------------------------------------

if __name__ == "__main__":
    root = jax.random.PRNGKey(0)

    # (N, C, H, W, kernel_size): K=7 exercises the fully unrolled tap path,
    # K=13 exercises the rolled (fori_loop) path used for large kernels.
    # C=4 also exercises the lane-padding (C -> 128) path.
    configs = [(2, 4, 16, 16, 7), (1, 4, 16, 16, 13)]

    for (N, C, H, W, kernel_size) in configs:
        kx, kp = jax.random.split(jax.random.fold_in(root, kernel_size))
        x = jax.random.normal(kx, (N, C, H, W), jnp.float32)
        params = make_params(kp, C, kernel_size)

        # Reparam (BN fold + dilated-branch merge) hoisted out of the forward.
        w_kkc, bias = reparam_merged_kernel(params)

        ref = jax.block_until_ready(forward_ref(x, params, kernel_size))

        # f32 tap path (works on every generation).
        out = jax.block_until_ready(dilated_reparam_block_apply(x, w_kkc, bias))
        np.testing.assert_allclose(np.asarray(out), np.asarray(ref),
                                   rtol=2e-3, atol=2e-3)

        # bf16 tap path (packed VALU on v6e/v7x; auto-promoted to f32 on v5e).
        # Row-level bf16 accumulation -> loose sanity tolerance vs the f32 ref.
        out_bf16 = jax.block_until_ready(
            dilated_reparam_block_apply(x, w_kkc, bias,
                                        compute_dtype=jnp.bfloat16))
        np.testing.assert_allclose(np.asarray(out_bf16), np.asarray(ref),
                                   rtol=5e-2, atol=1e-1)

    print("KERNEL_OK")
</pallas_src>

<mosaic_0001>
module attributes {stable_mosaic.version = 11 : i64} {
  func.func @_dw_conv_kernel(%arg0: i32, %arg1: i32, %arg2: memref<1x16x16x128xf32, #tpu.memory_space<vmem>>, %arg3: memref<7x7x128xf32, #tpu.memory_space<vmem>>, %arg4: memref<1x128xf32, #tpu.memory_space<vmem>>, %arg5: memref<1x16x16x128xf32, #tpu.memory_space<vmem>>, %arg6: memref<22x22x128xf32, #tpu.memory_space<vmem>>) attributes {dimension_semantics = [#tpu.dimension_semantics<parallel>, #tpu.dimension_semantics<parallel>], iteration_bounds = array<i64: 2, 1>, scalar_prefetch = 0 : i64, scratch_operands = 1 : i64, tpu.core_type = #tpu.core_type<tc>, window_params = [{transform_indices = @transform_0, window_bounds = array<i64: 1, 16, 16, 128>}, {transform_indices = @transform_1, window_bounds = array<i64: 7, 7, 128>}, {transform_indices = @transform_2, window_bounds = array<i64: 1, 128>}, {transform_indices = @transform_3, window_bounds = array<i64: 1, 16, 16, 128>}]} {
    %cst = arith.constant 0.000000e+00 : f32
    %0 = vector.broadcast %cst : f32 to vector<3x22x128xf32>
    %c0 = arith.constant 0 : index
    %c0_0 = arith.constant 0 : index
    %c0_1 = arith.constant 0 : index
    %1 = vector.load %arg6[%c0, %c0_0, %c0_1] : memref<22x22x128xf32, #tpu.memory_space<vmem>>, vector<3x22x128xf32>
    tpu.vector_store %arg6[%c0, %c0_0, %c0_1], %0 {strides = array<i32>} : memref<22x22x128xf32, #tpu.memory_space<vmem>>, vector<3x22x128xf32>,
    %cst_2 = arith.constant 0.000000e+00 : f32
    %2 = vector.broadcast %cst_2 : f32 to vector<3x22x128xf32>
    %c19 = arith.constant 19 : index
    %c0_3 = arith.constant 0 : index
    %c0_4 = arith.constant 0 : index
    %3 = vector.load %arg6[%c19, %c0_3, %c0_4] : memref<22x22x128xf32, #tpu.memory_space<vmem>>, vector<3x22x128xf32>
    tpu.vector_store %arg6[%c19, %c0_3, %c0_4], %2 {strides = array<i32>} : memref<22x22x128xf32, #tpu.memory_space<vmem>>, vector<3x22x128xf32>,
    %cst_5 = arith.constant 0.000000e+00 : f32
    %4 = vector.broadcast %cst_5 : f32 to vector<16x3x128xf32>
    %c3 = arith.constant 3 : index
    %c0_6 = arith.constant 0 : index
    %c0_7 = arith.constant 0 : index
    %5 = vector.load %arg6[%c3, %c0_6, %c0_7] : memref<22x22x128xf32, #tpu.memory_space<vmem>>, vector<16x3x128xf32>
    tpu.vector_store %arg6[%c3, %c0_6, %c0_7], %4 {strides = array<i32>} : memref<22x22x128xf32, #tpu.memory_space<vmem>>, vector<16x3x128xf32>,
    %cst_8 = arith.constant 0.000000e+00 : f32
    %6 = vector.broadcast %cst_8 : f32 to vector<16x3x128xf32>
    %c3_9 = arith.constant 3 : index
    %c19_10 = arith.constant 19 : index
    %c0_11 = arith.constant 0 : index
    %7 = vector.load %arg6[%c3_9, %c19_10, %c0_11] : memref<22x22x128xf32, #tpu.memory_space<vmem>>, vector<16x3x128xf32>
    tpu.vector_store %arg6[%c3_9, %c19_10, %c0_11], %6 {strides = array<i32>} : memref<22x22x128xf32, #tpu.memory_space<vmem>>, vector<16x3x128xf32>,
    %c0_12 = arith.constant 0 : index
    %c0_13 = arith.constant 0 : index
    %c0_14 = arith.constant 0 : index
    %c0_15 = arith.constant 0 : index
    %8 = vector.load %arg2[%c0_12, %c0_13, %c0_14, %c0_15] : memref<1x16x16x128xf32, #tpu.memory_space<vmem>>, vector<1x16x16x128xf32>
    %9 = vector.shape_cast %8 : vector<1x16x16x128xf32> to vector<16x16x128xf32>
    %c3_16 = arith.constant 3 : index
    %c3_17 = arith.constant 3 : index
    %c0_18 = arith.constant 0 : index
    %10 = vector.load %arg6[%c3_16, %c3_17, %c0_18] : memref<22x22x128xf32, #tpu.memory_space<vmem>>, vector<16x16x128xf32>
    tpu.vector_store %arg6[%c3_16, %c3_17, %c0_18], %9 {strides = array<i32>} : memref<22x22x128xf32, #tpu.memory_space<vmem>>, vector<16x16x128xf32>,
    %c0_19 = arith.constant 0 : index
    %c0_20 = arith.constant 0 : index
    %c0_21 = arith.constant 0 : index
    %11 = vector.load %arg6[%c0_19, %c0_20, %c0_21] : memref<22x22x128xf32, #tpu.memory_space<vmem>>, vector<16x16x128xf32>
    %c0_22 = arith.constant 0 : index
    %c0_23 = arith.constant 0 : index
    %c0_24 = arith.constant 0 : index
    %12 = vector.load %arg3[%c0_22, %c0_23, %c0_24] : memref<7x7x128xf32, #tpu.memory_space<vmem>>, vector<1x1x128xf32>
    %13 = vector.shape_cast %12 : vector<1x1x128xf32> to vector<128xf32>
    %14 = vector.shape_cast %13 : vector<128xf32> to vector<1x1x128xf32>
    %15 = vector.broadcast %14 : vector<1x1x128xf32> to vector<16x16x128xf32>
    %16 = arith.mulf %11, %15 : vector<16x16x128xf32>
    %c0_25 = arith.constant 0 : index
    %c1 = arith.constant 1 : index
    %c0_26 = arith.constant 0 : index
    %17 = vector.load %arg6[%c0_25, %c1, %c0_26] : memref<22x22x128xf32, #tpu.memory_space<vmem>>, vector<16x16x128xf32>
    %c0_27 = arith.constant 0 : index
    %c1_28 = arith.constant 1 : index
    %c0_29 = arith.constant 0 : index
    %18 = vector.load %arg3[%c0_27, %c1_28, %c0_29] : memref<7x7x128xf32, #tpu.memory_space<vmem>>, vector<1x1x128xf32>
    %19 = vector.shape_cast %18 : vector<1x1x128xf32> to vector<128xf32>
    %20 = vector.shape_cast %19 : vector<128xf32> to vector<1x1x128xf32>
    %21 = vector.broadcast %20 : vector<1x1x128xf32> to vector<16x16x128xf32>
    %22 = arith.mulf %17, %21 : vector<16x16x128xf32>
    %23 = arith.addf %16, %22 : vector<16x16x128xf32>
    %c0_30 = arith.constant 0 : index
    %c2 = arith.constant 2 : index
    %c0_31 = arith.constant 0 : index
    %24 = vector.load %arg6[%c0_30, %c2, %c0_31] : memref<22x22x128xf32, #tpu.memory_space<vmem>>, vector<16x16x128xf32>
    %c0_32 = arith.constant 0 : index
    %c2_33 = arith.constant 2 : index
    %c0_34 = arith.constant 0 : index
    %25 = vector.load %arg3[%c0_32, %c2_33, %c0_34] : memref<7x7x128xf32, #tpu.memory_space<vmem>>, vector<1x1x128xf32>
    %26 = vector.shape_cast %25 : vector<1x1x128xf32> to vector<128xf32>
    %27 = vector.shape_cast %26 : vector<128xf32> to vector<1x1x128xf32>
    %28 = vector.broadcast %27 : vector<1x1x128xf32> to vector<16x16x128xf32>
    %29 = arith.mulf %24, %28 : vector<16x16x128xf32>
    %30 = arith.addf %23, %29 : vector<16x16x128xf32>
    %c0_35 = arith.constant 0 : index
    %c3_36 = arith.constant 3 : index
    %c0_37 = arith.constant 0 : index
    %31 = vector.load %arg6[%c0_35, %c3_36, %c0_37] : memref<22x22x128xf32, #tpu.memory_space<vmem>>, vector<16x16x128xf32>
    %c0_38 = arith.constant 0 : index
    %c3_39 = arith.constant 3 : index
    %c0_40 = arith.constant 0 : index
    %32 = vector.load %arg3[%c0_38, %c3_39, %c0_40] : memref<7x7x128xf32, #tpu.memory_space<vmem>>, vector<1x1x128xf32>
    %33 = vector.shape_cast %32 : vector<1x1x128xf32> to vector<128xf32>
    %34 = vector.shape_cast %33 : vector<128xf32> to vector<1x1x128xf32>
    %35 = vector.broadcast %34 : vector<1x1x128xf32> to vector<16x16x128xf32>
    %36 = arith.mulf %31, %35 : vector<16x16x128xf32>
    %37 = arith.addf %30, %36 : vector<16x16x128xf32>
    %c0_41 = arith.constant 0 : index
    %c4 = arith.constant 4 : index
    %c0_42 = arith.constant 0 : index
    %38 = vector.load %arg6[%c0_41, %c4, %c0_42] : memref<22x22x128xf32, #tpu.memory_space<vmem>>, vector<16x16x128xf32>
    %c0_43 = arith.constant 0 : index
    %c4_44 = arith.constant 4 : index
    %c0_45 = arith.constant 0 : index
    %39 = vector.load %arg3[%c0_43, %c4_44, %c0_45] : memref<7x7x128xf32, #tpu.memory_space<vmem>>, vector<1x1x128xf32>
    %40 = vector.shape_cast %39 : vector<1x1x128xf32> to vector<128xf32>
    %41 = vector.shape_cast %40 : vector<128xf32> to vector<1x1x128xf32>
    %42 = vector.broadcast %41 : vector<1x1x128xf32> to vector<16x16x128xf32>
    %43 = arith.mulf %38, %42 : vector<16x16x128xf32>
    %44 = arith.addf %37, %43 : vector<16x16x128xf32>
    %c0_46 = arith.constant 0 : index
    %c5 = arith.constant 5 : index
    %c0_47 = arith.constant 0 : index
    %45 = vector.load %arg6[%c0_46, %c5, %c0_47] : memref<22x22x128xf32, #tpu.memory_space<vmem>>, vector<16x16x128xf32>
    %c0_48 = arith.constant 0 : index
    %c5_49 = arith.constant 5 : index
    %c0_50 = arith.constant 0 : index
    %46 = vector.load %arg3[%c0_48, %c5_49, %c0_50] : memref<7x7x128xf32, #tpu.memory_space<vmem>>, vector<1x1x128xf32>
    %47 = vector.shape_cast %46 : vector<1x1x128xf32> to vector<128xf32>
    %48 = vector.shape_cast %47 : vector<128xf32> to vector<1x1x128xf32>
    %49 = vector.broadcast %48 : vector<1x1x128xf32> to vector<16x16x128xf32>
    %50 = arith.mulf %45, %49 : vector<16x16x128xf32>
    %51 = arith.addf %44, %50 : vector<16x16x128xf32>
    %c0_51 = arith.constant 0 : index
    %c6 = arith.constant 6 : index
    %c0_52 = arith.constant 0 : index
    %52 = vector.load %arg6[%c0_51, %c6, %c0_52] : memref<22x22x128xf32, #tpu.memory_space<vmem>>, vector<16x16x128xf32>
    %c0_53 = arith.constant 0 : index
    %c6_54 = arith.constant 6 : index
    %c0_55 = arith.constant 0 : index
    %53 = vector.load %arg3[%c0_53, %c6_54, %c0_55] : memref<7x7x128xf32, #tpu.memory_space<vmem>>, vector<1x1x128xf32>
    %54 = vector.shape_cast %53 : vector<1x1x128xf32> to vector<128xf32>
    %55 = vector.shape_cast %54 : vector<128xf32> to vector<1x1x128xf32>
    %56 = vector.broadcast %55 : vector<1x1x128xf32> to vector<16x16x128xf32>
    %57 = arith.mulf %52, %56 : vector<16x16x128xf32>
    %58 = arith.addf %51, %57 : vector<16x16x128xf32>
    %c0_56 = arith.constant 0 : index
    %c0_57 = arith.constant 0 : index
    %59 = vector.load %arg4[%c0_56, %c0_57] : memref<1x128xf32, #tpu.memory_space<vmem>>, vector<1x128xf32>
    %60 = vector.shape_cast %59 : vector<1x128xf32> to vector<128xf32>
    %61 = vector.shape_cast %60 : vector<128xf32> to vector<1x1x128xf32>
    %62 = vector.broadcast %61 : vector<1x1x128xf32> to vector<16x16x128xf32>
    %63 = arith.addf %58, %62 : vector<16x16x128xf32>
    %c0_58 = arith.constant 0 : index
    %c0_59 = arith.constant 0 : index
    %c0_60 = arith.constant 0 : index
    %c0_61 = arith.constant 0 : index
    %64 = vector.load %arg5[%c0_58, %c0_59, %c0_60, %c0_61] : memref<1x16x16x128xf32, #tpu.memory_space<vmem>>, vector<1x16x16x128xf32>
    %65 = vector.shape_cast %64 : vector<1x16x16x128xf32> to vector<16x16x128xf32>
    %66 = vector.shape_cast %63 : vector<16x16x128xf32> to vector<1x16x16x128xf32>
    tpu.vector_store %arg5[%c0_58, %c0_59, %c0_60, %c0_61], %66 {strides = array<i32>} : memref<1x16x16x128xf32, #tpu.memory_space<vmem>>, vector<1x16x16x128xf32>,
    %c1_62 = arith.constant 1 : index
    %c0_63 = arith.constant 0 : index
    %c0_64 = arith.constant 0 : index
    %67 = vector.load %arg6[%c1_62, %c0_63, %c0_64] : memref<22x22x128xf32, #tpu.memory_space<vmem>>, vector<16x16x128xf32>
    %c1_65 = arith.constant 1 : index
    %c0_66 = arith.constant 0 : index
    %c0_67 = arith.constant 0 : index
    %68 = vector.load %arg3[%c1_65, %c0_66, %c0_67] : memref<7x7x128xf32, #tpu.memory_space<vmem>>, vector<1x1x128xf32>
    %69 = vector.shape_cast %68 : vector<1x1x128xf32> to vector<128xf32>
    %70 = vector.shape_cast %69 : vector<128xf32> to vector<1x1x128xf32>
    %71 = vector.broadcast %70 : vector<1x1x128xf32> to vector<16x16x128xf32>
    %72 = arith.mulf %67, %71 : vector<16x16x128xf32>
    %c1_68 = arith.constant 1 : index
    %c1_69 = arith.constant 1 : index
    %c0_70 = arith.constant 0 : index
    %73 = vector.load %arg6[%c1_68, %c1_69, %c0_70] : memref<22x22x128xf32, #tpu.memory_space<vmem>>, vector<16x16x128xf32>
    %c1_71 = arith.constant 1 : index
    %c1_72 = arith.constant 1 : index
    %c0_73 = arith.constant 0 : index
    %74 = vector.load %arg3[%c1_71, %c1_72, %c0_73] : memref<7x7x128xf32, #tpu.memory_space<vmem>>, vector<1x1x128xf32>
    %75 = vector.shape_cast %74 : vector<1x1x128xf32> to vector<128xf32>
    %76 = vector.shape_cast %75 : vector<128xf32> to vector<1x1x128xf32>
    %77 = vector.broadcast %76 : vector<1x1x128xf32> to vector<16x16x128xf32>
    %78 = arith.mulf %73, %77 : vector<16x16x128xf32>
    %79 = arith.addf %72, %78 : vector<16x16x128xf32>
    %c1_74 = arith.constant 1 : index
    %c2_75 = arith.constant 2 : index
    %c0_76 = arith.constant 0 : index
    %80 = vector.load %arg6[%c1_74, %c2_75, %c0_76] : memref<22x22x128xf32, #tpu.memory_space<vmem>>, vector<16x16x128xf32>
    %c1_77 = arith.constant 1 : index
    %c2_78 = arith.constant 2 : index
    %c0_79 = arith.constant 0 : index
    %81 = vector.load %arg3[%c1_77, %c2_78, %c0_79] : memref<7x7x128xf32, #tpu.memory_space<vmem>>, vector<1x1x128xf32>
    %82 = vector.shape_cast %81 : vector<1x1x128xf32> to vector<128xf32>
    %83 = vector.shape_cast %82 : vector<128xf32> to vector<1x1x128xf32>
    %84 = vector.broadcast %83 : vector<1x1x128xf32> to vector<16x16x128xf32>
    %85 = arith.mulf %80, %84 : vector<16x16x128xf32>
    %86 = arith.addf %79, %85 : vector<16x16x128xf32>
    %c1_80 = arith.constant 1 : index
    %c3_81 = arith.constant 3 : index
    %c0_82 = arith.constant 0 : index
    %87 = vector.load %arg6[%c1_80, %c3_81, %c0_82] : memref<22x22x128xf32, #tpu.memory_space<vmem>>, vector<16x16x128xf32>
    %c1_83 = arith.constant 1 : index
    %c3_84 = arith.constant 3 : index
    %c0_85 = arith.constant 0 : index
    %88 = vector.load %arg3[%c1_83, %c3_84, %c0_85] : memref<7x7x128xf32, #tpu.memory_space<vmem>>, vector<1x1x128xf32>
    %89 = vector.shape_cast %88 : vector<1x1x128xf32> to vector<128xf32>
    %90 = vector.shape_cast %89 : vector<128xf32> to vector<1x1x128xf32>
    %91 = vector.broadcast %90 : vector<1x1x128xf32> to vector<16x16x128xf32>
    %92 = arith.mulf %87, %91 : vector<16x16x128xf32>
    %93 = arith.addf %86, %92 : vector<16x16x128xf32>
    %c1_86 = arith.constant 1 : index
    %c4_87 = arith.constant 4 : index
    %c0_88 = arith.constant 0 : index
    %94 = vector.load %arg6[%c1_86, %c4_87, %c0_88] : memref<22x22x128xf32, #tpu.memory_space<vmem>>, vector<16x16x128xf32>
    %c1_89 = arith.constant 1 : index
    %c4_90 = arith.constant 4 : index
    %c0_91 = arith.constant 0 : index
    %95 = vector.load %arg3[%c1_89, %c4_90, %c0_91] : memref<7x7x128xf32, #tpu.memory_space<vmem>>, vector<1x1x128xf32>
    %96 = vector.shape_cast %95 : vector<1x1x128xf32> to vector<128xf32>
    %97 = vector.shape_cast %96 : vector<128xf32> to vector<1x1x128xf32>
    %98 = vector.broadcast %97 : vector<1x1x128xf32> to vector<16x16x128xf32>
    %99 = arith.mulf %94, %98 : vector<16x16x128xf32>
    %100 = arith.addf %93, %99 : vector<16x16x128xf32>
    %c1_92 = arith.constant 1 : index
    %c5_93 = arith.constant 5 : index
    %c0_94 = arith.constant 0 : index
    %101 = vector.load %arg6[%c1_92, %c5_93, %c0_94] : memref<22x22x128xf32, #tpu.memory_space<vmem>>, vector<16x16x128xf32>
    %c1_95 = arith.constant 1 : index
    %c5_96 = arith.constant 5 : index
    %c0_97 = arith.constant 0 : index
    %102 = vector.load %arg3[%c1_95, %c5_96, %c0_97] : memref<7x7x128xf32, #tpu.memory_space<vmem>>, vector<1x1x128xf32>
    %103 = vector.shape_cast %102 : vector<1x1x128xf32> to vector<128xf32>
    %104 = vector.shape_cast %103 : vector<128xf32> to vector<1x1x128xf32>
    %105 = vector.broadcast %104 : vector<1x1x128xf32> to vector<16x16x128xf32>
    %106 = arith.mulf %101, %105 : vector<16x16x128xf32>
    %107 = arith.addf %100, %106 : vector<16x16x128xf32>
    %c1_98 = arith.constant 1 : index
    %c6_99 = arith.constant 6 : index
    %c0_100 = arith.constant 0 : index
    %108 = vector.load %arg6[%c1_98, %c6_99, %c0_100] : memref<22x22x128xf32, #tpu.memory_space<vmem>>, vector<16x16x128xf32>
    %c1_101 = arith.constant 1 : index
    %c6_102 = arith.constant 6 : index
    %c0_103 = arith.constant 0 : index
    %109 = vector.load %arg3[%c1_101, %c6_102, %c0_103] : memref<7x7x128xf32, #tpu.memory_space<vmem>>, vector<1x1x128xf32>
    %110 = vector.shape_cast %109 : vector<1x1x128xf32> to vector<128xf32>
    %111 = vector.shape_cast %110 : vector<128xf32> to vector<1x1x128xf32>
    %112 = vector.broadcast %111 : vector<1x1x128xf32> to vector<16x16x128xf32>
    %113 = arith.mulf %108, %112 : vector<16x16x128xf32>
    %114 = arith.addf %107, %113 : vector<16x16x128xf32>
    %c0_104 = arith.constant 0 : index
    %c0_105 = arith.constant 0 : index
    %c0_106 = arith.constant 0 : index
    %c0_107 = arith.constant 0 : index
    %115 = vector.load %arg5[%c0_104, %c0_105, %c0_106, %c0_107] : memref<1x16x16x128xf32, #tpu.memory_space<vmem>>, vector<1x16x16x128xf32>
    %116 = vector.shape_cast %115 : vector<1x16x16x128xf32> to vector<16x16x128xf32>
    %117 = arith.addf %116, %114 : vector<16x16x128xf32>
    %c0_108 = arith.constant 0 : index
    %c0_109 = arith.constant 0 : index
    %c0_110 = arith.constant 0 : index
    %c0_111 = arith.constant 0 : index
    %118 = vector.load %arg5[%c0_108, %c0_109, %c0_110, %c0_111] : memref<1x16x16x128xf32, #tpu.memory_space<vmem>>, vector<1x16x16x128xf32>
    %119 = vector.shape_cast %118 : vector<1x16x16x128xf32> to vector<16x16x128xf32>
    %120 = vector.shape_cast %117 : vector<16x16x128xf32> to vector<1x16x16x128xf32>
    tpu.vector_store %arg5[%c0_108, %c0_109, %c0_110, %c0_111], %120 {strides = array<i32>} : memref<1x16x16x128xf32, #tpu.memory_space<vmem>>, vector<1x16x16x128xf32>,
    %c2_112 = arith.constant 2 : index
    %c0_113 = arith.constant 0 : index
    %c0_114 = arith.constant 0 : index
    %121 = vector.load %arg6[%c2_112, %c0_113, %c0_114] : memref<22x22x128xf32, #tpu.memory_space<vmem>>, vector<16x16x128xf32>
    %c2_115 = arith.constant 2 : index
    %c0_116 = arith.constant 0 : index
    %c0_117 = arith.constant 0 : index
    %122 = vector.load %arg3[%c2_115, %c0_116, %c0_117] : memref<7x7x128xf32, #tpu.memory_space<vmem>>, vector<1x1x128xf32>
    %123 = vector.shape_cast %122 : vector<1x1x128xf32> to vector<128xf32>
    %124 = vector.shape_cast %123 : vector<128xf32> to vector<1x1x128xf32>
    %125 = vector.broadcast %124 : vector<1x1x128xf32> to vector<16x16x128xf32>
    %126 = arith.mulf %121, %125 : vector<16x16x128xf32>
    %c2_118 = arith.constant 2 : index
    %c1_119 = arith.constant 1 : index
    %c0_120 = arith.constant 0 : index
    %127 = vector.load %arg6[%c2_118, %c1_119, %c0_120] : memref<22x22x128xf32, #tpu.memory_space<vmem>>, vector<16x16x128xf32>
    %c2_121 = arith.constant 2 : index
    %c1_122 = arith.constant 1 : index
    %c0_123 = arith.constant 0 : index
    %128 = vector.load %arg3[%c2_121, %c1_122, %c0_123] : memref<7x7x128xf32, #tpu.memory_space<vmem>>, vector<1x1x128xf32>
    %129 = vector.shape_cast %128 : vector<1x1x128xf32> to vector<128xf32>
    %130 = vector.shape_cast %129 : vector<128xf32> to vector<1x1x128xf32>
    %131 = vector.broadcast %130 : vector<1x1x128xf32> to vector<16x16x128xf32>
    %132 = arith.mulf %127, %131 : vector<16x16x128xf32>
    %133 = arith.addf %126, %132 : vector<16x16x128xf32>
    %c2_124 = arith.constant 2 : index
    %c2_125 = arith.constant 2 : index
    %c0_126 = arith.constant 0 : index
    %134 = vector.load %arg6[%c2_124, %c2_125, %c0_126] : memref<22x22x128xf32, #tpu.memory_space<vmem>>, vector<16x16x128xf32>
    %c2_127 = arith.constant 2 : index
    %c2_128 = arith.constant 2 : index
    %c0_129 = arith.constant 0 : index
    %135 = vector.load %arg3[%c2_127, %c2_128, %c0_129] : memref<7x7x128xf32, #tpu.memory_space<vmem>>, vector<1x1x128xf32>
    %136 = vector.shape_cast %135 : vector<1x1x128xf32> to vector<128xf32>
    %137 = vector.shape_cast %136 : vector<128xf32> to vector<1x1x128xf32>
    %138 = vector.broadcast %137 : vector<1x1x128xf32> to vector<16x16x128xf32>
    %139 = arith.mulf %134, %138 : vector<16x16x128xf32>
    %140 = arith.addf %133, %139 : vector<16x16x128xf32>
    %c2_130 = arith.constant 2 : index
    %c3_131 = arith.constant 3 : index
    %c0_132 = arith.constant 0 : index
    %141 = vector.load %arg6[%c2_130, %c3_131, %c0_132] : memref<22x22x128xf32, #tpu.memory_space<vmem>>, vector<16x16x128xf32>
    %c2_133 = arith.constant 2 : index
    %c3_134 = arith.constant 3 : index
    %c0_135 = arith.constant 0 : index
    %142 = vector.load %arg3[%c2_133, %c3_134, %c0_135] : memref<7x7x128xf32, #tpu.memory_space<vmem>>, vector<1x1x128xf32>
    %143 = vector.shape_cast %142 : vector<1x1x128xf32> to vector<128xf32>
    %144 = vector.shape_cast %143 : vector<128xf32> to vector<1x1x128xf32>
    %145 = vector.broadcast %144 : vector<1x1x128xf32> to vector<16x16x128xf32>
    %146 = arith.mulf %141, %145 : vector<16x16x128xf32>
    %147 = arith.addf %140, %146 : vector<16x16x128xf32>
    %c2_136 = arith.constant 2 : index
    %c4_137 = arith.constant 4 : index
    %c0_138 = arith.constant 0 : index
    %148 = vector.load %arg6[%c2_136, %c4_137, %c0_138] : memref<22x22x128xf32, #tpu.memory_space<vmem>>, vector<16x16x128xf32>
    %c2_139 = arith.constant 2 : index
    %c4_140 = arith.constant 4 : index
    %c0_141 = arith.constant 0 : index
    %149 = vector.load %arg3[%c2_139, %c4_140, %c0_141] : memref<7x7x128xf32, #tpu.memory_space<vmem>>, vector<1x1x128xf32>
    %150 = vector.shape_cast %149 : vector<1x1x128xf32> to vector<128xf32>
    %151 = vector.shape_cast %150 : vector<128xf32> to vector<1x1x128xf32>
    %152 = vector.broadcast %151 : vector<1x1x128xf32> to vector<16x16x128xf32>
    %153 = arith.mulf %148, %152 : vector<16x16x128xf32>
    %154 = arith.addf %147, %153 : vector<16x16x128xf32>
    %c2_142 = arith.constant 2 : index
    %c5_143 = arith.constant 5 : index
    %c0_144 = arith.constant 0 : index
    %155 = vector.load %arg6[%c2_142, %c5_143, %c0_144] : memref<22x22x128xf32, #tpu.memory_space<vmem>>, vector<16x16x128xf32>
    %c2_145 = arith.constant 2 : index
    %c5_146 = arith.constant 5 : index
    %c0_147 = arith.constant 0 : index
    %156 = vector.load %arg3[%c2_145, %c5_146, %c0_147] : memref<7x7x128xf32, #tpu.memory_space<vmem>>, vector<1x1x128xf32>
    %157 = vector.shape_cast %156 : vector<1x1x128xf32> to vector<128xf32>
    %158 = vector.shape_cast %157 : vector<128xf32> to vector<1x1x128xf32>
    %159 = vector.broadcast %158 : vector<1x1x128xf32> to vector<16x16x128xf32>
    %160 = arith.mulf %155, %159 : vector<16x16x128xf32>
    %161 = arith.addf %154, %160 : vector<16x16x128xf32>
    %c2_148 = arith.constant 2 : index
    %c6_149 = arith.constant 6 : index
    %c0_150 = arith.constant 0 : index
    %162 = vector.load %arg6[%c2_148, %c6_149, %c0_150] : memref<22x22x128xf32, #tpu.memory_space<vmem>>, vector<16x16x128xf32>
    %c2_151 = arith.constant 2 : index
    %c6_152 = arith.constant 6 : index
    %c0_153 = arith.constant 0 : index
    %163 = vector.load %arg3[%c2_151, %c6_152, %c0_153] : memref<7x7x128xf32, #tpu.memory_space<vmem>>, vector<1x1x128xf32>
    %164 = vector.shape_cast %163 : vector<1x1x128xf32> to vector<128xf32>
    %165 = vector.shape_cast %164 : vector<128xf32> to vector<1x1x128xf32>
    %166 = vector.broadcast %165 : vector<1x1x128xf32> to vector<16x16x128xf32>
    %167 = arith.mulf %162, %166 : vector<16x16x128xf32>
    %168 = arith.addf %161, %167 : vector<16x16x128xf32>
    %c0_154 = arith.constant 0 : index
    %c0_155 = arith.constant 0 : index
    %c0_156 = arith.constant 0 : index
    %c0_157 = arith.constant 0 : index
    %169 = vector.load %arg5[%c0_154, %c0_155, %c0_156, %c0_157] : memref<1x16x16x128xf32, #tpu.memory_space<vmem>>, vector<1x16x16x128xf32>
    %170 = vector.shape_cast %169 : vector<1x16x16x128xf32> to vector<16x16x128xf32>
    %171 = arith.addf %170, %168 : vector<16x16x128xf32>
    %c0_158 = arith.constant 0 : index
    %c0_159 = arith.constant 0 : index
    %c0_160 = arith.constant 0 : index
    %c0_161 = arith.constant 0 : index
    %172 = vector.load %arg5[%c0_158, %c0_159, %c0_160, %c0_161] : memref<1x16x16x128xf32, #tpu.memory_space<vmem>>, vector<1x16x16x128xf32>
    %173 = vector.shape_cast %172 : vector<1x16x16x128xf32> to vector<16x16x128xf32>
    %174 = vector.shape_cast %171 : vector<16x16x128xf32> to vector<1x16x16x128xf32>
    tpu.vector_store %arg5[%c0_158, %c0_159, %c0_160, %c0_161], %174 {strides = array<i32>} : memref<1x16x16x128xf32, #tpu.memory_space<vmem>>, vector<1x16x16x128xf32>,
    %c3_162 = arith.constant 3 : index
    %c0_163 = arith.constant 0 : index
    %c0_164 = arith.constant 0 : index
    %175 = vector.load %arg6[%c3_162, %c0_163, %c0_164] : memref<22x22x128xf32, #tpu.memory_space<vmem>>, vector<16x16x128xf32>
    %c3_165 = arith.constant 3 : index
    %c0_166 = arith.constant 0 : index
    %c0_167 = arith.constant 0 : index
    %176 = vector.load %arg3[%c3_165, %c0_166, %c0_167] : memref<7x7x128xf32, #tpu.memory_space<vmem>>, vector<1x1x128xf32>
    %177 = vector.shape_cast %176 : vector<1x1x128xf32> to vector<128xf32>
    %178 = vector.shape_cast %177 : vector<128xf32> to vector<1x1x128xf32>
    %179 = vector.broadcast %178 : vector<1x1x128xf32> to vector<16x16x128xf32>
    %180 = arith.mulf %175, %179 : vector<16x16x128xf32>
    %c3_168 = arith.constant 3 : index
    %c1_169 = arith.constant 1 : index
    %c0_170 = arith.constant 0 : index
    %181 = vector.load %arg6[%c3_168, %c1_169, %c0_170] : memref<22x22x128xf32, #tpu.memory_space<vmem>>, vector<16x16x128xf32>
    %c3_171 = arith.constant 3 : index
    %c1_172 = arith.constant 1 : index
    %c0_173 = arith.constant 0 : index
    %182 = vector.load %arg3[%c3_171, %c1_172, %c0_173] : memref<7x7x128xf32, #tpu.memory_space<vmem>>, vector<1x1x128xf32>
    %183 = vector.shape_cast %182 : vector<1x1x128xf32> to vector<128xf32>
    %184 = vector.shape_cast %183 : vector<128xf32> to vector<1x1x128xf32>
    %185 = vector.broadcast %184 : vector<1x1x128xf32> to vector<16x16x128xf32>
    %186 = arith.mulf %181, %185 : vector<16x16x128xf32>
    %187 = arith.addf %180, %186 : vector<16x16x128xf32>
    %c3_174 = arith.constant 3 : index
    %c2_175 = arith.constant 2 : index
    %c0_176 = arith.constant 0 : index
    %188 = vector.load %arg6[%c3_174, %c2_175, %c0_176] : memref<22x22x128xf32, #tpu.memory_space<vmem>>, vector<16x16x128xf32>
    %c3_177 = arith.constant 3 : index
    %c2_178 = arith.constant 2 : index
    %c0_179 = arith.constant 0 : index
    %189 = vector.load %arg3[%c3_177, %c2_178, %c0_179] : memref<7x7x128xf32, #tpu.memory_space<vmem>>, vector<1x1x128xf32>
    %190 = vector.shape_cast %189 : vector<1x1x128xf32> to vector<128xf32>
    %191 = vector.shape_cast %190 : vector<128xf32> to vector<1x1x128xf32>
    %192 = vector.broadcast %191 : vector<1x1x128xf32> to vector<16x16x128xf32>
    %193 = arith.mulf %188, %192 : vector<16x16x128xf32>
    %194 = arith.addf %187, %193 : vector<16x16x128xf32>
    %c3_180 = arith.constant 3 : index
    %c3_181 = arith.constant 3 : index
    %c0_182 = arith.constant 0 : index
    %195 = vector.load %arg6[%c3_180, %c3_181, %c0_182] : memref<22x22x128xf32, #tpu.memory_space<vmem>>, vector<16x16x128xf32>
    %c3_183 = arith.constant 3 : index
    %c3_184 = arith.constant 3 : index
    %c0_185 = arith.constant 0 : index
    %196 = vector.load %arg3[%c3_183, %c3_184, %c0_185] : memref<7x7x128xf32, #tpu.memory_space<vmem>>, vector<1x1x128xf32>
    %197 = vector.shape_cast %196 : vector<1x1x128xf32> to vector<128xf32>
    %198 = vector.shape_cast %197 : vector<128xf32> to vector<1x1x128xf32>
    %199 = vector.broadcast %198 : vector<1x1x128xf32> to vector<16x16x128xf32>
    %200 = arith.mulf %195, %199 : vector<16x16x128xf32>
    %201 = arith.addf %194, %200 : vector<16x16x128xf32>
    %c3_186 = arith.constant 3 : index
    %c4_187 = arith.constant 4 : index
    %c0_188 = arith.constant 0 : index
    %202 = vector.load %arg6[%c3_186, %c4_187, %c0_188] : memref<22x22x128xf32, #tpu.memory_space<vmem>>, vector<16x16x128xf32>
    %c3_189 = arith.constant 3 : index
    %c4_190 = arith.constant 4 : index
    %c0_191 = arith.constant 0 : index
    %203 = vector.load %arg3[%c3_189, %c4_190, %c0_191] : memref<7x7x128xf32, #tpu.memory_space<vmem>>, vector<1x1x128xf32>
    %204 = vector.shape_cast %203 : vector<1x1x128xf32> to vector<128xf32>
    %205 = vector.shape_cast %204 : vector<128xf32> to vector<1x1x128xf32>
    %206 = vector.broadcast %205 : vector<1x1x128xf32> to vector<16x16x128xf32>
    %207 = arith.mulf %202, %206 : vector<16x16x128xf32>
    %208 = arith.addf %201, %207 : vector<16x16x128xf32>
    %c3_192 = arith.constant 3 : index
    %c5_193 = arith.constant 5 : index
    %c0_194 = arith.constant 0 : index
    %209 = vector.load %arg6[%c3_192, %c5_193, %c0_194] : memref<22x22x128xf32, #tpu.memory_space<vmem>>, vector<16x16x128xf32>
    %c3_195 = arith.constant 3 : index
    %c5_196 = arith.constant 5 : index
    %c0_197 = arith.constant 0 : index
    %210 = vector.load %arg3[%c3_195, %c5_196, %c0_197] : memref<7x7x128xf32, #tpu.memory_space<vmem>>, vector<1x1x128xf32>
    %211 = vector.shape_cast %210 : vector<1x1x128xf32> to vector<128xf32>
    %212 = vector.shape_cast %211 : vector<128xf32> to vector<1x1x128xf32>
    %213 = vector.broadcast %212 : vector<1x1x128xf32> to vector<16x16x128xf32>
    %214 = arith.mulf %209, %213 : vector<16x16x128xf32>
    %215 = arith.addf %208, %214 : vector<16x16x128xf32>
    %c3_198 = arith.constant 3 : index
    %c6_199 = arith.constant 6 : index
    %c0_200 = arith.constant 0 : index
    %216 = vector.load %arg6[%c3_198, %c6_199, %c0_200] : memref<22x22x128xf32, #tpu.memory_space<vmem>>, vector<16x16x128xf32>
    %c3_201 = arith.constant 3 : index
    %c6_202 = arith.constant 6 : index
    %c0_203 = arith.constant 0 : index
    %217 = vector.load %arg3[%c3_201, %c6_202, %c0_203] : memref<7x7x128xf32, #tpu.memory_space<vmem>>, vector<1x1x128xf32>
    %218 = vector.shape_cast %217 : vector<1x1x128xf32> to vector<128xf32>
    %219 = vector.shape_cast %218 : vector<128xf32> to vector<1x1x128xf32>
    %220 = vector.broadcast %219 : vector<1x1x128xf32> to vector<16x16x128xf32>
    %221 = arith.mulf %216, %220 : vector<16x16x128xf32>
    %222 = arith.addf %215, %221 : vector<16x16x128xf32>
    %c0_204 = arith.constant 0 : index
    %c0_205 = arith.constant 0 : index
    %c0_206 = arith.constant 0 : index
    %c0_207 = arith.constant 0 : index
    %223 = vector.load %arg5[%c0_204, %c0_205, %c0_206, %c0_207] : memref<1x16x16x128xf32, #tpu.memory_space<vmem>>, vector<1x16x16x128xf32>
    %224 = vector.shape_cast %223 : vector<1x16x16x128xf32> to vector<16x16x128xf32>
    %225 = arith.addf %224, %222 : vector<16x16x128xf32>
    %c0_208 = arith.constant 0 : index
    %c0_209 = arith.constant 0 : index
    %c0_210 = arith.constant 0 : index
    %c0_211 = arith.constant 0 : index
    %226 = vector.load %arg5[%c0_208, %c0_209, %c0_210, %c0_211] : memref<1x16x16x128xf32, #tpu.memory_space<vmem>>, vector<1x16x16x128xf32>
    %227 = vector.shape_cast %226 : vector<1x16x16x128xf32> to vector<16x16x128xf32>
    %228 = vector.shape_cast %225 : vector<16x16x128xf32> to vector<1x16x16x128xf32>
    tpu.vector_store %arg5[%c0_208, %c0_209, %c0_210, %c0_211], %228 {strides = array<i32>} : memref<1x16x16x128xf32, #tpu.memory_space<vmem>>, vector<1x16x16x128xf32>,
    %c4_212 = arith.constant 4 : index
    %c0_213 = arith.constant 0 : index
    %c0_214 = arith.constant 0 : index
    %229 = vector.load %arg6[%c4_212, %c0_213, %c0_214] : memref<22x22x128xf32, #tpu.memory_space<vmem>>, vector<16x16x128xf32>
    %c4_215 = arith.constant 4 : index
    %c0_216 = arith.constant 0 : index
    %c0_217 = arith.constant 0 : index
    %230 = vector.load %arg3[%c4_215, %c0_216, %c0_217] : memref<7x7x128xf32, #tpu.memory_space<vmem>>, vector<1x1x128xf32>
    %231 = vector.shape_cast %230 : vector<1x1x128xf32> to vector<128xf32>
    %232 = vector.shape_cast %231 : vector<128xf32> to vector<1x1x128xf32>
    %233 = vector.broadcast %232 : vector<1x1x128xf32> to vector<16x16x128xf32>
    %234 = arith.mulf %229, %233 : vector<16x16x128xf32>
    %c4_218 = arith.constant 4 : index
    %c1_219 = arith.constant 1 : index
    %c0_220 = arith.constant 0 : index
    %235 = vector.load %arg6[%c4_218, %c1_219, %c0_220] : memref<22x22x128xf32, #tpu.memory_space<vmem>>, vector<16x16x128xf32>
    %c4_221 = arith.constant 4 : index
    %c1_222 = arith.constant 1 : index
    %c0_223 = arith.constant 0 : index
    %236 = vector.load %arg3[%c4_221, %c1_222, %c0_223] : memref<7x7x128xf32, #tpu.memory_space<vmem>>, vector<1x1x128xf32>
    %237 = vector.shape_cast %236 : vector<1x1x128xf32> to vector<128xf32>
    %238 = vector.shape_cast %237 : vector<128xf32> to vector<1x1x128xf32>
    %239 = vector.broadcast %238 : vector<1x1x128xf32> to vector<16x16x128xf32>
    %240 = arith.mulf %235, %239 : vector<16x16x128xf32>
    %241 = arith.addf %234, %240 : vector<16x16x128xf32>
    %c4_224 = arith.constant 4 : index
    %c2_225 = arith.constant 2 : index
    %c0_226 = arith.constant 0 : index
    %242 = vector.load %arg6[%c4_224, %c2_225, %c0_226] : memref<22x22x128xf32, #tpu.memory_space<vmem>>, vector<16x16x128xf32>
    %c4_227 = arith.constant 4 : index
    %c2_228 = arith.constant 2 : index
    %c0_229 = arith.constant 0 : index
    %243 = vector.load %arg3[%c4_227, %c2_228, %c0_229] : memref<7x7x128xf32, #tpu.memory_space<vmem>>, vector<1x1x128xf32>
    %244 = vector.shape_cast %243 : vector<1x1x128xf32> to vector<128xf32>
    %245 = vector.shape_cast %244 : vector<128xf32> to vector<1x1x128xf32>
    %246 = vector.broadcast %245 : vector<1x1x128xf32> to vector<16x16x128xf32>
    %247 = arith.mulf %242, %246 : vector<16x16x128xf32>
    %248 = arith.addf %241, %247 : vector<16x16x128xf32>
    %c4_230 = arith.constant 4 : index
    %c3_231 = arith.constant 3 : index
    %c0_232 = arith.constant 0 : index
    %249 = vector.load %arg6[%c4_230, %c3_231, %c0_232] : memref<22x22x128xf32, #tpu.memory_space<vmem>>, vector<16x16x128xf32>
    %c4_233 = arith.constant 4 : index
    %c3_234 = arith.constant 3 : index
    %c0_235 = arith.constant 0 : index
    %250 = vector.load %arg3[%c4_233, %c3_234, %c0_235] : memref<7x7x128xf32, #tpu.memory_space<vmem>>, vector<1x1x128xf32>
    %251 = vector.shape_cast %250 : vector<1x1x128xf32> to vector<128xf32>
    %252 = vector.shape_cast %251 : vector<128xf32> to vector<1x1x128xf32>
    %253 = vector.broadcast %252 : vector<1x1x128xf32> to vector<16x16x128xf32>
    %254 = arith.mulf %249, %253 : vector<16x16x128xf32>
    %255 = arith.addf %248, %254 : vector<16x16x128xf32>
    %c4_236 = arith.constant 4 : index
    %c4_237 = arith.constant 4 : index
    %c0_238 = arith.constant 0 : index
    %256 = vector.load %arg6[%c4_236, %c4_237, %c0_238] : memref<22x22x128xf32, #tpu.memory_space<vmem>>, vector<16x16x128xf32>
    %c4_239 = arith.constant 4 : index
    %c4_240 = arith.constant 4 : index
    %c0_241 = arith.constant 0 : index
    %257 = vector.load %arg3[%c4_239, %c4_240, %c0_241] : memref<7x7x128xf32, #tpu.memory_space<vmem>>, vector<1x1x128xf32>
    %258 = vector.shape_cast %257 : vector<1x1x128xf32> to vector<128xf32>
    %259 = vector.shape_cast %258 : vector<128xf32> to vector<1x1x128xf32>
    %260 = vector.broadcast %259 : vector<1x1x128xf32> to vector<16x16x128xf32>
    %261 = arith.mulf %256, %260 : vector<16x16x128xf32>
    %262 = arith.addf %255, %261 : vector<16x16x128xf32>
    %c4_242 = arith.constant 4 : index
    %c5_243 = arith.constant 5 : index
    %c0_244 = arith.constant 0 : index
    %263 = vector.load %arg6[%c4_242, %c5_243, %c0_244] : memref<22x22x128xf32, #tpu.memory_space<vmem>>, vector<16x16x128xf32>
    %c4_245 = arith.constant 4 : index
    %c5_246 = arith.constant 5 : index
    %c0_247 = arith.constant 0 : index
    %264 = vector.load %arg3[%c4_245, %c5_246, %c0_247] : memref<7x7x128xf32, #tpu.memory_space<vmem>>, vector<1x1x128xf32>
    %265 = vector.shape_cast %264 : vector<1x1x128xf32> to vector<128xf32>
    %266 = vector.shape_cast %265 : vector<128xf32> to vector<1x1x128xf32>
    %267 = vector.broadcast %266 : vector<1x1x128xf32> to vector<16x16x128xf32>
    %268 = arith.mulf %263, %267 : vector<16x16x128xf32>
    %269 = arith.addf %262, %268 : vector<16x16x128xf32>
    %c4_248 = arith.constant 4 : index
    %c6_249 = arith.constant 6 : index
    %c0_250 = arith.constant 0 : index
    %270 = vector.load %arg6[%c4_248, %c6_249, %c0_250] : memref<22x22x128xf32, #tpu.memory_space<vmem>>, vector<16x16x128xf32>
    %c4_251 = arith.constant 4 : index
    %c6_252 = arith.constant 6 : index
    %c0_253 = arith.constant 0 : index
    %271 = vector.load %arg3[%c4_251, %c6_252, %c0_253] : memref<7x7x128xf32, #tpu.memory_space<vmem>>, vector<1x1x128xf32>
    %272 = vector.shape_cast %271 : vector<1x1x128xf32> to vector<128xf32>
    %273 = vector.shape_cast %272 : vector<128xf32> to vector<1x1x128xf32>
    %274 = vector.broadcast %273 : vector<1x1x128xf32> to vector<16x16x128xf32>
    %275 = arith.mulf %270, %274 : vector<16x16x128xf32>
    %276 = arith.addf %269, %275 : vector<16x16x128xf32>
    %c0_254 = arith.constant 0 : index
    %c0_255 = arith.constant 0 : index
    %c0_256 = arith.constant 0 : index
    %c0_257 = arith.constant 0 : index
    %277 = vector.load %arg5[%c0_254, %c0_255, %c0_256, %c0_257] : memref<1x16x16x128xf32, #tpu.memory_space<vmem>>, vector<1x16x16x128xf32>
    %278 = vector.shape_cast %277 : vector<1x16x16x128xf32> to vector<16x16x128xf32>
    %279 = arith.addf %278, %276 : vector<16x16x128xf32>
    %c0_258 = arith.constant 0 : index
    %c0_259 = arith.constant 0 : index
    %c0_260 = arith.constant 0 : index
    %c0_261 = arith.constant 0 : index
    %280 = vector.load %arg5[%c0_258, %c0_259, %c0_260, %c0_261] : memref<1x16x16x128xf32, #tpu.memory_space<vmem>>, vector<1x16x16x128xf32>
    %281 = vector.shape_cast %280 : vector<1x16x16x128xf32> to vector<16x16x128xf32>
    %282 = vector.shape_cast %279 : vector<16x16x128xf32> to vector<1x16x16x128xf32>
    tpu.vector_store %arg5[%c0_258, %c0_259, %c0_260, %c0_261], %282 {strides = array<i32>} : memref<1x16x16x128xf32, #tpu.memory_space<vmem>>, vector<1x16x16x128xf32>,
    %c5_262 = arith.constant 5 : index
    %c0_263 = arith.constant 0 : index
    %c0_264 = arith.constant 0 : index
    %283 = vector.load %arg6[%c5_262, %c0_263, %c0_264] : memref<22x22x128xf32, #tpu.memory_space<vmem>>, vector<16x16x128xf32>
    %c5_265 = arith.constant 5 : index
    %c0_266 = arith.constant 0 : index
    %c0_267 = arith.constant 0 : index
    %284 = vector.load %arg3[%c5_265, %c0_266, %c0_267] : memref<7x7x128xf32, #tpu.memory_space<vmem>>, vector<1x1x128xf32>
    %285 = vector.shape_cast %284 : vector<1x1x128xf32> to vector<128xf32>
    %286 = vector.shape_cast %285 : vector<128xf32> to vector<1x1x128xf32>
    %287 = vector.broadcast %286 : vector<1x1x128xf32> to vector<16x16x128xf32>
    %288 = arith.mulf %283, %287 : vector<16x16x128xf32>
    %c5_268 = arith.constant 5 : index
    %c1_269 = arith.constant 1 : index
    %c0_270 = arith.constant 0 : index
    %289 = vector.load %arg6[%c5_268, %c1_269, %c0_270] : memref<22x22x128xf32, #tpu.memory_space<vmem>>, vector<16x16x128xf32>
    %c5_271 = arith.constant 5 : index
    %c1_272 = arith.constant 1 : index
    %c0_273 = arith.constant 0 : index
    %290 = vector.load %arg3[%c5_271, %c1_272, %c0_273] : memref<7x7x128xf32, #tpu.memory_space<vmem>>, vector<1x1x128xf32>
    %291 = vector.shape_cast %290 : vector<1x1x128xf32> to vector<128xf32>
    %292 = vector.shape_cast %291 : vector<128xf32> to vector<1x1x128xf32>
    %293 = vector.broadcast %292 : vector<1x1x128xf32> to vector<16x16x128xf32>
    %294 = arith.mulf %289, %293 : vector<16x16x128xf32>
    %295 = arith.addf %288, %294 : vector<16x16x128xf32>
    %c5_274 = arith.constant 5 : index
    %c2_275 = arith.constant 2 : index
    %c0_276 = arith.constant 0 : index
    %296 = vector.load %arg6[%c5_274, %c2_275, %c0_276] : memref<22x22x128xf32, #tpu.memory_space<vmem>>, vector<16x16x128xf32>
    %c5_277 = arith.constant 5 : index
    %c2_278 = arith.constant 2 : index
    %c0_279 = arith.constant 0 : index
    %297 = vector.load %arg3[%c5_277, %c2_278, %c0_279] : memref<7x7x128xf32, #tpu.memory_space<vmem>>, vector<1x1x128xf32>
    %298 = vector.shape_cast %297 : vector<1x1x128xf32> to vector<128xf32>
    %299 = vector.shape_cast %298 : vector<128xf32> to vector<1x1x128xf32>
    %300 = vector.broadcast %299 : vector<1x1x128xf32> to vector<16x16x128xf32>
    %301 = arith.mulf %296, %300 : vector<16x16x128xf32>
    %302 = arith.addf %295, %301 : vector<16x16x128xf32>
    %c5_280 = arith.constant 5 : index
    %c3_281 = arith.constant 3 : index
    %c0_282 = arith.constant 0 : index
    %303 = vector.load %arg6[%c5_280, %c3_281, %c0_282] : memref<22x22x128xf32, #tpu.memory_space<vmem>>, vector<16x16x128xf32>
    %c5_283 = arith.constant 5 : index
    %c3_284 = arith.constant 3 : index
    %c0_285 = arith.constant 0 : index
    %304 = vector.load %arg3[%c5_283, %c3_284, %c0_285] : memref<7x7x128xf32, #tpu.memory_space<vmem>>, vector<1x1x128xf32>
    %305 = vector.shape_cast %304 : vector<1x1x128xf32> to vector<128xf32>
    %306 = vector.shape_cast %305 : vector<128xf32> to vector<1x1x128xf32>
    %307 = vector.broadcast %306 : vector<1x1x128xf32> to vector<16x16x128xf32>
    %308 = arith.mulf %303, %307 : vector<16x16x128xf32>
    %309 = arith.addf %302, %308 : vector<16x16x128xf32>
    %c5_286 = arith.constant 5 : index
    %c4_287 = arith.constant 4 : index
    %c0_288 = arith.constant 0 : index
    %310 = vector.load %arg6[%c5_286, %c4_287, %c0_288] : memref<22x22x128xf32, #tpu.memory_space<vmem>>, vector<16x16x128xf32>
    %c5_289 = arith.constant 5 : index
    %c4_290 = arith.constant 4 : index
    %c0_291 = arith.constant 0 : index
    %311 = vector.load %arg3[%c5_289, %c4_290, %c0_291] : memref<7x7x128xf32, #tpu.memory_space<vmem>>, vector<1x1x128xf32>
    %312 = vector.shape_cast %311 : vector<1x1x128xf32> to vector<128xf32>
    %313 = vector.shape_cast %312 : vector<128xf32> to vector<1x1x128xf32>
    %314 = vector.broadcast %313 : vector<1x1x128xf32> to vector<16x16x128xf32>
    %315 = arith.mulf %310, %314 : vector<16x16x128xf32>
    %316 = arith.addf %309, %315 : vector<16x16x128xf32>
    %c5_292 = arith.constant 5 : index
    %c5_293 = arith.constant 5 : index
    %c0_294 = arith.constant 0 : index
    %317 = vector.load %arg6[%c5_292, %c5_293, %c0_294] : memref<22x22x128xf32, #tpu.memory_space<vmem>>, vector<16x16x128xf32>
    %c5_295 = arith.constant 5 : index
    %c5_296 = arith.constant 5 : index
    %c0_297 = arith.constant 0 : index
    %318 = vector.load %arg3[%c5_295, %c5_296, %c0_297] : memref<7x7x128xf32, #tpu.memory_space<vmem>>, vector<1x1x128xf32>
    %319 = vector.shape_cast %318 : vector<1x1x128xf32> to vector<128xf32>
    %320 = vector.shape_cast %319 : vector<128xf32> to vector<1x1x128xf32>
    %321 = vector.broadcast %320 : vector<1x1x128xf32> to vector<16x16x128xf32>
    %322 = arith.mulf %317, %321 : vector<16x16x128xf32>
    %323 = arith.addf %316, %322 : vector<16x16x128xf32>
    %c5_298 = arith.constant 5 : index
    %c6_299 = arith.constant 6 : index
    %c0_300 = arith.constant 0 : index
    %324 = vector.load %arg6[%c5_298, %c6_299, %c0_300] : memref<22x22x128xf32, #tpu.memory_space<vmem>>, vector<16x16x128xf32>
    %c5_301 = arith.constant 5 : index
    %c6_302 = arith.constant 6 : index
    %c0_303 = arith.constant 0 : index
    %325 = vector.load %arg3[%c5_301, %c6_302, %c0_303] : memref<7x7x128xf32, #tpu.memory_space<vmem>>, vector<1x1x128xf32>
    %326 = vector.shape_cast %325 : vector<1x1x128xf32> to vector<128xf32>
    %327 = vector.shape_cast %326 : vector<128xf32> to vector<1x1x128xf32>
    %328 = vector.broadcast %327 : vector<1x1x128xf32> to vector<16x16x128xf32>
    %329 = arith.mulf %324, %328 : vector<16x16x128xf32>
    %330 = arith.addf %323, %329 : vector<16x16x128xf32>
    %c0_304 = arith.constant 0 : index
    %c0_305 = arith.constant 0 : index
    %c0_306 = arith.constant 0 : index
    %c0_307 = arith.constant 0 : index
    %331 = vector.load %arg5[%c0_304, %c0_305, %c0_306, %c0_307] : memref<1x16x16x128xf32, #tpu.memory_space<vmem>>, vector<1x16x16x128xf32>
    %332 = vector.shape_cast %331 : vector<1x16x16x128xf32> to vector<16x16x128xf32>
    %333 = arith.addf %332, %330 : vector<16x16x128xf32>
    %c0_308 = arith.constant 0 : index
    %c0_309 = arith.constant 0 : index
    %c0_310 = arith.constant 0 : index
    %c0_311 = arith.constant 0 : index
    %334 = vector.load %arg5[%c0_308, %c0_309, %c0_310, %c0_311] : memref<1x16x16x128xf32, #tpu.memory_space<vmem>>, vector<1x16x16x128xf32>
    %335 = vector.shape_cast %334 : vector<1x16x16x128xf32> to vector<16x16x128xf32>
    %336 = vector.shape_cast %333 : vector<16x16x128xf32> to vector<1x16x16x128xf32>
    tpu.vector_store %arg5[%c0_308, %c0_309, %c0_310, %c0_311], %336 {strides = array<i32>} : memref<1x16x16x128xf32, #tpu.memory_space<vmem>>, vector<1x16x16x128xf32>,
    %c6_312 = arith.constant 6 : index
    %c0_313 = arith.constant 0 : index
    %c0_314 = arith.constant 0 : index
    %337 = vector.load %arg6[%c6_312, %c0_313, %c0_314] : memref<22x22x128xf32, #tpu.memory_space<vmem>>, vector<16x16x128xf32>
    %c6_315 = arith.constant 6 : index
    %c0_316 = arith.constant 0 : index
    %c0_317 = arith.constant 0 : index
    %338 = vector.load %arg3[%c6_315, %c0_316, %c0_317] : memref<7x7x128xf32, #tpu.memory_space<vmem>>, vector<1x1x128xf32>
    %339 = vector.shape_cast %338 : vector<1x1x128xf32> to vector<128xf32>
    %340 = vector.shape_cast %339 : vector<128xf32> to vector<1x1x128xf32>
    %341 = vector.broadcast %340 : vector<1x1x128xf32> to vector<16x16x128xf32>
    %342 = arith.mulf %337, %341 : vector<16x16x128xf32>
    %c6_318 = arith.constant 6 : index
    %c1_319 = arith.constant 1 : index
    %c0_320 = arith.constant 0 : index
    %343 = vector.load %arg6[%c6_318, %c1_319, %c0_320] : memref<22x22x128xf32, #tpu.memory_space<vmem>>, vector<16x16x128xf32>
    %c6_321 = arith.constant 6 : index
    %c1_322 = arith.constant 1 : index
    %c0_323 = arith.constant 0 : index
    %344 = vector.load %arg3[%c6_321, %c1_322, %c0_323] : memref<7x7x128xf32, #tpu.memory_space<vmem>>, vector<1x1x128xf32>
    %345 = vector.shape_cast %344 : vector<1x1x128xf32> to vector<128xf32>
    %346 = vector.shape_cast %345 : vector<128xf32> to vector<1x1x128xf32>
    %347 = vector.broadcast %346 : vector<1x1x128xf32> to vector<16x16x128xf32>
    %348 = arith.mulf %343, %347 : vector<16x16x128xf32>
    %349 = arith.addf %342, %348 : vector<16x16x128xf32>
    %c6_324 = arith.constant 6 : index
    %c2_325 = arith.constant 2 : index
    %c0_326 = arith.constant 0 : index
    %350 = vector.load %arg6[%c6_324, %c2_325, %c0_326] : memref<22x22x128xf32, #tpu.memory_space<vmem>>, vector<16x16x128xf32>
    %c6_327 = arith.constant 6 : index
    %c2_328 = arith.constant 2 : index
    %c0_329 = arith.constant 0 : index
    %351 = vector.load %arg3[%c6_327, %c2_328, %c0_329] : memref<7x7x128xf32, #tpu.memory_space<vmem>>, vector<1x1x128xf32>
    %352 = vector.shape_cast %351 : vector<1x1x128xf32> to vector<128xf32>
    %353 = vector.shape_cast %352 : vector<128xf32> to vector<1x1x128xf32>
    %354 = vector.broadcast %353 : vector<1x1x128xf32> to vector<16x16x128xf32>
    %355 = arith.mulf %350, %354 : vector<16x16x128xf32>
    %356 = arith.addf %349, %355 : vector<16x16x128xf32>
    %c6_330 = arith.constant 6 : index
    %c3_331 = arith.constant 3 : index
    %c0_332 = arith.constant 0 : index
    %357 = vector.load %arg6[%c6_330, %c3_331, %c0_332] : memref<22x22x128xf32, #tpu.memory_space<vmem>>, vector<16x16x128xf32>
    %c6_333 = arith.constant 6 : index
    %c3_334 = arith.constant 3 : index
    %c0_335 = arith.constant 0 : index
    %358 = vector.load %arg3[%c6_333, %c3_334, %c0_335] : memref<7x7x128xf32, #tpu.memory_space<vmem>>, vector<1x1x128xf32>
    %359 = vector.shape_cast %358 : vector<1x1x128xf32> to vector<128xf32>
    %360 = vector.shape_cast %359 : vector<128xf32> to vector<1x1x128xf32>
    %361 = vector.broadcast %360 : vector<1x1x128xf32> to vector<16x16x128xf32>
    %362 = arith.mulf %357, %361 : vector<16x16x128xf32>
    %363 = arith.addf %356, %362 : vector<16x16x128xf32>
    %c6_336 = arith.constant 6 : index
    %c4_337 = arith.constant 4 : index
    %c0_338 = arith.constant 0 : index
    %364 = vector.load %arg6[%c6_336, %c4_337, %c0_338] : memref<22x22x128xf32, #tpu.memory_space<vmem>>, vector<16x16x128xf32>
    %c6_339 = arith.constant 6 : index
    %c4_340 = arith.constant 4 : index
    %c0_341 = arith.constant 0 : index
    %365 = vector.load %arg3[%c6_339, %c4_340, %c0_341] : memref<7x7x128xf32, #tpu.memory_space<vmem>>, vector<1x1x128xf32>
    %366 = vector.shape_cast %365 : vector<1x1x128xf32> to vector<128xf32>
    %367 = vector.shape_cast %366 : vector<128xf32> to vector<1x1x128xf32>
    %368 = vector.broadcast %367 : vector<1x1x128xf32> to vector<16x16x128xf32>
    %369 = arith.mulf %364, %368 : vector<16x16x128xf32>
    %370 = arith.addf %363, %369 : vector<16x16x128xf32>
    %c6_342 = arith.constant 6 : index
    %c5_343 = arith.constant 5 : index
    %c0_344 = arith.constant 0 : index
    %371 = vector.load %arg6[%c6_342, %c5_343, %c0_344] : memref<22x22x128xf32, #tpu.memory_space<vmem>>, vector<16x16x128xf32>
    %c6_345 = arith.constant 6 : index
    %c5_346 = arith.constant 5 : index
    %c0_347 = arith.constant 0 : index
    %372 = vector.load %arg3[%c6_345, %c5_346, %c0_347] : memref<7x7x128xf32, #tpu.memory_space<vmem>>, vector<1x1x128xf32>
    %373 = vector.shape_cast %372 : vector<1x1x128xf32> to vector<128xf32>
    %374 = vector.shape_cast %373 : vector<128xf32> to vector<1x1x128xf32>
    %375 = vector.broadcast %374 : vector<1x1x128xf32> to vector<16x16x128xf32>
    %376 = arith.mulf %371, %375 : vector<16x16x128xf32>
    %377 = arith.addf %370, %376 : vector<16x16x128xf32>
    %c6_348 = arith.constant 6 : index
    %c6_349 = arith.constant 6 : index
    %c0_350 = arith.constant 0 : index
    %378 = vector.load %arg6[%c6_348, %c6_349, %c0_350] : memref<22x22x128xf32, #tpu.memory_space<vmem>>, vector<16x16x128xf32>
    %c6_351 = arith.constant 6 : index
    %c6_352 = arith.constant 6 : index
    %c0_353 = arith.constant 0 : index
    %379 = vector.load %arg3[%c6_351, %c6_352, %c0_353] : memref<7x7x128xf32, #tpu.memory_space<vmem>>, vector<1x1x128xf32>
    %380 = vector.shape_cast %379 : vector<1x1x128xf32> to vector<128xf32>
    %381 = vector.shape_cast %380 : vector<128xf32> to vector<1x1x128xf32>
    %382 = vector.broadcast %381 : vector<1x1x128xf32> to vector<16x16x128xf32>
    %383 = arith.mulf %378, %382 : vector<16x16x128xf32>
    %384 = arith.addf %377, %383 : vector<16x16x128xf32>
    %c0_354 = arith.constant 0 : index
    %c0_355 = arith.constant 0 : index
    %c0_356 = arith.constant 0 : index
    %c0_357 = arith.constant 0 : index
    %385 = vector.load %arg5[%c0_354, %c0_355, %c0_356, %c0_357] : memref<1x16x16x128xf32, #tpu.memory_space<vmem>>, vector<1x16x16x128xf32>
    %386 = vector.shape_cast %385 : vector<1x16x16x128xf32> to vector<16x16x128xf32>
    %387 = arith.addf %386, %384 : vector<16x16x128xf32>
    %c0_358 = arith.constant 0 : index
    %c0_359 = arith.constant 0 : index
    %c0_360 = arith.constant 0 : index
    %c0_361 = arith.constant 0 : index
    %388 = vector.load %arg5[%c0_358, %c0_359, %c0_360, %c0_361] : memref<1x16x16x128xf32, #tpu.memory_space<vmem>>, vector<1x16x16x128xf32>
    %389 = vector.shape_cast %388 : vector<1x16x16x128xf32> to vector<16x16x128xf32>
    %390 = vector.shape_cast %387 : vector<16x16x128xf32> to vector<1x16x16x128xf32>
    tpu.vector_store %arg5[%c0_358, %c0_359, %c0_360, %c0_361], %390 {strides = array<i32>} : memref<1x16x16x128xf32, #tpu.memory_space<vmem>>, vector<1x16x16x128xf32>,
    return
  }
  func.func @transform_0(%arg0: i32, %arg1: i32) -> (i32, i32, i32, i32) {
    %c0_i32 = arith.constant 0 : i32
    %c0_i32_0 = arith.constant 0 : i32
    %c0_i32_1 = arith.constant 0 : i32
    return %arg0, %c0_i32, %c0_i32_0, %arg1 : i32, i32, i32, i32
  }
  func.func @transform_1(%arg0: i32, %arg1: i32) -> (i32, i32, i32) {
    %c0_i32 = arith.constant 0 : i32
    %c0_i32_0 = arith.constant 0 : i32
    %c0_i32_1 = arith.constant 0 : i32
    return %c0_i32, %c0_i32_0, %arg1 : i32, i32, i32
  }
  func.func @transform_2(%arg0: i32, %arg1: i32) -> (i32, i32) {
    %c0_i32 = arith.constant 0 : i32
    %c0_i32_0 = arith.constant 0 : i32
    return %c0_i32, %arg1 : i32, i32
  }
  func.func @transform_3(%arg0: i32, %arg1: i32) -> (i32, i32, i32, i32) {
    %c0_i32 = arith.constant 0 : i32
    %c0_i32_0 = arith.constant 0 : i32
    %c0_i32_1 = arith.constant 0 : i32
    return %arg0, %c0_i32, %c0_i32_0, %arg1 : i32, i32, i32, i32
  }
}

</mosaic_0001>

<bundles_post_ra>
// kernel: dilated_reparam_block_apply_nhwc.1
= control target key start
LH: loop header
LB: loop body
LE: loop exit
PB: predicated region body
PF: predicated region fallthrough
CT: control target
= control target key end

     0   :  { %s6075_s12 = smov 0   ;;  %s6077_s13 = smov 0   ;;  %s8781_s0 = inlined_call_operand.vmem [shape: f32[2,16,16,128], index: 0, kind: input, shape index: {}]   ;;  %s8782_s1 = inlined_call_operand.vmem [shape: f32[7,7,128], index: 1, kind: input, shape index: {}]   ;;  %s8783_s2 = inlined_call_operand.vmem [shape: f32[1,128], index: 2, kind: input, shape index: {}]   ;;  %s8784_s3 = inlined_call_operand.vmem [shape: f32[2,16,16,128], index: 3, kind: output, shape index: {}]  }
   0x1   :  { %s6079_s14 = smov 0  }
   0x2 LB: > { %s25_s15 = sadd.s32 1, %s6048_s13  ;;  %p5849_p0 = scmp.ge.s32.totalorder %s6052_s14, 1  ;;  %s6052_s14 = sphi %s6079_s14, %s13_s14   ;;  %s6048_s13 = sphi %s6077_s13, %s8786_s13   ;;  %s6044_s12 = sphi %s6075_s12, %s8785_s12  }
   0x3   : > { %p27_p1 = scmp.ge.s32.totalorder %s25_s15, 2  ;;  %p173_p2 = scmp.lt.s32.totalorder %s6052_s14, 3 }
   0x5   : > { %s8788_s15 = smov (%p27_p1, %s25_s15), 0  ;;  %p174_p3 = pnand %p5849_p0, %p173_p2 }
   0x6   : > { %p210_p4 = scmp.lt.s32.totalorder (!%p174_p3), %s6044_s12, 1  ;;  %v6054_v0 = vmov (!%p174_p3), 0.0   ;;  %v6134_v10 = vld [vmem:[%s8782_s1] ss:$0 sm:$0xff] (!%p174_p3)  ;;  %v5863_v14 = vld [vmem:[%s8782_s1 + $0x8] ss:$0 sm:$0xff] (!%p174_p3) }
   0x7   : > { %177 = sbr.rel (%p174_p3) target bundleno = 824 (0x338), region = 32  ;;  %233 = vst [vmem:[#allocation2] sm:$0xff] (!%p174_p3), %v6054_v0  ;;  %234 = vst [vmem:[#allocation2 + $0x8] sm:$0xff] (!%p174_p3), %v6054_v0  ;;  %v6173_v21 = vld [vmem:[%s8782_s1 + $0x3] ss:$0 sm:$0xff] (!%p174_p3)  ;;  %v6193_v30 = vmul.f32 (!%p174_p3), 0.0, %v6134_v10 }
   0x8   : > { %235 = vst [vmem:[#allocation2 + $0x10] sm:$0x3f] (!%p174_p3), %v6054_v0  ;;  %236 = vst [vmem:[#allocation2 + $0x18] sm:$0xff] (!%p174_p3), %v6054_v0  ;;  %v6182_v25 = vld [vmem:[%s8782_s1 + $0x1] ss:$0 sm:$0xff] (!%p174_p3)  ;;  %v6212_v38 = vmul.f32 (!%p174_p3), 0.0, %v5863_v14 }
   0x9   : > { %237 = vst [vmem:[#allocation2 + $0x20] sm:$0xff] (!%p174_p3), %v6054_v0  ;;  %238 = vst [vmem:[#allocation2 + $0x28] sm:$0x3f] (!%p174_p3), %v6054_v0  ;;  %v6187_v26 = vld [vmem:[%s8782_s1 + $0x2] ss:$0 sm:$0xff] (!%p174_p3) }
   0xa   : > { %239 = vst [vmem:[#allocation2 + $0x30] sm:$0xff] (!%p174_p3), %v6054_v0  ;;  %240 = vst [vmem:[#allocation2 + $0x38] sm:$0xff] (!%p174_p3), %v6054_v0  ;;  %v6201_v34 = vld [vmem:[%s8782_s1 + $0x4] ss:$0 sm:$0xff] (!%p174_p3)  ;;  %v6220_v42 = vld [vmem:[%s8782_s1 + $0x5] ss:$0 sm:$0xff] (!%p174_p3) }
   0xb   : > { %241 = vst [vmem:[#allocation2 + $0x40] sm:$0x3f] (!%p174_p3), %v6054_v0  ;;  %243 = vst [vmem:[#allocation2 + $0x1c8] sm:$0xff] (!%p174_p3), %v6054_v0  ;;  %v6225_v43 = vld [vmem:[%s8782_s1 + $0x6] ss:$0 sm:$0xff] (!%p174_p3) }
   0xc   : > { %244 = vst [vmem:[#allocation2 + $0x1d0] sm:$0xff] (!%p174_p3), %v6054_v0  ;;  %245 = vst [vmem:[#allocation2 + $0x1d8] sm:$0x3f] (!%p174_p3), %v6054_v0 }
   0xd   : > { %246 = vst [vmem:[#allocation2 + $0x1e0] sm:$0xff] (!%p174_p3), %v6054_v0  ;;  %247 = vst [vmem:[#allocation2 + $0x1e8] sm:$0xff] (!%p174_p3), %v6054_v0 }
   0xe   : > { %248 = vst [vmem:[#allocation2 + $0x1f0] sm:$0x3f] %v6054_v0  ;;  %249 = vst [vmem:[#allocation2 + $0x1f8] sm:$0xff] %v6054_v0  ;;  %s8790_s12 = smov (!%p210_p4, %s6044_s12), 1  ;;  %v418_v48 = vld [vmem:[#allocation2 + $0x1] sm:$0xff] }
   0xf   : > { %250 = vst [vmem:[#allocation2 + $0x200] sm:$0xff] %v6054_v0  ;;  %251 = vst [vmem:[#allocation2 + $0x208] sm:$0x3f] %v6054_v0  ;;  %s5948_s16 = sshll.u32 %s8790_s12, 8  ;;  %v519_v49 = vld [vmem:[#allocation2 + $0x2] sm:$0xff]  ;;  %v455_v55 = vmul.f32 %v6182_v25, %v418_v48 }
  0x10   : > { %253 = vst [vmem:[#allocation2 + $0x48] sm:$0x7] %v6054_v0  ;;  %254 = vst [vmem:[#allocation2 + $0x60] sm:$0x7] %v6054_v0  ;;  %s6107_s19 = scalar_lea.vmem %s8781_s0, %s5948_s16  ;;  %v620_v50 = vld [vmem:[#allocation2 + $0x3] sm:$0xff]  ;;  %v556_v56 = vmul.f32 %v6187_v26, %v519_v49  ;;  %s6323_s18 = scalar_lea.vmem %s8784_s3, %s5948_s16 }
  0x11   : > { %255 = vst [vmem:[#allocation2 + $0x78] sm:$0x7] %v6054_v0  ;;  %256 = vst [vmem:[#allocation2 + $0x90] sm:$0x7] %v6054_v0  ;;  %v285_v1 = vld [vmem:[%s6107_s19] sm:$0xff]  ;;  %v286_v2 = vld [vmem:[%s6107_s19 + $0x8] sm:$0xff]  ;;  %v657_v62 = vmul.f32 %v6173_v21, %v620_v50 }
  0x12   : > { %257 = vst [vmem:[#allocation2 + $0xa8] sm:$0x7] %v6054_v0  ;;  %258 = vst [vmem:[#allocation2 + $0xc0] sm:$0x7] %v6054_v0  ;;  %v287_v3 = vld [vmem:[%s6107_s19 + $0x10] sm:$0xff]  ;;  %v6113_v4 = vld [vmem:[%s6107_s19 + $0x18] sm:$0xff]  ;;  %v6204_v35 = vmul.f32 %v6173_v21, %v285_v1  ;;  %v6207_v36 = vmul.f32 %v6173_v21, %v286_v2 }
  0x13   : > { %259 = vst [vmem:[#allocation2 + $0xd8] sm:$0x7] %v6054_v0  ;;  %260 = vst [vmem:[#allocation2 + $0xf0] sm:$0x7] %v6054_v0  ;;  %v6116_v5 = vld [vmem:[%s6107_s19 + $0x20] sm:$0xff]  ;;  %v6119_v6 = vld [vmem:[%s6107_s19 + $0x28] sm:$0xff]  ;;  %v6210_v37 = vmul.f32 %v6173_v21, %v287_v3  ;;  %v6229_v44 = vmul.f32 %v6173_v21, %v6113_v4 }
  0x14   : > { %261 = vst [vmem:[#allocation2 + $0x108] sm:$0x7] %v6054_v0  ;;  %262 = vst [vmem:[#allocation2 + $0x120] sm:$0x7] %v6054_v0  ;;  %v291_v7 = vld [vmem:[%s6107_s19 + $0x30] sm:$0xff]  ;;  %v6126_v8 = vld [vmem:[%s6107_s19 + $0x38] sm:$0xff]  ;;  %v6233_v45 = vmul.f32 %v6173_v21, %v6116_v5  ;;  %v6237_v46 = vmul.f32 %v6173_v21, %v6119_v6 }
  0x15   : > { %263 = vst [vmem:[#allocation2 + $0x138] sm:$0x7] %v6054_v0  ;;  %264 = vst [vmem:[#allocation2 + $0x150] sm:$0x7] %v6054_v0  ;;  %v6129_v9 = vld [vmem:[%s6107_s19 + $0x40] sm:$0xff]  ;;  %v6139_v11 = vld [vmem:[%s6107_s19 + $0x48] sm:$0xff]  ;;  %v6240_v47 = vmul.f32 %v6173_v21, %v291_v7  ;;  %v6244_v51 = vmul.f32 %v6173_v21, %v6126_v8 }
  0x16   : > { %265 = vst [vmem:[#allocation2 + $0x168] sm:$0x7] %v6054_v0  ;;  %266 = vst [vmem:[#allocation2 + $0x180] sm:$0x7] %v6054_v0  ;;  %v6142_v12 = vld [vmem:[%s6107_s19 + $0x50] sm:$0xff]  ;;  %v6145_v13 = vld [vmem:[%s6107_s19 + $0x58] sm:$0xff]  ;;  %v6248_v52 = vmul.f32 %v6173_v21, %v6129_v9  ;;  %v6252_v53 = vmul.f32 %v6173_v21, %v6139_v11 }
  0x17   : > { %267 = vst [vmem:[#allocation2 + $0x198] sm:$0x7] %v6054_v0  ;;  %268 = vst [vmem:[#allocation2 + $0x1b0] sm:$0x7] %v6054_v0  ;;  %v6154_v15 = vld [vmem:[%s6107_s19 + $0x60] sm:$0xff]  ;;  %v6157_v16 = vld [vmem:[%s6107_s19 + $0x68] sm:$0xff]  ;;  %v6256_v54 = vmul.f32 %v6173_v21, %v6142_v12  ;;  %v6262_v60 = vmul.f32 %v6173_v21, %v6145_v13 }
  0x18   : > { %269 = vst [vmem:[#allocation2 + $0x5b] sm:$0x7] %v6054_v0  ;;  %270 = vst [vmem:[#allocation2 + $0x73] sm:$0x7] %v6054_v0  ;;  %v6160_v17 = vld [vmem:[%s6107_s19 + $0x70] sm:$0xff]  ;;  %v6166_v18 = vld [vmem:[%s6107_s19 + $0x78] sm:$0xff]  ;;  %v6266_v61 = vmul.f32 %v6173_v21, %v6154_v15 }
  0x19   : > { %271 = vst [vmem:[#allocation2 + $0x8b] sm:$0x7] %v6054_v0  ;;  %272 = vst [vmem:[#allocation2 + $0xa3] sm:$0x7] %v6054_v0  ;;  %v301_v19 = vld [vmem:[%s6107_s19 + $0x80] sm:$0xff]  ;;  %v302_v20 = vld [vmem:[%s6107_s19 + $0x88] sm:$0xff] }
  0x1a   : > { %273 = vst [vmem:[#allocation2 + $0xbb] sm:$0x7] %v6054_v0  ;;  %274 = vst [vmem:[#allocation2 + $0xd3] sm:$0x7] %v6054_v0  ;;  %v303_v22 = vld [vmem:[%s6107_s19 + $0x90] sm:$0xff]  ;;  %v304_v23 = vld [vmem:[%s6107_s19 + $0x98] sm:$0xff] }
  0x1b   : > { %275 = vst [vmem:[#allocation2 + $0xeb] sm:$0x7] %v6054_v0  ;;  %276 = vst [vmem:[#allocation2 + $0x103] sm:$0x7] %v6054_v0  ;;  %v305_v24 = vld [vmem:[%s6107_s19 + $0xa0] sm:$0xff]  ;;  %v306_v27 = vld [vmem:[%s6107_s19 + $0xa8] sm:$0xff] }
  0x1c   : > { %277 = vst [vmem:[#allocation2 + $0x11b] sm:$0x7] %v6054_v0  ;;  %278 = vst [vmem:[#allocation2 + $0x133] sm:$0x7] %v6054_v0  ;;  %v307_v28 = vld [vmem:[%s6107_s19 + $0xb0] sm:$0xff]  ;;  %v308_v29 = vld [vmem:[%s6107_s19 + $0xb8] sm:$0xff] }
  0x1d   : > { %279 = vst [vmem:[#allocation2 + $0x14b] sm:$0x7] %v6054_v0  ;;  %280 = vst [vmem:[#allocation2 + $0x163] sm:$0x7] %v6054_v0  ;;  %v309_v31 = vld [vmem:[%s6107_s19 + $0xc0] sm:$0xff]  ;;  %v310_v32 = vld [vmem:[%s6107_s19 + $0xc8] sm:$0xff] }
  0x1e   : > { %281 = vst [vmem:[#allocation2 + $0x17b] sm:$0x7] %v6054_v0  ;;  %282 = vst [vmem:[#allocation2 + $0x193] sm:$0x7] %v6054_v0  ;;  %v311_v33 = vld [vmem:[%s6107_s19 + $0xd0] sm:$0xff]  ;;  %v312_v39 = vld [vmem:[%s6107_s19 + $0xd8] sm:$0xff] }
  0x1f   : > { %283 = vst [vmem:[#allocation2 + $0x1ab] sm:$0x7] %v6054_v0  ;;  %284 = vst [vmem:[#allocation2 + $0x1c3] sm:$0x7] %v6054_v0  ;;  %v313_v40 = vld [vmem:[%s6107_s19 + $0xe0] sm:$0xff]  ;;  %v314_v41 = vld [vmem:[%s6107_s19 + $0xe8] sm:$0xff] }
  0x20   : > { %317 = vst [vmem:[#allocation2 + $0x4b] sm:$0xff] %v285_v1  ;;  %318 = vst [vmem:[#allocation2 + $0x53] sm:$0xff] %v286_v2  ;;  %v721_v57 = vld [vmem:[#allocation2 + $0x4] sm:$0xff]  ;;  %v6271_v2 = vmul.f32 %v6173_v21, %v6157_v16 }
  0x21   : > { %319 = vst [vmem:[#allocation2 + $0x63] sm:$0xff] %v287_v3  ;;  %320 = vst [vmem:[#allocation2 + $0x6b] sm:$0xff] %v6113_v4  ;;  %v822_v58 = vld [vmem:[#allocation2 + $0x5] sm:$0xff]  ;;  %v6275_v3 = vmul.f32 %v6173_v21, %v6160_v17  ;;  %v6279_v4 = vmul.f32 %v6173_v21, %v6166_v18 }
  0x22   : > { %321 = vst [vmem:[#allocation2 + $0x7b] sm:$0xff] %v6116_v5  ;;  %322 = vst [vmem:[#allocation2 + $0x83] sm:$0xff] %v6119_v6  ;;  %v923_v59 = vld [vmem:[#allocation2 + $0x6] sm:$0xff]  ;;  %v487_v5 = vadd.f32 %v455_v55, %v6193_v30  ;;  %v758_v6 = vmul.f32 %v6201_v34, %v721_v57 }
  0x23   : > { %323 = vst [vmem:[#allocation2 + $0x93] sm:$0xff] %v291_v7  ;;  %324 = vst [vmem:[#allocation2 + $0x9b] sm:$0xff] %v6126_v8  ;;  %v419_v63 = vld [vmem:[#allocation2 + $0x9] sm:$0xff]  ;;  %v960_v14 = vmul.f32 %v6225_v43, %v923_v59 }
  0x24   : > { %325 = vst [vmem:[#allocation2 + $0xab] sm:$0xff] %v6129_v9  ;;  %326 = vst [vmem:[#allocation2 + $0xb3] sm:$0xff] %v6139_v11  ;;  %v520_v0 = vld [vmem:[#allocation2 + $0xa] sm:$0xff]  ;;  %v456_v7 = vmul.f32 %v6182_v25, %v419_v63 }
  0x25   : > { %327 = vst [vmem:[#allocation2 + $0xc3] sm:$0xff] %v6142_v12  ;;  %328 = vst [vmem:[#allocation2 + $0xcb] sm:$0xff] %v6145_v13  ;;  %v621_v1 = vld [vmem:[#allocation2 + $0xb] sm:$0xff]  ;;  %v557_v8 = vmul.f32 %v6187_v26, %v520_v0  ;;  %v859_v13 = vmul.f32 %v6220_v42, %v822_v58  ;;  %v623_v48 = vld [vmem:[#allocation2 + $0x23] sm:$0xff] }
  0x26   : > { %329 = vst [vmem:[#allocation2 + $0xdb] sm:$0xff] %v6154_v15  ;;  %330 = vst [vmem:[#allocation2 + $0xe3] sm:$0xff] %v6157_v16  ;;  %v722_v9 = vld [vmem:[#allocation2 + $0xc] sm:$0xff]  ;;  %v658_v15 = vmul.f32 %v6173_v21, %v621_v1  ;;  %v724_v57 = vld [vmem:[#allocation2 + $0x24] sm:$0xff]  ;;  %v660_v1 = vmul.f32 %v6173_v21, %v623_v48 }
  0x27   : > { %331 = vst [vmem:[#allocation2 + $0xf3] sm:$0xff] %v6160_v17  ;;  %332 = vst [vmem:[#allocation2 + $0xfb] sm:$0xff] %v6166_v18  ;;  %v823_v11 = vld [vmem:[#allocation2 + $0xd] sm:$0xff]  ;;  %v759_v16 = vmul.f32 %v6201_v34, %v722_v9  ;;  %v420_v17 = vld [vmem:[#allocation2 + $0x19] sm:$0xff] }
  0x28   : > { %333 = vst [vmem:[#allocation2 + $0x10b] sm:$0xff] %v301_v19  ;;  %334 = vst [vmem:[#allocation2 + $0x113] sm:$0xff] %v302_v20  ;;  %v924_v12 = vld [vmem:[#allocation2 + $0xe] sm:$0xff]  ;;  %v521_v18 = vld [vmem:[#allocation2 + $0x1a] sm:$0xff]  ;;  %v588_v20 = vadd.f32 %v556_v56, %v487_v5 }
  0x29   : > { %335 = vst [vmem:[#allocation2 + $0x123] sm:$0xff] %v303_v22  ;;  %336 = vst [vmem:[#allocation2 + $0x12b] sm:$0xff] %v304_v23  ;;  %v622_v19 = vld [vmem:[#allocation2 + $0x1b] sm:$0xff]  ;;  %v488_v22 = vadd.f32 %v456_v7, %v6193_v30  ;;  %v457_v23 = vmul.f32 %v6182_v25, %v420_v17  ;;  %v825_v58 = vld [vmem:[#allocation2 + $0x25] sm:$0xff] }
  0x2a   : > { %337 = vst [vmem:[#allocation2 + $0x13b] sm:$0xff] %v305_v24  ;;  %338 = vst [vmem:[#allocation2 + $0x143] sm:$0xff] %v306_v27  ;;  %v558_v24 = vmul.f32 %v6187_v26, %v521_v18  ;;  %v723_v27 = vld [vmem:[#allocation2 + $0x1c] sm:$0xff]  ;;  %v689_v49 = vadd.f32 %v657_v62, %v588_v20  ;;  %v422_v5 = vld [vmem:[#allocation2 + $0x31] sm:$0xff]  ;;  %v862_v20 = vmul.f32 %v6220_v42, %v825_v58 }
  0x2b   : > { %339 = vst [vmem:[#allocation2 + $0x153] sm:$0xff] %v307_v28  ;;  %340 = vst [vmem:[#allocation2 + $0x15b] sm:$0xff] %v308_v29  ;;  %v824_v28 = vld [vmem:[#allocation2 + $0x1d] sm:$0xff]  ;;  %v589_v50 = vadd.f32 %v557_v8, %v488_v22  ;;  %v489_v55 = vadd.f32 %v457_v23, %v6193_v30  ;;  %v523_v7 = vld [vmem:[#allocation2 + $0x32] sm:$0xff]  ;;  %v459_v22 = vmul.f32 %v6182_v25, %v422_v5 }
  0x2c   : > { %341 = vst [vmem:[#allocation2 + $0x16b] sm:$0xff] %v309_v31  ;;  %342 = vst [vmem:[#allocation2 + $0x173] sm:$0xff] %v310_v32  ;;  %v925_v29 = vld [vmem:[#allocation2 + $0x1e] sm:$0xff]  ;;  %v860_v31 = vmul.f32 %v6220_v42, %v823_v11  ;;  %v961_v32 = vmul.f32 %v6225_v43, %v924_v12  ;;  %v861_v59 = vmul.f32 %v6220_v42, %v824_v28  ;;  %v926_v12 = vld [vmem:[#allocation2 + $0x26] sm:$0xff] }
  0x2d   : > { %343 = vst [vmem:[#allocation2 + $0x183] sm:$0xff] %v311_v33  ;;  %344 = vst [vmem:[#allocation2 + $0x18b] sm:$0xff] %v312_v39  ;;  %v659_v33 = vmul.f32 %v6173_v21, %v622_v19  ;;  %v760_v39 = vmul.f32 %v6201_v34, %v723_v27  ;;  %v962_v63 = vmul.f32 %v6225_v43, %v925_v29  ;;  %v624_v17 = vld [vmem:[#allocation2 + $0x33] sm:$0xff]  ;;  %v625_v5 = vld [vmem:[#allocation2 + $0x3b] sm:$0xff] }
  0x2e   : > { %345 = vst [vmem:[#allocation2 + $0x19b] sm:$0xff] %v313_v40  ;;  %346 = vst [vmem:[#allocation2 + $0x1a3] sm:$0xff] %v314_v41  ;;  %v421_v40 = vld [vmem:[#allocation2 + $0x21] sm:$0xff]  ;;  %v790_v9 = vadd.f32 %v758_v6, %v689_v49  ;;  %v690_v11 = vadd.f32 %v658_v15, %v589_v50  ;;  %v590_v62 = vadd.f32 %v558_v24, %v489_v55  ;;  %v725_v18 = vld [vmem:[#allocation2 + $0x34] sm:$0xff] }
  0x2f   : > { %v522_v41 = vld [vmem:[#allocation2 + $0x22] sm:$0xff]  ;;  %v458_v56 = vmul.f32 %v6182_v25, %v421_v40  ;;  %v761_v19 = vmul.f32 %v6201_v34, %v724_v57  ;;  %v560_v23 = vmul.f32 %v6187_v26, %v523_v7  ;;  %v826_v24 = vld [vmem:[#allocation2 + $0x35] sm:$0xff]  ;;  %v963_v48 = vmul.f32 %v6225_v43, %v926_v12 }
  0x30   : > { %v559_v0 = vmul.f32 %v6187_v26, %v522_v41  ;;  %v891_v27 = vadd.f32 %v859_v13, %v790_v9  ;;  %v791_v28 = vadd.f32 %v759_v16, %v690_v11  ;;  %v691_v6 = vadd.f32 %v659_v33, %v590_v62  ;;  %v423_v29 = vld [vmem:[#allocation2 + $0x39] sm:$0xff]  ;;  %v315_v16 = vld [vmem:[%s6107_s19 + $0xf0] sm:$0xff]  ;;  %v355_v12 = vld [vmem:[#allocation2 + $0x48] sm:$0xff] }
  0x31   : > { %v490_v8 = vadd.f32 %v458_v56, %v6193_v30  ;;  %v524_v40 = vld [vmem:[#allocation2 + $0x3a] sm:$0xff]  ;;  %v491_v49 = vadd.f32 %v459_v22, %v6193_v30  ;;  %v661_v50 = vmul.f32 %v6173_v21, %v624_v17  ;;  %v762_v13 = vmul.f32 %v6201_v34, %v725_v18  ;;  %347 = vst [vmem:[#allocation2 + $0x1b3] sm:$0xff] %v315_v16  ;;  %v424_v17 = vld [vmem:[#allocation2 + $0x49] sm:$0xff] }
  0x32   : > { %v6310_v41 = vld [vmem:[%s8783_s2] ss:$0 sm:$0xff]  ;;  %v316_v33 = vld [vmem:[%s6107_s19 + $0xf8] sm:$0xff]  ;;  %v992_v55 = vadd.f32 %v960_v14, %v891_v27  ;;  %v892_v56 = vadd.f32 %v860_v31, %v791_v28  ;;  %v792_v57 = vadd.f32 %v760_v39, %v691_v6  ;;  %v863_v9 = vmul.f32 %v6220_v42, %v826_v24  ;;  %v356_v16 = vld [vmem:[#allocation2 + $0x50] sm:$0xff] }
  0x33   : > { %v591_v15 = vadd.f32 %v559_v0, %v490_v8  ;;  %v927_v0 = vld [vmem:[#allocation2 + $0x36] sm:$0xff]  ;;  %348 = vst [vmem:[#allocation2 + $0x1bb] sm:$0xff] %v316_v33  ;;  %v592_v7 = vadd.f32 %v560_v23, %v491_v49  ;;  %v460_v11 = vmul.f32 %v6182_v25, %v423_v29  ;;  %v561_v14 = vmul.f32 %v6187_v26, %v524_v40  ;;  %v928_v6 = vld [vmem:[#allocation2 + $0x3e] sm:$0xff] }
  0x34   : > { %v726_v31 = vld [vmem:[#allocation2 + $0x3c] sm:$0xff]  ;;  %v1031_v39 = vadd.f32 %v6310_v41, %v992_v55  ;;  %v893_v62 = vadd.f32 %v861_v59, %v792_v57  ;;  %v964_v22 = vmul.f32 %v6225_v43, %v927_v0  ;;  %v662_v27 = vmul.f32 %v6173_v21, %v625_v5  ;;  %v525_v59 = vld [vmem:[#allocation2 + $0x4a] sm:$0xff] }
  0x35   : > { %v692_v58 = vadd.f32 %v660_v1, %v591_v15  ;;  %v993_v1 = vadd.f32 %v961_v32, %v892_v56  ;;  %v693_v18 = vadd.f32 %v661_v50, %v592_v7  ;;  %v492_v23 = vadd.f32 %v460_v11, %v6193_v30  ;;  %v827_v28 = vld [vmem:[#allocation2 + $0x3d] sm:$0xff]  ;;  %v727_v30 = vld [vmem:[#allocation2 + $0x4c] sm:$0xff] }
  0x36   : > { %1063 = vst [vmem:[%s6323_s18] sm:$0xff] %v1031_v39  ;;  %v994_v24 = vadd.f32 %v962_v63, %v893_v62  ;;  %v763_v32 = vmul.f32 %v6201_v34, %v726_v31  ;;  %v392_v49 = vmul.f32 %v6134_v10, %v355_v12  ;;  %v461_v50 = vmul.f32 %v6182_v25, %v424_v17  ;;  %v425_v33 = vld [vmem:[#allocation2 + $0x51] sm:$0xff]  ;;  %v357_v62 = vld [vmem:[#allocation2 + $0x60] sm:$0xff] }
  0x37   : > { %v793_v8 = vadd.f32 %v761_v19, %v692_v58  ;;  %v1032_v15 = vadd.f32 %v6310_v41, %v993_v1  ;;  %v794_v19 = vadd.f32 %v762_v13, %v693_v18  ;;  %v593_v40 = vadd.f32 %v561_v14, %v492_v23  ;;  %v828_v57 = vld [vmem:[#allocation2 + $0x4d] sm:$0xff]  ;;  %v829_v18 = vld [vmem:[#allocation2 + $0x55] sm:$0xff] }
  0x38   : > { %v1033_v55 = vadd.f32 %v6310_v41, %v994_v24  ;;  %v864_v63 = vmul.f32 %v6220_v42, %v827_v28  ;;  %v493_v0 = vadd.f32 %v461_v50, %v392_v49  ;;  %v562_v5 = vmul.f32 %v6187_v26, %v525_v59  ;;  %v929_v7 = vld [vmem:[#allocation2 + $0x4e] sm:$0xff]  ;;  %v930_v23 = vld [vmem:[#allocation2 + $0x56] sm:$0xff]  ;;  %v729_v59 = vld [vmem:[#allocation2 + $0x64] sm:$0xff] }
  0x39   : > { %v894_v29 = vadd.f32 %v862_v20, %v793_v8  ;;  %1064 = vst [vmem:[%s6323_s18 + $0x8] sm:$0xff] %v1032_v15  ;;  %v965_v20 = vmul.f32 %v6225_v43, %v928_v6  ;;  %v895_v58 = vadd.f32 %v863_v9, %v794_v19  ;;  %v694_v13 = vadd.f32 %v662_v27, %v593_v40  ;;  %v526_v11 = vld [vmem:[#allocation2 + $0x52] sm:$0xff]  ;;  %v426_v27 = vld [vmem:[#allocation2 + $0x61] sm:$0xff]  ;;  %v427_v50 = vld [vmem:[#allocation2 + $0x69] sm:$0xff] }
  0x3a   : > { %v728_v14 = vld [vmem:[#allocation2 + $0x54] sm:$0xff]  ;;  %1065 = vst [vmem:[%s6323_s18 + $0x10] sm:$0xff] %v1033_v55  ;;  %v764_v39 = vmul.f32 %v6201_v34, %v727_v30  ;;  %v462_v1 = vmul.f32 %v6182_v25, %v425_v33  ;;  %v594_v12 = vadd.f32 %v562_v5, %v493_v0  ;;  %v865_v17 = vmul.f32 %v6220_v42, %v828_v57  ;;  %v358_v49 = vld [vmem:[#allocation2 + $0x68] sm:$0xff] }
  0x3b   : > { %v995_v56 = vadd.f32 %v963_v48, %v894_v29  ;;  %v393_v48 = vmul.f32 %v6134_v10, %v356_v16  ;;  %v996_v8 = vadd.f32 %v964_v22, %v895_v58  ;;  %v795_v9 = vadd.f32 %v763_v32, %v694_v13  ;;  %v527_v29 = vld [vmem:[#allocation2 + $0x62] sm:$0xff]  ;;  %v528_v0 = vld [vmem:[#allocation2 + $0x6a] sm:$0xff] }
  0x3c   : > { %v966_v28 = vmul.f32 %v6225_v43, %v929_v7  ;;  %v563_v15 = vmul.f32 %v6187_v26, %v526_v11  ;;  %v765_v24 = vmul.f32 %v6201_v34, %v728_v14  ;;  %v695_v19 = vadd.f32 %v6204_v35, %v594_v12  ;;  %v931_v57 = vld [vmem:[#allocation2 + $0x66] sm:$0xff] }
  0x3d   : > { %v1034_v31 = vadd.f32 %v6310_v41, %v995_v56  ;;  %v494_v6 = vadd.f32 %v462_v1, %v393_v48  ;;  %v1035_v22 = vadd.f32 %v6310_v41, %v996_v8  ;;  %v896_v32 = vadd.f32 %v864_v63, %v795_v9  ;;  %v830_v56 = vld [vmem:[#allocation2 + $0x65] sm:$0xff]  ;;  %v359_v48 = vld [vmem:[#allocation2 + $0x78] sm:$0xff]  ;;  %v831_v9 = vld [vmem:[#allocation2 + $0x6d] sm:$0xff] }
  0x3e   : > { %v394_v40 = vmul.f32 %v6134_v10, %v357_v62  ;;  %v866_v16 = vmul.f32 %v6220_v42, %v829_v18  ;;  %v967_v33 = vmul.f32 %v6225_v43, %v930_v23  ;;  %v463_v55 = vmul.f32 %v6182_v25, %v426_v27  ;;  %v428_v1 = vld [vmem:[#allocation2 + $0x79] sm:$0xff]  ;;  %v932_v27 = vld [vmem:[#allocation2 + $0x6e] sm:$0xff] }
  0x3f   : > { %1066 = vst [vmem:[%s6323_s18 + $0x18] sm:$0xff] %v1034_v31  ;;  %v595_v30 = vadd.f32 %v563_v15, %v494_v6  ;;  %1067 = vst [vmem:[%s6323_s18 + $0x20] sm:$0xff] %v1035_v22  ;;  %v997_v58 = vadd.f32 %v965_v20, %v896_v32  ;;  %v796_v13 = vadd.f32 %v764_v39, %v695_v19  ;;  %v730_v31 = vld [vmem:[#allocation2 + $0x6c] sm:$0xff]  ;;  %v529_v6 = vld [vmem:[#allocation2 + $0x7a] sm:$0xff] }
  0x40   : > { %v564_v63 = vmul.f32 %v6187_v26, %v527_v29  ;;  %v766_v35 = vmul.f32 %v6201_v34, %v729_v59  ;;  %v495_v7 = vadd.f32 %v463_v55, %v394_v40  ;;  %v395_v11 = vmul.f32 %v6134_v10, %v358_v49  ;;  %v731_v22 = vld [vmem:[#allocation2 + $0x7c] sm:$0xff] }
  0x41   : > { %v696_v5 = vadd.f32 %v6207_v36, %v595_v30  ;;  %v464_v14 = vmul.f32 %v6182_v25, %v427_v50  ;;  %v1036_v62 = vadd.f32 %v6310_v41, %v997_v58  ;;  %v897_v20 = vadd.f32 %v865_v17, %v796_v13  ;;  %v832_v49 = vld [vmem:[#allocation2 + $0x7d] sm:$0xff] }
  0x42   : > { %v867_v39 = vmul.f32 %v6220_v42, %v830_v56  ;;  %v968_v8 = vmul.f32 %v6225_v43, %v931_v57  ;;  %v596_v18 = vadd.f32 %v564_v63, %v495_v7  ;;  %v565_v23 = vmul.f32 %v6187_v26, %v528_v0  ;;  %v360_v50 = vld [vmem:[#allocation2 + $0x80] sm:$0xff] }
  0x43   : > { %v797_v12 = vadd.f32 %v765_v24, %v696_v5  ;;  %v496_v36 = vadd.f32 %v464_v14, %v395_v11  ;;  %1068 = vst [vmem:[%s6323_s18 + $0x28] sm:$0xff] %v1036_v62  ;;  %v998_v15 = vadd.f32 %v966_v28, %v897_v20  ;;  %v767_v29 = vmul.f32 %v6201_v34, %v730_v31  ;;  %v429_v30 = vld [vmem:[#allocation2 + $0x81] sm:$0xff] }
  0x44   : > { %v396_v59 = vmul.f32 %v6134_v10, %v359_v48  ;;  %v465_v17 = vmul.f32 %v6182_v25, %v428_v1  ;;  %v697_v19 = vadd.f32 %v6210_v37, %v596_v18  ;;  %v868_v24 = vmul.f32 %v6220_v42, %v831_v9  ;;  %v933_v58 = vld [vmem:[#allocation2 + $0x7e] sm:$0xff]  ;;  %v361_v48 = vld [vmem:[#allocation2 + $0x90] sm:$0xff]  ;;  %v934_v9 = vld [vmem:[#allocation2 + $0x86] sm:$0xff] }
  0x45   : > { %v898_v32 = vadd.f32 %v866_v16, %v797_v12  ;;  %v597_v40 = vadd.f32 %v565_v23, %v496_v36  ;;  %v1037_v55 = vadd.f32 %v6310_v41, %v998_v15  ;;  %v969_v28 = vmul.f32 %v6225_v43, %v932_v27  ;;  %v530_v0 = vld [vmem:[#allocation2 + $0x82] sm:$0xff]  ;;  %v430_v1 = vld [vmem:[#allocation2 + $0x91] sm:$0xff] }
  0x46   : > { %v497_v56 = vadd.f32 %v465_v17, %v396_v59  ;;  %v566_v57 = vmul.f32 %v6187_v26, %v529_v6  ;;  %v798_v63 = vadd.f32 %v766_v35, %v697_v19  ;;  %v768_v37 = vmul.f32 %v6201_v34, %v731_v22  ;;  %v732_v5 = vld [vmem:[#allocation2 + $0x84] sm:$0xff]  ;;  %v531_v27 = vld [vmem:[#allocation2 + $0x92] sm:$0xff] }
  0x47   : > { %v999_v13 = vadd.f32 %v967_v33, %v898_v32  ;;  %v698_v16 = vadd.f32 %v6229_v44, %v597_v40  ;;  %1069 = vst [vmem:[%s6323_s18 + $0x30] sm:$0xff] %v1037_v55  ;;  %v869_v11 = vmul.f32 %v6220_v42, %v832_v49  ;;  %v397_v14 = vmul.f32 %v6134_v10, %v360_v50  ;;  %v833_v20 = vld [vmem:[#allocation2 + $0x85] sm:$0xff]  ;;  %v362_v17 = vld [vmem:[#allocation2 + $0x98] sm:$0xff] }
  0x48   : > { %v598_v7 = vadd.f32 %v566_v57, %v497_v56  ;;  %v466_v31 = vmul.f32 %v6182_v25, %v429_v30  ;;  %v899_v35 = vadd.f32 %v867_v39, %v798_v63  ;;  %v970_v44 = vmul.f32 %v6225_v43, %v933_v58  ;;  %v834_v40 = vld [vmem:[#allocation2 + $0x95] sm:$0xff] }
  0x49   : > { %v1038_v33 = vadd.f32 %v6310_v41, %v999_v13  ;;  %v799_v62 = vadd.f32 %v767_v29, %v698_v16  ;;  %v567_v36 = vmul.f32 %v6187_v26, %v530_v0  ;;  %v769_v23 = vmul.f32 %v6201_v34, %v732_v5  ;;  %v733_v29 = vld [vmem:[#allocation2 + $0x94] sm:$0xff]  ;;  %v734_v16 = vld [vmem:[#allocation2 + $0x9c] sm:$0xff] }
  0x4a   : > { %v699_v12 = vadd.f32 %v6233_v45, %v598_v7  ;;  %v498_v18 = vadd.f32 %v466_v31, %v397_v14  ;;  %v1000_v6 = vadd.f32 %v968_v8, %v899_v35  ;;  %v398_v59 = vmul.f32 %v6134_v10, %v361_v48  ;;  %v431_v49 = vld [vmem:[#allocation2 + $0x99] sm:$0xff]  ;;  %v432_v31 = vld [vmem:[#allocation2 + $0xa9] sm:$0xff] }
  0x4b   : > { %1070 = vst [vmem:[%s6323_s18 + $0x38] sm:$0xff] %v1038_v33  ;;  %v900_v15 = vadd.f32 %v868_v24, %v799_v62  ;;  %v467_v39 = vmul.f32 %v6182_v25, %v430_v1  ;;  %v870_v19 = vmul.f32 %v6220_v42, %v833_v20  ;;  %v971_v45 = vmul.f32 %v6225_v43, %v934_v9  ;;  %v935_v55 = vld [vmem:[#allocation2 + $0x96] sm:$0xff]  ;;  %v936_v33 = vld [vmem:[#allocation2 + $0x9e] sm:$0xff]  ;;  %v533_v35 = vld [vmem:[#allocation2 + $0xaa] sm:$0xff] }
  0x4c   : > { %v800_v22 = vadd.f32 %v768_v37, %v699_v12  ;;  %v599_v32 = vadd.f32 %v567_v36, %v498_v18  ;;  %v1039_v50 = vadd.f32 %v6310_v41, %v1000_v6  ;;  %v568_v24 = vmul.f32 %v6187_v26, %v531_v27  ;;  %v532_v56 = vld [vmem:[#allocation2 + $0x9a] sm:$0xff]  ;;  %v363_v37 = vld [vmem:[#allocation2 + $0xa8] sm:$0xff]  ;;  %v364_v36 = vld [vmem:[#allocation2 + $0xb0] sm:$0xff] }
  0x4d   : > { %v1001_v30 = vadd.f32 %v969_v28, %v900_v15  ;;  %v499_v8 = vadd.f32 %v467_v39, %v398_v59  ;;  %v770_v13 = vmul.f32 %v6201_v34, %v733_v29  ;;  %v399_v63 = vmul.f32 %v6134_v10, %v362_v17  ;;  %v835_v14 = vld [vmem:[#allocation2 + $0x9d] sm:$0xff]  ;;  %v735_v18 = vld [vmem:[#allocation2 + $0xac] sm:$0xff] }
  0x4e   : > { %v901_v57 = vadd.f32 %v869_v11, %v800_v22  ;;  %v700_v58 = vadd.f32 %v6237_v46, %v599_v32  ;;  %1071 = vst [vmem:[%s6323_s18 + $0x40] sm:$0xff] %v1039_v50  ;;  %v871_v28 = vmul.f32 %v6220_v42, %v834_v40  ;;  %v468_v7 = vmul.f32 %v6182_v25, %v431_v49  ;;  %v836_v15 = vld [vmem:[#allocation2 + $0xad] sm:$0xff] }
  0x4f   : > { %v1040_v0 = vadd.f32 %v6310_v41, %v1001_v30  ;;  %v600_v5 = vadd.f32 %v568_v24, %v499_v8  ;;  %v972_v46 = vmul.f32 %v6225_v43, %v935_v55  ;;  %v569_v1 = vmul.f32 %v6187_v26, %v532_v56  ;;  %v433_v59 = vld [vmem:[#allocation2 + $0xb1] sm:$0xff] }
  0x50   : > { %v1002_v11 = vadd.f32 %v970_v44, %v901_v57  ;;  %v801_v48 = vadd.f32 %v769_v23, %v700_v58  ;;  %v500_v20 = vadd.f32 %v468_v7, %v399_v63  ;;  %v771_v9 = vmul.f32 %v6201_v34, %v734_v16  ;;  %v937_v22 = vld [vmem:[#allocation2 + $0xae] sm:$0xff]  ;;  %v365_v58 = vld [vmem:[#allocation2 + $0xc0] sm:$0xff] }
  0x51   : > { %1072 = vst [vmem:[%s6323_s18 + $0x48] sm:$0xff] %v1040_v0  ;;  %v701_v62 = vadd.f32 %v6240_v47, %v600_v5  ;;  %v400_v12 = vmul.f32 %v6134_v10, %v363_v37  ;;  %v872_v27 = vmul.f32 %v6220_v42, %v835_v14  ;;  %v469_v6 = vmul.f32 %v6182_v25, %v432_v31  ;;  %v534_v32 = vld [vmem:[#allocation2 + $0xb2] sm:$0xff]  ;;  %v535_v14 = vld [vmem:[#allocation2 + $0xc2] sm:$0xff] }
  0x52   : > { %v1041_v44 = vadd.f32 %v6310_v41, %v1002_v11  ;;  %v902_v23 = vadd.f32 %v870_v19, %v801_v48  ;;  %v601_v29 = vadd.f32 %v569_v1, %v500_v20  ;;  %v973_v47 = vmul.f32 %v6225_v43, %v936_v33  ;;  %v736_v30 = vld [vmem:[#allocation2 + $0xb4] sm:$0xff]  ;;  %v737_v31 = vld [vmem:[#allocation2 + $0xc4] sm:$0xff] }
  0x53   : > { %v802_v39 = vadd.f32 %v770_v13, %v701_v62  ;;  %v570_v17 = vmul.f32 %v6187_v26, %v533_v35  ;;  %v501_v49 = vadd.f32 %v469_v6, %v400_v12  ;;  %v772_v50 = vmul.f32 %v6201_v34, %v735_v18  ;;  %v837_v57 = vld [vmem:[#allocation2 + $0xb5] sm:$0xff]  ;;  %v434_v13 = vld [vmem:[#allocation2 + $0xc1] sm:$0xff]  ;;  %v435_v62 = vld [vmem:[#allocation2 + $0xc9] sm:$0xff] }
  0x54   : > { %1073 = vst [vmem:[%s6323_s18 + $0x50] sm:$0xff] %v1041_v44  ;;  %v1003_v40 = vadd.f32 %v971_v45, %v902_v23  ;;  %v401_v19 = vmul.f32 %v6134_v10, %v364_v36  ;;  %v702_v24 = vadd.f32 %v6244_v51, %v601_v29  ;;  %v873_v55 = vmul.f32 %v6220_v42, %v836_v15  ;;  %v938_v0 = vld [vmem:[#allocation2 + $0xb6] sm:$0xff]  ;;  %v366_v35 = vld [vmem:[#allocation2 + $0xc8] sm:$0xff] }
  0x55   : > { %v903_v8 = vadd.f32 %v871_v28, %v802_v39  ;;  %v470_v56 = vmul.f32 %v6182_v25, %v433_v59  ;;  %v602_v45 = vadd.f32 %v570_v17, %v501_v49  ;;  %v974_v16 = vmul.f32 %v6225_v43, %v937_v22  ;;  %v838_v18 = vld [vmem:[#allocation2 + $0xc5] sm:$0xff]  ;;  %v367_v22 = vld [vmem:[#allocation2 + $0xd8] sm:$0xff] }
  0x56   : > { %v1042_v63 = vadd.f32 %v6310_v41, %v1003_v40  ;;  %v571_v37 = vmul.f32 %v6187_v26, %v534_v32  ;;  %v803_v28 = vadd.f32 %v771_v9, %v702_v24  ;;  %v773_v51 = vmul.f32 %v6201_v34, %v736_v30  ;;  %v939_v36 = vld [vmem:[#allocation2 + $0xc6] sm:$0xff]  ;;  %v436_v30 = vld [vmem:[#allocation2 + $0xd9] sm:$0xff] }
  0x57   : > { %v1004_v5 = vadd.f32 %v972_v46, %v903_v8  ;;  %v502_v7 = vadd.f32 %v470_v56, %v401_v19  ;;  %v703_v11 = vadd.f32 %v6248_v52, %v602_v45  ;;  %v874_v48 = vmul.f32 %v6220_v42, %v837_v57  ;;  %v536_v15 = vld [vmem:[#allocation2 + $0xca] sm:$0xff]  ;;  %v537_v57 = vld [vmem:[#allocation2 + $0xda] sm:$0xff] }
  0x58   : > { %1074 = vst [vmem:[%s6323_s18 + $0x58] sm:$0xff] %v1042_v63  ;;  %v402_v1 = vmul.f32 %v6134_v10, %v365_v58  ;;  %v471_v33 = vmul.f32 %v6182_v25, %v434_v13  ;;  %v904_v20 = vadd.f32 %v872_v27, %v803_v28  ;;  %v975_v12 = vmul.f32 %v6225_v43, %v938_v0  ;;  %v738_v17 = vld [vmem:[#allocation2 + $0xcc] sm:$0xff]  ;;  %v739_v45 = vld [vmem:[#allocation2 + $0xdc] sm:$0xff] }
  0x59   : > { %v1043_v46 = vadd.f32 %v6310_v41, %v1004_v5  ;;  %v603_v9 = vadd.f32 %v571_v37, %v502_v7  ;;  %v804_v44 = vadd.f32 %v772_v50, %v703_v11  ;;  %v572_v52 = vmul.f32 %v6187_v26, %v535_v14  ;;  %v839_v19 = vld [vmem:[#allocation2 + $0xcd] sm:$0xff]  ;;  %v840_v7 = vld [vmem:[#allocation2 + $0xdd] sm:$0xff] }
  0x5a   : > { %v503_v23 = vadd.f32 %v471_v33, %v402_v1  ;;  %v774_v6 = vmul.f32 %v6201_v34, %v737_v31  ;;  %v1005_v59 = vadd.f32 %v973_v47, %v904_v20  ;;  %v403_v29 = vmul.f32 %v6134_v10, %v366_v35  ;;  %v940_v56 = vld [vmem:[#allocation2 + $0xce] sm:$0xff]  ;;  %v437_v14 = vld [vmem:[#allocation2 + $0xe1] sm:$0xff] }
  0x5b   : > { %1075 = vst [vmem:[%s6323_s18 + $0x60] sm:$0xff] %v1043_v46  ;;  %v704_v39 = vadd.f32 %v6252_v53, %v603_v9  ;;  %v472_v27 = vmul.f32 %v6182_v25, %v435_v62  ;;  %v905_v32 = vadd.f32 %v873_v55, %v804_v44  ;;  %v875_v49 = vmul.f32 %v6220_v42, %v838_v18  ;;  %v941_v1 = vld [vmem:[#allocation2 + $0xde] sm:$0xff] }
  0x5c   : > { %v604_v40 = vadd.f32 %v572_v52, %v503_v23  ;;  %v976_v50 = vmul.f32 %v6225_v43, %v939_v36  ;;  %v1044_v8 = vadd.f32 %v6310_v41, %v1005_v59  ;;  %v573_v53 = vmul.f32 %v6187_v26, %v536_v15  ;;  %v538_v46 = vld [vmem:[#allocation2 + $0xe2] sm:$0xff]  ;;  %v369_v23 = vld [vmem:[#allocation2 + $0xf0] sm:$0xff] }
  0x5d   : > { %v805_v47 = vadd.f32 %v773_v51, %v704_v39  ;;  %v504_v24 = vadd.f32 %v472_v27, %v403_v29  ;;  %v1006_v58 = vadd.f32 %v974_v16, %v905_v32  ;;  %v775_v55 = vmul.f32 %v6201_v34, %v738_v17  ;;  %v368_v51 = vld [vmem:[#allocation2 + $0xe0] sm:$0xff]  ;;  %v438_v52 = vld [vmem:[#allocation2 + $0xf1] sm:$0xff] }
  0x5e   : > { %v705_v13 = vadd.f32 %v6256_v54, %v604_v40  ;;  %v404_v63 = vmul.f32 %v6134_v10, %v367_v22  ;;  %1076 = vst [vmem:[%s6323_s18 + $0x68] sm:$0xff] %v1044_v8  ;;  %v876_v5 = vmul.f32 %v6220_v42, %v839_v19  ;;  %v473_v28 = vmul.f32 %v6182_v25, %v436_v30  ;;  %v740_v20 = vld [vmem:[#allocation2 + $0xe4] sm:$0xff]  ;;  %v539_v32 = vld [vmem:[#allocation2 + $0xf2] sm:$0xff] }
  0x5f   : > { %v906_v37 = vadd.f32 %v874_v48, %v805_v47  ;;  %v605_v0 = vadd.f32 %v573_v53, %v504_v24  ;;  %v1045_v16 = vadd.f32 %v6310_v41, %v1006_v58  ;;  %v977_v54 = vmul.f32 %v6225_v43, %v940_v56  ;;  %v841_v59 = vld [vmem:[#allocation2 + $0xe5] sm:$0xff]  ;;  %v741_v8 = vld [vmem:[#allocation2 + $0xf4] sm:$0xff] }
  0x60   : > { %v806_v31 = vadd.f32 %v774_v6, %v705_v13  ;;  %v574_v11 = vmul.f32 %v6187_v26, %v537_v57  ;;  %v505_v35 = vadd.f32 %v473_v28, %v404_v63  ;;  %v776_v62 = vmul.f32 %v6201_v34, %v739_v45  ;;  %v942_v39 = vld [vmem:[#allocation2 + $0xe6] sm:$0xff]  ;;  %v370_v47 = vld [vmem:[#allocation2 + $0xf8] sm:$0xff] }
  0x61   : > { %v1007_v33 = vadd.f32 %v975_v12, %v906_v37  ;;  %v706_v48 = vadd.f32 %v6262_v60, %v605_v0  ;;  %1077 = vst [vmem:[%s6323_s18 + $0x70] sm:$0xff] %v1045_v16  ;;  %v877_v18 = vmul.f32 %v6220_v42, %v840_v7  ;;  %v405_v36 = vmul.f32 %v6134_v10, %v368_v51  ;;  %v439_v24 = vld [vmem:[#allocation2 + $0xf9] sm:$0xff] }
  0x62   : > { %v907_v9 = vadd.f32 %v875_v49, %v806_v31  ;;  %v474_v44 = vmul.f32 %v6182_v25, %v437_v14  ;;  %v606_v60 = vadd.f32 %v574_v11, %v505_v35  ;;  %v978_v15 = vmul.f32 %v6225_v43, %v941_v1  ;;  %v842_v58 = vld [vmem:[#allocation2 + $0xf5] sm:$0xff]  ;;  %v371_v14 = vld [vmem:[#allocation2 + $0x108] sm:$0xff]  ;;  %v843_v1 = vld [vmem:[#allocation2 + $0xfd] sm:$0xff] }
  0x63   : > { %v1046_v12 = vadd.f32 %v6310_v41, %v1007_v33  ;;  %v807_v6 = vadd.f32 %v775_v55, %v706_v48  ;;  %v575_v17 = vmul.f32 %v6187_v26, %v538_v46  ;;  %v777_v22 = vmul.f32 %v6201_v34, %v740_v20  ;;  %v943_v45 = vld [vmem:[#allocation2 + $0xf6] sm:$0xff]  ;;  %v440_v33 = vld [vmem:[#allocation2 + $0x109] sm:$0xff]  ;;  %v944_v46 = vld [vmem:[#allocation2 + $0xfe] sm:$0xff] }
  0x64   : > { %v1008_v29 = vadd.f32 %v976_v50, %v907_v9  ;;  %v506_v27 = vadd.f32 %v474_v44, %v405_v36  ;;  %v707_v49 = vadd.f32 %v6266_v61, %v606_v60  ;;  %v406_v19 = vmul.f32 %v6134_v10, %v369_v23  ;;  %v540_v37 = vld [vmem:[#allocation2 + $0xfa] sm:$0xff]  ;;  %v541_v20 = vld [vmem:[#allocation2 + $0x10a] sm:$0xff] }
  0x65   : > { %1078 = vst [vmem:[%s6323_s18 + $0x78] sm:$0xff] %v1046_v12  ;;  %v908_v40 = vadd.f32 %v876_v5, %v807_v6  ;;  %v475_v30 = vmul.f32 %v6182_v25, %v438_v52  ;;  %v878_v56 = vmul.f32 %v6220_v42, %v841_v59  ;;  %v979_v57 = vmul.f32 %v6225_v43, %v942_v39  ;;  %v742_v51 = vld [vmem:[#allocation2 + $0xfc] sm:$0xff]  ;;  %v642_v23 = vld [vmem:[#allocation2 + $0x10b] sm:$0xff] }
  0x66   : > { %v1047_v50 = vadd.f32 %v6310_v41, %v1008_v29  ;;  %v607_v53 = vadd.f32 %v575_v17, %v506_v27  ;;  %v808_v55 = vadd.f32 %v776_v62, %v707_v49  ;;  %v576_v61 = vmul.f32 %v6187_v26, %v539_v32  ;;  %v743_v59 = vld [vmem:[#allocation2 + $0x10c] sm:$0xff] }
  0x67   : > { %v1009_v13 = vadd.f32 %v977_v54, %v908_v40  ;;  %v507_v63 = vadd.f32 %v475_v30, %v406_v19  ;;  %v778_v5 = vmul.f32 %v6201_v34, %v741_v8  ;;  %v407_v28 = vmul.f32 %v6134_v10, %v370_v47  ;;  %v372_v39 = vld [vmem:[#allocation2 + $0x110] sm:$0xff] }
  0x68   : > { %1079 = vst [vmem:[%s6323_s18 + $0x80] sm:$0xff] %v1047_v50  ;;  %v708_v0 = vadd.f32 %v6271_v2, %v607_v53  ;;  %v476_v7 = vmul.f32 %v6182_v25, %v439_v24  ;;  %v909_v31 = vadd.f32 %v877_v18, %v808_v55  ;;  %v879_v11 = vmul.f32 %v6220_v42, %v842_v58  ;;  %v441_v29 = vld [vmem:[#allocation2 + $0x111] sm:$0xff]  ;;  %v6492_v24 = vld [vmem:[%s8782_s1] ss:$0 sm:$0xff] }
  0x69   : > { %v1048_v16 = vadd.f32 %v6310_v41, %v1009_v13  ;;  %v608_v54 = vadd.f32 %v576_v61, %v507_v63  ;;  %v980_v2 = vmul.f32 %v6225_v43, %v943_v45  ;;  %v577_v62 = vmul.f32 %v6187_v26, %v540_v37  ;;  %v945_v19 = vld [vmem:[#allocation2 + $0x10e] sm:$0xff]  ;;  %v373_v55 = vld [vmem:[#allocation2 + $0x120] sm:$0xff] }
  0x6a   : > { %v809_v48 = vadd.f32 %v777_v22, %v708_v0  ;;  %v508_v35 = vadd.f32 %v476_v7, %v407_v28  ;;  %v1010_v9 = vadd.f32 %v978_v15, %v909_v31  ;;  %v779_v44 = vmul.f32 %v6201_v34, %v742_v51  ;;  %v844_v22 = vld [vmem:[#allocation2 + $0x10d] sm:$0xff]  ;;  %v442_v63 = vld [vmem:[#allocation2 + $0x121] sm:$0xff]  ;;  %v946_v28 = vld [vmem:[#allocation2 + $0x116] sm:$0xff] }
  0x6b   : > { %1080 = vst [vmem:[%s6323_s18 + $0x88] sm:$0xff] %v1048_v16  ;;  %v709_v36 = vadd.f32 %v6275_v3, %v608_v54  ;;  %v408_v18 = vmul.f32 %v6134_v10, %v371_v14  ;;  %v880_v6 = vmul.f32 %v6220_v42, %v843_v1  ;;  %v477_v60 = vmul.f32 %v6182_v25, %v440_v33  ;;  %v542_v30 = vld [vmem:[#allocation2 + $0x112] sm:$0xff]  ;;  %v6504_v51 = vld [vmem:[%s8782_s1 + $0x3] ss:$0 sm:$0xff]  ;;  %v6513_v33 = vld [vmem:[%s8782_s1 + $0x1] ss:$0 sm:$0xff] }
  0x6c   : > { %v910_v52 = vadd.f32 %v878_v56, %v809_v48  ;;  %v609_v12 = vadd.f32 %v577_v62, %v508_v35  ;;  %v1049_v27 = vadd.f32 %v6310_v41, %v1010_v9  ;;  %v981_v3 = vmul.f32 %v6225_v43, %v944_v46  ;;  %v744_v56 = vld [vmem:[#allocation2 + $0x114] sm:$0xff]  ;;  %v543_v31 = vld [vmem:[#allocation2 + $0x122] sm:$0xff] }
  0x6d   : > { %v810_v15 = vadd.f32 %v778_v5, %v709_v36  ;;  %v578_v17 = vmul.f32 %v6187_v26, %v541_v20  ;;  %v509_v40 = vadd.f32 %v477_v60, %v408_v18  ;;  %v679_v49 = vmul.f32 %v6173_v21, %v642_v23  ;;  %v845_v5 = vld [vmem:[#allocation2 + $0x115] sm:$0xff]  ;;  %v644_v54 = vld [vmem:[#allocation2 + $0x123] sm:$0xff]  ;;  %v6522_v23 = vld [vmem:[%s8782_s1 + $0x2] ss:$0 sm:$0xff] }
  0x6e   : > { %v1011_v10 = vadd.f32 %v979_v57, %v910_v52  ;;  %v710_v32 = vadd.f32 %v6279_v4, %v609_v12  ;;  %1081 = vst [vmem:[%s6323_s18 + $0x90] sm:$0xff] %v1049_v27  ;;  %v780_v47 = vmul.f32 %v6201_v34, %v743_v59  ;;  %v409_v50 = vmul.f32 %v6492_v24, %v372_v39  ;;  %v643_v4 = vld [vmem:[#allocation2 + $0x113] sm:$0xff]  ;;  %v374_v35 = vld [vmem:[#allocation2 + $0x128] sm:$0xff]  ;;  %v6530_v39 = vld [vmem:[%s8782_s1 + $0x4] ss:$0 sm:$0xff] }
  0x6f   : > { %v911_v8 = vadd.f32 %v879_v11, %v810_v15  ;;  %v478_v53 = vmul.f32 %v6182_v25, %v441_v29  ;;  %v610_v58 = vadd.f32 %v578_v17, %v509_v40  ;;  %v881_v13 = vmul.f32 %v6220_v42, %v844_v22  ;;  %v846_v9 = vld [vmem:[#allocation2 + $0x125] sm:$0xff]  ;;  %v847_v40 = vld [vmem:[#allocation2 + $0x12d] sm:$0xff] }
  0x70   : > { %v1050_v21 = vadd.f32 %v6310_v41, %v1011_v10  ;;  %v811_v57 = vadd.f32 %v779_v44, %v710_v32  ;;  %v982_v45 = vmul.f32 %v6225_v43, %v945_v19  ;;  %v579_v0 = vmul.f32 %v6187_v26, %v542_v30  ;;  %v443_v36 = vld [vmem:[#allocation2 + $0x129] sm:$0xff]  ;;  %v6537_v22 = vld [vmem:[%s8782_s1 + $0x5] ss:$0 sm:$0xff]  ;;  %v444_v19 = vld [vmem:[#allocation2 + $0x139] sm:$0xff] }
  0x71   : > { %v1012_v61 = vadd.f32 %v980_v2, %v911_v8  ;;  %v510_v37 = vadd.f32 %v478_v53, %v409_v50  ;;  %v711_v7 = vadd.f32 %v679_v49, %v610_v58  ;;  %v680_v14 = vmul.f32 %v6504_v51, %v643_v4  ;;  %v745_v2 = vld [vmem:[#allocation2 + $0x124] sm:$0xff]  ;;  %v746_v15 = vld [vmem:[#allocation2 + $0x12c] sm:$0xff]  ;;  %v375_v49 = vld [vmem:[#allocation2 + $0x138] sm:$0xff] }
  0x72   : > { %1082 = vst [vmem:[%s6323_s18 + $0x98] sm:$0xff] %v1050_v21  ;;  %v912_v25 = vadd.f32 %v880_v6, %v811_v57  ;;  %v781_v16 = vmul.f32 %v6201_v34, %v744_v56  ;;  %v410_v1 = vmul.f32 %v6492_v24, %v373_v55  ;;  %v479_v48 = vmul.f32 %v6513_v33, %v442_v63  ;;  %v947_v6 = vld [vmem:[#allocation2 + $0x126] sm:$0xff]  ;;  %v948_v4 = vld [vmem:[#allocation2 + $0x12e] sm:$0xff]  ;;  %v646_v55 = vld [vmem:[#allocation2 + $0x13b] sm:$0xff] }
  0x73   : > { %v1051_v11 = vadd.f32 %v6310_v41, %v1012_v61  ;;  %v611_v26 = vadd.f32 %v579_v0, %v510_v37  ;;  %v812_v46 = vadd.f32 %v780_v47, %v711_v7  ;;  %v882_v34 = vmul.f32 %v6220_v42, %v845_v5  ;;  %v544_v60 = vld [vmem:[#allocation2 + $0x12a] sm:$0xff]  ;;  %v6545_v8 = vld [vmem:[%s8782_s1 + $0x6] ss:$0 sm:$0xff]  ;;  %v747_v63 = vld [vmem:[#allocation2 + $0x13c] sm:$0xff] }
  0x74   : > { %v1013_v62 = vadd.f32 %v981_v3, %v912_v25  ;;  %v983_v20 = vmul.f32 %v6225_v43, %v946_v28  ;;  %v511_v18 = vadd.f32 %v479_v48, %v410_v1  ;;  %v580_v52 = vmul.f32 %v6522_v23, %v543_v31  ;;  %v645_v42 = vld [vmem:[#allocation2 + $0x12b] sm:$0xff]  ;;  %v376_v5 = vld [vmem:[#allocation2 + $0x140] sm:$0xff] }
  0x75   : > { %1083 = vst [vmem:[%s6323_s18 + $0xa0] sm:$0xff] %v1051_v11  ;;  %v712_v44 = vadd.f32 %v680_v14, %v611_v26  ;;  %v681_v12 = vmul.f32 %v6504_v51, %v644_v54  ;;  %v913_v59 = vadd.f32 %v881_v13, %v812_v46  ;;  %v782_v29 = vmul.f32 %v6530_v39, %v745_v2  ;;  %v545_v13 = vld [vmem:[#allocation2 + $0x13a] sm:$0xff]  ;;  %v546_v2 = vld [vmem:[#allocation2 + $0x142] sm:$0xff] }
  0x76   : > { %v1052_v43 = vadd.f32 %v6310_v41, %v1013_v62  ;;  %v411_v27 = vmul.f32 %v6492_v24, %v374_v35  ;;  %v612_v17 = vadd.f32 %v580_v52, %v511_v18  ;;  %v883_v10 = vmul.f32 %v6537_v22, %v846_v9  ;;  %v949_v31 = vld [vmem:[#allocation2 + $0x13e] sm:$0xff] }
  0x77   : > { %v813_v3 = vadd.f32 %v781_v16, %v712_v44  ;;  %v480_v32 = vmul.f32 %v6513_v33, %v443_v36  ;;  %v1014_v30 = vadd.f32 %v982_v45, %v913_v59  ;;  %v984_v47 = vmul.f32 %v6545_v8, %v947_v6  ;;  %v848_v16 = vld [vmem:[#allocation2 + $0x13d] sm:$0xff]  ;;  %v377_v36 = vld [vmem:[#allocation2 + $0x150] sm:$0xff]  ;;  %v849_v6 = vld [vmem:[#allocation2 + $0x145] sm:$0xff] }
  0x78   : > { %1084 = vst [vmem:[%s6323_s18 + $0xa8] sm:$0xff] %v1052_v43  ;;  %v581_v50 = vmul.f32 %v6522_v23, %v544_v60  ;;  %v682_v53 = vmul.f32 %v6504_v51, %v645_v42  ;;  %v713_v21 = vadd.f32 %v681_v12, %v612_v17  ;;  %v783_v58 = vmul.f32 %v6530_v39, %v746_v15  ;;  %v445_v54 = vld [vmem:[#allocation2 + $0x141] sm:$0xff]  ;;  %v446_v60 = vld [vmem:[#allocation2 + $0x151] sm:$0xff] }
  0x79   : > { %v914_v56 = vadd.f32 %v882_v34, %v813_v3  ;;  %v512_v57 = vadd.f32 %v480_v32, %v411_v27  ;;  %v1053_v61 = vadd.f32 %v6310_v41, %v1014_v30  ;;  %v884_v45 = vmul.f32 %v6537_v22, %v847_v40  ;;  %v647_v35 = vld [vmem:[#allocation2 + $0x143] sm:$0xff]  ;;  %v547_v15 = vld [vmem:[#allocation2 + $0x152] sm:$0xff] }
  0x7a   : > { %v412_v37 = vmul.f32 %v6492_v24, %v375_v49  ;;  %v481_v0 = vmul.f32 %v6513_v33, %v444_v19  ;;  %v814_v25 = vadd.f32 %v782_v29, %v713_v21  ;;  %v985_v14 = vmul.f32 %v6545_v8, %v948_v4  ;;  %v748_v9 = vld [vmem:[#allocation2 + $0x144] sm:$0xff]  ;;  %v648_v40 = vld [vmem:[#allocation2 + $0x153] sm:$0xff] }
  0x7b   : > { %v1015_v28 = vadd.f32 %v983_v20, %v914_v56  ;;  %v613_v7 = vadd.f32 %v581_v50, %v512_v57  ;;  %1085 = vst [vmem:[%s6323_s18 + $0xb0] sm:$0xff] %v1053_v61  ;;  %v582_v26 = vmul.f32 %v6522_v23, %v545_v13  ;;  %v683_v1 = vmul.f32 %v6504_v51, %v646_v55  ;;  %v950_v27 = vld [vmem:[#allocation2 + $0x146] sm:$0xff]  ;;  %v749_v49 = vld [vmem:[#allocation2 + $0x154] sm:$0xff] }
  0x7c   : > { %v513_v11 = vadd.f32 %v481_v0, %v412_v37  ;;  %v784_v48 = vmul.f32 %v6530_v39, %v747_v63  ;;  %v915_v46 = vadd.f32 %v883_v10, %v814_v25  ;;  %v413_v20 = vmul.f32 %v6492_v24, %v376_v5  ;;  %v447_v4 = vld [vmem:[#allocation2 + $0x159] sm:$0xff] }
  0x7d   : > { %v1054_v62 = vadd.f32 %v6310_v41, %v1015_v28  ;;  %v714_v34 = vadd.f32 %v682_v53, %v613_v7  ;;  %v885_v18 = vmul.f32 %v6537_v22, %v848_v16  ;;  %v986_v52 = vmul.f32 %v6545_v8, %v949_v31  ;;  %v378_v53 = vld [vmem:[#allocation2 + $0x158] sm:$0xff]  ;;  %v379_v31 = vld [vmem:[#allocation2 + $0x168] sm:$0xff] }
  0x7e   : > { %v614_v44 = vadd.f32 %v582_v26, %v513_v11  ;;  %v482_v12 = vmul.f32 %v6513_v33, %v445_v54  ;;  %v1016_v42 = vadd.f32 %v984_v47, %v915_v46  ;;  %v583_v59 = vmul.f32 %v6522_v23, %v546_v2  ;;  %v850_v13 = vld [vmem:[#allocation2 + $0x155] sm:$0xff] }
  0x7f   : > { %1086 = vst [vmem:[%s6323_s18 + $0xb8] sm:$0xff] %v1054_v62  ;;  %v815_v43 = vadd.f32 %v783_v58, %v714_v34  ;;  %v684_v29 = vmul.f32 %v6504_v51, %v647_v35  ;;  %v785_v10 = vmul.f32 %v6530_v39, %v748_v9  ;;  %v414_v32 = vmul.f32 %v6492_v24, %v377_v36  ;;  %v951_v55 = vld [vmem:[#allocation2 + $0x156] sm:$0xff]  ;;  %v549_v9 = vld [vmem:[#allocation2 + $0x16a] sm:$0xff] }
  0x80   : > { %v715_v3 = vadd.f32 %v683_v1, %v614_v44  ;;  %v514_v17 = vadd.f32 %v482_v12, %v413_v20  ;;  %v1055_v19 = vadd.f32 %v6310_v41, %v1016_v42  ;;  %v886_v47 = vmul.f32 %v6537_v22, %v849_v6  ;;  %v548_v37 = vld [vmem:[#allocation2 + $0x15a] sm:$0xff]  ;;  %v650_v6 = vld [vmem:[#allocation2 + $0x16b] sm:$0xff] }
  0x81   : > { %v916_v30 = vadd.f32 %v884_v45, %v815_v43  ;;  %v483_v50 = vmul.f32 %v6513_v33, %v446_v60  ;;  %v987_v57 = vmul.f32 %v6545_v8, %v950_v27  ;;  %v584_v58 = vmul.f32 %v6522_v23, %v547_v15  ;;  %v649_v7 = vld [vmem:[#allocation2 + $0x15b] sm:$0xff]  ;;  %v449_v27 = vld [vmem:[#allocation2 + $0x171] sm:$0xff] }
  0x82   : > { %v816_v56 = vadd.f32 %v784_v48, %v715_v3  ;;  %v615_v21 = vadd.f32 %v583_v59, %v514_v17  ;;  %1087 = vst [vmem:[%s6323_s18 + $0xc0] sm:$0xff] %v1055_v19  ;;  %v685_v41 = vmul.f32 %v6504_v51, %v648_v40  ;;  %v786_v45 = vmul.f32 %v6530_v39, %v749_v49  ;;  %v750_v16 = vld [vmem:[#allocation2 + $0x15c] sm:$0xff]  ;;  %v448_v48 = vld [vmem:[#allocation2 + $0x169] sm:$0xff] }
  0x83   : > { %v1017_v63 = vadd.f32 %v985_v14, %v916_v30  ;;  %v515_v61 = vadd.f32 %v483_v50, %v414_v32  ;;  %v415_v28 = vmul.f32 %v6492_v24, %v378_v53  ;;  %v484_v25 = vmul.f32 %v6513_v33, %v447_v4  ;;  %v6583_v14 = vld [vmem:[%s8783_s2] ss:$0 sm:$0xff]  ;;  %v751_v59 = vld [vmem:[#allocation2 + $0x16c] sm:$0xff] }
  0x84   : > { %v917_v0 = vadd.f32 %v885_v18, %v816_v56  ;;  %v716_v5 = vadd.f32 %v684_v29, %v615_v21  ;;  %v887_v26 = vmul.f32 %v6537_v22, %v850_v13  ;;  %v988_v1 = vmul.f32 %v6545_v8, %v951_v55  ;;  %v851_v34 = vld [vmem:[#allocation2 + $0x15d] sm:$0xff]  ;;  %v380_v29 = vld [vmem:[#allocation2 + $0x170] sm:$0xff] }
  0x85   : > { %v1056_v54 = vadd.f32 %v6583_v14, %v1017_v63  ;;  %v616_v11 = vadd.f32 %v584_v58, %v515_v61  ;;  %v516_v62 = vadd.f32 %v484_v25, %v415_v28  ;;  %v585_v46 = vmul.f32 %v6522_v23, %v548_v37  ;;  %v952_v20 = vld [vmem:[#allocation2 + $0x15e] sm:$0xff]  ;;  %v852_v32 = vld [vmem:[#allocation2 + $0x16d] sm:$0xff]  ;;  %v853_v25 = vld [vmem:[#allocation2 + $0x175] sm:$0xff] }
  0x86   : > { %v1018_v2 = vadd.f32 %v986_v52, %v917_v0  ;;  %v817_v35 = vadd.f32 %v785_v10, %v716_v5  ;;  %v686_v44 = vmul.f32 %v6504_v51, %v649_v7  ;;  %v787_v18 = vmul.f32 %v6530_v39, %v750_v16  ;;  %v550_v50 = vld [vmem:[#allocation2 + $0x172] sm:$0xff]  ;;  %v1267_v37 = vld [vmem:[#allocation2 + $0x1a] sm:$0xff]  ;;  %v6620_v16 = vld [vmem:[%s8782_s1 + $0xb] ss:$0 sm:$0xff] }
  0x87   : > { %1088 = vst [vmem:[%s6323_s18 + $0xc8] sm:$0xff] %v1056_v54  ;;  %v717_v36 = vadd.f32 %v685_v41, %v616_v11  ;;  %v416_v12 = vmul.f32 %v6492_v24, %v379_v31  ;;  %v617_v42 = vadd.f32 %v585_v46, %v516_v62  ;;  %v485_v43 = vmul.f32 %v6513_v33, %v448_v48  ;;  %v651_v58 = vld [vmem:[#allocation2 + $0x173] sm:$0xff]  ;;  %v1469_v48 = vld [vmem:[#allocation2 + $0x1c] sm:$0xff] }
  0x88   : > { %v1057_v60 = vadd.f32 %v6583_v14, %v1018_v2  ;;  %v918_v52 = vadd.f32 %v886_v47, %v817_v35  ;;  %v888_v3 = vmul.f32 %v6537_v22, %v851_v34  ;;  %v989_v17 = vmul.f32 %v6545_v8, %v952_v20  ;;  %v953_v47 = vld [vmem:[#allocation2 + $0x16e] sm:$0xff]  ;;  %v954_v7 = vld [vmem:[#allocation2 + $0x176] sm:$0xff]  ;;  %v1268_v34 = vld [vmem:[#allocation2 + $0x22] sm:$0xff] }
  0x89   : > { %v818_v15 = vadd.f32 %v786_v45, %v717_v36  ;;  %v586_v10 = vmul.f32 %v6522_v23, %v549_v9  ;;  %v718_v49 = vadd.f32 %v686_v44, %v617_v42  ;;  %v517_v19 = vadd.f32 %v485_v43, %v416_v12  ;;  %v752_v13 = vld [vmem:[#allocation2 + $0x174] sm:$0xff]  ;;  %v1671_v12 = vld [vmem:[#allocation2 + $0x1e] sm:$0xff] }
  0x8a   : > { %1089 = vst [vmem:[%s6323_s18 + $0xd0] sm:$0xff] %v1057_v60  ;;  %v1019_v40 = vadd.f32 %v987_v57, %v918_v52  ;;  %v687_v30 = vmul.f32 %v6504_v51, %v650_v6  ;;  %v788_v4 = vmul.f32 %v6530_v39, %v751_v59  ;;  %v417_v56 = vmul.f32 %v6492_v24, %v380_v29  ;;  %v6606_v57 = vld [vmem:[%s8782_s1 + $0x9] ss:$0 sm:$0xff]  ;;  %v1166_v45 = vld [vmem:[#allocation2 + $0x19] sm:$0xff]  ;;  %v6613_v24 = vld [vmem:[%s8782_s1 + $0xa] ss:$0 sm:$0xff] }
  0x8b   : > { %v919_v53 = vadd.f32 %v887_v26, %v818_v15  ;;  %v486_v21 = vmul.f32 %v6513_v33, %v449_v27  ;;  %v819_v63 = vadd.f32 %v787_v18, %v718_v49  ;;  %v618_v61 = vadd.f32 %v586_v10, %v517_v19  ;;  %v1570_v18 = vld [vmem:[#allocation2 + $0x1d] sm:$0xff]  ;;  %v6643_v6 = vld [vmem:[%s8782_s1 + $0xe] ss:$0 sm:$0xff]  ;;  %v1571_v19 = vld [vmem:[#allocation2 + $0x25] sm:$0xff] }
  0x8c   : > { %v1058_v55 = vadd.f32 %v6583_v14, %v1019_v40  ;;  %v889_v41 = vmul.f32 %v6537_v22, %v852_v32  ;;  %v990_v0 = vmul.f32 %v6545_v8, %v953_v47  ;;  %v587_v28 = vmul.f32 %v6522_v23, %v550_v50  ;;  %v6628_v23 = vld [vmem:[%s8782_s1 + $0xc] ss:$0 sm:$0xff]  ;;  %v1369_v59 = vld [vmem:[#allocation2 + $0x23] sm:$0xff] }
  0x8d   : > { %v1020_v33 = vadd.f32 %v988_v1, %v919_v53  ;;  %v518_v5 = vadd.f32 %v486_v21, %v417_v56  ;;  %v920_v31 = vadd.f32 %v888_v3, %v819_v63  ;;  %v719_v54 = vadd.f32 %v687_v30, %v618_v61  ;;  %v1368_v1 = vld [vmem:[#allocation2 + $0x1b] sm:$0xff]  ;;  %v1168_v3 = vld [vmem:[#allocation2 + $0x31] sm:$0xff]  ;;  %v1672_v30 = vld [vmem:[#allocation2 + $0x26] sm:$0xff] }
  0x8e   : > { %1090 = vst [vmem:[%s6323_s18 + $0xd8] sm:$0xff] %v1058_v55  ;;  %v688_v11 = vmul.f32 %v6504_v51, %v651_v58  ;;  %v789_v26 = vmul.f32 %v6530_v39, %v752_v13  ;;  %v1203_v62 = vmul.f32 %v6606_v57, %v1166_v45  ;;  %v1304_v46 = vmul.f32 %v6613_v24, %v1267_v37  ;;  %v6636_v51 = vld [vmem:[%s8782_s1 + $0xd] ss:$0 sm:$0xff]  ;;  %v1167_v39 = vld [vmem:[#allocation2 + $0x21] sm:$0xff]  ;;  %v1370_v56 = vld [vmem:[#allocation2 + $0x33] sm:$0xff] }
  0x8f   : > { %v1059_v2 = vadd.f32 %v6583_v14, %v1020_v33  ;;  %v619_v35 = vadd.f32 %v587_v28, %v518_v5  ;;  %v1021_v20 = vadd.f32 %v989_v17, %v920_v31  ;;  %v820_v9 = vadd.f32 %v788_v4, %v719_v54  ;;  %v1269_v17 = vld [vmem:[#allocation2 + $0x32] sm:$0xff] }
  0x90   : > { %v890_v36 = vmul.f32 %v6537_v22, %v853_v25  ;;  %v991_v44 = vmul.f32 %v6545_v8, %v954_v7  ;;  %v1235_v52 = vadd.f32 %v1203_v62, %v6212_v38  ;;  %v1405_v42 = vmul.f32 %v6620_v16, %v1368_v1  ;;  %v1470_v22 = vld [vmem:[#allocation2 + $0x24] sm:$0xff]  ;;  %v1471_v63 = vld [vmem:[#allocation2 + $0x34] sm:$0xff] }
  0x91   : > { %1091 = vst [vmem:[%s6323_s18 + $0xe0] sm:$0xff] %v1059_v2  ;;  %v720_v60 = vadd.f32 %v688_v11, %v619_v35  ;;  %v1506_v43 = vmul.f32 %v6628_v23, %v1469_v48  ;;  %v1060_v8 = vadd.f32 %v6583_v14, %v1021_v20  ;;  %v921_v29 = vadd.f32 %v889_v41, %v820_v9  ;;  %v1169_v61 = vld [vmem:[#allocation2 + $0x39] sm:$0xff]  ;;  %v1100_v62 = vld [vmem:[#allocation2 + $0x48] sm:$0xff] }
  0x92   : > { %v1204_v27 = vmul.f32 %v6606_v57, %v1167_v39  ;;  %v1305_v15 = vmul.f32 %v6613_v24, %v1268_v34  ;;  %v1336_v32 = vadd.f32 %v1304_v46, %v1235_v52  ;;  %v1607_v40 = vmul.f32 %v6636_v51, %v1570_v18  ;;  %v1270_v41 = vld [vmem:[#allocation2 + $0x3a] sm:$0xff] }
  0x93   : > { %v821_v10 = vadd.f32 %v789_v26, %v720_v60  ;;  %v1708_v49 = vmul.f32 %v6643_v6, %v1671_v12  ;;  %1092 = vst [vmem:[%s6323_s18 + $0xe8] sm:$0xff] %v1060_v8  ;;  %v1022_v47 = vadd.f32 %v990_v0, %v921_v29  ;;  %v1406_v53 = vmul.f32 %v6620_v16, %v1369_v59  ;;  %v1572_v5 = vld [vmem:[#allocation2 + $0x35] sm:$0xff]  ;;  %v1573_v9 = vld [vmem:[#allocation2 + $0x3d] sm:$0xff]  ;;  %v6680_v8 = vld [vmem:[%s8782_s1 + $0x8] ss:$0 sm:$0xff] }
  0x94   : > { %v1236_v50 = vadd.f32 %v1204_v27, %v6212_v38  ;;  %v1507_v4 = vmul.f32 %v6628_v23, %v1470_v22  ;;  %v1437_v58 = vadd.f32 %v1405_v42, %v1336_v32  ;;  %v1205_v13 = vmul.f32 %v6606_v57, %v1168_v3  ;;  %v1673_v54 = vld [vmem:[#allocation2 + $0x36] sm:$0xff]  ;;  %v1674_v42 = vld [vmem:[#allocation2 + $0x3e] sm:$0xff]  ;;  %v1372_v27 = vld [vmem:[#allocation2 + $0x4b] sm:$0xff] }
  0x95   : > { %v922_v21 = vadd.f32 %v890_v36, %v821_v10  ;;  %v1306_v55 = vmul.f32 %v6613_v24, %v1269_v17  ;;  %v1061_v45 = vadd.f32 %v6583_v14, %v1022_v47  ;;  %v1608_v33 = vmul.f32 %v6636_v51, %v1571_v19  ;;  %v1371_v11 = vld [vmem:[#allocation2 + $0x3b] sm:$0xff]  ;;  %v1170_v36 = vld [vmem:[#allocation2 + $0x49] sm:$0xff] }
  0x96   : > { %v1337_v37 = vadd.f32 %v1305_v15, %v1236_v50  ;;  %v1709_v0 = vmul.f32 %v6643_v6, %v1672_v30  ;;  %v1538_v25 = vadd.f32 %v1506_v43, %v1437_v58  ;;  %v1237_v7 = vadd.f32 %v1205_v13, %v6212_v38  ;;  %v1472_v35 = vld [vmem:[#allocation2 + $0x3c] sm:$0xff]  ;;  %v1271_v43 = vld [vmem:[#allocation2 + $0x4a] sm:$0xff] }
  0x97   : > { %v1023_v28 = vadd.f32 %v991_v44, %v922_v21  ;;  %v1407_v31 = vmul.f32 %v6620_v16, %v1370_v56  ;;  %1093 = vst [vmem:[%s6323_s18 + $0xf0] sm:$0xff] %v1061_v45  ;;  %v1508_v1 = vmul.f32 %v6628_v23, %v1471_v63  ;;  %v1206_v48 = vmul.f32 %v6606_v57, %v1169_v61  ;;  %v1772_v44 = vld [vmem:[%s6323_s18] sm:$0xff]  ;;  %v1473_v10 = vld [vmem:[#allocation2 + $0x4c] sm:$0xff] }
  0x98   : > { %v1438_v26 = vadd.f32 %v1406_v53, %v1337_v37  ;;  %v1307_v2 = vmul.f32 %v6613_v24, %v1270_v41  ;;  %v1639_v39 = vadd.f32 %v1607_v40, %v1538_v25  ;;  %v1338_v34 = vadd.f32 %v1306_v55, %v1237_v7  ;;  %v1101_v32 = vld [vmem:[#allocation2 + $0x50] sm:$0xff]  ;;  %v1773_v19 = vld [vmem:[%s6323_s18 + $0x8] sm:$0xff] }
  0x99   : > { %v1062_v46 = vadd.f32 %v6583_v14, %v1023_v28  ;;  %v1609_v20 = vmul.f32 %v6636_v51, %v1572_v5  ;;  %v1710_v12 = vmul.f32 %v6643_v6, %v1673_v54  ;;  %v1238_v60 = vadd.f32 %v1206_v48, %v6212_v38  ;;  %v1171_v40 = vld [vmem:[#allocation2 + $0x51] sm:$0xff]  ;;  %v1172_v54 = vld [vmem:[#allocation2 + $0x61] sm:$0xff] }
  0x9a   : > { %v1539_v18 = vadd.f32 %v1507_v4, %v1438_v26  ;;  %v1408_v52 = vmul.f32 %v6620_v16, %v1371_v11  ;;  %v1740_v59 = vadd.f32 %v1708_v49, %v1639_v39  ;;  %v1439_v14 = vadd.f32 %v1407_v31, %v1338_v34  ;;  %v1574_v53 = vld [vmem:[#allocation2 + $0x4d] sm:$0xff]  ;;  %v1102_v31 = vld [vmem:[#allocation2 + $0x60] sm:$0xff] }
  0x9b   : > { %1094 = vst [vmem:[%s6323_s18 + $0xf8] sm:$0xff] %v1062_v46  ;;  %v1509_v22 = vmul.f32 %v6628_v23, %v1472_v35  ;;  %v1138_v29 = vmul.f32 %v6680_v8, %v1100_v62  ;;  %v1339_v38 = vadd.f32 %v1307_v2, %v1238_v60  ;;  %v1610_v3 = vmul.f32 %v6636_v51, %v1573_v9  ;;  %v1675_v13 = vld [vmem:[#allocation2 + $0x4e] sm:$0xff]  ;;  %v1676_v35 = vld [vmem:[#allocation2 + $0x56] sm:$0xff]  ;;  %v1374_v9 = vld [vmem:[#allocation2 + $0x63] sm:$0xff] }
  0x9c   : > { %v1640_v15 = vadd.f32 %v1608_v33, %v1539_v18  ;;  %v1207_v17 = vmul.f32 %v6606_v57, %v1170_v36  ;;  %v1804_v49 = vadd.f32 %v1772_v44, %v1740_v59  ;;  %v1540_v30 = vadd.f32 %v1508_v1, %v1439_v14  ;;  %v1272_v55 = vld [vmem:[#allocation2 + $0x52] sm:$0xff] }
  0x9d   : > { %v1711_v47 = vmul.f32 %v6643_v6, %v1674_v42  ;;  %v1308_v50 = vmul.f32 %v6613_v24, %v1271_v43  ;;  %v1440_v56 = vadd.f32 %v1408_v52, %v1339_v38  ;;  %v1409_v58 = vmul.f32 %v6620_v16, %v1372_v27  ;;  %v1373_v37 = vld [vmem:[#allocation2 + $0x53] sm:$0xff]  ;;  %v1475_v52 = vld [vmem:[#allocation2 + $0x64] sm:$0xff] }
  0x9e   : > { %v1741_v4 = vadd.f32 %v1709_v0, %v1640_v15  ;;  %v1239_v21 = vadd.f32 %v1207_v17, %v1138_v29  ;;  %1836 = vst [vmem:[%s6323_s18] sm:$0xff] %v1804_v49  ;;  %v1641_v63 = vadd.f32 %v1609_v20, %v1540_v30  ;;  %v1510_v61 = vmul.f32 %v6628_v23, %v1473_v10  ;;  %v1474_v33 = vld [vmem:[#allocation2 + $0x54] sm:$0xff]  ;;  %v1273_v20 = vld [vmem:[#allocation2 + $0x62] sm:$0xff] }
  0x9f   : > { %v1139_v41 = vmul.f32 %v6680_v8, %v1101_v32  ;;  %v1208_v45 = vmul.f32 %v6606_v57, %v1171_v40  ;;  %v1774_v28 = vld [vmem:[%s6323_s18 + $0x10] sm:$0xff]  ;;  %v1541_v0 = vadd.f32 %v1509_v22, %v1440_v56  ;;  %v1611_v7 = vmul.f32 %v6636_v51, %v1574_v53  ;;  %v1775_v44 = vld [vmem:[%s6323_s18 + $0x18] sm:$0xff]  ;;  %v1103_v42 = vld [vmem:[#allocation2 + $0x68] sm:$0xff] }
  0xa0   : > { %v1805_v5 = vadd.f32 %v1773_v19, %v1741_v4  ;;  %v1340_v25 = vadd.f32 %v1308_v50, %v1239_v21  ;;  %v1742_v11 = vadd.f32 %v1710_v12, %v1641_v63  ;;  %v1712_v26 = vmul.f32 %v6643_v6, %v1675_v13  ;;  %v1575_v2 = vld [vmem:[#allocation2 + $0x55] sm:$0xff]  ;;  %v1576_v29 = vld [vmem:[#allocation2 + $0x65] sm:$0xff]  ;;  %v1577_v13 = vld [vmem:[#allocation2 + $0x6d] sm:$0xff] }
  0xa1   : > { %v1240_v1 = vadd.f32 %v1208_v45, %v1139_v41  ;;  %v1309_v48 = vmul.f32 %v6613_v24, %v1272_v55  ;;  %v1642_v62 = vadd.f32 %v1610_v3, %v1541_v0  ;;  %v1410_v39 = vmul.f32 %v6620_v16, %v1373_v37  ;;  %v1173_v27 = vld [vmem:[#allocation2 + $0x69] sm:$0xff]  ;;  %v1776_v30 = vld [vmem:[%s6323_s18 + $0x20] sm:$0xff]  ;;  %v1104_v55 = vld [vmem:[#allocation2 + $0x78] sm:$0xff] }
  0xa2   : > { %1837 = vst [vmem:[%s6323_s18 + $0x8] sm:$0xff] %v1805_v5  ;;  %v1441_v46 = vadd.f32 %v1409_v58, %v1340_v25  ;;  %v1511_v34 = vmul.f32 %v6628_v23, %v1474_v33  ;;  %v1806_v36 = vadd.f32 %v1774_v28, %v1742_v11  ;;  %v1140_v12 = vmul.f32 %v6680_v8, %v1102_v31  ;;  %v1677_v10 = vld [vmem:[#allocation2 + $0x66] sm:$0xff]  ;;  %v1174_v63 = vld [vmem:[#allocation2 + $0x79] sm:$0xff]  ;;  %v1678_v33 = vld [vmem:[#allocation2 + $0x6e] sm:$0xff] }
  0xa3   : > { %v1341_v18 = vadd.f32 %v1309_v48, %v1240_v1  ;;  %v1209_v60 = vmul.f32 %v6606_v57, %v1172_v54  ;;  %v1743_v43 = vadd.f32 %v1711_v47, %v1642_v62  ;;  %v1612_v14 = vmul.f32 %v6636_v51, %v1575_v2  ;;  %v1274_v32 = vld [vmem:[#allocation2 + $0x6a] sm:$0xff]  ;;  %v1376_v31 = vld [vmem:[#allocation2 + $0x7b] sm:$0xff] }
  0xa4   : > { %v1542_v59 = vadd.f32 %v1510_v61, %v1441_v46  ;;  %v1713_v22 = vmul.f32 %v6643_v6, %v1676_v35  ;;  %1838 = vst [vmem:[%s6323_s18 + $0x10] sm:$0xff] %v1806_v36  ;;  %v1310_v3 = vmul.f32 %v6613_v24, %v1273_v20  ;;  %v1411_v17 = vmul.f32 %v6620_v16, %v1374_v9  ;;  %v1375_v40 = vld [vmem:[#allocation2 + $0x6b] sm:$0xff]  ;;  %v1477_v54 = vld [vmem:[#allocation2 + $0x7c] sm:$0xff] }
  0xa5   : > { %v1442_v15 = vadd.f32 %v1410_v39, %v1341_v18  ;;  %v1241_v38 = vadd.f32 %v1209_v60, %v1140_v12  ;;  %v1807_v49 = vadd.f32 %v1775_v44, %v1743_v43  ;;  %v1512_v47 = vmul.f32 %v6628_v23, %v1475_v52  ;;  %v1476_v53 = vld [vmem:[#allocation2 + $0x6c] sm:$0xff]  ;;  %v1105_v35 = vld [vmem:[#allocation2 + $0x80] sm:$0xff] }
  0xa6   : > { %v1643_v19 = vadd.f32 %v1611_v7, %v1542_v59  ;;  %v1141_v50 = vmul.f32 %v6680_v8, %v1103_v42  ;;  %v1613_v21 = vmul.f32 %v6636_v51, %v1576_v29  ;;  %v1210_v58 = vmul.f32 %v6606_v57, %v1173_v27  ;;  %v1275_v7 = vld [vmem:[#allocation2 + $0x7a] sm:$0xff]  ;;  %v1777_v1 = vld [vmem:[%s6323_s18 + $0x28] sm:$0xff]  ;;  %v1106_v27 = vld [vmem:[#allocation2 + $0x90] sm:$0xff] }
  0xa7   : > { %v1543_v4 = vadd.f32 %v1511_v34, %v1442_v15  ;;  %v1342_v56 = vadd.f32 %v1310_v3, %v1241_v38  ;;  %1839 = vst [vmem:[%s6323_s18 + $0x18] sm:$0xff] %v1807_v49  ;;  %v1714_v41 = vmul.f32 %v6643_v6, %v1677_v10  ;;  %v1311_v45 = vmul.f32 %v6613_v24, %v1274_v32  ;;  %v1578_v20 = vld [vmem:[#allocation2 + $0x7d] sm:$0xff]  ;;  %v1778_v15 = vld [vmem:[%s6323_s18 + $0x30] sm:$0xff]  ;;  %v1579_v32 = vld [vmem:[#allocation2 + $0x85] sm:$0xff] }
  0xa8   : > { %v1744_v61 = vadd.f32 %v1712_v26, %v1643_v19  ;;  %v1412_v37 = vmul.f32 %v6620_v16, %v1375_v40  ;;  %v1242_v0 = vadd.f32 %v1210_v58, %v1141_v50  ;;  %v1513_v25 = vmul.f32 %v6628_v23, %v1476_v53  ;;  %v1679_v9 = vld [vmem:[#allocation2 + $0x7e] sm:$0xff]  ;;  %v1176_v40 = vld [vmem:[#allocation2 + $0x91] sm:$0xff]  ;;  %v1680_v50 = vld [vmem:[#allocation2 + $0x86] sm:$0xff] }
  0xa9   : > { %v1644_v5 = vadd.f32 %v1612_v14, %v1543_v4  ;;  %v1443_v28 = vadd.f32 %v1411_v17, %v1342_v56  ;;  %v1614_v26 = vmul.f32 %v6636_v51, %v1577_v13  ;;  %v1142_v48 = vmul.f32 %v6680_v8, %v1104_v55  ;;  %v1175_v36 = vld [vmem:[#allocation2 + $0x81] sm:$0xff]  ;;  %v1277_v53 = vld [vmem:[#allocation2 + $0x92] sm:$0xff] }
  0xaa   : > { %v1808_v11 = vadd.f32 %v1776_v30, %v1744_v61  ;;  %v1211_v2 = vmul.f32 %v6606_v57, %v1174_v63  ;;  %v1343_v39 = vadd.f32 %v1311_v45, %v1242_v0  ;;  %v1715_v34 = vmul.f32 %v6643_v6, %v1678_v33  ;;  %v1276_v52 = vld [vmem:[#allocation2 + $0x82] sm:$0xff]  ;;  %v1378_v13 = vld [vmem:[#allocation2 + $0x93] sm:$0xff] }
  0xab   : > { %v1745_v62 = vadd.f32 %v1713_v22, %v1644_v5  ;;  %v1544_v46 = vadd.f32 %v1512_v47, %v1443_v28  ;;  %v1312_v18 = vmul.f32 %v6613_v24, %v1275_v7  ;;  %v1413_v12 = vmul.f32 %v6620_v16, %v1376_v31  ;;  %v1377_v42 = vld [vmem:[#allocation2 + $0x83] sm:$0xff]  ;;  %v1479_v55 = vld [vmem:[#allocation2 + $0x94] sm:$0xff] }
  0xac   : > { %1840 = vst [vmem:[%s6323_s18 + $0x20] sm:$0xff] %v1808_v11  ;;  %v1243_v44 = vadd.f32 %v1211_v2, %v1142_v48  ;;  %v1514_v60 = vmul.f32 %v6628_v23, %v1477_v54  ;;  %v1444_v14 = vadd.f32 %v1412_v37, %v1343_v39  ;;  %v1143_v22 = vmul.f32 %v6680_v8, %v1105_v35  ;;  %v1478_v29 = vld [vmem:[#allocation2 + $0x84] sm:$0xff]  ;;  %v1107_v37 = vld [vmem:[#allocation2 + $0x98] sm:$0xff] }
  0xad   : > { %v1809_v43 = vadd.f32 %v1777_v1, %v1745_v62  ;;  %v1645_v59 = vadd.f32 %v1613_v21, %v1544_v46  ;;  %v1615_v3 = vmul.f32 %v6636_v51, %v1578_v20  ;;  %v1716_v17 = vmul.f32 %v6643_v6, %v1679_v9  ;;  %v1177_v33 = vld [vmem:[#allocation2 + $0x99] sm:$0xff] }
  0xae   : > { %v1344_v38 = vadd.f32 %v1312_v18, %v1243_v44  ;;  %v1212_v10 = vmul.f32 %v6606_v57, %v1175_v36  ;;  %v1545_v19 = vadd.f32 %v1513_v25, %v1444_v14  ;;  %v1313_v30 = vmul.f32 %v6613_v24, %v1276_v52  ;;  %v1779_v5 = vld [vmem:[%s6323_s18 + $0x38] sm:$0xff]  ;;  %v1108_v36 = vld [vmem:[#allocation2 + $0xa8] sm:$0xff]  ;;  %v1780_v18 = vld [vmem:[%s6323_s18 + $0x40] sm:$0xff] }
  0xaf   : > { %1841 = vst [vmem:[%s6323_s18 + $0x28] sm:$0xff] %v1809_v43  ;;  %v1746_v49 = vadd.f32 %v1714_v41, %v1645_v59  ;;  %v1414_v47 = vmul.f32 %v6620_v16, %v1377_v42  ;;  %v1515_v21 = vmul.f32 %v6628_v23, %v1478_v29  ;;  %v1144_v58 = vmul.f32 %v6680_v8, %v1106_v27  ;;  %v1580_v31 = vld [vmem:[#allocation2 + $0x95] sm:$0xff]  ;;  %v1178_v52 = vld [vmem:[#allocation2 + $0xa9] sm:$0xff]  ;;  %v1682_v29 = vld [vmem:[#allocation2 + $0x9e] sm:$0xff] }
  0xb0   : > { %v1445_v4 = vadd.f32 %v1413_v12, %v1344_v38  ;;  %v1244_v56 = vadd.f32 %v1212_v10, %v1143_v22  ;;  %v1646_v61 = vadd.f32 %v1614_v26, %v1545_v19  ;;  %v1616_v41 = vmul.f32 %v6636_v51, %v1579_v32  ;;  %v1681_v54 = vld [vmem:[#allocation2 + $0x96] sm:$0xff]  ;;  %v1279_v27 = vld [vmem:[#allocation2 + $0xaa] sm:$0xff] }
  0xb1   : > { %v1810_v63 = vadd.f32 %v1778_v15, %v1746_v49  ;;  %v1213_v45 = vmul.f32 %v6606_v57, %v1176_v40  ;;  %v1717_v25 = vmul.f32 %v6643_v6, %v1680_v50  ;;  %v1314_v7 = vmul.f32 %v6613_v24, %v1277_v53  ;;  %v1278_v2 = vld [vmem:[#allocation2 + $0x9a] sm:$0xff]  ;;  %v1380_v32 = vld [vmem:[#allocation2 + $0xab] sm:$0xff] }
  0xb2   : > { %v1546_v28 = vadd.f32 %v1514_v60, %v1445_v4  ;;  %v1345_v0 = vadd.f32 %v1313_v30, %v1244_v56  ;;  %v1747_v11 = vadd.f32 %v1715_v34, %v1646_v61  ;;  %v1415_v26 = vmul.f32 %v6620_v16, %v1378_v13  ;;  %v1379_v20 = vld [vmem:[#allocation2 + $0x9b] sm:$0xff]  ;;  %v1481_v30 = vld [vmem:[#allocation2 + $0xac] sm:$0xff] }
  0xb3   : > { %1842 = vst [vmem:[%s6323_s18 + $0x30] sm:$0xff] %v1810_v63  ;;  %v1245_v1 = vadd.f32 %v1213_v45, %v1144_v58  ;;  %v1516_v48 = vmul.f32 %v6628_v23, %v1479_v55  ;;  %v1145_v46 = vmul.f32 %v6680_v8, %v1107_v37  ;;  %v1214_v39 = vmul.f32 %v6606_v57, %v1177_v33  ;;  %v1480_v9 = vld [vmem:[#allocation2 + $0x9c] sm:$0xff]  ;;  %v1179_v50 = vld [vmem:[#allocation2 + $0xb1] sm:$0xff]  ;;  %v1781_v53 = vld [vmem:[%s6323_s18 + $0x48] sm:$0xff] }
  0xb4   : > { %v1647_v35 = vadd.f32 %v1615_v3, %v1546_v28  ;;  %v1446_v62 = vadd.f32 %v1414_v47, %v1345_v0  ;;  %v1811_v44 = vadd.f32 %v1779_v5, %v1747_v11  ;;  %v1617_v34 = vmul.f32 %v6636_v51, %v1580_v31  ;;  %v1581_v22 = vld [vmem:[#allocation2 + $0x9d] sm:$0xff]  ;;  %v1109_v47 = vld [vmem:[#allocation2 + $0xb0] sm:$0xff] }
  0xb5   : > { %v1346_v12 = vadd.f32 %v1314_v7, %v1245_v1  ;;  %v1718_v60 = vmul.f32 %v6643_v6, %v1681_v54  ;;  %v1246_v59 = vadd.f32 %v1214_v39, %v1145_v46  ;;  %v1315_v14 = vmul.f32 %v6613_v24, %v1278_v2  ;;  %v1582_v13 = vld [vmem:[#allocation2 + $0xad] sm:$0xff]  ;;  %v1180_v2 = vld [vmem:[#allocation2 + $0xc1] sm:$0xff] }
  0xb6   : > { %v1748_v42 = vadd.f32 %v1716_v17, %v1647_v35  ;;  %v1547_v43 = vadd.f32 %v1515_v21, %v1446_v62  ;;  %1843 = vst [vmem:[%s6323_s18 + $0x38] sm:$0xff] %v1811_v44  ;;  %v1416_v38 = vmul.f32 %v6620_v16, %v1379_v20  ;;  %v1517_v3 = vmul.f32 %v6628_v23, %v1480_v9  ;;  %v1683_v45 = vld [vmem:[#allocation2 + $0xae] sm:$0xff]  ;;  %v1684_v9 = vld [vmem:[#allocation2 + $0xb6] sm:$0xff] }
  0xb7   : > { %v1447_v15 = vadd.f32 %v1415_v26, %v1346_v12  ;;  %v1146_v10 = vmul.f32 %v6680_v8, %v1108_v36  ;;  %v1347_v49 = vadd.f32 %v1315_v14, %v1246_v59  ;;  %v1215_v19 = vmul.f32 %v6606_v57, %v1178_v52  ;;  %v1280_v37 = vld [vmem:[#allocation2 + $0xb2] sm:$0xff]  ;;  %v1382_v52 = vld [vmem:[#allocation2 + $0xc3] sm:$0xff] }
  0xb8   : > { %v1812_v40 = vadd.f32 %v1780_v18, %v1748_v42  ;;  %v1648_v17 = vadd.f32 %v1616_v41, %v1547_v43  ;;  %v1618_v56 = vmul.f32 %v6636_v51, %v1581_v22  ;;  %v1719_v21 = vmul.f32 %v6643_v6, %v1682_v29  ;;  %v1381_v7 = vld [vmem:[#allocation2 + $0xb3] sm:$0xff]  ;;  %v1483_v22 = vld [vmem:[#allocation2 + $0xc4] sm:$0xff] }
  0xb9   : > { %v1548_v4 = vadd.f32 %v1516_v48, %v1447_v15  ;;  %v1316_v58 = vmul.f32 %v6613_v24, %v1279_v27  ;;  %v1448_v63 = vadd.f32 %v1416_v38, %v1347_v49  ;;  %v1247_v61 = vadd.f32 %v1215_v19, %v1146_v10  ;;  %v1482_v31 = vld [vmem:[#allocation2 + $0xb4] sm:$0xff]  ;;  %v1110_v48 = vld [vmem:[#allocation2 + $0xc0] sm:$0xff]  ;;  %v1111_v29 = vld [vmem:[#allocation2 + $0xc8] sm:$0xff] }
  0xba   : > { %1844 = vst [vmem:[%s6323_s18 + $0x40] sm:$0xff] %v1812_v40  ;;  %v1749_v55 = vadd.f32 %v1717_v25, %v1648_v17  ;;  %v1417_v41 = vmul.f32 %v6620_v16, %v1380_v32  ;;  %v1518_v5 = vmul.f32 %v6628_v23, %v1481_v30  ;;  %v1147_v28 = vmul.f32 %v6680_v8, %v1109_v47  ;;  %v1782_v11 = vld [vmem:[%s6323_s18 + $0x50] sm:$0xff]  ;;  %v1783_v43 = vld [vmem:[%s6323_s18 + $0x58] sm:$0xff]  ;;  %v1584_v10 = vld [vmem:[#allocation2 + $0xc5] sm:$0xff] }
  0xbb   : > { %v1649_v33 = vadd.f32 %v1617_v34, %v1548_v4  ;;  %v1216_v0 = vmul.f32 %v6606_v57, %v1179_v50  ;;  %v1549_v1 = vadd.f32 %v1517_v3, %v1448_v63  ;;  %v1348_v25 = vadd.f32 %v1316_v58, %v1247_v61  ;;  %v1583_v20 = vld [vmem:[#allocation2 + $0xb5] sm:$0xff]  ;;  %v1281_v34 = vld [vmem:[#allocation2 + $0xc2] sm:$0xff]  ;;  %v1282_v47 = vld [vmem:[#allocation2 + $0xca] sm:$0xff] }
  0xbc   : > { %v1813_v54 = vadd.f32 %v1781_v53, %v1749_v55  ;;  %v1619_v26 = vmul.f32 %v6636_v51, %v1582_v13  ;;  %v1720_v62 = vmul.f32 %v6643_v6, %v1683_v45  ;;  %v1317_v39 = vmul.f32 %v6613_v24, %v1280_v37  ;;  %v1181_v32 = vld [vmem:[#allocation2 + $0xc9] sm:$0xff]  ;;  %v1112_v37 = vld [vmem:[#allocation2 + $0xd8] sm:$0xff] }
  0xbd   : > { %v1750_v35 = vadd.f32 %v1718_v60, %v1649_v33  ;;  %v1248_v46 = vadd.f32 %v1216_v0, %v1147_v28  ;;  %v1650_v36 = vadd.f32 %v1618_v56, %v1549_v1  ;;  %v1449_v44 = vadd.f32 %v1417_v41, %v1348_v25  ;;  %v1685_v30 = vld [vmem:[#allocation2 + $0xc6] sm:$0xff]  ;;  %v1182_v33 = vld [vmem:[#allocation2 + $0xd9] sm:$0xff] }
  0xbe   : > { %1845 = vst [vmem:[%s6323_s18 + $0x48] sm:$0xff] %v1813_v54  ;;  %v1418_v18 = vmul.f32 %v6620_v16, %v1381_v7  ;;  %v1519_v12 = vmul.f32 %v6628_v23, %v1482_v31  ;;  %v1148_v59 = vmul.f32 %v6680_v8, %v1110_v48  ;;  %v1217_v14 = vmul.f32 %v6606_v57, %v1180_v2  ;;  %v1383_v50 = vld [vmem:[#allocation2 + $0xcb] sm:$0xff]  ;;  %v1784_v56 = vld [vmem:[%s6323_s18 + $0x60] sm:$0xff] }
  0xbf   : > { %v1814_v42 = vadd.f32 %v1782_v11, %v1750_v35  ;;  %v1349_v60 = vadd.f32 %v1317_v39, %v1248_v46  ;;  %v1751_v27 = vadd.f32 %v1719_v21, %v1650_v36  ;;  %v1550_v15 = vadd.f32 %v1518_v5, %v1449_v44  ;;  %v1484_v13 = vld [vmem:[#allocation2 + $0xcc] sm:$0xff]  ;;  %v1384_v48 = vld [vmem:[#allocation2 + $0xdb] sm:$0xff] }
  0xc0   : > { %v1620_v38 = vmul.f32 %v6636_v51, %v1583_v20  ;;  %v1721_v3 = vmul.f32 %v6643_v6, %v1684_v9  ;;  %v1249_v17 = vadd.f32 %v1217_v14, %v1148_v59  ;;  %v1318_v49 = vmul.f32 %v6613_v24, %v1281_v34  ;;  %v1585_v45 = vld [vmem:[#allocation2 + $0xcd] sm:$0xff]  ;;  %v1485_v2 = vld [vmem:[#allocation2 + $0xdc] sm:$0xff] }
  0xc1   : > { %1846 = vst [vmem:[%s6323_s18 + $0x50] sm:$0xff] %v1814_v42  ;;  %v1450_v40 = vadd.f32 %v1418_v18, %v1349_v60  ;;  %v1419_v19 = vmul.f32 %v6620_v16, %v1382_v52  ;;  %v1815_v53 = vadd.f32 %v1783_v43, %v1751_v27  ;;  %v1651_v4 = vadd.f32 %v1619_v26, %v1550_v15  ;;  %v1686_v31 = vld [vmem:[#allocation2 + $0xce] sm:$0xff]  ;;  %v1283_v26 = vld [vmem:[#allocation2 + $0xda] sm:$0xff] }
  0xc2   : > { %v1520_v21 = vmul.f32 %v6628_v23, %v1483_v22  ;;  %v1149_v58 = vmul.f32 %v6680_v8, %v1111_v29  ;;  %v1350_v63 = vadd.f32 %v1318_v49, %v1249_v17  ;;  %v1621_v61 = vmul.f32 %v6636_v51, %v1584_v10  ;;  %v1785_v46 = vld [vmem:[%s6323_s18 + $0x68] sm:$0xff]  ;;  %v1113_v9 = vld [vmem:[#allocation2 + $0xe0] sm:$0xff] }
  0xc3   : > { %v1551_v55 = vadd.f32 %v1519_v12, %v1450_v40  ;;  %v1218_v41 = vmul.f32 %v6606_v57, %v1181_v32  ;;  %1847 = vst [vmem:[%s6323_s18 + $0x58] sm:$0xff] %v1815_v53  ;;  %v1752_v5 = vadd.f32 %v1720_v62, %v1651_v4  ;;  %v1722_v28 = vmul.f32 %v6643_v6, %v1685_v30  ;;  %v1586_v34 = vld [vmem:[#allocation2 + $0xdd] sm:$0xff]  ;;  %v1114_v32 = vld [vmem:[#allocation2 + $0xf0] sm:$0xff] }
  0xc4   : > { %v1319_v0 = vmul.f32 %v6613_v24, %v1282_v47  ;;  %v1420_v7 = vmul.f32 %v6620_v16, %v1383_v50  ;;  %v1451_v11 = vadd.f32 %v1419_v19, %v1350_v63  ;;  %v1521_v25 = vmul.f32 %v6628_v23, %v1484_v13  ;;  %v1687_v52 = vld [vmem:[#allocation2 + $0xde] sm:$0xff]  ;;  %v1786_v40 = vld [vmem:[%s6323_s18 + $0x70] sm:$0xff] }
  0xc5   : > { %v1652_v54 = vadd.f32 %v1620_v38, %v1551_v55  ;;  %v1250_v1 = vadd.f32 %v1218_v41, %v1149_v58  ;;  %v1816_v35 = vadd.f32 %v1784_v56, %v1752_v5  ;;  %v1622_v62 = vmul.f32 %v6636_v51, %v1585_v45  ;;  %v1183_v42 = vld [vmem:[#allocation2 + $0xe1] sm:$0xff]  ;;  %v1184_v50 = vld [vmem:[#allocation2 + $0xf1] sm:$0xff] }
  0xc6   : > { %v1150_v39 = vmul.f32 %v6680_v8, %v1112_v37  ;;  %v1219_v20 = vmul.f32 %v6606_v57, %v1182_v33  ;;  %v1552_v44 = vadd.f32 %v1520_v21, %v1451_v11  ;;  %v1723_v12 = vmul.f32 %v6643_v6, %v1686_v31  ;;  %v1284_v22 = vld [vmem:[#allocation2 + $0xe2] sm:$0xff]  ;;  %v1285_v13 = vld [vmem:[#allocation2 + $0xf2] sm:$0xff] }
  0xc7   : > { %v1753_v36 = vadd.f32 %v1721_v3, %v1652_v54  ;;  %v1351_v18 = vadd.f32 %v1319_v0, %v1250_v1  ;;  %1848 = vst [vmem:[%s6323_s18 + $0x60] sm:$0xff] %v1816_v35  ;;  %v1320_v60 = vmul.f32 %v6613_v24, %v1283_v26  ;;  %v1421_v59 = vmul.f32 %v6620_v16, %v1384_v48  ;;  %v1385_v29 = vld [vmem:[#allocation2 + $0xe3] sm:$0xff]  ;;  %v1386_v45 = vld [vmem:[#allocation2 + $0xf3] sm:$0xff] }
  0xc8   : > { %v1251_v43 = vadd.f32 %v1219_v20, %v1150_v39  ;;  %v1522_v14 = vmul.f32 %v6628_v23, %v1485_v2  ;;  %v1653_v15 = vadd.f32 %v1621_v61, %v1552_v44  ;;  %v1151_v3 = vmul.f32 %v6680_v8, %v1113_v9  ;;  %v1486_v10 = vld [vmem:[#allocation2 + $0xe4] sm:$0xff]  ;;  %v1487_v37 = vld [vmem:[#allocation2 + $0xf4] sm:$0xff] }
  0xc9   : > { %v1817_v27 = vadd.f32 %v1785_v46, %v1753_v36  ;;  %v1452_v38 = vadd.f32 %v1420_v7, %v1351_v18  ;;  %v1623_v49 = vmul.f32 %v6636_v51, %v1586_v34  ;;  %v1724_v19 = vmul.f32 %v6643_v6, %v1687_v52  ;;  %v1587_v47 = vld [vmem:[#allocation2 + $0xe5] sm:$0xff]  ;;  %v1115_v7 = vld [vmem:[#allocation2 + $0xf8] sm:$0xff] }
  0xca   : > { %v1352_v17 = vadd.f32 %v1320_v60, %v1251_v43  ;;  %v1220_v30 = vmul.f32 %v6606_v57, %v1183_v42  ;;  %v1754_v53 = vadd.f32 %v1722_v28, %v1653_v15  ;;  %v1321_v56 = vmul.f32 %v6613_v24, %v1284_v22  ;;  %v1688_v58 = vld [vmem:[#allocation2 + $0xe6] sm:$0xff]  ;;  %v1185_v31 = vld [vmem:[#allocation2 + $0xf9] sm:$0xff] }
  0xcb   : > { %1849 = vst [vmem:[%s6323_s18 + $0x68] sm:$0xff] %v1817_v27  ;;  %v1553_v4 = vadd.f32 %v1521_v25, %v1452_v38  ;;  %v1422_v21 = vmul.f32 %v6620_v16, %v1385_v29  ;;  %v1523_v61 = vmul.f32 %v6628_v23, %v1486_v10  ;;  %v1152_v41 = vmul.f32 %v6680_v8, %v1114_v32  ;;  %v1787_v54 = vld [vmem:[%s6323_s18 + $0x78] sm:$0xff]  ;;  %v1116_v42 = vld [vmem:[#allocation2 + $0x108] sm:$0xff]  ;;  %v1788_v60 = vld [vmem:[%s6323_s18 + $0x80] sm:$0xff] }
  0xcc   : > { %v1453_v55 = vadd.f32 %v1421_v59, %v1352_v17  ;;  %v1252_v63 = vadd.f32 %v1220_v30, %v1151_v3  ;;  %v1818_v33 = vadd.f32 %v1786_v40, %v1754_v53  ;;  %v1624_v28 = vmul.f32 %v6636_v51, %v1587_v47  ;;  %v1588_v48 = vld [vmem:[#allocation2 + $0xf5] sm:$0xff]  ;;  %v1186_v22 = vld [vmem:[#allocation2 + $0x109] sm:$0xff]  ;;  %v1589_v3 = vld [vmem:[#allocation2 + $0xfd] sm:$0xff] }
  0xcd   : > { %v1654_v5 = vadd.f32 %v1622_v62, %v1553_v4  ;;  %v1221_v0 = vmul.f32 %v6606_v57, %v1184_v50  ;;  %v1725_v25 = vmul.f32 %v6643_v6, %v1688_v58  ;;  %v1322_v26 = vmul.f32 %v6613_v24, %v1285_v13  ;;  %v1689_v2 = vld [vmem:[#allocation2 + $0xf6] sm:$0xff]  ;;  %v1690_v10 = vld [vmem:[#allocation2 + $0xfe] sm:$0xff]  ;;  %v1287_v32 = vld [vmem:[#allocation2 + $0x10a] sm:$0xff] }
  0xce   : > { %v1554_v11 = vadd.f32 %v1522_v14, %v1453_v55  ;;  %v1353_v1 = vadd.f32 %v1321_v56, %v1252_v63  ;;  %1850 = vst [vmem:[%s6323_s18 + $0x70] sm:$0xff] %v1818_v33  ;;  %v1423_v62 = vmul.f32 %v6620_v16, %v1386_v45  ;;  %v1524_v39 = vmul.f32 %v6628_v23, %v1487_v37  ;;  %v1286_v20 = vld [vmem:[#allocation2 + $0xfa] sm:$0xff]  ;;  %v1388_v47 = vld [vmem:[#allocation2 + $0x10b] sm:$0xff] }
  0xcf   : > { %v1755_v35 = vadd.f32 %v1723_v12, %v1654_v5  ;;  %v1253_v46 = vadd.f32 %v1221_v0, %v1152_v41  ;;  %v1153_v44 = vmul.f32 %v6680_v8, %v1115_v7  ;;  %v1222_v18 = vmul.f32 %v6606_v57, %v1185_v31  ;;  %v1387_v34 = vld [vmem:[#allocation2 + $0xfb] sm:$0xff]  ;;  %v1489_v56 = vld [vmem:[#allocation2 + $0x10c] sm:$0xff] }
  0xd0   : > { %v1655_v9 = vadd.f32 %v1623_v49, %v1554_v11  ;;  %v1454_v36 = vadd.f32 %v1422_v21, %v1353_v1  ;;  %v1488_v52 = vld [vmem:[#allocation2 + $0xfc] sm:$0xff]  ;;  %v1625_v12 = vmul.f32 %v6636_v51, %v1588_v48  ;;  %v1726_v14 = vmul.f32 %v6643_v6, %v1689_v2  ;;  %v1117_v21 = vld [vmem:[#allocation2 + $0x110] sm:$0xff]  ;;  %v1789_v13 = vld [vmem:[%s6323_s18 + $0x88] sm:$0xff] }
  0xd1   : > { %v1819_v43 = vadd.f32 %v1787_v54, %v1755_v35  ;;  %v1354_v59 = vadd.f32 %v1322_v26, %v1253_v46  ;;  %v1254_v15 = vadd.f32 %v1222_v18, %v1153_v44  ;;  %v1323_v38 = vmul.f32 %v6613_v24, %v1286_v20  ;;  %v1187_v58 = vld [vmem:[#allocation2 + $0x111] sm:$0xff]  ;;  %v1188_v20 = vld [vmem:[#allocation2 + $0x121] sm:$0xff] }
  0xd2   : > { %v1756_v29 = vadd.f32 %v1724_v19, %v1655_v9  ;;  %v1555_v27 = vadd.f32 %v1523_v61, %v1454_v36  ;;  %v1424_v17 = vmul.f32 %v6620_v16, %v1387_v34  ;;  %v1525_v49 = vmul.f32 %v6628_v23, %v1488_v52  ;;  %v1590_v45 = vld [vmem:[#allocation2 + $0x10d] sm:$0xff]  ;;  %v1591_v34 = vld [vmem:[#allocation2 + $0x115] sm:$0xff] }
  0xd3   : > { %1851 = vst [vmem:[%s6323_s18 + $0x78] sm:$0xff] %v1819_v43  ;;  %v1455_v40 = vadd.f32 %v1423_v62, %v1354_v59  ;;  %v1154_v30 = vmul.f32 %v6680_v8, %v1116_v42  ;;  %v1355_v53 = vadd.f32 %v1323_v38, %v1254_v15  ;;  %v1223_v4 = vmul.f32 %v6606_v57, %v1186_v22  ;;  %v1691_v0 = vld [vmem:[#allocation2 + $0x10e] sm:$0xff]  ;;  %v1289_v59 = vld [vmem:[#allocation2 + $0x122] sm:$0xff] }
  0xd4   : > { %v1820_v50 = vadd.f32 %v1788_v60, %v1756_v29  ;;  %v1656_v19 = vadd.f32 %v1624_v28, %v1555_v27  ;;  %v1626_v63 = vmul.f32 %v6636_v51, %v1589_v3  ;;  %v1727_v61 = vmul.f32 %v6643_v6, %v1690_v10  ;;  %v1288_v7 = vld [vmem:[#allocation2 + $0x112] sm:$0xff]  ;;  %v1491_v38 = vld [vmem:[#allocation2 + $0x124] sm:$0xff] }
  0xd5   : > { %v1556_v55 = vadd.f32 %v1524_v39, %v1455_v40  ;;  %v1324_v41 = vmul.f32 %v6613_v24, %v1287_v32  ;;  %v1456_v33 = vadd.f32 %v1424_v17, %v1355_v53  ;;  %v1255_v5 = vadd.f32 %v1223_v4, %v1154_v30  ;;  %v1389_v26 = vld [vmem:[#allocation2 + $0x113] sm:$0xff]  ;;  %v1118_v39 = vld [vmem:[#allocation2 + $0x120] sm:$0xff]  ;;  %v1119_v3 = vld [vmem:[#allocation2 + $0x128] sm:$0xff] }
  0xd6   : > { %1852 = vst [vmem:[%s6323_s18 + $0x80] sm:$0xff] %v1820_v50  ;;  %v1757_v37 = vadd.f32 %v1725_v25, %v1656_v19  ;;  %v1425_v28 = vmul.f32 %v6620_v16, %v1388_v47  ;;  %v1526_v54 = vmul.f32 %v6628_v23, %v1489_v56  ;;  %v1155_v11 = vmul.f32 %v6680_v8, %v1117_v21  ;;  %v1490_v48 = vld [vmem:[#allocation2 + $0x114] sm:$0xff]  ;;  %v1592_v40 = vld [vmem:[#allocation2 + $0x125] sm:$0xff] }
  0xd7   : > { %v1657_v31 = vadd.f32 %v1625_v12, %v1556_v55  ;;  %v1224_v1 = vmul.f32 %v6606_v57, %v1187_v58  ;;  %v1790_v35 = vld [vmem:[%s6323_s18 + $0x90] sm:$0xff]  ;;  %v1557_v46 = vadd.f32 %v1525_v49, %v1456_v33  ;;  %v1356_v25 = vadd.f32 %v1324_v41, %v1255_v5  ;;  %v1390_v12 = vld [vmem:[#allocation2 + $0x123] sm:$0xff]  ;;  %v1791_v29 = vld [vmem:[%s6323_s18 + $0x98] sm:$0xff] }
  0xd8   : > { %v1821_v2 = vadd.f32 %v1789_v13, %v1757_v37  ;;  %v1627_v62 = vmul.f32 %v6636_v51, %v1590_v45  ;;  %v1728_v36 = vmul.f32 %v6643_v6, %v1691_v0  ;;  %v1325_v18 = vmul.f32 %v6613_v24, %v1288_v7  ;;  %v1692_v57 = vld [vmem:[#allocation2 + $0x116] sm:$0xff]  ;;  %v6849_v24 = vld [vmem:[%s8782_s1 + $0x9] ss:$0 sm:$0xff]  ;;  %v6858_v47 = vld [vmem:[%s8782_s1 + $0xa] ss:$0 sm:$0xff] }
  0xd9   : > { %v1758_v9 = vadd.f32 %v1726_v14, %v1657_v31  ;;  %v1256_v44 = vadd.f32 %v1224_v1, %v1155_v11  ;;  %v1658_v52 = vadd.f32 %v1626_v63, %v1557_v46  ;;  %v1457_v42 = vadd.f32 %v1425_v28, %v1356_v25  ;;  %v1189_v17 = vld [vmem:[#allocation2 + $0x129] sm:$0xff]  ;;  %v1792_v58 = vld [vmem:[%s6323_s18 + $0xa0] sm:$0xff]  ;;  %v1120_v0 = vld [vmem:[#allocation2 + $0x138] sm:$0xff] }
  0xda   : > { %1853 = vst [vmem:[%s6323_s18 + $0x88] sm:$0xff] %v1821_v2  ;;  %v1426_v43 = vmul.f32 %v6620_v16, %v1389_v26  ;;  %v1527_v60 = vmul.f32 %v6628_v23, %v1490_v48  ;;  %v1156_v27 = vmul.f32 %v6680_v8, %v1118_v39  ;;  %v1225_v15 = vmul.f32 %v6849_v24, %v1188_v20  ;;  %v6864_v19 = vld [vmem:[%s8782_s1 + $0xb] ss:$0 sm:$0xff]  ;;  %v6871_v13 = vld [vmem:[%s8782_s1 + $0xc] ss:$0 sm:$0xff]  ;;  %v1593_v28 = vld [vmem:[#allocation2 + $0x12d] sm:$0xff] }
  0xdb   : > { %v1822_v22 = vadd.f32 %v1790_v35, %v1758_v9  ;;  %v1357_v14 = vadd.f32 %v1325_v18, %v1256_v44  ;;  %v1759_v16 = vadd.f32 %v1727_v61, %v1658_v52  ;;  %v1558_v10 = vadd.f32 %v1526_v54, %v1457_v42  ;;  %v1290_v53 = vld [vmem:[#allocation2 + $0x12a] sm:$0xff]  ;;  %v1190_v7 = vld [vmem:[#allocation2 + $0x139] sm:$0xff] }
  0xdc   : > { %v1628_v23 = vmul.f32 %v6636_v51, %v1591_v34  ;;  %v1729_v32 = vmul.f32 %v6643_v6, %v1692_v57  ;;  %v1257_v30 = vadd.f32 %v1225_v15, %v1156_v27  ;;  %v1326_v50 = vmul.f32 %v6858_v47, %v1289_v59  ;;  %v1693_v6 = vld [vmem:[#allocation2 + $0x126] sm:$0xff]  ;;  %v6886_v54 = vld [vmem:[%s8782_s1 + $0xe] ss:$0 sm:$0xff]  ;;  %v1392_v39 = vld [vmem:[#allocation2 + $0x13b] sm:$0xff] }
  0xdd   : > { %1854 = vst [vmem:[%s6323_s18 + $0x90] sm:$0xff] %v1822_v22  ;;  %v1458_v49 = vadd.f32 %v1426_v43, %v1357_v14  ;;  %v1427_v51 = vmul.f32 %v6864_v19, %v1390_v12  ;;  %v1391_v4 = vld [vmem:[#allocation2 + $0x12b] sm:$0xff]  ;;  %v1823_v56 = vadd.f32 %v1791_v29, %v1759_v16  ;;  %v1659_v21 = vadd.f32 %v1627_v62, %v1558_v10  ;;  %v1291_v62 = vld [vmem:[#allocation2 + $0x13a] sm:$0xff] }
  0xde   : > { %v1528_v55 = vmul.f32 %v6871_v13, %v1491_v38  ;;  %v1157_v63 = vmul.f32 %v6680_v8, %v1119_v3  ;;  %v1492_v61 = vld [vmem:[#allocation2 + $0x12c] sm:$0xff]  ;;  %v1358_v45 = vadd.f32 %v1326_v50, %v1257_v30  ;;  %v1226_v5 = vmul.f32 %v6849_v24, %v1189_v17  ;;  %v1493_v20 = vld [vmem:[#allocation2 + $0x13c] sm:$0xff] }
  0xdf   : > { %v1559_v41 = vadd.f32 %v1527_v60, %v1458_v49  ;;  %v6878_v37 = vld [vmem:[%s8782_s1 + $0xd] ss:$0 sm:$0xff]  ;;  %1855 = vst [vmem:[%s6323_s18 + $0x98] sm:$0xff] %v1823_v56  ;;  %v1760_v31 = vadd.f32 %v1728_v36, %v1659_v21  ;;  %v1730_v11 = vmul.f32 %v6886_v54, %v1693_v6  ;;  %v1327_v1 = vmul.f32 %v6858_v47, %v1290_v53  ;;  %v1694_v48 = vld [vmem:[#allocation2 + $0x12e] sm:$0xff]  ;;  %v1121_v57 = vld [vmem:[#allocation2 + $0x140] sm:$0xff] }
  0xe0   : > { %v1629_v33 = vmul.f32 %v6878_v37, %v1592_v40  ;;  %v1428_v26 = vmul.f32 %v6864_v19, %v1391_v4  ;;  %v1459_v35 = vadd.f32 %v1427_v51, %v1358_v45  ;;  %v1258_v46 = vadd.f32 %v1226_v5, %v1157_v63  ;;  %v1793_v36 = vld [vmem:[%s6323_s18 + $0xa8] sm:$0xff]  ;;  %v1594_v59 = vld [vmem:[#allocation2 + $0x13d] sm:$0xff]  ;;  %v1122_v17 = vld [vmem:[#allocation2 + $0x150] sm:$0xff] }
  0xe1   : > { %v1660_v2 = vadd.f32 %v1628_v23, %v1559_v41  ;;  %v1529_v25 = vmul.f32 %v6871_v13, %v1492_v61  ;;  %v1824_v9 = vadd.f32 %v1792_v58, %v1760_v31  ;;  %v1630_v44 = vmul.f32 %v6878_v37, %v1593_v28  ;;  %v1695_v12 = vld [vmem:[#allocation2 + $0x13e] sm:$0xff]  ;;  %v1794_v49 = vld [vmem:[%s6323_s18 + $0xb0] sm:$0xff]  ;;  %v1696_v63 = vld [vmem:[#allocation2 + $0x146] sm:$0xff] }
  0xe2   : > { %v1158_v18 = vmul.f32 %v6680_v8, %v1120_v0  ;;  %v1227_v34 = vmul.f32 %v6849_v24, %v1190_v7  ;;  %v1560_v42 = vadd.f32 %v1528_v55, %v1459_v35  ;;  %v1359_v43 = vadd.f32 %v1327_v1, %v1258_v46  ;;  %v1191_v22 = vld [vmem:[#allocation2 + $0x141] sm:$0xff]  ;;  %v1192_v4 = vld [vmem:[#allocation2 + $0x151] sm:$0xff] }
  0xe3   : > { %v1761_v52 = vadd.f32 %v1729_v32, %v1660_v2  ;;  %v1731_v60 = vmul.f32 %v6886_v54, %v1694_v48  ;;  %1856 = vst [vmem:[%s6323_s18 + $0xa0] sm:$0xff] %v1824_v9  ;;  %v1328_v14 = vmul.f32 %v6858_v47, %v1291_v62  ;;  %v1429_v27 = vmul.f32 %v6864_v19, %v1392_v39  ;;  %v1292_v38 = vld [vmem:[#allocation2 + $0x142] sm:$0xff]  ;;  %v1293_v61 = vld [vmem:[#allocation2 + $0x152] sm:$0xff] }
  0xe4   : > { %v1259_v29 = vadd.f32 %v1227_v34, %v1158_v18  ;;  %v1530_v15 = vmul.f32 %v6871_v13, %v1493_v20  ;;  %v1393_v3 = vld [vmem:[#allocation2 + $0x143] sm:$0xff]  ;;  %v1661_v10 = vadd.f32 %v1629_v33, %v1560_v42  ;;  %v1460_v23 = vadd.f32 %v1428_v26, %v1359_v43  ;;  %v1394_v28 = vld [vmem:[#allocation2 + $0x153] sm:$0xff] }
  0xe5   : > { %v1825_v16 = vadd.f32 %v1793_v36, %v1761_v52  ;;  %v1159_v32 = vmul.f32 %v6680_v8, %v1121_v57  ;;  %v1494_v40 = vld [vmem:[#allocation2 + $0x144] sm:$0xff]  ;;  %v1631_v50 = vmul.f32 %v6878_v37, %v1594_v59  ;;  %v1732_v51 = vmul.f32 %v6886_v54, %v1695_v12  ;;  %v1495_v0 = vld [vmem:[#allocation2 + $0x154] sm:$0xff] }
  0xe6   : > { %v1360_v30 = vadd.f32 %v1328_v14, %v1259_v29  ;;  %v1228_v6 = vmul.f32 %v6849_v24, %v1191_v22  ;;  %v1595_v53 = vld [vmem:[#allocation2 + $0x145] sm:$0xff]  ;;  %v1762_v56 = vadd.f32 %v1730_v11, %v1661_v10  ;;  %v1561_v21 = vadd.f32 %v1529_v25, %v1460_v23  ;;  %v1123_v26 = vld [vmem:[#allocation2 + $0x158] sm:$0xff] }
  0xe7   : > { %1857 = vst [vmem:[%s6323_s18 + $0xa8] sm:$0xff] %v1825_v16  ;;  %v1329_v58 = vmul.f32 %v6858_v47, %v1292_v38  ;;  %v1430_v55 = vmul.f32 %v6864_v19, %v1393_v3  ;;  %v1531_v33 = vmul.f32 %v6871_v13, %v1494_v40  ;;  %v1160_v5 = vmul.f32 %v6680_v8, %v1122_v17  ;;  %v1193_v48 = vld [vmem:[#allocation2 + $0x159] sm:$0xff]  ;;  %v6922_v52 = vld [vmem:[%s8782_s1 + $0x8] ss:$0 sm:$0xff]  ;;  %v1194_v38 = vld [vmem:[#allocation2 + $0x169] sm:$0xff] }
  0xe8   : > { %v1461_v41 = vadd.f32 %v1429_v27, %v1360_v30  ;;  %v1260_v45 = vadd.f32 %v1228_v6, %v1159_v32  ;;  %v1826_v7 = vadd.f32 %v1794_v49, %v1762_v56  ;;  %v1662_v31 = vadd.f32 %v1630_v44, %v1561_v21  ;;  %v1795_v2 = vld [vmem:[%s6323_s18 + $0xb8] sm:$0xff]  ;;  %v1124_v12 = vld [vmem:[#allocation2 + $0x168] sm:$0xff]  ;;  %v1796_v29 = vld [vmem:[%s6323_s18 + $0xc0] sm:$0xff] }
  0xe9   : > { %v1632_v11 = vmul.f32 %v6878_v37, %v1595_v53  ;;  %v1229_v1 = vmul.f32 %v6849_v24, %v1192_v4  ;;  %v1733_v25 = vmul.f32 %v6886_v54, %v1696_v63  ;;  %v1330_v62 = vmul.f32 %v6858_v47, %v1293_v61  ;;  %v1596_v39 = vld [vmem:[#allocation2 + $0x155] sm:$0xff]  ;;  %v1597_v32 = vld [vmem:[#allocation2 + $0x15d] sm:$0xff]  ;;  %v1295_v17 = vld [vmem:[#allocation2 + $0x16a] sm:$0xff] }
  0xea   : > { %v1562_v35 = vadd.f32 %v1530_v15, %v1461_v41  ;;  %v1361_v46 = vadd.f32 %v1329_v58, %v1260_v45  ;;  %v1697_v8 = vld [vmem:[#allocation2 + $0x156] sm:$0xff]  ;;  %1858 = vst [vmem:[%s6323_s18 + $0xb0] sm:$0xff] %v1826_v7  ;;  %v1763_v20 = vadd.f32 %v1731_v60, %v1662_v31  ;;  %v1431_v36 = vmul.f32 %v6864_v19, %v1394_v28  ;;  %v1698_v40 = vld [vmem:[#allocation2 + $0x15e] sm:$0xff]  ;;  %v1396_v53 = vld [vmem:[#allocation2 + $0x16b] sm:$0xff] }
  0xeb   : > { %v1261_v9 = vadd.f32 %v1229_v1, %v1160_v5  ;;  %v1532_v44 = vmul.f32 %v6871_v13, %v1495_v0  ;;  %v1294_v18 = vld [vmem:[#allocation2 + $0x15a] sm:$0xff]  ;;  %v1161_v42 = vmul.f32 %v6922_v52, %v1123_v26  ;;  %v1230_v43 = vmul.f32 %v6849_v24, %v1193_v48  ;;  %v1497_v58 = vld [vmem:[#allocation2 + $0x16c] sm:$0xff] }
  0xec   : > { %v1663_v34 = vadd.f32 %v1631_v50, %v1562_v35  ;;  %v1462_v57 = vadd.f32 %v1430_v55, %v1361_v46  ;;  %v1395_v59 = vld [vmem:[#allocation2 + $0x15b] sm:$0xff]  ;;  %v1827_v22 = vadd.f32 %v1795_v2, %v1763_v20  ;;  %v1633_v27 = vmul.f32 %v6878_v37, %v1596_v39  ;;  %v1125_v55 = vld [vmem:[#allocation2 + $0x170] sm:$0xff]  ;;  %v1797_v61 = vld [vmem:[%s6323_s18 + $0xc8] sm:$0xff] }
  0xed   : > { %v1496_v60 = vld [vmem:[#allocation2 + $0x15c] sm:$0xff]  ;;  %v1362_v14 = vadd.f32 %v1330_v62, %v1261_v9  ;;  %v1734_v15 = vmul.f32 %v6886_v54, %v1697_v8  ;;  %v1262_v10 = vadd.f32 %v1230_v43, %v1161_v42  ;;  %v1331_v23 = vmul.f32 %v6858_v47, %v1294_v18  ;;  %v1195_v63 = vld [vmem:[#allocation2 + $0x171] sm:$0xff] }
  0xee   : > { %v1764_v3 = vadd.f32 %v1732_v51, %v1663_v34  ;;  %v1563_v16 = vadd.f32 %v1531_v33, %v1462_v57  ;;  %1859 = vst [vmem:[%s6323_s18 + $0xb8] sm:$0xff] %v1827_v22  ;;  %v1432_v30 = vmul.f32 %v6864_v19, %v1395_v59  ;;  %v1533_v50 = vmul.f32 %v6871_v13, %v1496_v60  ;;  %v1598_v28 = vld [vmem:[#allocation2 + $0x16d] sm:$0xff]  ;;  %v1196_v18 = vld [vmem:[#allocation2 + $0x181] sm:$0xff]  ;;  %v1599_v59 = vld [vmem:[#allocation2 + $0x175] sm:$0xff] }
  0xef   : > { %v1463_v49 = vadd.f32 %v1431_v36, %v1362_v14  ;;  %v1162_v6 = vmul.f32 %v6922_v52, %v1124_v12  ;;  %v1363_v56 = vadd.f32 %v1331_v23, %v1262_v10  ;;  %v1231_v21 = vmul.f32 %v6849_v24, %v1194_v38  ;;  %v1699_v1 = vld [vmem:[#allocation2 + $0x16e] sm:$0xff]  ;;  %v1297_v60 = vld [vmem:[#allocation2 + $0x182] sm:$0xff] }
  0xf0   : > { %v1828_v4 = vadd.f32 %v1796_v29, %v1764_v3  ;;  %v1664_v51 = vadd.f32 %v1632_v11, %v1563_v16  ;;  %v1634_v45 = vmul.f32 %v6878_v37, %v1597_v32  ;;  %v1735_v33 = vmul.f32 %v6886_v54, %v1698_v40  ;;  %v1296_v26 = vld [vmem:[#allocation2 + $0x172] sm:$0xff]  ;;  %v1398_v38 = vld [vmem:[#allocation2 + $0x183] sm:$0xff] }
  0xf1   : > { %v1564_v41 = vadd.f32 %v1532_v44, %v1463_v49  ;;  %v1332_v5 = vmul.f32 %v6858_v47, %v1295_v17  ;;  %v1464_v7 = vadd.f32 %v1432_v30, %v1363_v56  ;;  %v1263_v31 = vadd.f32 %v1231_v21, %v1162_v6  ;;  %v1397_v62 = vld [vmem:[#allocation2 + $0x173] sm:$0xff]  ;;  %v1126_v44 = vld [vmem:[#allocation2 + $0x180] sm:$0xff]  ;;  %v1127_v40 = vld [vmem:[#allocation2 + $0x188] sm:$0xff] }
  0xf2   : > { %1860 = vst [vmem:[%s6323_s18 + $0xc0] sm:$0xff] %v1828_v4  ;;  %v1765_v0 = vadd.f32 %v1733_v25, %v1664_v51  ;;  %v1433_v11 = vmul.f32 %v6864_v19, %v1396_v53  ;;  %v1534_v2 = vmul.f32 %v6871_v13, %v1497_v58  ;;  %v1163_v35 = vmul.f32 %v6922_v52, %v1125_v55  ;;  %v1498_v39 = vld [vmem:[#allocation2 + $0x174] sm:$0xff]  ;;  %v1499_v32 = vld [vmem:[#allocation2 + $0x184] sm:$0xff] }
  0xf3   : > { %v1665_v48 = vadd.f32 %v1633_v27, %v1564_v41  ;;  %v1232_v46 = vmul.f32 %v6849_v24, %v1195_v63  ;;  %v1798_v20 = vld [vmem:[%s6323_s18 + $0xd0] sm:$0xff]  ;;  %v1565_v9 = vadd.f32 %v1533_v50, %v1464_v7  ;;  %v1364_v25 = vadd.f32 %v1332_v5, %v1263_v31  ;;  %v1800_v4 = vld [vmem:[%s6323_s18 + $0xe0] sm:$0xff] }
  0xf4   : > { %v1829_v8 = vadd.f32 %v1797_v61, %v1765_v0  ;;  %v1635_v36 = vmul.f32 %v6878_v37, %v1598_v28  ;;  %v1736_v57 = vmul.f32 %v6886_v54, %v1699_v1  ;;  %v1333_v43 = vmul.f32 %v6858_v47, %v1296_v26  ;;  %v1700_v27 = vld [vmem:[#allocation2 + $0x176] sm:$0xff]  ;;  %v1197_v6 = vld [vmem:[#allocation2 + $0x189] sm:$0xff] }
  0xf5   : > { %v1766_v34 = vadd.f32 %v1734_v15, %v1665_v48  ;;  %v1264_v42 = vadd.f32 %v1232_v46, %v1163_v35  ;;  %v1666_v12 = vadd.f32 %v1634_v45, %v1565_v9  ;;  %v1465_v22 = vadd.f32 %v1433_v11, %v1364_v25  ;;  %v1799_v15 = vld [vmem:[%s6323_s18 + $0xd8] sm:$0xff]  ;;  %v1298_v53 = vld [vmem:[#allocation2 + $0x18a] sm:$0xff] }
  0xf6   : > { %1861 = vst [vmem:[%s6323_s18 + $0xc8] sm:$0xff] %v1829_v8  ;;  %v1434_v29 = vmul.f32 %v6864_v19, %v1397_v62  ;;  %v1535_v14 = vmul.f32 %v6871_v13, %v1498_v39  ;;  %v1164_v10 = vmul.f32 %v6922_v52, %v1126_v44  ;;  %v1233_v23 = vmul.f32 %v6849_v24, %v1196_v18  ;;  %v1600_v55 = vld [vmem:[#allocation2 + $0x185] sm:$0xff]  ;;  %v6965_v0 = vld [vmem:[%s8782_s1 + $0x10] ss:$0 sm:$0xff]  ;;  %v1939_v7 = vld [vmem:[#allocation2 + $0x31] sm:$0xff] }
  0xf7   : > { %v1830_v3 = vadd.f32 %v1798_v20, %v1766_v34  ;;  %v1365_v16 = vadd.f32 %v1333_v43, %v1264_v42  ;;  %v1767_v17 = vadd.f32 %v1735_v33, %v1666_v12  ;;  %v1566_v49 = vadd.f32 %v1534_v2, %v1465_v22  ;;  %v1701_v63 = vld [vmem:[#allocation2 + $0x186] sm:$0xff]  ;;  %v6972_v48 = vld [vmem:[%s8782_s1 + $0x11] ss:$0 sm:$0xff]  ;;  %v2040_v2 = vld [vmem:[#allocation2 + $0x32] sm:$0xff] }
  0xf8   : > { %v1636_v30 = vmul.f32 %v6878_v37, %v1599_v59  ;;  %v1334_v50 = vmul.f32 %v6858_v47, %v1297_v60  ;;  %v1737_v56 = vmul.f32 %v6886_v54, %v1700_v27  ;;  %v1265_v21 = vadd.f32 %v1233_v23, %v1164_v10  ;;  %v1399_v61 = vld [vmem:[#allocation2 + $0x18b] sm:$0xff]  ;;  %v2141_v20 = vld [vmem:[#allocation2 + $0x33] sm:$0xff]  ;;  %v5991_v42 = vld [vmem:[#allocation2] sm:$0xff] }
  0xf9   : > { %1862 = vst [vmem:[%s6323_s18 + $0xd0] sm:$0xff] %v1830_v3  ;;  %v1466_v51 = vadd.f32 %v1434_v29, %v1365_v16  ;;  %v1435_v58 = vmul.f32 %v6864_v19, %v1398_v38  ;;  %v1831_v41 = vadd.f32 %v1799_v15, %v1767_v17  ;;  %v1667_v45 = vadd.f32 %v1635_v36, %v1566_v49  ;;  %v1500_v28 = vld [vmem:[#allocation2 + $0x18c] sm:$0xff]  ;;  %v2242_v34 = vld [vmem:[#allocation2 + $0x34] sm:$0xff] }
  0xfa   : > { %v1536_v33 = vmul.f32 %v6871_v13, %v1499_v32  ;;  %v1165_v5 = vmul.f32 %v6922_v52, %v1127_v40  ;;  %v1366_v11 = vadd.f32 %v1334_v50, %v1265_v21  ;;  %v1234_v1 = vmul.f32 %v6849_v24, %v1197_v6  ;;  %v6977_v52 = vld [vmem:[%s8782_s1 + $0x12] ss:$0 sm:$0xff]  ;;  %v1801_v46 = vld [vmem:[%s6323_s18 + $0xe8] sm:$0xff]  ;;  %v6988_v18 = vld [vmem:[%s8782_s1 + $0x13] ss:$0 sm:$0xff] }
  0xfb   : > { %v1567_v31 = vadd.f32 %v1535_v14, %v1466_v51  ;;  %v1335_v26 = vmul.f32 %v6858_v47, %v1298_v53  ;;  %1863 = vst [vmem:[%s6323_s18 + $0xd8] sm:$0xff] %v1831_v41  ;;  %v1768_v35 = vadd.f32 %v1736_v57, %v1667_v45  ;;  %v1637_v62 = vmul.f32 %v6878_v37, %v1600_v55  ;;  %v1601_v39 = vld [vmem:[#allocation2 + $0x18d] sm:$0xff]  ;;  %v2343_v60 = vld [vmem:[#allocation2 + $0x35] sm:$0xff]  ;;  %v2344_v55 = vld [vmem:[#allocation2 + $0x3d] sm:$0xff] }
  0xfc   : > { %v1738_v24 = vmul.f32 %v6886_v54, %v1701_v63  ;;  %v1436_v47 = vmul.f32 %v6864_v19, %v1399_v61  ;;  %v1702_v8 = vld [vmem:[#allocation2 + $0x18e] sm:$0xff]  ;;  %v1467_v25 = vadd.f32 %v1435_v58, %v1366_v11  ;;  %v1266_v36 = vadd.f32 %v1234_v1, %v1165_v5  ;;  %v1940_v22 = vld [vmem:[#allocation2 + $0x39] sm:$0xff]  ;;  %v7007_v15 = vld [vmem:[%s8782_s1 + $0x16] ss:$0 sm:$0xff] }
  0xfd   : > { %v1668_v9 = vadd.f32 %v1636_v30, %v1567_v31  ;;  %v1537_v44 = vmul.f32 %v6871_v13, %v1500_v28  ;;  %v6993_v57 = vld [vmem:[%s8782_s1 + $0x14] ss:$0 sm:$0xff]  ;;  %v1832_v19 = vadd.f32 %v1800_v4, %v1768_v35  ;;  %v1907_v43 = vmul.f32 %v5991_v42, %v6965_v0  ;;  %v7001_v12 = vld [vmem:[%s8782_s1 + $0x15] ss:$0 sm:$0xff]  ;;  %v2444_v3 = vld [vmem:[#allocation2 + $0x36] sm:$0xff] }
  0xfe   : > { %v1976_v59 = vmul.f32 %v6972_v48, %v1939_v7  ;;  %v2077_v13 = vmul.f32 %v6977_v52, %v2040_v2  ;;  %v1568_v14 = vadd.f32 %v1536_v33, %v1467_v25  ;;  %v1367_v27 = vadd.f32 %v1335_v26, %v1266_v36  ;;  %v2041_v16 = vld [vmem:[#allocation2 + $0x3a] sm:$0xff]  ;;  %v1871_v53 = vld [vmem:[#allocation2 + $0x48] sm:$0xff]  ;;  %v1802_v51 = vld [vmem:[%s6323_s18 + $0xf0] sm:$0xff] }
  0xff   : > { %v1769_v29 = vadd.f32 %v1737_v56, %v1668_v9  ;;  %v1638_v38 = vmul.f32 %v6878_v37, %v1601_v39  ;;  %1864 = vst [vmem:[%s6323_s18 + $0xe0] sm:$0xff] %v1832_v19  ;;  %v1739_v10 = vmul.f32 %v6886_v54, %v1702_v8  ;;  %v2178_v32 = vmul.f32 %v6988_v18, %v2141_v20  ;;  %v2142_v17 = vld [vmem:[#allocation2 + $0x3b] sm:$0xff]  ;;  %v1941_v4 = vld [vmem:[#allocation2 + $0x49] sm:$0xff] }
 0x100   : > { %v2008_v23 = vadd.f32 %v1976_v59, %v1907_v43  ;;  %v2279_v40 = vmul.f32 %v6993_v57, %v2242_v34  ;;  %v1669_v37 = vadd.f32 %v1637_v62, %v1568_v14  ;;  %v1468_v30 = vadd.f32 %v1436_v47, %v1367_v27  ;;  %v2243_v6 = vld [vmem:[#allocation2 + $0x3c] sm:$0xff]  ;;  %v2042_v5 = vld [vmem:[#allocation2 + $0x4a] sm:$0xff]  ;;  %v2043_v59 = vld [vmem:[#allocation2 + $0x52] sm:$0xff] }
 0x101   : > { %v1833_v49 = vadd.f32 %v1801_v46, %v1769_v29  ;;  %v1977_v50 = vmul.f32 %v6972_v48, %v1940_v22  ;;  %v2380_v21 = vmul.f32 %v7001_v12, %v2343_v60  ;;  %v2481_v54 = vmul.f32 %v7007_v15, %v2444_v3  ;;  %v2445_v33 = vld [vmem:[#allocation2 + $0x3e] sm:$0xff]  ;;  %v2143_v1 = vld [vmem:[#allocation2 + $0x4b] sm:$0xff]  ;;  %v2144_v14 = vld [vmem:[#allocation2 + $0x53] sm:$0xff] }
 0x102   : > { %v2109_v56 = vadd.f32 %v2077_v13, %v2008_v23  ;;  %v2078_v58 = vmul.f32 %v6977_v52, %v2041_v16  ;;  %v1770_v63 = vadd.f32 %v1738_v24, %v1669_v37  ;;  %v1569_v61 = vadd.f32 %v1537_v44, %v1468_v30  ;;  %v2244_v26 = vld [vmem:[#allocation2 + $0x4c] sm:$0xff]  ;;  %v1803_v39 = vld [vmem:[%s6323_s18 + $0xf8] sm:$0xff]  ;;  %v2545_v16 = vld [vmem:[%s6323_s18] sm:$0xff] }
 0x103   : > { %1865 = vst [vmem:[%s6323_s18 + $0xe8] sm:$0xff] %v1833_v49  ;;  %v2009_v41 = vadd.f32 %v1977_v50, %v1907_v43  ;;  %v2179_v45 = vmul.f32 %v6988_v18, %v2142_v17  ;;  %v2280_v7 = vmul.f32 %v6993_v57, %v2243_v6  ;;  %v1909_v31 = vmul.f32 %v6965_v0, %v1871_v53  ;;  %v1872_v24 = vld [vmem:[#allocation2 + $0x50] sm:$0xff]  ;;  %v2044_v53 = vld [vmem:[#allocation2 + $0x62] sm:$0xff] }
 0x104   : > { %v2210_v28 = vadd.f32 %v2178_v32, %v2109_v56  ;;  %v1978_v11 = vmul.f32 %v6972_v48, %v1941_v4  ;;  %v1834_v2 = vadd.f32 %v1802_v51, %v1770_v63  ;;  %v1670_v35 = vadd.f32 %v1638_v38, %v1569_v61  ;;  %v1942_v47 = vld [vmem:[#allocation2 + $0x51] sm:$0xff]  ;;  %v1873_v38 = vld [vmem:[#allocation2 + $0x60] sm:$0xff]  ;;  %v2546_v51 = vld [vmem:[%s6323_s18 + $0x8] sm:$0xff] }
 0x105   : > { %v2110_v46 = vadd.f32 %v2078_v58, %v2009_v41  ;;  %v2381_v62 = vmul.f32 %v7001_v12, %v2344_v55  ;;  %v2482_v20 = vmul.f32 %v7007_v15, %v2445_v33  ;;  %v2079_v25 = vmul.f32 %v6977_v52, %v2042_v5  ;;  %v2345_v36 = vld [vmem:[#allocation2 + $0x4d] sm:$0xff]  ;;  %v2346_v50 = vld [vmem:[#allocation2 + $0x55] sm:$0xff]  ;;  %v2145_v55 = vld [vmem:[#allocation2 + $0x63] sm:$0xff] }
 0x106   : > { %v2311_v8 = vadd.f32 %v2279_v40, %v2210_v28  ;;  %v2010_v9 = vadd.f32 %v1978_v11, %v1909_v31  ;;  %v2446_v44 = vld [vmem:[#allocation2 + $0x4e] sm:$0xff]  ;;  %1866 = vst [vmem:[%s6323_s18 + $0xf0] sm:$0xff] %v1834_v2  ;;  %v1771_v34 = vadd.f32 %v1739_v10, %v1670_v35  ;;  %v2180_v42 = vmul.f32 %v6988_v18, %v2143_v1  ;;  %v1943_v40 = vld [vmem:[#allocation2 + $0x61] sm:$0xff]  ;;  %v2447_v6 = vld [vmem:[#allocation2 + $0x56] sm:$0xff] }
 0x107   : > { %v2211_v19 = vadd.f32 %v2179_v45, %v2110_v46  ;;  %v2281_v43 = vmul.f32 %v6993_v57, %v2244_v26  ;;  %v1910_v22 = vmul.f32 %v6965_v0, %v1872_v24  ;;  %v1979_v29 = vmul.f32 %v6972_v48, %v1942_v47  ;;  %v2245_v27 = vld [vmem:[#allocation2 + $0x54] sm:$0xff]  ;;  %v2246_v45 = vld [vmem:[#allocation2 + $0x64] sm:$0xff] }
 0x108   : > { %v2412_v13 = vadd.f32 %v2380_v21, %v2311_v8  ;;  %v2111_v60 = vadd.f32 %v2079_v25, %v2010_v9  ;;  %v1835_v3 = vadd.f32 %v1803_v39, %v1771_v34  ;;  %v2382_v23 = vmul.f32 %v7001_v12, %v2345_v36  ;;  %v1874_v33 = vld [vmem:[#allocation2 + $0x68] sm:$0xff]  ;;  %v2547_v8 = vld [vmem:[%s6323_s18 + $0x10] sm:$0xff] }
 0x109   : > { %v2312_v10 = vadd.f32 %v2280_v7, %v2211_v19  ;;  %v2483_v32 = vmul.f32 %v7007_v15, %v2446_v44  ;;  %v2011_v37 = vadd.f32 %v1979_v29, %v1910_v22  ;;  %v2080_v30 = vmul.f32 %v6977_v52, %v2043_v59  ;;  %v1944_v5 = vld [vmem:[#allocation2 + $0x69] sm:$0xff]  ;;  %v1875_v59 = vld [vmem:[#allocation2 + $0x78] sm:$0xff] }
 0x10a   : > { %v2513_v17 = vadd.f32 %v2481_v54, %v2412_v13  ;;  %v2212_v49 = vadd.f32 %v2180_v42, %v2111_v60  ;;  %1867 = vst [vmem:[%s6323_s18 + $0xf8] sm:$0xff] %v1835_v3  ;;  %v2181_v56 = vmul.f32 %v6988_v18, %v2144_v14  ;;  %v2282_v21 = vmul.f32 %v6993_v57, %v2245_v27  ;;  %v2347_v1 = vld [vmem:[#allocation2 + $0x65] sm:$0xff]  ;;  %v1945_v13 = vld [vmem:[#allocation2 + $0x79] sm:$0xff]  ;;  %v2449_v27 = vld [vmem:[#allocation2 + $0x6e] sm:$0xff] }
 0x10b   : > { %v2413_v4 = vadd.f32 %v2381_v62, %v2312_v10  ;;  %v1911_v58 = vmul.f32 %v6965_v0, %v1873_v38  ;;  %v2112_v61 = vadd.f32 %v2080_v30, %v2011_v37  ;;  %v1980_v41 = vmul.f32 %v6972_v48, %v1943_v40  ;;  %v2448_v62 = vld [vmem:[#allocation2 + $0x66] sm:$0xff]  ;;  %v2046_v38 = vld [vmem:[#allocation2 + $0x7a] sm:$0xff] }
 0x10c   : > { %v2577_v63 = vadd.f32 %v2545_v16, %v2513_v17  ;;  %v2313_v54 = vadd.f32 %v2281_v43, %v2212_v49  ;;  %v2383_v7 = vmul.f32 %v7001_v12, %v2346_v50  ;;  %v2484_v31 = vmul.f32 %v7007_v15, %v2447_v6  ;;  %v2045_v24 = vld [vmem:[#allocation2 + $0x6a] sm:$0xff]  ;;  %v2248_v40 = vld [vmem:[#allocation2 + $0x7c] sm:$0xff] }
 0x10d   : > { %v2514_v28 = vadd.f32 %v2482_v20, %v2413_v4  ;;  %v2081_v11 = vmul.f32 %v6977_v52, %v2044_v53  ;;  %v2213_v2 = vadd.f32 %v2181_v56, %v2112_v61  ;;  %v2012_v35 = vadd.f32 %v1980_v41, %v1911_v58  ;;  %v2146_v47 = vld [vmem:[#allocation2 + $0x6b] sm:$0xff]  ;;  %v2548_v17 = vld [vmem:[%s6323_s18 + $0x18] sm:$0xff]  ;;  %v1876_v6 = vld [vmem:[#allocation2 + $0x80] sm:$0xff] }
 0x10e   : > { %2609 = vst [vmem:[%s6323_s18] sm:$0xff] %v2577_v63  ;;  %v2414_v26 = vadd.f32 %v2382_v23, %v2313_v54  ;;  %v2182_v46 = vmul.f32 %v6988_v18, %v2145_v55  ;;  %v2283_v20 = vmul.f32 %v6993_v57, %v2246_v45  ;;  %v1912_v9 = vmul.f32 %v6965_v0, %v1874_v33  ;;  %v2247_v36 = vld [vmem:[#allocation2 + $0x6c] sm:$0xff]  ;;  %v1946_v53 = vld [vmem:[#allocation2 + $0x81] sm:$0xff] }
 0x10f   : > { %v2578_v39 = vadd.f32 %v2546_v51, %v2514_v28  ;;  %v1981_v25 = vmul.f32 %v6972_v48, %v1944_v5  ;;  %v2314_v34 = vadd.f32 %v2282_v21, %v2213_v2  ;;  %v2113_v19 = vadd.f32 %v2081_v11, %v2012_v35  ;;  %v2348_v43 = vld [vmem:[#allocation2 + $0x6d] sm:$0xff]  ;;  %v2349_v58 = vld [vmem:[#allocation2 + $0x7d] sm:$0xff] }
 0x110   : > { %v2515_v44 = vadd.f32 %v2483_v32, %v2414_v26  ;;  %v2384_v42 = vmul.f32 %v7001_v12, %v2347_v1  ;;  %v2485_v60 = vmul.f32 %v7007_v15, %v2448_v62  ;;  %v2082_v29 = vmul.f32 %v6977_v52, %v2045_v24  ;;  %v2147_v32 = vld [vmem:[#allocation2 + $0x7b] sm:$0xff]  ;;  %v2148_v33 = vld [vmem:[#allocation2 + $0x83] sm:$0xff]  ;;  %v1877_v1 = vld [vmem:[#allocation2 + $0x90] sm:$0xff] }
 0x111   : > { %2610 = vst [vmem:[%s6323_s18 + $0x8] sm:$0xff] %v2578_v39  ;;  %v2013_v22 = vadd.f32 %v1981_v25, %v1912_v9  ;;  %v2183_v14 = vmul.f32 %v6988_v18, %v2146_v47  ;;  %v2415_v16 = vadd.f32 %v2383_v7, %v2314_v34  ;;  %v2214_v10 = vadd.f32 %v2182_v46, %v2113_v19  ;;  %v2450_v55 = vld [vmem:[#allocation2 + $0x7e] sm:$0xff]  ;;  %v1947_v47 = vld [vmem:[#allocation2 + $0x91] sm:$0xff]  ;;  %v2451_v25 = vld [vmem:[#allocation2 + $0x86] sm:$0xff] }
 0x112   : > { %v2579_v3 = vadd.f32 %v2547_v8, %v2515_v44  ;;  %v2284_v23 = vmul.f32 %v6993_v57, %v2247_v36  ;;  %v2385_v37 = vmul.f32 %v7001_v12, %v2348_v43  ;;  %v1913_v30 = vmul.f32 %v6965_v0, %v1875_v59  ;;  %v2047_v45 = vld [vmem:[#allocation2 + $0x82] sm:$0xff]  ;;  %v2048_v36 = vld [vmem:[#allocation2 + $0x92] sm:$0xff] }
 0x113   : > { %v2114_v49 = vadd.f32 %v2082_v29, %v2013_v22  ;;  %v1982_v50 = vmul.f32 %v6972_v48, %v1945_v13  ;;  %v2516_v4 = vadd.f32 %v2484_v31, %v2415_v16  ;;  %v2315_v51 = vadd.f32 %v2283_v20, %v2214_v10  ;;  %v2249_v11 = vld [vmem:[#allocation2 + $0x84] sm:$0xff]  ;;  %v2149_v43 = vld [vmem:[#allocation2 + $0x93] sm:$0xff] }
 0x114   : > { %2611 = vst [vmem:[%s6323_s18 + $0x10] sm:$0xff] %v2579_v3  ;;  %v2486_v56 = vmul.f32 %v7007_v15, %v2449_v27  ;;  %v2083_v21 = vmul.f32 %v6977_v52, %v2046_v38  ;;  %v2184_v61 = vmul.f32 %v6988_v18, %v2147_v32  ;;  %v2285_v41 = vmul.f32 %v6993_v57, %v2248_v40  ;;  %v2549_v26 = vld [vmem:[%s6323_s18 + $0x20] sm:$0xff]  ;;  %v2250_v59 = vld [vmem:[#allocation2 + $0x94] sm:$0xff]  ;;  %v2550_v22 = vld [vmem:[%s6323_s18 + $0x28] sm:$0xff] }
 0x115   : > { %v2215_v63 = vadd.f32 %v2183_v14, %v2114_v49  ;;  %v2014_v54 = vadd.f32 %v1982_v50, %v1913_v30  ;;  %v2580_v5 = vadd.f32 %v2548_v17, %v2516_v4  ;;  %v2416_v28 = vadd.f32 %v2384_v42, %v2315_v51  ;;  %v2350_v24 = vld [vmem:[#allocation2 + $0x85] sm:$0xff]  ;;  %v1878_v27 = vld [vmem:[#allocation2 + $0x98] sm:$0xff] }
 0x116   : > { %v1914_v7 = vmul.f32 %v6965_v0, %v1876_v6  ;;  %v1983_v31 = vmul.f32 %v6972_v48, %v1946_v53  ;;  %v2386_v46 = vmul.f32 %v7001_v12, %v2349_v58  ;;  %v2487_v62 = vmul.f32 %v7007_v15, %v2450_v55  ;;  %v1948_v38 = vld [vmem:[#allocation2 + $0x99] sm:$0xff]  ;;  %v1879_v58 = vld [vmem:[#allocation2 + $0xa8] sm:$0xff]  ;;  %v2551_v55 = vld [vmem:[%s6323_s18 + $0x30] sm:$0xff] }
 0x117   : > { %v2316_v2 = vadd.f32 %v2284_v23, %v2215_v63  ;;  %v2115_v35 = vadd.f32 %v2083_v21, %v2014_v54  ;;  %2612 = vst [vmem:[%s6323_s18 + $0x18] sm:$0xff] %v2580_v5  ;;  %v2517_v39 = vadd.f32 %v2485_v60, %v2416_v28  ;;  %v2084_v20 = vmul.f32 %v6977_v52, %v2047_v45  ;;  %v2351_v32 = vld [vmem:[#allocation2 + $0x95] sm:$0xff]  ;;  %v2352_v45 = vld [vmem:[#allocation2 + $0x9d] sm:$0xff] }
 0x118   : > { %v2015_v8 = vadd.f32 %v1983_v31, %v1914_v7  ;;  %v2185_v9 = vmul.f32 %v6988_v18, %v2148_v33  ;;  %v2286_v19 = vmul.f32 %v6993_v57, %v2249_v11  ;;  %v1915_v42 = vmul.f32 %v6965_v0, %v1877_v1  ;;  %v2452_v40 = vld [vmem:[#allocation2 + $0x96] sm:$0xff]  ;;  %v1949_v33 = vld [vmem:[#allocation2 + $0xa9] sm:$0xff]  ;;  %v2453_v11 = vld [vmem:[#allocation2 + $0x9e] sm:$0xff] }
 0x119   : > { %v2417_v44 = vadd.f32 %v2385_v37, %v2316_v2  ;;  %v2216_v34 = vadd.f32 %v2184_v61, %v2115_v35  ;;  %v2581_v13 = vadd.f32 %v2549_v26, %v2517_v39  ;;  %v2387_v60 = vmul.f32 %v7001_v12, %v2350_v24  ;;  %v2049_v50 = vld [vmem:[#allocation2 + $0x9a] sm:$0xff]  ;;  %v2050_v1 = vld [vmem:[#allocation2 + $0xaa] sm:$0xff] }
 0x11a   : > { %v2116_v29 = vadd.f32 %v2084_v20, %v2015_v8  ;;  %v1984_v14 = vmul.f32 %v6972_v48, %v1947_v47  ;;  %v2488_v10 = vmul.f32 %v7007_v15, %v2451_v25  ;;  %v2085_v23 = vmul.f32 %v6977_v52, %v2048_v36  ;;  %v2150_v6 = vld [vmem:[#allocation2 + $0x9b] sm:$0xff]  ;;  %v2151_v24 = vld [vmem:[#allocation2 + $0xab] sm:$0xff] }
 0x11b   : > { %v2518_v3 = vadd.f32 %v2486_v56, %v2417_v44  ;;  %v2317_v16 = vadd.f32 %v2285_v41, %v2216_v34  ;;  %2613 = vst [vmem:[%s6323_s18 + $0x20] sm:$0xff] %v2581_v13  ;;  %v2186_v37 = vmul.f32 %v6988_v18, %v2149_v43  ;;  %v2287_v30 = vmul.f32 %v6993_v57, %v2250_v59  ;;  %v2251_v21 = vld [vmem:[#allocation2 + $0x9c] sm:$0xff]  ;;  %v2252_v47 = vld [vmem:[#allocation2 + $0xac] sm:$0xff] }
 0x11c   : > { %v2217_v17 = vadd.f32 %v2185_v9, %v2116_v29  ;;  %v2016_v49 = vadd.f32 %v1984_v14, %v1915_v42  ;;  %v1916_v51 = vmul.f32 %v6965_v0, %v1878_v27  ;;  %v1985_v56 = vmul.f32 %v6972_v48, %v1948_v38  ;;  %v2552_v8 = vld [vmem:[%s6323_s18 + $0x38] sm:$0xff]  ;;  %v1880_v25 = vld [vmem:[#allocation2 + $0xb0] sm:$0xff] }
 0x11d   : > { %v2582_v53 = vadd.f32 %v2550_v22, %v2518_v3  ;;  %v2418_v4 = vadd.f32 %v2386_v46, %v2317_v16  ;;  %v2388_v61 = vmul.f32 %v7001_v12, %v2351_v32  ;;  %v2489_v41 = vmul.f32 %v7007_v15, %v2452_v40  ;;  %v1950_v36 = vld [vmem:[#allocation2 + $0xb1] sm:$0xff]  ;;  %v1881_v32 = vld [vmem:[#allocation2 + $0xc0] sm:$0xff] }
 0x11e   : > { %v2318_v63 = vadd.f32 %v2286_v19, %v2217_v17  ;;  %v2117_v54 = vadd.f32 %v2085_v23, %v2016_v49  ;;  %v2017_v28 = vadd.f32 %v1985_v56, %v1916_v51  ;;  %v2086_v7 = vmul.f32 %v6977_v52, %v2049_v50  ;;  %v2353_v43 = vld [vmem:[#allocation2 + $0xad] sm:$0xff]  ;;  %v2553_v40 = vld [vmem:[%s6323_s18 + $0x40] sm:$0xff]  ;;  %v2354_v50 = vld [vmem:[#allocation2 + $0xb5] sm:$0xff] }
 0x11f   : > { %2614 = vst [vmem:[%s6323_s18 + $0x28] sm:$0xff] %v2582_v53  ;;  %v2519_v5 = vadd.f32 %v2487_v62, %v2418_v4  ;;  %v2187_v31 = vmul.f32 %v6988_v18, %v2150_v6  ;;  %v2288_v35 = vmul.f32 %v6993_v57, %v2251_v21  ;;  %v1917_v46 = vmul.f32 %v6965_v0, %v1879_v58  ;;  %v2454_v59 = vld [vmem:[#allocation2 + $0xae] sm:$0xff]  ;;  %v1951_v6 = vld [vmem:[#allocation2 + $0xc1] sm:$0xff]  ;;  %v2455_v21 = vld [vmem:[#allocation2 + $0xb6] sm:$0xff] }
 0x120   : > { %v2419_v26 = vadd.f32 %v2387_v60, %v2318_v63  ;;  %v2218_v2 = vadd.f32 %v2186_v37, %v2117_v54  ;;  %v2118_v20 = vadd.f32 %v2086_v7, %v2017_v28  ;;  %v2389_v62 = vmul.f32 %v7001_v12, %v2352_v45  ;;  %v2051_v14 = vld [vmem:[#allocation2 + $0xb2] sm:$0xff]  ;;  %v2052_v58 = vld [vmem:[#allocation2 + $0xc2] sm:$0xff] }
 0x121   : > { %v2583_v39 = vadd.f32 %v2551_v55, %v2519_v5  ;;  %v1986_v9 = vmul.f32 %v6972_v48, %v1949_v33  ;;  %v2490_v19 = vmul.f32 %v7007_v15, %v2453_v11  ;;  %v2087_v42 = vmul.f32 %v6977_v52, %v2050_v1  ;;  %v2152_v27 = vld [vmem:[#allocation2 + $0xb3] sm:$0xff]  ;;  %v2153_v45 = vld [vmem:[#allocation2 + $0xc3] sm:$0xff] }
 0x122   : > { %v2520_v44 = vadd.f32 %v2488_v10, %v2419_v26  ;;  %v2319_v34 = vadd.f32 %v2287_v30, %v2218_v2  ;;  %v2219_v13 = vadd.f32 %v2187_v31, %v2118_v20  ;;  %v2188_v29 = vmul.f32 %v6988_v18, %v2151_v24  ;;  %v2253_v23 = vld [vmem:[#allocation2 + $0xb4] sm:$0xff]  ;;  %v2254_v33 = vld [vmem:[#allocation2 + $0xc4] sm:$0xff] }
 0x123   : > { %2615 = vst [vmem:[%s6323_s18 + $0x30] sm:$0xff] %v2583_v39  ;;  %v2018_v22 = vadd.f32 %v1986_v9, %v1917_v46  ;;  %v2289_v60 = vmul.f32 %v6993_v57, %v2252_v47  ;;  %v1918_v16 = vmul.f32 %v6965_v0, %v1880_v25  ;;  %v1987_v10 = vmul.f32 %v6972_v48, %v1950_v36  ;;  %v2554_v28 = vld [vmem:[%s6323_s18 + $0x48] sm:$0xff] }
 0x124   : > { %v2584_v38 = vadd.f32 %v2552_v8, %v2520_v44  ;;  %v2420_v3 = vadd.f32 %v2388_v61, %v2319_v34  ;;  %v2320_v17 = vadd.f32 %v2288_v35, %v2219_v13  ;;  %v2390_v37 = vmul.f32 %v7001_v12, %v2353_v43  ;;  %v1882_v11 = vld [vmem:[#allocation2 + $0xc8] sm:$0xff]  ;;  %v1883_v43 = vld [vmem:[#allocation2 + $0xd8] sm:$0xff] }
 0x125   : > { %v2119_v49 = vadd.f32 %v2087_v42, %v2018_v22  ;;  %v2491_v30 = vmul.f32 %v7007_v15, %v2454_v59  ;;  %v2019_v4 = vadd.f32 %v1987_v10, %v1918_v16  ;;  %v2088_v51 = vmul.f32 %v6977_v52, %v2051_v14  ;;  %v1952_v1 = vld [vmem:[#allocation2 + $0xc9] sm:$0xff] }
 0x126   : > { %2616 = vst [vmem:[%s6323_s18 + $0x38] sm:$0xff] %v2584_v38  ;;  %v2521_v53 = vadd.f32 %v2489_v41, %v2420_v3  ;;  %v2189_v56 = vmul.f32 %v6988_v18, %v2152_v27  ;;  %v2421_v55 = vadd.f32 %v2389_v62, %v2320_v17  ;;  %v2290_v54 = vmul.f32 %v6993_v57, %v2253_v23  ;;  %v2355_v24 = vld [vmem:[#allocation2 + $0xc5] sm:$0xff]  ;;  %v2555_v59 = vld [vmem:[%s6323_s18 + $0x50] sm:$0xff]  ;;  %v1953_v27 = vld [vmem:[#allocation2 + $0xd9] sm:$0xff] }
 0x127   : > { %v2220_v63 = vadd.f32 %v2188_v29, %v2119_v49  ;;  %v1919_v61 = vmul.f32 %v6965_v0, %v1881_v32  ;;  %v2120_v7 = vadd.f32 %v2088_v51, %v2019_v4  ;;  %v2391_v41 = vmul.f32 %v7001_v12, %v2354_v50  ;;  %v2456_v47 = vld [vmem:[#allocation2 + $0xc6] sm:$0xff]  ;;  %v2457_v23 = vld [vmem:[#allocation2 + $0xce] sm:$0xff]  ;;  %v2054_v32 = vld [vmem:[#allocation2 + $0xda] sm:$0xff] }
 0x128   : > { %v2585_v5 = vadd.f32 %v2553_v40, %v2521_v53  ;;  %v1988_v31 = vmul.f32 %v6972_v48, %v1951_v6  ;;  %v2522_v26 = vadd.f32 %v2490_v19, %v2421_v55  ;;  %v2492_v35 = vmul.f32 %v7007_v15, %v2455_v21  ;;  %v2053_v9 = vld [vmem:[#allocation2 + $0xca] sm:$0xff]  ;;  %v2155_v50 = vld [vmem:[#allocation2 + $0xdb] sm:$0xff] }
 0x129   : > { %v2321_v2 = vadd.f32 %v2289_v60, %v2220_v63  ;;  %v2089_v46 = vmul.f32 %v6977_v52, %v2052_v58  ;;  %v2221_v39 = vadd.f32 %v2189_v56, %v2120_v7  ;;  %v2190_v20 = vmul.f32 %v6988_v18, %v2153_v45  ;;  %v2154_v25 = vld [vmem:[#allocation2 + $0xcb] sm:$0xff]  ;;  %v2256_v6 = vld [vmem:[#allocation2 + $0xdc] sm:$0xff] }
 0x12a   : > { %2617 = vst [vmem:[%s6323_s18 + $0x40] sm:$0xff] %v2585_v5  ;;  %v2020_v8 = vadd.f32 %v1988_v31, %v1919_v61  ;;  %v2291_v62 = vmul.f32 %v6993_v57, %v2254_v33  ;;  %v2586_v36 = vadd.f32 %v2554_v28, %v2522_v26  ;;  %v1920_v34 = vmul.f32 %v6965_v0, %v1882_v11  ;;  %v2255_v42 = vld [vmem:[#allocation2 + $0xcc] sm:$0xff]  ;;  %v2556_v4 = vld [vmem:[%s6323_s18 + $0x58] sm:$0xff]  ;;  %v1884_v21 = vld [vmem:[#allocation2 + $0xe0] sm:$0xff] }
 0x12b   : > { %v2422_v44 = vadd.f32 %v2390_v37, %v2321_v2  ;;  %v1989_v19 = vmul.f32 %v6972_v48, %v1952_v1  ;;  %v2322_v13 = vadd.f32 %v2290_v54, %v2221_v39  ;;  %v2392_v29 = vmul.f32 %v7001_v12, %v2355_v24  ;;  %v2356_v14 = vld [vmem:[#allocation2 + $0xcd] sm:$0xff]  ;;  %v1954_v58 = vld [vmem:[#allocation2 + $0xe1] sm:$0xff] }
 0x12c   : > { %v2121_v22 = vadd.f32 %v2089_v46, %v2020_v8  ;;  %v2493_v60 = vmul.f32 %v7007_v15, %v2456_v47  ;;  %2618 = vst [vmem:[%s6323_s18 + $0x48] sm:$0xff] %v2586_v36  ;;  %v2090_v16 = vmul.f32 %v6977_v52, %v2053_v9  ;;  %v2191_v10 = vmul.f32 %v6988_v18, %v2154_v25  ;;  %v2357_v45 = vld [vmem:[#allocation2 + $0xdd] sm:$0xff]  ;;  %v1885_v24 = vld [vmem:[#allocation2 + $0xf0] sm:$0xff]  ;;  %v2358_v9 = vld [vmem:[#allocation2 + $0xe5] sm:$0xff] }
 0x12d   : > { %v2523_v38 = vadd.f32 %v2491_v30, %v2422_v44  ;;  %v2021_v3 = vadd.f32 %v1989_v19, %v1920_v34  ;;  %v2423_v40 = vadd.f32 %v2391_v41, %v2322_v13  ;;  %v2292_v49 = vmul.f32 %v6993_v57, %v2255_v42  ;;  %v2458_v33 = vld [vmem:[#allocation2 + $0xde] sm:$0xff]  ;;  %v1955_v25 = vld [vmem:[#allocation2 + $0xf1] sm:$0xff]  ;;  %v2459_v42 = vld [vmem:[#allocation2 + $0xe6] sm:$0xff] }
 0x12e   : > { %v2222_v17 = vadd.f32 %v2190_v20, %v2121_v22  ;;  %v1921_v37 = vmul.f32 %v6965_v0, %v1883_v43  ;;  %v2393_v30 = vmul.f32 %v7001_v12, %v2356_v14  ;;  %v1990_v56 = vmul.f32 %v6972_v48, %v1953_v27  ;;  %v2055_v31 = vld [vmem:[#allocation2 + $0xe2] sm:$0xff]  ;;  %v2056_v43 = vld [vmem:[#allocation2 + $0xf2] sm:$0xff] }
 0x12f   : > { %v2587_v53 = vadd.f32 %v2555_v59, %v2523_v38  ;;  %v2122_v51 = vadd.f32 %v2090_v16, %v2021_v3  ;;  %v2524_v55 = vadd.f32 %v2492_v35, %v2423_v40  ;;  %v2494_v54 = vmul.f32 %v7007_v15, %v2457_v23  ;;  %v2156_v11 = vld [vmem:[#allocation2 + $0xe3] sm:$0xff]  ;;  %v2157_v14 = vld [vmem:[#allocation2 + $0xf3] sm:$0xff] }
 0x130   : > { %v2323_v63 = vadd.f32 %v2291_v62, %v2222_v17  ;;  %v2091_v61 = vmul.f32 %v6977_v52, %v2054_v32  ;;  %v2022_v28 = vadd.f32 %v1990_v56, %v1921_v37  ;;  %v2192_v7 = vmul.f32 %v6988_v18, %v2155_v50  ;;  %v2257_v46 = vld [vmem:[#allocation2 + $0xe4] sm:$0xff]  ;;  %v2258_v27 = vld [vmem:[#allocation2 + $0xf4] sm:$0xff] }
 0x131   : > { %2619 = vst [vmem:[%s6323_s18 + $0x50] sm:$0xff] %v2587_v53  ;;  %v2223_v5 = vadd.f32 %v2191_v10, %v2122_v51  ;;  %v2293_v41 = vmul.f32 %v6993_v57, %v2256_v6  ;;  %v2588_v1 = vadd.f32 %v2556_v4, %v2524_v55  ;;  %v1922_v2 = vmul.f32 %v6965_v0, %v1884_v21  ;;  %v2557_v47 = vld [vmem:[%s6323_s18 + $0x60] sm:$0xff]  ;;  %v2558_v3 = vld [vmem:[%s6323_s18 + $0x68] sm:$0xff]  ;;  %v1886_v23 = vld [vmem:[#allocation2 + $0xf8] sm:$0xff] }
 0x132   : > { %v2424_v26 = vadd.f32 %v2392_v29, %v2323_v63  ;;  %v1991_v35 = vmul.f32 %v6972_v48, %v1954_v58  ;;  %v2123_v8 = vadd.f32 %v2091_v61, %v2022_v28  ;;  %v2394_v20 = vmul.f32 %v7001_v12, %v2357_v45  ;;  %v1956_v32 = vld [vmem:[#allocation2 + $0xf9] sm:$0xff]  ;;  %v1887_v45 = vld [vmem:[#allocation2 + $0x108] sm:$0xff] }
 0x133   : > { %v2324_v39 = vadd.f32 %v2292_v49, %v2223_v5  ;;  %v2495_v62 = vmul.f32 %v7007_v15, %v2458_v33  ;;  %2620 = vst [vmem:[%s6323_s18 + $0x58] sm:$0xff] %v2588_v1  ;;  %v2092_v34 = vmul.f32 %v6977_v52, %v2055_v31  ;;  %v2193_v19 = vmul.f32 %v6988_v18, %v2156_v11  ;;  %v2359_v50 = vld [vmem:[#allocation2 + $0xf5] sm:$0xff]  ;;  %v2360_v31 = vld [vmem:[#allocation2 + $0xfd] sm:$0xff]  ;;  %v1957_v11 = vld [vmem:[#allocation2 + $0x109] sm:$0xff] }
 0x134   : > { %v2525_v36 = vadd.f32 %v2493_v60, %v2424_v26  ;;  %v2023_v44 = vadd.f32 %v1991_v35, %v1922_v2  ;;  %v2224_v13 = vadd.f32 %v2192_v7, %v2123_v8  ;;  %v2294_v22 = vmul.f32 %v6993_v57, %v2257_v46  ;;  %v2460_v6 = vld [vmem:[#allocation2 + $0xf6] sm:$0xff]  ;;  %v2461_v46 = vld [vmem:[#allocation2 + $0xfe] sm:$0xff] }
 0x135   : > { %v2425_v59 = vadd.f32 %v2393_v30, %v2324_v39  ;;  %v1923_v29 = vmul.f32 %v6965_v0, %v1885_v24  ;;  %v2395_v60 = vmul.f32 %v7001_v12, %v2358_v9  ;;  %v1992_v10 = vmul.f32 %v6972_v48, %v1955_v25  ;;  %v2057_v56 = vld [vmem:[#allocation2 + $0xfa] sm:$0xff]  ;;  %v2559_v33 = vld [vmem:[%s6323_s18 + $0x70] sm:$0xff] }
 0x136   : > { %v2589_v38 = vadd.f32 %v2557_v47, %v2525_v36  ;;  %v2124_v16 = vadd.f32 %v2092_v34, %v2023_v44  ;;  %v2325_v17 = vadd.f32 %v2293_v41, %v2224_v13  ;;  %v2496_v49 = vmul.f32 %v7007_v15, %v2459_v42  ;;  %v2158_v21 = vld [vmem:[#allocation2 + $0xfb] sm:$0xff]  ;;  %v2058_v24 = vld [vmem:[#allocation2 + $0x10a] sm:$0xff] }
 0x137   : > { %v2526_v40 = vadd.f32 %v2494_v54, %v2425_v59  ;;  %v2093_v37 = vmul.f32 %v6977_v52, %v2056_v43  ;;  %v2024_v4 = vadd.f32 %v1992_v10, %v1923_v29  ;;  %v2194_v51 = vmul.f32 %v6988_v18, %v2157_v14  ;;  %v2259_v61 = vld [vmem:[#allocation2 + $0xfc] sm:$0xff]  ;;  %v2159_v9 = vld [vmem:[#allocation2 + $0x10b] sm:$0xff] }
 0x138   : > { %2621 = vst [vmem:[%s6323_s18 + $0x60] sm:$0xff] %v2589_v38  ;;  %v2225_v53 = vadd.f32 %v2193_v19, %v2124_v16  ;;  %v2295_v30 = vmul.f32 %v6993_v57, %v2258_v27  ;;  %v2426_v55 = vadd.f32 %v2394_v20, %v2325_v17  ;;  %v1924_v63 = vmul.f32 %v6965_v0, %v1886_v23  ;;  %v2260_v25 = vld [vmem:[#allocation2 + $0x10c] sm:$0xff]  ;;  %v2560_v44 = vld [vmem:[%s6323_s18 + $0x78] sm:$0xff] }
 0x139   : > { %v2590_v58 = vadd.f32 %v2558_v3, %v2526_v40  ;;  %v1993_v54 = vmul.f32 %v6972_v48, %v1956_v32  ;;  %v2125_v28 = vadd.f32 %v2093_v37, %v2024_v4  ;;  %v2396_v7 = vmul.f32 %v7001_v12, %v2359_v50  ;;  %v1888_v42 = vld [vmem:[#allocation2 + $0x110] sm:$0xff]  ;;  %v1889_v50 = vld [vmem:[#allocation2 + $0x120] sm:$0xff] }
 0x13a   : > { %v2326_v5 = vadd.f32 %v2294_v22, %v2225_v53  ;;  %v2497_v41 = vmul.f32 %v7007_v15, %v2460_v6  ;;  %v2527_v1 = vadd.f32 %v2495_v62, %v2426_v55  ;;  %v2094_v2 = vmul.f32 %v6977_v52, %v2057_v56  ;;  %v1958_v43 = vld [vmem:[#allocation2 + $0x111] sm:$0xff]  ;;  %v2561_v6 = vld [vmem:[%s6323_s18 + $0x80] sm:$0xff] }
 0x13b   : > { %2622 = vst [vmem:[%s6323_s18 + $0x68] sm:$0xff] %v2590_v58  ;;  %v2025_v26 = vadd.f32 %v1993_v54, %v1924_v63  ;;  %v2195_v35 = vmul.f32 %v6988_v18, %v2158_v21  ;;  %v2226_v39 = vadd.f32 %v2194_v51, %v2125_v28  ;;  %v2296_v8 = vmul.f32 %v6993_v57, %v2259_v61  ;;  %v2361_v14 = vld [vmem:[#allocation2 + $0x10d] sm:$0xff]  ;;  %v2362_v56 = vld [vmem:[#allocation2 + $0x115] sm:$0xff]  ;;  %v1959_v21 = vld [vmem:[#allocation2 + $0x121] sm:$0xff] }
 0x13c   : > { %v2427_v47 = vadd.f32 %v2395_v60, %v2326_v5  ;;  %v1925_v20 = vmul.f32 %v6965_v0, %v1887_v45  ;;  %v2591_v36 = vadd.f32 %v2559_v33, %v2527_v1  ;;  %v2397_v62 = vmul.f32 %v7001_v12, %v2360_v31  ;;  %v2462_v27 = vld [vmem:[#allocation2 + $0x10e] sm:$0xff]  ;;  %v2463_v61 = vld [vmem:[#allocation2 + $0x116] sm:$0xff]  ;;  %v2060_v45 = vld [vmem:[#allocation2 + $0x122] sm:$0xff] }
 0x13d   : > { %v2126_v34 = vadd.f32 %v2094_v2, %v2025_v26  ;;  %v1994_v19 = vmul.f32 %v6972_v48, %v1957_v11  ;;  %v2327_v13 = vadd.f32 %v2295_v30, %v2226_v39  ;;  %v2498_v22 = vmul.f32 %v7007_v15, %v2461_v46  ;;  %v2059_v10 = vld [vmem:[#allocation2 + $0x112] sm:$0xff]  ;;  %v2161_v31 = vld [vmem:[#allocation2 + $0x123] sm:$0xff] }
 0x13e   : > { %v2528_v59 = vadd.f32 %v2496_v49, %v2427_v47  ;;  %v2095_v29 = vmul.f32 %v6977_v52, %v2058_v24  ;;  %2623 = vst [vmem:[%s6323_s18 + $0x70] sm:$0xff] %v2591_v36  ;;  %v2196_v16 = vmul.f32 %v6988_v18, %v2159_v9  ;;  %v2297_v60 = vmul.f32 %v6993_v57, %v2260_v25  ;;  %v2160_v23 = vld [vmem:[#allocation2 + $0x113] sm:$0xff]  ;;  %v2262_v11 = vld [vmem:[#allocation2 + $0x124] sm:$0xff] }
 0x13f   : > { %v2227_v38 = vadd.f32 %v2195_v35, %v2126_v34  ;;  %v2026_v3 = vadd.f32 %v1994_v19, %v1925_v20  ;;  %v2428_v40 = vadd.f32 %v2396_v7, %v2327_v13  ;;  %v1926_v17 = vmul.f32 %v6965_v0, %v1888_v42  ;;  %v2261_v37 = vld [vmem:[#allocation2 + $0x114] sm:$0xff]  ;;  %v2562_v26 = vld [vmem:[%s6323_s18 + $0x88] sm:$0xff] }
 0x140   : > { %v2592_v32 = vadd.f32 %v2560_v44, %v2528_v59  ;;  %v1995_v49 = vmul.f32 %v6972_v48, %v1958_v43  ;;  %v2398_v51 = vmul.f32 %v7001_v12, %v2361_v14  ;;  %v2499_v30 = vmul.f32 %v7007_v15, %v2462_v27  ;;  %v1890_v46 = vld [vmem:[#allocation2 + $0x128] sm:$0xff]  ;;  %v2563_v14 = vld [vmem:[%s6323_s18 + $0x90] sm:$0xff] }
 0x141   : > { %v2328_v53 = vadd.f32 %v2296_v8, %v2227_v38  ;;  %v2127_v4 = vadd.f32 %v2095_v29, %v2026_v3  ;;  %v2529_v58 = vadd.f32 %v2497_v41, %v2428_v40  ;;  %v2096_v63 = vmul.f32 %v6977_v52, %v2059_v10  ;;  %v1960_v24 = vld [vmem:[#allocation2 + $0x129] sm:$0xff]  ;;  %v1891_v29 = vld [vmem:[#allocation2 + $0x138] sm:$0xff] }
 0x142   : > { %2624 = vst [vmem:[%s6323_s18 + $0x78] sm:$0xff] %v2592_v32  ;;  %v2027_v55 = vadd.f32 %v1995_v49, %v1926_v17  ;;  %v2197_v54 = vmul.f32 %v6988_v18, %v2160_v23  ;;  %v2298_v28 = vmul.f32 %v6993_v57, %v2261_v37  ;;  %v1927_v7 = vmul.f32 %v6965_v0, %v1889_v50  ;;  %v2363_v9 = vld [vmem:[#allocation2 + $0x125] sm:$0xff]  ;;  %v1961_v10 = vld [vmem:[#allocation2 + $0x139] sm:$0xff]  ;;  %v2465_v17 = vld [vmem:[#allocation2 + $0x12e] sm:$0xff] }
 0x143   : > { %v2429_v33 = vadd.f32 %v2397_v62, %v2328_v53  ;;  %v2228_v5 = vadd.f32 %v2196_v16, %v2127_v4  ;;  %v2593_v1 = vadd.f32 %v2561_v6, %v2529_v58  ;;  %v2399_v41 = vmul.f32 %v7001_v12, %v2362_v56  ;;  %v2464_v25 = vld [vmem:[#allocation2 + $0x126] sm:$0xff]  ;;  %v2062_v49 = vld [vmem:[#allocation2 + $0x13a] sm:$0xff]  ;;  %v7209_v53 = vld [vmem:[%s8782_s1 + $0x10] ss:$0 sm:$0xff] }
 0x144   : > { %v2128_v2 = vadd.f32 %v2096_v63, %v2027_v55  ;;  %v1996_v35 = vmul.f32 %v6972_v48, %v1959_v21  ;;  %v2500_v8 = vmul.f32 %v7007_v15, %v2463_v61  ;;  %v2097_v20 = vmul.f32 %v6977_v52, %v2060_v45  ;;  %v2061_v19 = vld [vmem:[#allocation2 + $0x12a] sm:$0xff]  ;;  %v2564_v21 = vld [vmem:[%s6323_s18 + $0x98] sm:$0xff]  ;;  %v1892_v63 = vld [vmem:[#allocation2 + $0x140] sm:$0xff] }
 0x145   : > { %v2530_v47 = vadd.f32 %v2498_v22, %v2429_v33  ;;  %v2329_v39 = vadd.f32 %v2297_v60, %v2228_v5  ;;  %2625 = vst [vmem:[%s6323_s18 + $0x80] sm:$0xff] %v2593_v1  ;;  %v2198_v34 = vmul.f32 %v6988_v18, %v2161_v31  ;;  %v2299_v62 = vmul.f32 %v6993_v57, %v2262_v11  ;;  %v2162_v42 = vld [vmem:[#allocation2 + $0x12b] sm:$0xff]  ;;  %v7226_v11 = vld [vmem:[%s8782_s1 + $0x13] ss:$0 sm:$0xff] }
 0x146   : > { %v2229_v36 = vadd.f32 %v2197_v54, %v2128_v2  ;;  %v2028_v44 = vadd.f32 %v1996_v35, %v1927_v7  ;;  %v1928_v13 = vmul.f32 %v6965_v0, %v1890_v46  ;;  %v1997_v22 = vmul.f32 %v6972_v48, %v1960_v24  ;;  %v2263_v52 = vld [vmem:[#allocation2 + $0x12c] sm:$0xff]  ;;  %v1962_v54 = vld [vmem:[#allocation2 + $0x141] sm:$0xff] }
 0x147   : > { %v2594_v43 = vadd.f32 %v2562_v26, %v2530_v47  ;;  %v2430_v59 = vadd.f32 %v2398_v51, %v2329_v39  ;;  %v2400_v3 = vmul.f32 %v7001_v12, %v2363_v9  ;;  %v2501_v16 = vmul.f32 %v7007_v15, %v2464_v25  ;;  %v2364_v60 = vld [vmem:[#allocation2 + $0x12d] sm:$0xff]  ;;  %v2163_v51 = vld [vmem:[#allocation2 + $0x13b] sm:$0xff]  ;;  %v2265_v39 = vld [vmem:[#allocation2 + $0x144] sm:$0xff] }
 0x148   : > { %v2330_v27 = vadd.f32 %v2298_v28, %v2229_v36  ;;  %v2129_v38 = vadd.f32 %v2097_v20, %v2028_v44  ;;  %v2029_v32 = vadd.f32 %v1997_v22, %v1928_v13  ;;  %v7201_v0 = vld [vmem:[%s8782_s1 + $0x12] ss:$0 sm:$0xff]  ;;  %v2199_v40 = vmul.f32 %v6988_v18, %v2162_v42  ;;  %v7217_v55 = vld [vmem:[%s8782_s1 + $0x11] ss:$0 sm:$0xff]  ;;  %v2365_v28 = vld [vmem:[#allocation2 + $0x13d] sm:$0xff] }
 0x149   : > { %2626 = vst [vmem:[%s6323_s18 + $0x88] sm:$0xff] %v2594_v43  ;;  %v2531_v23 = vadd.f32 %v2499_v30, %v2430_v59  ;;  %v2098_v48 = vmul.f32 %v7201_v0, %v2061_v19  ;;  %v2300_v6 = vmul.f32 %v6993_v57, %v2263_v52  ;;  %v1929_v4 = vmul.f32 %v7209_v53, %v1891_v29  ;;  %v2264_v30 = vld [vmem:[#allocation2 + $0x13c] sm:$0xff]  ;;  %v7232_v26 = vld [vmem:[%s8782_s1 + $0x14] ss:$0 sm:$0xff]  ;;  %v7241_v36 = vld [vmem:[%s8782_s1 + $0x15] ss:$0 sm:$0xff] }
 0x14a   : > { %v2431_v37 = vadd.f32 %v2399_v41, %v2330_v27  ;;  %v2230_v50 = vadd.f32 %v2198_v34, %v2129_v38  ;;  %v2401_v18 = vmul.f32 %v7001_v12, %v2364_v60  ;;  %v1998_v57 = vmul.f32 %v7217_v55, %v1961_v10  ;;  %v2466_v7 = vld [vmem:[#allocation2 + $0x13e] sm:$0xff]  ;;  %v7247_v34 = vld [vmem:[%s8782_s1 + $0x16] ss:$0 sm:$0xff]  ;;  %v2467_v52 = vld [vmem:[#allocation2 + $0x146] sm:$0xff] }
 0x14b   : > { %v2595_v56 = vadd.f32 %v2563_v14, %v2531_v23  ;;  %v2130_v58 = vadd.f32 %v2098_v48, %v2029_v32  ;;  %v2502_v33 = vmul.f32 %v7007_v15, %v2465_v17  ;;  %v2099_v5 = vmul.f32 %v7201_v0, %v2062_v49  ;;  %v2063_v2 = vld [vmem:[#allocation2 + $0x142] sm:$0xff]  ;;  %v1963_v42 = vld [vmem:[#allocation2 + $0x151] sm:$0xff]  ;;  %v1964_v49 = vld [vmem:[#allocation2 + $0x159] sm:$0xff] }
 0x14c   : > { %v2532_v61 = vadd.f32 %v2500_v8, %v2431_v37  ;;  %v2331_v45 = vadd.f32 %v2299_v62, %v2230_v50  ;;  %v2030_v31 = vadd.f32 %v1998_v57, %v1929_v4  ;;  %v2200_v1 = vmul.f32 %v7226_v11, %v2163_v51  ;;  %v2164_v41 = vld [vmem:[#allocation2 + $0x143] sm:$0xff]  ;;  %v1893_v8 = vld [vmem:[#allocation2 + $0x150] sm:$0xff]  ;;  %v1894_v17 = vld [vmem:[#allocation2 + $0x158] sm:$0xff] }
 0x14d   : > { %2627 = vst [vmem:[%s6323_s18 + $0x90] sm:$0xff] %v2595_v56  ;;  %v2231_v12 = vadd.f32 %v2199_v40, %v2130_v58  ;;  %v2301_v15 = vmul.f32 %v7232_v26, %v2264_v30  ;;  %v1930_v24 = vmul.f32 %v7209_v53, %v1892_v63  ;;  %v1999_v47 = vmul.f32 %v7217_v55, %v1962_v54  ;;  %v2565_v20 = vld [vmem:[%s6323_s18 + $0xa0] sm:$0xff]  ;;  %v2064_v29 = vld [vmem:[#allocation2 + $0x152] sm:$0xff]  ;;  %v2566_v32 = vld [vmem:[%s6323_s18 + $0xa8] sm:$0xff] }
 0x14e   : > { %v2596_v35 = vadd.f32 %v2564_v21, %v2532_v61  ;;  %v2432_v46 = vadd.f32 %v2400_v3, %v2331_v45  ;;  %v2131_v25 = vadd.f32 %v2099_v5, %v2030_v31  ;;  %v2402_v44 = vmul.f32 %v7241_v36, %v2365_v28  ;;  %v2366_v19 = vld [vmem:[#allocation2 + $0x145] sm:$0xff]  ;;  %v2165_v60 = vld [vmem:[#allocation2 + $0x153] sm:$0xff]  ;;  %v2166_v63 = vld [vmem:[#allocation2 + $0x15b] sm:$0xff] }
 0x14f   : > { %v2332_v9 = vadd.f32 %v2300_v6, %v2231_v12  ;;  %v2503_v62 = vmul.f32 %v7247_v34, %v2466_v7  ;;  %v2031_v59 = vadd.f32 %v1999_v47, %v1930_v24  ;;  %v2100_v13 = vmul.f32 %v7201_v0, %v2063_v2  ;;  %v2266_v10 = vld [vmem:[#allocation2 + $0x154] sm:$0xff]  ;;  %v2267_v5 = vld [vmem:[#allocation2 + $0x15c] sm:$0xff]  ;;  %v1895_v28 = vld [vmem:[#allocation2 + $0x168] sm:$0xff] }
 0x150   : > { %2628 = vst [vmem:[%s6323_s18 + $0x98] sm:$0xff] %v2596_v35  ;;  %v2533_v43 = vadd.f32 %v2501_v16, %v2432_v46  ;;  %v2201_v22 = vmul.f32 %v7226_v11, %v2164_v41  ;;  %v2232_v27 = vadd.f32 %v2200_v1, %v2131_v25  ;;  %v2302_v38 = vmul.f32 %v7232_v26, %v2265_v39  ;;  %v2367_v51 = vld [vmem:[#allocation2 + $0x155] sm:$0xff]  ;;  %v2368_v2 = vld [vmem:[#allocation2 + $0x15d] sm:$0xff]  ;;  %v1965_v41 = vld [vmem:[#allocation2 + $0x169] sm:$0xff] }
 0x151   : > { %v2433_v14 = vadd.f32 %v2401_v18, %v2332_v9  ;;  %v1931_v3 = vmul.f32 %v7209_v53, %v1893_v8  ;;  %v2132_v48 = vadd.f32 %v2100_v13, %v2031_v59  ;;  %v2403_v16 = vmul.f32 %v7241_v36, %v2366_v19  ;;  %v2468_v30 = vld [vmem:[#allocation2 + $0x156] sm:$0xff]  ;;  %v2469_v39 = vld [vmem:[#allocation2 + $0x15e] sm:$0xff]  ;;  %v2066_v8 = vld [vmem:[#allocation2 + $0x16a] sm:$0xff] }
 0x152   : > { %v2597_v23 = vadd.f32 %v2565_v20, %v2533_v43  ;;  %v2000_v40 = vmul.f32 %v7217_v55, %v1963_v42  ;;  %v2333_v50 = vadd.f32 %v2301_v15, %v2232_v27  ;;  %v2504_v6 = vmul.f32 %v7247_v34, %v2467_v52  ;;  %v2065_v57 = vld [vmem:[#allocation2 + $0x15a] sm:$0xff]  ;;  %v2567_v7 = vld [vmem:[%s6323_s18 + $0xb0] sm:$0xff] }
 0x153   : > { %v2534_v37 = vadd.f32 %v2502_v33, %v2433_v14  ;;  %v2101_v4 = vmul.f32 %v7201_v0, %v2064_v29  ;;  %v2233_v56 = vadd.f32 %v2201_v22, %v2132_v48  ;;  %v2202_v58 = vmul.f32 %v7226_v11, %v2165_v60  ;;  %v2167_v19 = vld [vmem:[#allocation2 + $0x16b] sm:$0xff]  ;;  %v2568_v59 = vld [vmem:[%s6323_s18 + $0xb8] sm:$0xff] }
 0x154   : > { %2629 = vst [vmem:[%s6323_s18 + $0xa0] sm:$0xff] %v2597_v23  ;;  %v2032_v21 = vadd.f32 %v2000_v40, %v1931_v3  ;;  %v2303_v18 = vmul.f32 %v7232_v26, %v2266_v10  ;;  %v2434_v61 = vadd.f32 %v2402_v44, %v2333_v50  ;;  %v1932_v45 = vmul.f32 %v7209_v53, %v1894_v17  ;;  %v2268_v42 = vld [vmem:[#allocation2 + $0x16c] sm:$0xff] }
 0x155   : > { %v2598_v54 = vadd.f32 %v2566_v32, %v2534_v37  ;;  %v2001_v33 = vmul.f32 %v7217_v55, %v1964_v49  ;;  %v2334_v12 = vadd.f32 %v2302_v38, %v2233_v56  ;;  %v2404_v1 = vmul.f32 %v7241_v36, %v2367_v51  ;;  %v1896_v52 = vld [vmem:[#allocation2 + $0x170] sm:$0xff]  ;;  %v1897_v51 = vld [vmem:[#allocation2 + $0x180] sm:$0xff] }
 0x156   : > { %v2133_v31 = vadd.f32 %v2101_v4, %v2032_v21  ;;  %v2505_v15 = vmul.f32 %v7247_v34, %v2468_v30  ;;  %v2535_v35 = vadd.f32 %v2503_v62, %v2434_v61  ;;  %v2102_v24 = vmul.f32 %v7201_v0, %v2065_v57  ;;  %v1966_v29 = vld [vmem:[#allocation2 + $0x171] sm:$0xff]  ;;  %v2569_v30 = vld [vmem:[%s6323_s18 + $0xc0] sm:$0xff] }
 0x157   : > { %2630 = vst [vmem:[%s6323_s18 + $0xa8] sm:$0xff] %v2598_v54  ;;  %v2033_v46 = vadd.f32 %v2001_v33, %v1932_v45  ;;  %v2203_v47 = vmul.f32 %v7226_v11, %v2166_v63  ;;  %v2435_v20 = vadd.f32 %v2403_v16, %v2334_v12  ;;  %v2304_v25 = vmul.f32 %v7232_v26, %v2267_v5  ;;  %v2369_v60 = vld [vmem:[#allocation2 + $0x16d] sm:$0xff]  ;;  %v1967_v57 = vld [vmem:[#allocation2 + $0x181] sm:$0xff]  ;;  %v2370_v5 = vld [vmem:[#allocation2 + $0x175] sm:$0xff] }
 0x158   : > { %v2234_v9 = vadd.f32 %v2202_v58, %v2133_v31  ;;  %v1933_v44 = vmul.f32 %v7209_v53, %v1895_v28  ;;  %v2599_v43 = vadd.f32 %v2567_v7, %v2535_v35  ;;  %v2405_v62 = vmul.f32 %v7241_v36, %v2368_v2  ;;  %v2470_v10 = vld [vmem:[#allocation2 + $0x16e] sm:$0xff]  ;;  %v2068_v63 = vld [vmem:[#allocation2 + $0x182] sm:$0xff]  ;;  %v2471_v28 = vld [vmem:[#allocation2 + $0x176] sm:$0xff] }
 0x159   : > { %v2134_v13 = vadd.f32 %v2102_v24, %v2033_v46  ;;  %v2002_v22 = vmul.f32 %v7217_v55, %v1965_v41  ;;  %v2536_v14 = vadd.f32 %v2504_v6, %v2435_v20  ;;  %v2506_v38 = vmul.f32 %v7247_v34, %v2469_v39  ;;  %v2067_v40 = vld [vmem:[#allocation2 + $0x172] sm:$0xff]  ;;  %v2169_v2 = vld [vmem:[#allocation2 + $0x183] sm:$0xff] }
 0x15a   : > { %v2335_v27 = vadd.f32 %v2303_v18, %v2234_v9  ;;  %v2103_v3 = vmul.f32 %v7201_v0, %v2066_v8  ;;  %2631 = vst [vmem:[%s6323_s18 + $0xb0] sm:$0xff] %v2599_v43  ;;  %v2204_v48 = vmul.f32 %v7226_v11, %v2167_v19  ;;  %v2305_v16 = vmul.f32 %v7232_v26, %v2268_v42  ;;  %v2168_v17 = vld [vmem:[#allocation2 + $0x173] sm:$0xff]  ;;  %v2270_v41 = vld [vmem:[#allocation2 + $0x184] sm:$0xff] }
 0x15b   : > { %v2235_v23 = vadd.f32 %v2203_v47, %v2134_v13  ;;  %v2034_v32 = vadd.f32 %v2002_v22, %v1933_v44  ;;  %v2600_v49 = vadd.f32 %v2568_v59, %v2536_v14  ;;  %v1934_v50 = vmul.f32 %v7209_v53, %v1896_v52  ;;  %v2269_v4 = vld [vmem:[#allocation2 + $0x174] sm:$0xff]  ;;  %v2570_v46 = vld [vmem:[%s6323_s18 + $0xc8] sm:$0xff] }
 0x15c   : > { %v2436_v37 = vadd.f32 %v2404_v1, %v2335_v27  ;;  %v2003_v6 = vmul.f32 %v7217_v55, %v1966_v29  ;;  %v2406_v58 = vmul.f32 %v7241_v36, %v2369_v60  ;;  %v2507_v18 = vmul.f32 %v7247_v34, %v2470_v10  ;;  %v1898_v39 = vld [vmem:[#allocation2 + $0x188] sm:$0xff]  ;;  %v1899_v60 = vld [vmem:[#allocation2 + $0x198] sm:$0xff]  ;;  %v2571_v10 = vld [vmem:[%s6323_s18 + $0xd0] sm:$0xff] }
 0x15d   : > { %v2336_v56 = vadd.f32 %v2304_v25, %v2235_v23  ;;  %v2135_v21 = vadd.f32 %v2103_v3, %v2034_v32  ;;  %2632 = vst [vmem:[%s6323_s18 + $0xb8] sm:$0xff] %v2600_v49  ;;  %v2104_v45 = vmul.f32 %v7201_v0, %v2067_v40  ;;  %v2205_v33 = vmul.f32 %v7226_v11, %v2168_v17  ;;  %v1968_v8 = vld [vmem:[#allocation2 + $0x189] sm:$0xff]  ;;  %v1969_v40 = vld [vmem:[#allocation2 + $0x199] sm:$0xff] }
 0x15e   : > { %v2537_v54 = vadd.f32 %v2505_v15, %v2436_v37  ;;  %v2035_v61 = vadd.f32 %v2003_v6, %v1934_v50  ;;  %v2306_v31 = vmul.f32 %v7232_v26, %v2269_v4  ;;  %v1935_v1 = vmul.f32 %v7209_v53, %v1897_v51  ;;  %v2371_v19 = vld [vmem:[#allocation2 + $0x185] sm:$0xff]  ;;  %v2070_v17 = vld [vmem:[#allocation2 + $0x19a] sm:$0xff]  ;;  %v2372_v4 = vld [vmem:[#allocation2 + $0x18d] sm:$0xff] }
 0x15f   : > { %v2437_v7 = vadd.f32 %v2405_v62, %v2336_v56  ;;  %v2236_v12 = vadd.f32 %v2204_v48, %v2135_v21  ;;  %v2004_v15 = vmul.f32 %v7217_v55, %v1967_v57  ;;  %v2105_v47 = vmul.f32 %v7201_v0, %v2068_v63  ;;  %v2069_v42 = vld [vmem:[#allocation2 + $0x18a] sm:$0xff]  ;;  %v2171_v57 = vld [vmem:[#allocation2 + $0x19b] sm:$0xff] }
 0x160   : > { %v2601_v35 = vadd.f32 %v2569_v30, %v2537_v54  ;;  %v2136_v24 = vadd.f32 %v2104_v45, %v2035_v61  ;;  %v2407_v25 = vmul.f32 %v7241_v36, %v2370_v5  ;;  %v2508_v44 = vmul.f32 %v7247_v34, %v2471_v28  ;;  %v2472_v22 = vld [vmem:[#allocation2 + $0x186] sm:$0xff]  ;;  %v2473_v51 = vld [vmem:[#allocation2 + $0x18e] sm:$0xff]  ;;  %v2272_v63 = vld [vmem:[#allocation2 + $0x19c] sm:$0xff] }
 0x161   : > { %v2538_v20 = vadd.f32 %v2506_v38, %v2437_v7  ;;  %v2337_v9 = vadd.f32 %v2305_v16, %v2236_v12  ;;  %v2036_v59 = vadd.f32 %v2004_v15, %v1935_v1  ;;  %v2206_v13 = vmul.f32 %v7226_v11, %v2169_v2  ;;  %v2170_v52 = vld [vmem:[#allocation2 + $0x18b] sm:$0xff]  ;;  %v2572_v61 = vld [vmem:[%s6323_s18 + $0xd8] sm:$0xff]  ;;  %v1900_v5 = vld [vmem:[#allocation2 + $0x1a0] sm:$0xff] }
 0x162   : > { %2633 = vst [vmem:[%s6323_s18 + $0xc0] sm:$0xff] %v2601_v35  ;;  %v2237_v43 = vadd.f32 %v2205_v33, %v2136_v24  ;;  %v2307_v62 = vmul.f32 %v7232_v26, %v2270_v41  ;;  %v1936_v27 = vmul.f32 %v7209_v53, %v1898_v39  ;;  %v2005_v38 = vmul.f32 %v7217_v55, %v1968_v8  ;;  %v2271_v3 = vld [vmem:[#allocation2 + $0x18c] sm:$0xff]  ;;  %v1970_v28 = vld [vmem:[#allocation2 + $0x1a1] sm:$0xff] }
 0x163   : > { %v2602_v29 = vadd.f32 %v2570_v46, %v2538_v20  ;;  %v2438_v14 = vadd.f32 %v2406_v58, %v2337_v9  ;;  %v2137_v32 = vadd.f32 %v2105_v47, %v2036_v59  ;;  %v2408_v48 = vmul.f32 %v7241_v36, %v2371_v19  ;;  %v2373_v2 = vld [vmem:[#allocation2 + $0x19d] sm:$0xff]  ;;  %v7323_v59 = vld [vmem:[%s8782_s1 + $0x18] ss:$0 sm:$0xff] }
 0x164   : > { %v2338_v23 = vadd.f32 %v2306_v31, %v2237_v43  ;;  %v2106_v16 = vmul.f32 %v7201_v0, %v2069_v42  ;;  %v2509_v37 = vmul.f32 %v7247_v34, %v2472_v22  ;;  %v2037_v50 = vadd.f32 %v2005_v38, %v1936_v27  ;;  %v2071_v41 = vld [vmem:[#allocation2 + $0x1a2] sm:$0xff] }
 0x165   : > { %2634 = vst [vmem:[%s6323_s18 + $0xc8] sm:$0xff] %v2602_v29  ;;  %v2539_v49 = vadd.f32 %v2507_v18, %v2438_v14  ;;  %v2207_v6 = vmul.f32 %v7226_v11, %v2170_v52  ;;  %v2238_v56 = vadd.f32 %v2206_v13, %v2137_v32  ;;  %v2308_v21 = vmul.f32 %v7232_v26, %v2271_v3  ;;  %v2573_v35 = vld [vmem:[%s6323_s18 + $0xe0] sm:$0xff]  ;;  %v2641_v43 = vld [vmem:[#allocation2 + $0x48] sm:$0xff] }
 0x166   : > { %v2439_v30 = vadd.f32 %v2407_v25, %v2338_v23  ;;  %v1937_v58 = vmul.f32 %v7209_v53, %v1899_v60  ;;  %v2138_v18 = vadd.f32 %v2106_v16, %v2037_v50  ;;  %v2006_v45 = vmul.f32 %v7217_v55, %v1969_v40  ;;  %v2474_v39 = vld [vmem:[#allocation2 + $0x19e] sm:$0xff]  ;;  %v2475_v29 = vld [vmem:[#allocation2 + $0x1a6] sm:$0xff] }
 0x167   : > { %v2603_v54 = vadd.f32 %v2571_v10, %v2539_v49  ;;  %v2107_v33 = vmul.f32 %v7201_v0, %v2070_v17  ;;  %v2339_v12 = vadd.f32 %v2307_v62, %v2238_v56  ;;  %v2409_v31 = vmul.f32 %v7241_v36, %v2372_v4  ;;  %v2172_v8 = vld [vmem:[#allocation2 + $0x1a3] sm:$0xff]  ;;  %v2913_v23 = vld [vmem:[#allocation2 + $0x4b] sm:$0xff]  ;;  %v7346_v17 = vld [vmem:[%s8782_s1 + $0x1b] ss:$0 sm:$0xff] }
 0x168   : > { %v2540_v7 = vadd.f32 %v2508_v44, %v2439_v30  ;;  %v2510_v1 = vmul.f32 %v7247_v34, %v2473_v51  ;;  %v2239_v46 = vadd.f32 %v2207_v6, %v2138_v18  ;;  %v2038_v24 = vadd.f32 %v2006_v45, %v1937_v58  ;;  %v2273_v20 = vld [vmem:[#allocation2 + $0x1a4] sm:$0xff]  ;;  %v3014_v49 = vld [vmem:[#allocation2 + $0x4c] sm:$0xff] }
 0x169   : > { %2635 = vst [vmem:[%s6323_s18 + $0xd0] sm:$0xff] %v2603_v54  ;;  %v2208_v15 = vmul.f32 %v7226_v11, %v2171_v57  ;;  %v2309_v47 = vmul.f32 %v7232_v26, %v2272_v63  ;;  %v2440_v25 = vadd.f32 %v2408_v48, %v2339_v12  ;;  %v1938_v44 = vmul.f32 %v7209_v53, %v1900_v5  ;;  %v2374_v42 = vld [vmem:[#allocation2 + $0x1a5] sm:$0xff]  ;;  %v7330_v53 = vld [vmem:[%s8782_s1 + $0x19] ss:$0 sm:$0xff]  ;;  %v3115_v4 = vld [vmem:[#allocation2 + $0x4d] sm:$0xff] }
 0x16a   : > { %v2604_v9 = vadd.f32 %v2572_v61, %v2540_v7  ;;  %v2007_v19 = vmul.f32 %v7217_v55, %v1970_v28  ;;  %v2340_v13 = vadd.f32 %v2308_v21, %v2239_v46  ;;  %v2139_v62 = vadd.f32 %v2107_v33, %v2038_v24  ;;  %v2711_v14 = vld [vmem:[#allocation2 + $0x49] sm:$0xff]  ;;  %v2712_v30 = vld [vmem:[#allocation2 + $0x51] sm:$0xff]  ;;  %v7360_v63 = vld [vmem:[%s8782_s1 + $0x1d] ss:$0 sm:$0xff] }
 0x16b   : > { %v2410_v22 = vmul.f32 %v7241_v36, %v2373_v2  ;;  %v2108_v52 = vmul.f32 %v7201_v0, %v2071_v41  ;;  %v2541_v55 = vadd.f32 %v2509_v37, %v2440_v25  ;;  %v2574_v27 = vld [vmem:[%s6323_s18 + $0xe8] sm:$0xff]  ;;  %v2511_v38 = vmul.f32 %v7247_v34, %v2474_v39  ;;  %v7339_v0 = vld [vmem:[%s8782_s1 + $0x1a] ss:$0 sm:$0xff]  ;;  %v2642_v51 = vld [vmem:[#allocation2 + $0x50] sm:$0xff] }
 0x16c   : > { %2636 = vst [vmem:[%s6323_s18 + $0xd8] sm:$0xff] %v2604_v9  ;;  %v2039_v3 = vadd.f32 %v2007_v19, %v1938_v44  ;;  %v2209_v60 = vmul.f32 %v7226_v11, %v2172_v8  ;;  %v2812_v10 = vld [vmem:[#allocation2 + $0x4a] sm:$0xff]  ;;  %v2441_v32 = vadd.f32 %v2409_v31, %v2340_v13  ;;  %v2240_v48 = vadd.f32 %v2208_v15, %v2139_v62  ;;  %v7351_v11 = vld [vmem:[%s8782_s1 + $0x1c] ss:$0 sm:$0xff]  ;;  %v2813_v33 = vld [vmem:[#allocation2 + $0x52] sm:$0xff] }
 0x16d   : > { %v2310_v16 = vmul.f32 %v7232_v26, %v2273_v20  ;;  %v2679_v40 = vmul.f32 %v7323_v59, %v2641_v43  ;;  %v2605_v37 = vadd.f32 %v2573_v35, %v2541_v55  ;;  %v2411_v6 = vmul.f32 %v7241_v36, %v2374_v42  ;;  %v3216_v54 = vld [vmem:[#allocation2 + $0x4e] sm:$0xff]  ;;  %v7365_v36 = vld [vmem:[%s8782_s1 + $0x1e] ss:$0 sm:$0xff]  ;;  %v2643_v2 = vld [vmem:[#allocation2 + $0x60] sm:$0xff] }
 0x16e   : > { %v2140_v50 = vadd.f32 %v2108_v52, %v2039_v3  ;;  %v2748_v26 = vmul.f32 %v7330_v53, %v2711_v14  ;;  %v2542_v56 = vadd.f32 %v2510_v1, %v2441_v32  ;;  %v2341_v21 = vadd.f32 %v2309_v47, %v2240_v48  ;;  %v2914_v5 = vld [vmem:[#allocation2 + $0x53] sm:$0xff]  ;;  %v2713_v39 = vld [vmem:[#allocation2 + $0x61] sm:$0xff] }
 0x16f   : > { %v2512_v58 = vmul.f32 %v7247_v34, %v2475_v29  ;;  %v2849_v57 = vmul.f32 %v7339_v0, %v2812_v10  ;;  %2637 = vst [vmem:[%s6323_s18 + $0xe0] sm:$0xff] %v2605_v37  ;;  %v2950_v45 = vmul.f32 %v7346_v17, %v2913_v23  ;;  %v3051_v34 = vmul.f32 %v7351_v11, %v3014_v49  ;;  %v3015_v1 = vld [vmem:[#allocation2 + $0x54] sm:$0xff]  ;;  %v2814_v19 = vld [vmem:[#allocation2 + $0x62] sm:$0xff] }
 0x170   : > { %v2241_v61 = vadd.f32 %v2209_v60, %v2140_v50  ;;  %v2780_v18 = vadd.f32 %v2748_v26, %v2679_v40  ;;  %v2606_v28 = vadd.f32 %v2574_v27, %v2542_v56  ;;  %v2442_v7 = vadd.f32 %v2410_v22, %v2341_v21  ;;  %v2575_v41 = vld [vmem:[%s6323_s18 + $0xf0] sm:$0xff]  ;;  %v2915_v22 = vld [vmem:[#allocation2 + $0x63] sm:$0xff]  ;;  %v2576_v14 = vld [vmem:[%s6323_s18 + $0xf8] sm:$0xff] }
 0x171   : > { %v2680_v12 = vmul.f32 %v7323_v59, %v2642_v51  ;;  %v2749_v31 = vmul.f32 %v7330_v53, %v2712_v30  ;;  %v3152_v24 = vmul.f32 %v7360_v63, %v3115_v4  ;;  %v3253_v15 = vmul.f32 %v7365_v36, %v3216_v54  ;;  %v3116_v47 = vld [vmem:[#allocation2 + $0x55] sm:$0xff]  ;;  %v3016_v52 = vld [vmem:[#allocation2 + $0x64] sm:$0xff] }
 0x172   : > { %v2342_v35 = vadd.f32 %v2310_v16, %v2241_v61  ;;  %v2881_v46 = vadd.f32 %v2849_v57, %v2780_v18  ;;  %2638 = vst [vmem:[%s6323_s18 + $0xe8] sm:$0xff] %v2606_v28  ;;  %v2543_v8 = vadd.f32 %v2511_v38, %v2442_v7  ;;  %v2850_v9 = vmul.f32 %v7339_v0, %v2813_v33  ;;  %v3217_v44 = vld [vmem:[#allocation2 + $0x56] sm:$0xff]  ;;  %v2644_v3 = vld [vmem:[#allocation2 + $0x68] sm:$0xff]  ;;  %v3317_v54 = vld [vmem:[%s6323_s18] sm:$0xff] }
 0x173   : > { %v2781_v20 = vadd.f32 %v2749_v31, %v2680_v12  ;;  %v2951_v25 = vmul.f32 %v7346_v17, %v2914_v5  ;;  %v3052_v13 = vmul.f32 %v7351_v11, %v3015_v1  ;;  %v2681_v62 = vmul.f32 %v7323_v59, %v2643_v2  ;;  %v2714_v60 = vld [vmem:[#allocation2 + $0x69] sm:$0xff]  ;;  %v2645_v57 = vld [vmem:[#allocation2 + $0x78] sm:$0xff] }
 0x174   : > { %v2443_v42 = vadd.f32 %v2411_v6, %v2342_v35  ;;  %v2982_v43 = vadd.f32 %v2950_v45, %v2881_v46  ;;  %v2607_v29 = vadd.f32 %v2575_v41, %v2543_v8  ;;  %v3153_v27 = vmul.f32 %v7360_v63, %v3116_v47  ;;  %v3117_v16 = vld [vmem:[#allocation2 + $0x65] sm:$0xff]  ;;  %v3118_v33 = vld [vmem:[#allocation2 + $0x6d] sm:$0xff]  ;;  %v2715_v5 = vld [vmem:[#allocation2 + $0x79] sm:$0xff] }
 0x175   : > { %v2882_v55 = vadd.f32 %v2850_v9, %v2781_v20  ;;  %v2750_v38 = vmul.f32 %v7330_v53, %v2713_v39  ;;  %v3254_v32 = vmul.f32 %v7365_v36, %v3217_v44  ;;  %v2851_v48 = vmul.f32 %v7339_v0, %v2814_v19  ;;  %v3218_v40 = vld [vmem:[#allocation2 + $0x66] sm:$0xff]  ;;  %v3219_v1 = vld [vmem:[#allocation2 + $0x6e] sm:$0xff]  ;;  %v2816_v2 = vld [vmem:[#allocation2 + $0x7a] sm:$0xff] }
 0x176   : > { %v2544_v10 = vadd.f32 %v2512_v58, %v2443_v42  ;;  %v3083_v23 = vadd.f32 %v3051_v34, %v2982_v43  ;;  %2639 = vst [vmem:[%s6323_s18 + $0xf0] sm:$0xff] %v2607_v29  ;;  %v2952_v50 = vmul.f32 %v7346_v17, %v2915_v22  ;;  %v3053_v6 = vmul.f32 %v7351_v11, %v3016_v52  ;;  %v2815_v26 = vld [vmem:[#allocation2 + $0x6a] sm:$0xff]  ;;  %v2917_v47 = vld [vmem:[#allocation2 + $0x7b] sm:$0xff] }
 0x177   : > { %v2983_v49 = vadd.f32 %v2951_v25, %v2882_v55  ;;  %v2782_v37 = vadd.f32 %v2750_v38, %v2681_v62  ;;  %v2916_v4 = vld [vmem:[#allocation2 + $0x6b] sm:$0xff]  ;;  %v2682_v56 = vmul.f32 %v7323_v59, %v2644_v3  ;;  %v2751_v21 = vmul.f32 %v7330_v53, %v2714_v60  ;;  %v3018_v39 = vld [vmem:[#allocation2 + $0x7c] sm:$0xff] }
 0x178   : > { %v2608_v51 = vadd.f32 %v2576_v14, %v2544_v10  ;;  %v3184_v30 = vadd.f32 %v3152_v24, %v3083_v23  ;;  %v3017_v58 = vld [vmem:[#allocation2 + $0x6c] sm:$0xff]  ;;  %v3154_v45 = vmul.f32 %v7360_v63, %v3117_v16  ;;  %v3255_v34 = vmul.f32 %v7365_v36, %v3218_v40  ;;  %v2646_v44 = vld [vmem:[#allocation2 + $0x80] sm:$0xff] }
 0x179   : > { %v3084_v61 = vadd.f32 %v3052_v13, %v2983_v49  ;;  %v2883_v18 = vadd.f32 %v2851_v48, %v2782_v37  ;;  %v2783_v7 = vadd.f32 %v2751_v21, %v2682_v56  ;;  %v2852_v12 = vmul.f32 %v7339_v0, %v2815_v26  ;;  %v3318_v20 = vld [vmem:[%s6323_s18 + $0x8] sm:$0xff]  ;;  %v3119_v22 = vld [vmem:[#allocation2 + $0x7d] sm:$0xff]  ;;  %v2647_v16 = vld [vmem:[#allocation2 + $0x90] sm:$0xff] }
 0x17a   : > { %2640 = vst [vmem:[%s6323_s18 + $0xf8] sm:$0xff] %v2608_v51  ;;  %v3285_v28 = vadd.f32 %v3253_v15, %v3184_v30  ;;  %v2953_v31 = vmul.f32 %v7346_v17, %v2916_v4  ;;  %v3054_v46 = vmul.f32 %v7351_v11, %v3017_v58  ;;  %v2683_v24 = vmul.f32 %v7323_v59, %v2645_v57  ;;  %v2716_v19 = vld [vmem:[#allocation2 + $0x81] sm:$0xff]  ;;  %v3319_v40 = vld [vmem:[%s6323_s18 + $0x10] sm:$0xff] }
 0x17b   : > { %v3185_v41 = vadd.f32 %v3153_v27, %v3084_v61  ;;  %v2984_v35 = vadd.f32 %v2952_v50, %v2883_v18  ;;  %v2884_v9 = vadd.f32 %v2852_v12, %v2783_v7  ;;  %v3155_v15 = vmul.f32 %v7360_v63, %v3118_v33  ;;  %v3220_v52 = vld [vmem:[#allocation2 + $0x7e] sm:$0xff]  ;;  %v2717_v4 = vld [vmem:[#allocation2 + $0x91] sm:$0xff]  ;;  %v3221_v58 = vld [vmem:[#allocation2 + $0x86] sm:$0xff] }
 0x17c   : > { %v3349_v8 = vadd.f32 %v3317_v54, %v3285_v28  ;;  %v2752_v25 = vmul.f32 %v7330_v53, %v2715_v5  ;;  %v3256_v13 = vmul.f32 %v7365_v36, %v3219_v1  ;;  %v2853_v62 = vmul.f32 %v7339_v0, %v2816_v2  ;;  %v2817_v38 = vld [vmem:[#allocation2 + $0x82] sm:$0xff]  ;;  %v2818_v57 = vld [vmem:[#allocation2 + $0x92] sm:$0xff] }
 0x17d   : > { %v3286_v42 = vadd.f32 %v3254_v32, %v3185_v41  ;;  %v3085_v43 = vadd.f32 %v3053_v6, %v2984_v35  ;;  %v2985_v29 = vadd.f32 %v2953_v31, %v2884_v9  ;;  %v2954_v55 = vmul.f32 %v7346_v17, %v2917_v47  ;;  %v2918_v3 = vld [vmem:[#allocation2 + $0x83] sm:$0xff]  ;;  %v2919_v33 = vld [vmem:[#allocation2 + $0x93] sm:$0xff] }
 0x17e   : > { %3381 = vst [vmem:[%s6323_s18] sm:$0xff] %v3349_v8  ;;  %v2784_v14 = vadd.f32 %v2752_v25, %v2683_v24  ;;  %v3055_v27 = vmul.f32 %v7351_v11, %v3018_v39  ;;  %v2684_v23 = vmul.f32 %v7323_v59, %v2646_v44  ;;  %v2753_v32 = vmul.f32 %v7330_v53, %v2716_v19  ;;  %v3019_v48 = vld [vmem:[#allocation2 + $0x84] sm:$0xff]  ;;  %v3020_v5 = vld [vmem:[#allocation2 + $0x94] sm:$0xff] }
 0x17f   : > { %v3350_v60 = vadd.f32 %v3318_v20, %v3286_v42  ;;  %v3186_v10 = vadd.f32 %v3154_v45, %v3085_v43  ;;  %v3086_v49 = vadd.f32 %v3054_v46, %v2985_v29  ;;  %v3156_v50 = vmul.f32 %v7360_v63, %v3119_v22  ;;  %v3120_v26 = vld [vmem:[#allocation2 + $0x85] sm:$0xff]  ;;  %v3320_v7 = vld [vmem:[%s6323_s18 + $0x18] sm:$0xff] }
 0x180   : > { %v2885_v37 = vadd.f32 %v2853_v62, %v2784_v14  ;;  %v3257_v6 = vmul.f32 %v7365_v36, %v3220_v52  ;;  %v2785_v30 = vadd.f32 %v2753_v32, %v2684_v23  ;;  %v2854_v56 = vmul.f32 %v7339_v0, %v2817_v38  ;;  %v2648_v1 = vld [vmem:[#allocation2 + $0x98] sm:$0xff]  ;;  %v2649_v22 = vld [vmem:[#allocation2 + $0xa8] sm:$0xff]  ;;  %v3321_v52 = vld [vmem:[%s6323_s18 + $0x20] sm:$0xff] }
 0x181   : > { %3382 = vst [vmem:[%s6323_s18 + $0x8] sm:$0xff] %v3350_v60  ;;  %v3287_v51 = vadd.f32 %v3255_v34, %v3186_v10  ;;  %v2955_v21 = vmul.f32 %v7346_v17, %v2918_v3  ;;  %v3187_v54 = vadd.f32 %v3155_v15, %v3086_v49  ;;  %v3056_v18 = vmul.f32 %v7351_v11, %v3019_v48  ;;  %v2718_v2 = vld [vmem:[#allocation2 + $0x99] sm:$0xff]  ;;  %v2719_v3 = vld [vmem:[#allocation2 + $0xa9] sm:$0xff] }
 0x182   : > { %v2986_v61 = vadd.f32 %v2954_v55, %v2885_v37  ;;  %v2685_v45 = vmul.f32 %v7323_v59, %v2647_v16  ;;  %v2886_v12 = vadd.f32 %v2854_v56, %v2785_v30  ;;  %v3157_v34 = vmul.f32 %v7360_v63, %v3120_v26  ;;  %v3121_v47 = vld [vmem:[#allocation2 + $0x95] sm:$0xff]  ;;  %v3122_v38 = vld [vmem:[#allocation2 + $0x9d] sm:$0xff]  ;;  %v2820_v16 = vld [vmem:[#allocation2 + $0xaa] sm:$0xff] }
 0x183   : > { %v3351_v28 = vadd.f32 %v3319_v40, %v3287_v51  ;;  %v2754_v31 = vmul.f32 %v7330_v53, %v2717_v4  ;;  %v3288_v41 = vadd.f32 %v3256_v13, %v3187_v54  ;;  %v3258_v46 = vmul.f32 %v7365_v36, %v3221_v58  ;;  %v3222_v39 = vld [vmem:[#allocation2 + $0x96] sm:$0xff]  ;;  %v3223_v48 = vld [vmem:[#allocation2 + $0x9e] sm:$0xff]  ;;  %v2921_v26 = vld [vmem:[#allocation2 + $0xab] sm:$0xff] }
 0x184   : > { %v3087_v35 = vadd.f32 %v3055_v27, %v2986_v61  ;;  %v2855_v24 = vmul.f32 %v7339_v0, %v2818_v57  ;;  %v2987_v8 = vadd.f32 %v2955_v21, %v2886_v12  ;;  %v2956_v9 = vmul.f32 %v7346_v17, %v2919_v33  ;;  %v2819_v25 = vld [vmem:[#allocation2 + $0x9a] sm:$0xff]  ;;  %v3022_v4 = vld [vmem:[#allocation2 + $0xac] sm:$0xff] }
 0x185   : > { %3383 = vst [vmem:[%s6323_s18 + $0x10] sm:$0xff] %v3351_v28  ;;  %v2786_v20 = vadd.f32 %v2754_v31, %v2685_v45  ;;  %v3057_v15 = vmul.f32 %v7351_v11, %v3020_v5  ;;  %v2920_v44 = vld [vmem:[#allocation2 + $0x9b] sm:$0xff]  ;;  %v3352_v19 = vadd.f32 %v3320_v7, %v3288_v41  ;;  %v2686_v43 = vmul.f32 %v7323_v59, %v2648_v1  ;;  %v3322_v30 = vld [vmem:[%s6323_s18 + $0x28] sm:$0xff]  ;;  %v2650_v58 = vld [vmem:[#allocation2 + $0xb0] sm:$0xff] }
 0x186   : > { %v3188_v42 = vadd.f32 %v3156_v50, %v3087_v35  ;;  %v2755_v13 = vmul.f32 %v7330_v53, %v2718_v2  ;;  %v3021_v62 = vld [vmem:[#allocation2 + $0x9c] sm:$0xff]  ;;  %v3088_v29 = vadd.f32 %v3056_v18, %v2987_v8  ;;  %v3158_v55 = vmul.f32 %v7360_v63, %v3121_v47  ;;  %v2720_v57 = vld [vmem:[#allocation2 + $0xb1] sm:$0xff] }
 0x187   : > { %v2887_v14 = vadd.f32 %v2855_v24, %v2786_v20  ;;  %v3259_v27 = vmul.f32 %v7365_v36, %v3222_v39  ;;  %3384 = vst [vmem:[%s6323_s18 + $0x18] sm:$0xff] %v3352_v19  ;;  %v2856_v23 = vmul.f32 %v7339_v0, %v2819_v25  ;;  %v2957_v32 = vmul.f32 %v7346_v17, %v2920_v44  ;;  %v3123_v33 = vld [vmem:[#allocation2 + $0xad] sm:$0xff]  ;;  %v2651_v47 = vld [vmem:[#allocation2 + $0xc0] sm:$0xff]  ;;  %v3124_v25 = vld [vmem:[#allocation2 + $0xb5] sm:$0xff] }
 0x188   : > { %v3289_v60 = vadd.f32 %v3257_v6, %v3188_v42  ;;  %v2787_v10 = vadd.f32 %v2755_v13, %v2686_v43  ;;  %v3189_v40 = vadd.f32 %v3157_v34, %v3088_v29  ;;  %v3058_v37 = vmul.f32 %v7351_v11, %v3021_v62  ;;  %v3224_v5 = vld [vmem:[#allocation2 + $0xae] sm:$0xff]  ;;  %v2721_v44 = vld [vmem:[#allocation2 + $0xc1] sm:$0xff]  ;;  %v3225_v62 = vld [vmem:[#allocation2 + $0xb6] sm:$0xff] }
 0x189   : > { %v2988_v49 = vadd.f32 %v2956_v9, %v2887_v14  ;;  %v2687_v50 = vmul.f32 %v7323_v59, %v2649_v22  ;;  %v3159_v6 = vmul.f32 %v7360_v63, %v3122_v38  ;;  %v2756_v21 = vmul.f32 %v7330_v53, %v2719_v3  ;;  %v2821_v31 = vld [vmem:[#allocation2 + $0xb2] sm:$0xff]  ;;  %v2822_v22 = vld [vmem:[#allocation2 + $0xc2] sm:$0xff] }
 0x18a   : > { %v3353_v51 = vadd.f32 %v3321_v52, %v3289_v60  ;;  %v2888_v56 = vadd.f32 %v2856_v23, %v2787_v10  ;;  %v3290_v54 = vadd.f32 %v3258_v46, %v3189_v40  ;;  %v3260_v18 = vmul.f32 %v7365_v36, %v3223_v48  ;;  %v2922_v1 = vld [vmem:[#allocation2 + $0xb3] sm:$0xff]  ;;  %v2923_v38 = vld [vmem:[#allocation2 + $0xc3] sm:$0xff] }
 0x18b   : > { %v3089_v61 = vadd.f32 %v3057_v15, %v2988_v49  ;;  %v2857_v45 = vmul.f32 %v7339_v0, %v2820_v16  ;;  %v2788_v7 = vadd.f32 %v2756_v21, %v2687_v50  ;;  %v2958_v12 = vmul.f32 %v7346_v17, %v2921_v26  ;;  %v3023_v24 = vld [vmem:[#allocation2 + $0xb4] sm:$0xff]  ;;  %v3024_v3 = vld [vmem:[#allocation2 + $0xc4] sm:$0xff] }
 0x18c   : > { %3385 = vst [vmem:[%s6323_s18 + $0x20] sm:$0xff] %v3353_v51  ;;  %v2989_v28 = vadd.f32 %v2957_v32, %v2888_v56  ;;  %v3059_v34 = vmul.f32 %v7351_v11, %v3022_v4  ;;  %v3354_v2 = vadd.f32 %v3322_v30, %v3290_v54  ;;  %v2688_v35 = vmul.f32 %v7323_v59, %v2650_v58  ;;  %v3323_v39 = vld [vmem:[%s6323_s18 + $0x30] sm:$0xff]  ;;  %v3324_v10 = vld [vmem:[%s6323_s18 + $0x38] sm:$0xff]  ;;  %v2652_v48 = vld [vmem:[#allocation2 + $0xc8] sm:$0xff] }
 0x18d   : > { %v3190_v41 = vadd.f32 %v3158_v55, %v3089_v61  ;;  %v2757_v46 = vmul.f32 %v7330_v53, %v2720_v57  ;;  %v2889_v20 = vadd.f32 %v2857_v45, %v2788_v7  ;;  %v3160_v9 = vmul.f32 %v7360_v63, %v3123_v33  ;;  %v2722_v16 = vld [vmem:[#allocation2 + $0xc9] sm:$0xff]  ;;  %v2653_v33 = vld [vmem:[#allocation2 + $0xd8] sm:$0xff] }
 0x18e   : > { %v3090_v8 = vadd.f32 %v3058_v37, %v2989_v28  ;;  %v3261_v15 = vmul.f32 %v7365_v36, %v3224_v5  ;;  %3386 = vst [vmem:[%s6323_s18 + $0x28] sm:$0xff] %v3354_v2  ;;  %v2858_v43 = vmul.f32 %v7339_v0, %v2821_v31  ;;  %v2959_v13 = vmul.f32 %v7346_v17, %v2922_v1  ;;  %v3125_v26 = vld [vmem:[#allocation2 + $0xc5] sm:$0xff]  ;;  %v3126_v31 = vld [vmem:[#allocation2 + $0xcd] sm:$0xff]  ;;  %v2723_v1 = vld [vmem:[#allocation2 + $0xd9] sm:$0xff] }
 0x18f   : > { %v3291_v19 = vadd.f32 %v3259_v27, %v3190_v41  ;;  %v2789_v42 = vadd.f32 %v2757_v46, %v2688_v35  ;;  %v2990_v29 = vadd.f32 %v2958_v12, %v2889_v20  ;;  %v3060_v14 = vmul.f32 %v7351_v11, %v3023_v24  ;;  %v3226_v4 = vld [vmem:[#allocation2 + $0xc6] sm:$0xff]  ;;  %v3227_v24 = vld [vmem:[#allocation2 + $0xce] sm:$0xff] }
 0x190   : > { %v3191_v52 = vadd.f32 %v3159_v6, %v3090_v8  ;;  %v2689_v55 = vmul.f32 %v7323_v59, %v2651_v47  ;;  %v3161_v27 = vmul.f32 %v7360_v63, %v3124_v25  ;;  %v2758_v32 = vmul.f32 %v7330_v53, %v2721_v44  ;;  %v2823_v21 = vld [vmem:[#allocation2 + $0xca] sm:$0xff]  ;;  %v3325_v5 = vld [vmem:[%s6323_s18 + $0x40] sm:$0xff] }
 0x191   : > { %v3355_v60 = vadd.f32 %v3323_v39, %v3291_v19  ;;  %v2890_v23 = vadd.f32 %v2858_v43, %v2789_v42  ;;  %v3091_v49 = vadd.f32 %v3059_v34, %v2990_v29  ;;  %v3262_v37 = vmul.f32 %v7365_v36, %v3225_v62  ;;  %v2924_v58 = vld [vmem:[#allocation2 + $0xcb] sm:$0xff]  ;;  %v2824_v47 = vld [vmem:[#allocation2 + $0xda] sm:$0xff] }
 0x192   : > { %v3292_v40 = vadd.f32 %v3260_v18, %v3191_v52  ;;  %v2859_v50 = vmul.f32 %v7339_v0, %v2822_v22  ;;  %v2790_v30 = vadd.f32 %v2758_v32, %v2689_v55  ;;  %v2960_v56 = vmul.f32 %v7346_v17, %v2923_v38  ;;  %v3025_v45 = vld [vmem:[#allocation2 + $0xcc] sm:$0xff]  ;;  %v2925_v25 = vld [vmem:[#allocation2 + $0xdb] sm:$0xff] }
 0x193   : > { %3387 = vst [vmem:[%s6323_s18 + $0x30] sm:$0xff] %v3355_v60  ;;  %v2991_v51 = vadd.f32 %v2959_v13, %v2890_v23  ;;  %v3061_v6 = vmul.f32 %v7351_v11, %v3024_v3  ;;  %v3192_v54 = vadd.f32 %v3160_v9, %v3091_v49  ;;  %v2690_v61 = vmul.f32 %v7323_v59, %v2652_v48  ;;  %v3026_v44 = vld [vmem:[#allocation2 + $0xdc] sm:$0xff]  ;;  %v3326_v42 = vld [vmem:[%s6323_s18 + $0x48] sm:$0xff] }
 0x194   : > { %v3356_v57 = vadd.f32 %v3324_v10, %v3292_v40  ;;  %v2759_v18 = vmul.f32 %v7330_v53, %v2722_v16  ;;  %v2891_v7 = vadd.f32 %v2859_v50, %v2790_v30  ;;  %v3162_v12 = vmul.f32 %v7360_v63, %v3125_v26  ;;  %v2654_v62 = vld [vmem:[#allocation2 + $0xe0] sm:$0xff]  ;;  %v2655_v26 = vld [vmem:[#allocation2 + $0xf0] sm:$0xff] }
 0x195   : > { %v3092_v28 = vadd.f32 %v3060_v14, %v2991_v51  ;;  %v3263_v34 = vmul.f32 %v7365_v36, %v3226_v4  ;;  %v3293_v2 = vadd.f32 %v3261_v15, %v3192_v54  ;;  %v2860_v35 = vmul.f32 %v7339_v0, %v2823_v21  ;;  %v2724_v22 = vld [vmem:[#allocation2 + $0xe1] sm:$0xff]  ;;  %v3327_v4 = vld [vmem:[%s6323_s18 + $0x50] sm:$0xff] }
 0x196   : > { %3388 = vst [vmem:[%s6323_s18 + $0x38] sm:$0xff] %v3356_v57  ;;  %v2791_v41 = vadd.f32 %v2759_v18, %v2690_v61  ;;  %v2961_v46 = vmul.f32 %v7346_v17, %v2924_v58  ;;  %v2992_v8 = vadd.f32 %v2960_v56, %v2891_v7  ;;  %v3062_v20 = vmul.f32 %v7351_v11, %v3025_v45  ;;  %v3127_v38 = vld [vmem:[#allocation2 + $0xdd] sm:$0xff]  ;;  %v3128_v21 = vld [vmem:[#allocation2 + $0xe5] sm:$0xff]  ;;  %v2725_v58 = vld [vmem:[#allocation2 + $0xf1] sm:$0xff] }
 0x197   : > { %v3193_v39 = vadd.f32 %v3161_v27, %v3092_v28  ;;  %v2691_v9 = vmul.f32 %v7323_v59, %v2653_v33  ;;  %v3357_v19 = vadd.f32 %v3325_v5, %v3293_v2  ;;  %v3163_v15 = vmul.f32 %v7360_v63, %v3126_v31  ;;  %v3228_v3 = vld [vmem:[#allocation2 + $0xde] sm:$0xff]  ;;  %v3229_v45 = vld [vmem:[#allocation2 + $0xe6] sm:$0xff]  ;;  %v2826_v33 = vld [vmem:[#allocation2 + $0xf2] sm:$0xff] }
 0x198   : > { %v2892_v43 = vadd.f32 %v2860_v35, %v2791_v41  ;;  %v2760_v13 = vmul.f32 %v7330_v53, %v2723_v1  ;;  %v3093_v29 = vadd.f32 %v3061_v6, %v2992_v8  ;;  %v3264_v14 = vmul.f32 %v7365_v36, %v3227_v24  ;;  %v2825_v32 = vld [vmem:[#allocation2 + $0xe2] sm:$0xff]  ;;  %v2927_v31 = vld [vmem:[#allocation2 + $0xf3] sm:$0xff] }
 0x199   : > { %v3294_v52 = vadd.f32 %v3262_v37, %v3193_v39  ;;  %v2861_v55 = vmul.f32 %v7339_v0, %v2824_v47  ;;  %3389 = vst [vmem:[%s6323_s18 + $0x40] sm:$0xff] %v3357_v19  ;;  %v2962_v23 = vmul.f32 %v7346_v17, %v2925_v25  ;;  %v3063_v27 = vmul.f32 %v7351_v11, %v3026_v44  ;;  %v2926_v48 = vld [vmem:[#allocation2 + $0xe3] sm:$0xff]  ;;  %v3028_v1 = vld [vmem:[#allocation2 + $0xf4] sm:$0xff] }
 0x19a   : > { %v2993_v60 = vadd.f32 %v2961_v46, %v2892_v43  ;;  %v2792_v10 = vadd.f32 %v2760_v13, %v2691_v9  ;;  %v3194_v40 = vadd.f32 %v3162_v12, %v3093_v29  ;;  %v2692_v49 = vmul.f32 %v7323_v59, %v2654_v62  ;;  %v3027_v50 = vld [vmem:[#allocation2 + $0xe4] sm:$0xff]  ;;  %v3328_v41 = vld [vmem:[%s6323_s18 + $0x58] sm:$0xff] }
 0x19b   : > { %v3358_v16 = vadd.f32 %v3326_v42, %v3294_v52  ;;  %v2761_v37 = vmul.f32 %v7330_v53, %v2724_v22  ;;  %v3164_v56 = vmul.f32 %v7360_v63, %v3127_v38  ;;  %v3265_v6 = vmul.f32 %v7365_v36, %v3228_v3  ;;  %v2656_v24 = vld [vmem:[#allocation2 + $0xf8] sm:$0xff]  ;;  %v2657_v38 = vld [vmem:[#allocation2 + $0x108] sm:$0xff]  ;;  %v3329_v3 = vld [vmem:[%s6323_s18 + $0x60] sm:$0xff] }
 0x19c   : > { %v3094_v51 = vadd.f32 %v3062_v20, %v2993_v60  ;;  %v2893_v30 = vadd.f32 %v2861_v55, %v2792_v10  ;;  %v3295_v57 = vadd.f32 %v3263_v34, %v3194_v40  ;;  %v2862_v61 = vmul.f32 %v7339_v0, %v2825_v32  ;;  %v2726_v47 = vld [vmem:[#allocation2 + $0xf9] sm:$0xff] }
 0x19d   : > { %3390 = vst [vmem:[%s6323_s18 + $0x48] sm:$0xff] %v3358_v16  ;;  %v2793_v54 = vadd.f32 %v2761_v37, %v2692_v49  ;;  %v2963_v18 = vmul.f32 %v7346_v17, %v2926_v48  ;;  %v3064_v7 = vmul.f32 %v7351_v11, %v3027_v50  ;;  %v2693_v12 = vmul.f32 %v7323_v59, %v2655_v26  ;;  %v3129_v25 = vld [vmem:[#allocation2 + $0xf5] sm:$0xff]  ;;  %v3130_v32 = vld [vmem:[#allocation2 + $0xfd] sm:$0xff]  ;;  %v2727_v48 = vld [vmem:[#allocation2 + $0x109] sm:$0xff] }
 0x19e   : > { %v3195_v5 = vadd.f32 %v3163_v15, %v3094_v51  ;;  %v2994_v28 = vadd.f32 %v2962_v23, %v2893_v30  ;;  %v3359_v2 = vadd.f32 %v3327_v4, %v3295_v57  ;;  %v3165_v34 = vmul.f32 %v7360_v63, %v3128_v21  ;;  %v3230_v44 = vld [vmem:[#allocation2 + $0xf6] sm:$0xff]  ;;  %v3231_v50 = vld [vmem:[#allocation2 + $0xfe] sm:$0xff]  ;;  %v2828_v26 = vld [vmem:[#allocation2 + $0x10a] sm:$0xff] }
 0x19f   : > { %v2894_v35 = vadd.f32 %v2862_v61, %v2793_v54  ;;  %v2762_v46 = vmul.f32 %v7330_v53, %v2725_v58  ;;  %v3266_v20 = vmul.f32 %v7365_v36, %v3229_v45  ;;  %v2863_v9 = vmul.f32 %v7339_v0, %v2826_v33  ;;  %v2827_v13 = vld [vmem:[#allocation2 + $0xfa] sm:$0xff]  ;;  %v2929_v21 = vld [vmem:[#allocation2 + $0x10b] sm:$0xff] }
 0x1a0   : > { %v3296_v39 = vadd.f32 %v3264_v14, %v3195_v5  ;;  %v3095_v8 = vadd.f32 %v3063_v27, %v2994_v28  ;;  %3391 = vst [vmem:[%s6323_s18 + $0x50] sm:$0xff] %v3359_v2  ;;  %v2964_v43 = vmul.f32 %v7346_v17, %v2927_v31  ;;  %v3065_v15 = vmul.f32 %v7351_v11, %v3028_v1  ;;  %v2928_v62 = vld [vmem:[#allocation2 + $0xfb] sm:$0xff]  ;;  %v3030_v58 = vld [vmem:[#allocation2 + $0x10c] sm:$0xff] }
 0x1a1   : > { %v2995_v19 = vadd.f32 %v2963_v18, %v2894_v35  ;;  %v2794_v42 = vadd.f32 %v2762_v46, %v2693_v12  ;;  %v2694_v29 = vmul.f32 %v7323_v59, %v2656_v24  ;;  %v2763_v14 = vmul.f32 %v7330_v53, %v2726_v47  ;;  %v3029_v55 = vld [vmem:[#allocation2 + $0xfc] sm:$0xff]  ;;  %v3330_v54 = vld [vmem:[%s6323_s18 + $0x68] sm:$0xff]  ;;  %v2658_v45 = vld [vmem:[#allocation2 + $0x110] sm:$0xff] }
 0x1a2   : > { %v3360_v22 = vadd.f32 %v3328_v41, %v3296_v39  ;;  %v3196_v52 = vadd.f32 %v3164_v56, %v3095_v8  ;;  %v3166_v23 = vmul.f32 %v7360_v63, %v3129_v25  ;;  %v3267_v27 = vmul.f32 %v7365_v36, %v3230_v44  ;;  %v2728_v33 = vld [vmem:[#allocation2 + $0x111] sm:$0xff]  ;;  %v2659_v25 = vld [vmem:[#allocation2 + $0x120] sm:$0xff] }
 0x1a3   : > { %v3096_v60 = vadd.f32 %v3064_v7, %v2995_v19  ;;  %v2895_v10 = vadd.f32 %v2863_v9, %v2794_v42  ;;  %v2795_v40 = vadd.f32 %v2763_v14, %v2694_v29  ;;  %v2864_v49 = vmul.f32 %v7339_v0, %v2827_v13  ;;  %v3131_v31 = vld [vmem:[#allocation2 + $0x10d] sm:$0xff]  ;;  %v3132_v13 = vld [vmem:[#allocation2 + $0x115] sm:$0xff] }
 0x1a4   : > { %3392 = vst [vmem:[%s6323_s18 + $0x58] sm:$0xff] %v3360_v22  ;;  %v3297_v16 = vadd.f32 %v3265_v6, %v3196_v52  ;;  %v2965_v37 = vmul.f32 %v7346_v17, %v2928_v62  ;;  %v3066_v30 = vmul.f32 %v7351_v11, %v3029_v55  ;;  %v2695_v56 = vmul.f32 %v7323_v59, %v2657_v38  ;;  %v3232_v1 = vld [vmem:[#allocation2 + $0x10e] sm:$0xff]  ;;  %v2729_v62 = vld [vmem:[#allocation2 + $0x121] sm:$0xff]  ;;  %v3233_v55 = vld [vmem:[#allocation2 + $0x116] sm:$0xff] }
 0x1a5   : > { %v3197_v4 = vadd.f32 %v3165_v34, %v3096_v60  ;;  %v2996_v51 = vadd.f32 %v2964_v43, %v2895_v10  ;;  %v2896_v61 = vadd.f32 %v2864_v49, %v2795_v40  ;;  %v3167_v6 = vmul.f32 %v7360_v63, %v3130_v32  ;;  %v2829_v46 = vld [vmem:[#allocation2 + $0x112] sm:$0xff]  ;;  %v2830_v38 = vld [vmem:[#allocation2 + $0x122] sm:$0xff] }
 0x1a6   : > { %v3361_v57 = vadd.f32 %v3329_v3, %v3297_v16  ;;  %v2764_v18 = vmul.f32 %v7330_v53, %v2727_v48  ;;  %v3268_v7 = vmul.f32 %v7365_v36, %v3231_v50  ;;  %v2865_v12 = vmul.f32 %v7339_v0, %v2828_v26  ;;  %v2930_v24 = vld [vmem:[#allocation2 + $0x113] sm:$0xff]  ;;  %v2931_v32 = vld [vmem:[#allocation2 + $0x123] sm:$0xff] }
 0x1a7   : > { %v3298_v5 = vadd.f32 %v3266_v20, %v3197_v4  ;;  %v3097_v28 = vadd.f32 %v3065_v15, %v2996_v51  ;;  %v2997_v2 = vadd.f32 %v2965_v37, %v2896_v61  ;;  %v2966_v35 = vmul.f32 %v7346_v17, %v2929_v21  ;;  %v3031_v9 = vld [vmem:[#allocation2 + $0x114] sm:$0xff]  ;;  %v3032_v48 = vld [vmem:[#allocation2 + $0x124] sm:$0xff] }
 0x1a8   : > { %3393 = vst [vmem:[%s6323_s18 + $0x60] sm:$0xff] %v3361_v57  ;;  %v2796_v41 = vadd.f32 %v2764_v18, %v2695_v56  ;;  %v3067_v34 = vmul.f32 %v7351_v11, %v3030_v58  ;;  %v2696_v8 = vmul.f32 %v7323_v59, %v2658_v45  ;;  %v2765_v20 = vmul.f32 %v7330_v53, %v2728_v33  ;;  %v3331_v44 = vld [vmem:[%s6323_s18 + $0x70] sm:$0xff]  ;;  %v3332_v40 = vld [vmem:[%s6323_s18 + $0x78] sm:$0xff]  ;;  %v2660_v50 = vld [vmem:[#allocation2 + $0x128] sm:$0xff] }
 0x1a9   : > { %v3362_v47 = vadd.f32 %v3330_v54, %v3298_v5  ;;  %v3198_v39 = vadd.f32 %v3166_v23, %v3097_v28  ;;  %v3098_v19 = vadd.f32 %v3066_v30, %v2997_v2  ;;  %v3168_v43 = vmul.f32 %v7360_v63, %v3131_v31  ;;  %v2730_v26 = vld [vmem:[#allocation2 + $0x129] sm:$0xff]  ;;  %v2661_v31 = vld [vmem:[#allocation2 + $0x138] sm:$0xff] }
 0x1aa   : > { %v2897_v42 = vadd.f32 %v2865_v12, %v2796_v41  ;;  %v3269_v15 = vmul.f32 %v7365_v36, %v3232_v1  ;;  %v2797_v52 = vadd.f32 %v2765_v20, %v2696_v8  ;;  %v2866_v29 = vmul.f32 %v7339_v0, %v2829_v46  ;;  %v3133_v21 = vld [vmem:[#allocation2 + $0x125] sm:$0xff]  ;;  %v3134_v46 = vld [vmem:[#allocation2 + $0x12d] sm:$0xff] }
 0x1ab   : > { %3394 = vst [vmem:[%s6323_s18 + $0x68] sm:$0xff] %v3362_v47  ;;  %v3299_v22 = vadd.f32 %v3267_v27, %v3198_v39  ;;  %v2967_v14 = vmul.f32 %v7346_v17, %v2930_v24  ;;  %v3199_v3 = vadd.f32 %v3167_v6, %v3098_v19  ;;  %v3068_v10 = vmul.f32 %v7351_v11, %v3031_v9  ;;  %v3234_v58 = vld [vmem:[#allocation2 + $0x126] sm:$0xff]  ;;  %v2731_v24 = vld [vmem:[#allocation2 + $0x139] sm:$0xff]  ;;  %v3235_v9 = vld [vmem:[#allocation2 + $0x12e] sm:$0xff] }
 0x1ac   : > { %v2998_v60 = vadd.f32 %v2966_v35, %v2897_v42  ;;  %v2697_v23 = vmul.f32 %v7323_v59, %v2659_v25  ;;  %v2898_v49 = vadd.f32 %v2866_v29, %v2797_v52  ;;  %v3169_v27 = vmul.f32 %v7360_v63, %v3132_v13  ;;  %v2831_v18 = vld [vmem:[#allocation2 + $0x12a] sm:$0xff]  ;;  %v3333_v1 = vld [vmem:[%s6323_s18 + $0x80] sm:$0xff] }
 0x1ad   : > { %v3363_v16 = vadd.f32 %v3331_v44, %v3299_v22  ;;  %v2766_v37 = vmul.f32 %v7330_v53, %v2729_v62  ;;  %v3300_v4 = vadd.f32 %v3268_v7, %v3199_v3  ;;  %v3270_v30 = vmul.f32 %v7365_v36, %v3233_v55  ;;  %v2932_v45 = vld [vmem:[#allocation2 + $0x12b] sm:$0xff]  ;;  %v2832_v25 = vld [vmem:[#allocation2 + $0x13a] sm:$0xff] }
 0x1ae   : > { %v3099_v51 = vadd.f32 %v3067_v34, %v2998_v60  ;;  %v2867_v56 = vmul.f32 %v7339_v0, %v2830_v38  ;;  %v2999_v57 = vadd.f32 %v2967_v14, %v2898_v49  ;;  %v2968_v61 = vmul.f32 %v7346_v17, %v2931_v32  ;;  %v3033_v12 = vld [vmem:[#allocation2 + $0x12c] sm:$0xff]  ;;  %v2933_v13 = vld [vmem:[#allocation2 + $0x13b] sm:$0xff] }
 0x1af   : > { %3395 = vst [vmem:[%s6323_s18 + $0x70] sm:$0xff] %v3363_v16  ;;  %v2798_v54 = vadd.f32 %v2766_v37, %v2697_v23  ;;  %v3069_v6 = vmul.f32 %v7351_v11, %v3032_v48  ;;  %v3364_v33 = vadd.f32 %v3332_v40, %v3300_v4  ;;  %v2698_v28 = vmul.f32 %v7323_v59, %v2660_v50  ;;  %v3034_v62 = vld [vmem:[#allocation2 + $0x13c] sm:$0xff]  ;;  %v3334_v52 = vld [vmem:[%s6323_s18 + $0x88] sm:$0xff] }
 0x1b0   : > { %v3200_v5 = vadd.f32 %v3168_v43, %v3099_v51  ;;  %v2767_v7 = vmul.f32 %v7330_v53, %v2730_v26  ;;  %v3100_v2 = vadd.f32 %v3068_v10, %v2999_v57  ;;  %v3170_v35 = vmul.f32 %v7360_v63, %v3133_v21  ;;  %v2662_v55 = vld [vmem:[#allocation2 + $0x140] sm:$0xff]  ;;  %v2663_v21 = vld [vmem:[#allocation2 + $0x150] sm:$0xff] }
 0x1b1   : > { %v2899_v41 = vadd.f32 %v2867_v56, %v2798_v54  ;;  %v3271_v34 = vmul.f32 %v7365_v36, %v3234_v58  ;;  %3396 = vst [vmem:[%s6323_s18 + $0x78] sm:$0xff] %v3364_v33  ;;  %v2868_v8 = vmul.f32 %v7339_v0, %v2831_v18  ;;  %v2969_v20 = vmul.f32 %v7346_v17, %v2932_v45  ;;  %v2732_v38 = vld [vmem:[#allocation2 + $0x141] sm:$0xff]  ;;  %v3335_v58 = vld [vmem:[%s6323_s18 + $0x90] sm:$0xff] }
 0x1b2   : > { %v3301_v47 = vadd.f32 %v3269_v15, %v3200_v5  ;;  %v2799_v39 = vadd.f32 %v2767_v7, %v2698_v28  ;;  %v3201_v44 = vadd.f32 %v3169_v27, %v3100_v2  ;;  %v3070_v42 = vmul.f32 %v7351_v11, %v3033_v12  ;;  %v3135_v32 = vld [vmem:[#allocation2 + $0x13d] sm:$0xff]  ;;  %v3136_v18 = vld [vmem:[#allocation2 + $0x145] sm:$0xff]  ;;  %v2733_v45 = vld [vmem:[#allocation2 + $0x151] sm:$0xff] }
 0x1b3   : > { %v3000_v19 = vadd.f32 %v2968_v61, %v2899_v41  ;;  %v2699_v43 = vmul.f32 %v7323_v59, %v2661_v31  ;;  %v3171_v15 = vmul.f32 %v7360_v63, %v3134_v46  ;;  %v2768_v14 = vmul.f32 %v7330_v53, %v2731_v24  ;;  %v3236_v48 = vld [vmem:[#allocation2 + $0x13e] sm:$0xff]  ;;  %v2834_v7 = vld [vmem:[#allocation2 + $0x152] sm:$0xff] }
 0x1b4   : > { %v3365_v22 = vadd.f32 %v3333_v1, %v3301_v47  ;;  %v2900_v29 = vadd.f32 %v2868_v8, %v2799_v39  ;;  %v3302_v3 = vadd.f32 %v3270_v30, %v3201_v44  ;;  %v3272_v10 = vmul.f32 %v7365_v36, %v3235_v9  ;;  %v2833_v37 = vld [vmem:[#allocation2 + $0x142] sm:$0xff]  ;;  %v7562_v2 = vld [vmem:[%s8782_s1 + $0x18] ss:$0 sm:$0xff]  ;;  %v7570_v47 = vld [vmem:[%s8782_s1 + $0x19] ss:$0 sm:$0xff] }
 0x1b5   : > { %v3101_v60 = vadd.f32 %v3069_v6, %v3000_v19  ;;  %v2869_v23 = vmul.f32 %v7339_v0, %v2832_v25  ;;  %v2800_v40 = vadd.f32 %v2768_v14, %v2699_v43  ;;  %v2970_v49 = vmul.f32 %v7346_v17, %v2933_v13  ;;  %v2934_v50 = vld [vmem:[#allocation2 + $0x143] sm:$0xff]  ;;  %v2664_v39 = vld [vmem:[#allocation2 + $0x158] sm:$0xff] }
 0x1b6   : > { %3397 = vst [vmem:[%s6323_s18 + $0x80] sm:$0xff] %v3365_v22  ;;  %v3001_v16 = vadd.f32 %v2969_v20, %v2900_v29  ;;  %v3071_v27 = vmul.f32 %v7351_v11, %v3034_v62  ;;  %v3366_v26 = vadd.f32 %v3334_v52, %v3302_v3  ;;  %v2700_v51 = vmul.f32 %v7323_v59, %v2662_v55  ;;  %v3035_v56 = vld [vmem:[#allocation2 + $0x144] sm:$0xff]  ;;  %v2734_v8 = vld [vmem:[#allocation2 + $0x159] sm:$0xff] }
 0x1b7   : > { %v3202_v4 = vadd.f32 %v3170_v35, %v3101_v60  ;;  %v2769_v30 = vmul.f32 %v7330_v53, %v2732_v38  ;;  %v2901_v54 = vadd.f32 %v2869_v23, %v2800_v40  ;;  %v3172_v61 = vmul.f32 %v7360_v63, %v3135_v32  ;;  %v3237_v53 = vld [vmem:[#allocation2 + $0x146] sm:$0xff]  ;;  %v2935_v35 = vld [vmem:[#allocation2 + $0x153] sm:$0xff]  ;;  %v7584_v62 = vld [vmem:[%s8782_s1 + $0x1b] ss:$0 sm:$0xff] }
 0x1b8   : > { %v3102_v57 = vadd.f32 %v3070_v42, %v3001_v16  ;;  %v3273_v6 = vmul.f32 %v7365_v36, %v3236_v48  ;;  %3398 = vst [vmem:[%s6323_s18 + $0x88] sm:$0xff] %v3366_v26  ;;  %v2870_v28 = vmul.f32 %v7339_v0, %v2833_v37  ;;  %v2971_v59 = vmul.f32 %v7346_v17, %v2934_v50  ;;  %v3336_v0 = vld [vmem:[%s6323_s18 + $0x98] sm:$0xff]  ;;  %v3337_v23 = vld [vmem:[%s6323_s18 + $0xa0] sm:$0xff]  ;;  %v2735_v50 = vld [vmem:[#allocation2 + $0x169] sm:$0xff] }
 0x1b9   : > { %v3303_v33 = vadd.f32 %v3271_v34, %v3202_v4  ;;  %v2801_v5 = vadd.f32 %v2769_v30, %v2700_v51  ;;  %v3002_v31 = vadd.f32 %v2970_v49, %v2901_v54  ;;  %v3072_v1 = vmul.f32 %v7351_v11, %v3035_v56  ;;  %v3036_v34 = vld [vmem:[#allocation2 + $0x154] sm:$0xff]  ;;  %v7590_v22 = vld [vmem:[%s8782_s1 + $0x1c] ss:$0 sm:$0xff]  ;;  %v7599_v16 = vld [vmem:[%s8782_s1 + $0x1d] ss:$0 sm:$0xff] }
 0x1ba   : > { %v3203_v12 = vadd.f32 %v3171_v15, %v3102_v57  ;;  %v2701_v41 = vmul.f32 %v7562_v2, %v2663_v21  ;;  %v3173_v17 = vmul.f32 %v7360_v63, %v3136_v18  ;;  %v2770_v11 = vmul.f32 %v7570_v47, %v2733_v45  ;;  %v7577_v44 = vld [vmem:[%s8782_s1 + $0x1a] ss:$0 sm:$0xff]  ;;  %v2936_v15 = vld [vmem:[#allocation2 + $0x15b] sm:$0xff]  ;;  %v2836_v21 = vld [vmem:[#allocation2 + $0x16a] sm:$0xff] }
 0x1bb   : > { %v3367_v46 = vadd.f32 %v3335_v58, %v3303_v33  ;;  %v2902_v24 = vadd.f32 %v2870_v28, %v2801_v5  ;;  %v3103_v9 = vadd.f32 %v3071_v27, %v3002_v31  ;;  %v3274_v25 = vmul.f32 %v7365_v36, %v3237_v53  ;;  %v3137_v19 = vld [vmem:[#allocation2 + $0x155] sm:$0xff]  ;;  %v7605_v49 = vld [vmem:[%s8782_s1 + $0x1e] ss:$0 sm:$0xff]  ;;  %v2937_v18 = vld [vmem:[#allocation2 + $0x16b] sm:$0xff] }
 0x1bc   : > { %v3304_v20 = vadd.f32 %v3272_v10, %v3203_v12  ;;  %v2871_v63 = vmul.f32 %v7577_v44, %v2834_v7  ;;  %v3238_v42 = vld [vmem:[#allocation2 + $0x156] sm:$0xff]  ;;  %v2802_v13 = vadd.f32 %v2770_v11, %v2701_v41  ;;  %v2972_v36 = vmul.f32 %v7584_v62, %v2935_v35  ;;  %v2665_v10 = vld [vmem:[#allocation2 + $0x168] sm:$0xff]  ;;  %v3239_v56 = vld [vmem:[#allocation2 + $0x15e] sm:$0xff] }
 0x1bd   : > { %3399 = vst [vmem:[%s6323_s18 + $0x90] sm:$0xff] %v3367_v46  ;;  %v3003_v43 = vadd.f32 %v2971_v59, %v2902_v24  ;;  %v3073_v52 = vmul.f32 %v7590_v22, %v3036_v34  ;;  %v2835_v29 = vld [vmem:[#allocation2 + $0x15a] sm:$0xff]  ;;  %v3204_v55 = vadd.f32 %v3172_v61, %v3103_v9  ;;  %v2702_v38 = vmul.f32 %v7562_v2, %v2664_v39  ;;  %v3038_v45 = vld [vmem:[#allocation2 + $0x16c] sm:$0xff] }
 0x1be   : > { %v3368_v14 = vadd.f32 %v3336_v0, %v3304_v20  ;;  %v2771_v3 = vmul.f32 %v7570_v47, %v2734_v8  ;;  %v3037_v60 = vld [vmem:[#allocation2 + $0x15c] sm:$0xff]  ;;  %v2903_v48 = vadd.f32 %v2871_v63, %v2802_v13  ;;  %v3174_v40 = vmul.f32 %v7599_v16, %v3137_v19  ;;  %v3338_v5 = vld [vmem:[%s6323_s18 + $0xa8] sm:$0xff]  ;;  %v2666_v53 = vld [vmem:[#allocation2 + $0x170] sm:$0xff] }
 0x1bf   : > { %v3104_v32 = vadd.f32 %v3072_v1, %v3003_v43  ;;  %v3275_v27 = vmul.f32 %v7605_v49, %v3238_v42  ;;  %v3138_v37 = vld [vmem:[#allocation2 + $0x15d] sm:$0xff]  ;;  %v3305_v26 = vadd.f32 %v3273_v6, %v3204_v55  ;;  %v2872_v51 = vmul.f32 %v7577_v44, %v2835_v29  ;;  %v2736_v7 = vld [vmem:[#allocation2 + $0x171] sm:$0xff] }
 0x1c0   : > { %3400 = vst [vmem:[%s6323_s18 + $0x98] sm:$0xff] %v3368_v14  ;;  %v2803_v4 = vadd.f32 %v2771_v3, %v2702_v38  ;;  %v2973_v30 = vmul.f32 %v7584_v62, %v2936_v15  ;;  %v3004_v57 = vadd.f32 %v2972_v36, %v2903_v48  ;;  %v3074_v54 = vmul.f32 %v7590_v22, %v3037_v60  ;;  %v3139_v35 = vld [vmem:[#allocation2 + $0x16d] sm:$0xff]  ;;  %v2667_v19 = vld [vmem:[#allocation2 + $0x180] sm:$0xff]  ;;  %v3140_v60 = vld [vmem:[#allocation2 + $0x175] sm:$0xff] }
 0x1c1   : > { %v3205_v58 = vadd.f32 %v3173_v17, %v3104_v32  ;;  %v2703_v61 = vmul.f32 %v7562_v2, %v2665_v10  ;;  %v3369_v33 = vadd.f32 %v3337_v23, %v3305_v26  ;;  %v3175_v6 = vmul.f32 %v7599_v16, %v3138_v37  ;;  %v3240_v34 = vld [vmem:[#allocation2 + $0x16e] sm:$0xff]  ;;  %v2737_v29 = vld [vmem:[#allocation2 + $0x181] sm:$0xff]  ;;  %v3241_v10 = vld [vmem:[#allocation2 + $0x176] sm:$0xff] }
 0x1c2   : > { %v2904_v28 = vadd.f32 %v2872_v51, %v2803_v4  ;;  %v2772_v59 = vmul.f32 %v7570_v47, %v2735_v50  ;;  %v3105_v31 = vadd.f32 %v3073_v52, %v3004_v57  ;;  %v3276_v1 = vmul.f32 %v7605_v49, %v3239_v56  ;;  %v2837_v11 = vld [vmem:[#allocation2 + $0x172] sm:$0xff]  ;;  %v2838_v15 = vld [vmem:[#allocation2 + $0x182] sm:$0xff] }
 0x1c3   : > { %v3306_v12 = vadd.f32 %v3274_v25, %v3205_v58  ;;  %v2873_v41 = vmul.f32 %v7577_v44, %v2836_v21  ;;  %3401 = vst [vmem:[%s6323_s18 + $0xa0] sm:$0xff] %v3369_v33  ;;  %v2974_v24 = vmul.f32 %v7584_v62, %v2937_v18  ;;  %v3075_v17 = vmul.f32 %v7590_v22, %v3038_v45  ;;  %v2938_v39 = vld [vmem:[#allocation2 + $0x173] sm:$0xff]  ;;  %v2939_v37 = vld [vmem:[#allocation2 + $0x183] sm:$0xff] }
 0x1c4   : > { %v3005_v46 = vadd.f32 %v2973_v30, %v2904_v28  ;;  %v2804_v0 = vadd.f32 %v2772_v59, %v2703_v61  ;;  %v3206_v20 = vadd.f32 %v3174_v40, %v3105_v31  ;;  %v2704_v9 = vmul.f32 %v7562_v2, %v2666_v53  ;;  %v3039_v63 = vld [vmem:[#allocation2 + $0x174] sm:$0xff]  ;;  %v3040_v50 = vld [vmem:[#allocation2 + $0x184] sm:$0xff] }
 0x1c5   : > { %v3370_v8 = vadd.f32 %v3338_v5, %v3306_v12  ;;  %v2773_v25 = vmul.f32 %v7570_v47, %v2736_v7  ;;  %v3339_v42 = vld [vmem:[%s6323_s18 + $0xb0] sm:$0xff]  ;;  %v3176_v36 = vmul.f32 %v7599_v16, %v3139_v35  ;;  %v3277_v52 = vmul.f32 %v7605_v49, %v3240_v34  ;;  %v3340_v4 = vld [vmem:[%s6323_s18 + $0xb8] sm:$0xff]  ;;  %v2668_v56 = vld [vmem:[#allocation2 + $0x188] sm:$0xff] }
 0x1c6   : > { %v3106_v43 = vadd.f32 %v3074_v54, %v3005_v46  ;;  %v2905_v13 = vadd.f32 %v2873_v41, %v2804_v0  ;;  %v3307_v14 = vadd.f32 %v3275_v27, %v3206_v20  ;;  %v2874_v38 = vmul.f32 %v7577_v44, %v2837_v11  ;;  %v2738_v21 = vld [vmem:[#allocation2 + $0x189] sm:$0xff]  ;;  %v2669_v35 = vld [vmem:[#allocation2 + $0x198] sm:$0xff]  ;;  %v3341_v34 = vld [vmem:[%s6323_s18 + $0xc0] sm:$0xff] }
 0x1c7   : > { %3402 = vst [vmem:[%s6323_s18 + $0xa8] sm:$0xff] %v3370_v8  ;;  %v2805_v55 = vadd.f32 %v2773_v25, %v2704_v9  ;;  %v2975_v3 = vmul.f32 %v7584_v62, %v2938_v39  ;;  %v3076_v48 = vmul.f32 %v7590_v22, %v3039_v63  ;;  %v2705_v40 = vmul.f32 %v7562_v2, %v2667_v19  ;;  %v3141_v18 = vld [vmem:[#allocation2 + $0x185] sm:$0xff]  ;;  %v2739_v11 = vld [vmem:[#allocation2 + $0x199] sm:$0xff]  ;;  %v3142_v63 = vld [vmem:[#allocation2 + $0x18d] sm:$0xff] }
 0x1c8   : > { %v3207_v23 = vadd.f32 %v3175_v6, %v3106_v43  ;;  %v3006_v32 = vadd.f32 %v2974_v24, %v2905_v13  ;;  %v3371_v26 = vadd.f32 %v3339_v42, %v3307_v14  ;;  %v2774_v27 = vmul.f32 %v7570_v47, %v2737_v29  ;;  %v2839_v45 = vld [vmem:[#allocation2 + $0x18a] sm:$0xff]  ;;  %v2840_v39 = vld [vmem:[#allocation2 + $0x19a] sm:$0xff] }
 0x1c9   : > { %v2906_v51 = vadd.f32 %v2874_v38, %v2805_v55  ;;  %v2875_v30 = vmul.f32 %v7577_v44, %v2838_v15  ;;  %v3177_v54 = vmul.f32 %v7599_v16, %v3140_v60  ;;  %v3278_v61 = vmul.f32 %v7605_v49, %v3241_v10  ;;  %v3242_v59 = vld [vmem:[#allocation2 + $0x186] sm:$0xff]  ;;  %v3243_v19 = vld [vmem:[#allocation2 + $0x18e] sm:$0xff]  ;;  %v2941_v29 = vld [vmem:[#allocation2 + $0x19b] sm:$0xff] }
 0x1ca   : > { %v3308_v58 = vadd.f32 %v3276_v1, %v3207_v23  ;;  %v3107_v57 = vadd.f32 %v3075_v17, %v3006_v32  ;;  %3403 = vst [vmem:[%s6323_s18 + $0xb0] sm:$0xff] %v3371_v26  ;;  %v2806_v5 = vadd.f32 %v2774_v27, %v2705_v40  ;;  %v2976_v28 = vmul.f32 %v7584_v62, %v2939_v37  ;;  %v2940_v53 = vld [vmem:[#allocation2 + $0x18b] sm:$0xff]  ;;  %v3042_v15 = vld [vmem:[#allocation2 + $0x19c] sm:$0xff] }
 0x1cb   : > { %v3007_v33 = vadd.f32 %v2975_v3, %v2906_v51  ;;  %v3077_v6 = vmul.f32 %v7590_v22, %v3040_v50  ;;  %v2706_v31 = vmul.f32 %v7562_v2, %v2668_v56  ;;  %v2775_v1 = vmul.f32 %v7570_v47, %v2738_v21  ;;  %v3041_v41 = vld [vmem:[#allocation2 + $0x18c] sm:$0xff]  ;;  %v2670_v60 = vld [vmem:[#allocation2 + $0x1a0] sm:$0xff] }
 0x1cc   : > { %v3372_v7 = vadd.f32 %v3340_v4, %v3308_v58  ;;  %v3208_v12 = vadd.f32 %v3176_v36, %v3107_v57  ;;  %v2907_v0 = vadd.f32 %v2875_v30, %v2806_v5  ;;  %v3178_v24 = vmul.f32 %v7599_v16, %v3141_v18  ;;  %v3342_v55 = vld [vmem:[%s6323_s18 + $0xc8] sm:$0xff]  ;;  %v3143_v37 = vld [vmem:[#allocation2 + $0x19d] sm:$0xff]  ;;  %v2671_v18 = vld [vmem:[#allocation2 + $0x1b0] sm:$0xff] }
 0x1cd   : > { %v3108_v46 = vadd.f32 %v3076_v48, %v3007_v33  ;;  %v2876_v17 = vmul.f32 %v7577_v44, %v2839_v45  ;;  %v3279_v20 = vmul.f32 %v7605_v49, %v3242_v59  ;;  %v2807_v9 = vadd.f32 %v2775_v1, %v2706_v31  ;;  %v2740_v10 = vld [vmem:[#allocation2 + $0x1a1] sm:$0xff]  ;;  %v3343_v45 = vld [vmem:[%s6323_s18 + $0xd0] sm:$0xff] }
 0x1ce   : > { %3404 = vst [vmem:[%s6323_s18 + $0xb8] sm:$0xff] %v3372_v7  ;;  %v3309_v8 = vadd.f32 %v3277_v52, %v3208_v12  ;;  %v2977_v25 = vmul.f32 %v7584_v62, %v2940_v53  ;;  %v3008_v43 = vadd.f32 %v2976_v28, %v2907_v0  ;;  %v3078_v13 = vmul.f32 %v7590_v22, %v3041_v41  ;;  %v2841_v50 = vld [vmem:[#allocation2 + $0x1a2] sm:$0xff]  ;;  %v2741_v59 = vld [vmem:[#allocation2 + $0x1b1] sm:$0xff] }
 0x1cf   : > { %v3209_v42 = vadd.f32 %v3177_v54, %v3108_v46  ;;  %v2707_v36 = vmul.f32 %v7562_v2, %v2669_v35  ;;  %v2908_v38 = vadd.f32 %v2876_v17, %v2807_v9  ;;  %v2776_v52 = vmul.f32 %v7570_v47, %v2739_v11  ;;  %v3244_v30 = vld [vmem:[#allocation2 + $0x19e] sm:$0xff]  ;;  %v2842_v53 = vld [vmem:[#allocation2 + $0x1b2] sm:$0xff]  ;;  %v3245_v35 = vld [vmem:[#allocation2 + $0x1a6] sm:$0xff] }
 0x1d0   : > { %v3373_v14 = vadd.f32 %v3341_v34, %v3309_v8  ;;  %v2877_v3 = vmul.f32 %v7577_v44, %v2840_v39  ;;  %v3109_v32 = vadd.f32 %v3077_v6, %v3008_v43  ;;  %v3179_v48 = vmul.f32 %v7599_v16, %v3142_v63  ;;  %v2942_v56 = vld [vmem:[#allocation2 + $0x1a3] sm:$0xff]  ;;  %v2943_v17 = vld [vmem:[#allocation2 + $0x1b3] sm:$0xff] }
 0x1d1   : > { %v3310_v23 = vadd.f32 %v3278_v61, %v3209_v42  ;;  %v3280_v40 = vmul.f32 %v7605_v49, %v3243_v19  ;;  %v3009_v26 = vadd.f32 %v2977_v25, %v2908_v38  ;;  %v2808_v4 = vadd.f32 %v2776_v52, %v2707_v36  ;;  %v3043_v61 = vld [vmem:[#allocation2 + $0x1a4] sm:$0xff]  ;;  %v3044_v11 = vld [vmem:[#allocation2 + $0x1b4] sm:$0xff] }
 0x1d2   : > { %3405 = vst [vmem:[%s6323_s18 + $0xc0] sm:$0xff] %v3373_v14  ;;  %v2978_v51 = vmul.f32 %v7584_v62, %v2941_v29  ;;  %v3079_v27 = vmul.f32 %v7590_v22, %v3042_v15  ;;  %v3210_v58 = vadd.f32 %v3178_v24, %v3109_v32  ;;  %v2708_v57 = vmul.f32 %v7562_v2, %v2670_v60  ;;  %v3144_v41 = vld [vmem:[#allocation2 + $0x1a5] sm:$0xff]  ;;  %v3344_v8 = vld [vmem:[%s6323_s18 + $0xd8] sm:$0xff] }
 0x1d3   : > { %v3374_v21 = vadd.f32 %v3342_v55, %v3310_v23  ;;  %v2777_v54 = vmul.f32 %v7570_v47, %v2740_v10  ;;  %v3110_v33 = vadd.f32 %v3078_v13, %v3009_v26  ;;  %v2909_v5 = vadd.f32 %v2877_v3, %v2808_v4  ;;  %v2672_v63 = vld [vmem:[#allocation2 + $0x1b8] sm:$0xff]  ;;  %v3414_v26 = vld [vmem:[#allocation2 + $0x60] sm:$0xff] }
 0x1d4   : > { %v3180_v28 = vmul.f32 %v7599_v16, %v3143_v37  ;;  %v2878_v6 = vmul.f32 %v7577_v44, %v2841_v50  ;;  %v3311_v7 = vadd.f32 %v3279_v20, %v3210_v58  ;;  %v3281_v12 = vmul.f32 %v7605_v49, %v3244_v30  ;;  %v2742_v19 = vld [vmem:[#allocation2 + $0x1b9] sm:$0xff] }
 0x1d5   : > { %3406 = vst [vmem:[%s6323_s18 + $0xc8] sm:$0xff] %v3374_v21  ;;  %v2809_v31 = vadd.f32 %v2777_v54, %v2708_v57  ;;  %v2979_v1 = vmul.f32 %v7584_v62, %v2942_v56  ;;  %v3211_v34 = vadd.f32 %v3179_v48, %v3110_v33  ;;  %v3010_v46 = vadd.f32 %v2978_v51, %v2909_v5  ;;  %v3145_v29 = vld [vmem:[#allocation2 + $0x1b5] sm:$0xff]  ;;  %v3146_v23 = vld [vmem:[#allocation2 + $0x1bd] sm:$0xff] }
 0x1d6   : > { %v3080_v0 = vmul.f32 %v7590_v22, %v3043_v61  ;;  %v2709_v24 = vmul.f32 %v7562_v2, %v2671_v18  ;;  %v3375_v39 = vadd.f32 %v3343_v45, %v3311_v7  ;;  %v2778_v20 = vmul.f32 %v7570_v47, %v2741_v59  ;;  %v3246_v15 = vld [vmem:[#allocation2 + $0x1b6] sm:$0xff]  ;;  %v3247_v50 = vld [vmem:[#allocation2 + $0x1be] sm:$0xff] }
 0x1d7   : > { %v2910_v9 = vadd.f32 %v2878_v6, %v2809_v31  ;;  %v2879_v25 = vmul.f32 %v7577_v44, %v2842_v53  ;;  %v3312_v42 = vadd.f32 %v3280_v40, %v3211_v34  ;;  %v3111_v43 = vadd.f32 %v3079_v27, %v3010_v46  ;;  %v2843_v14 = vld [vmem:[#allocation2 + $0x1ba] sm:$0xff]  ;;  %v7696_v45 = vld [vmem:[%s8782_s1 + $0x22] ss:$0 sm:$0xff]  ;;  %v7701_v33 = vld [vmem:[%s8782_s1 + $0x23] ss:$0 sm:$0xff] }
 0x1d8   : > { %v3181_v13 = vmul.f32 %v7599_v16, %v3144_v41  ;;  %v3282_v36 = vmul.f32 %v7605_v49, %v3245_v35  ;;  %3407 = vst [vmem:[%s6323_s18 + $0xd0] sm:$0xff] %v3375_v39  ;;  %v2810_v38 = vadd.f32 %v2778_v20, %v2709_v24  ;;  %v2980_v52 = vmul.f32 %v7584_v62, %v2943_v17  ;;  %v2944_v60 = vld [vmem:[#allocation2 + $0x1bb] sm:$0xff]  ;;  %v3787_v53 = vld [vmem:[#allocation2 + $0x64] sm:$0xff] }
 0x1d9   : > { %v3011_v55 = vadd.f32 %v2979_v1, %v2910_v9  ;;  %v3081_v3 = vmul.f32 %v7590_v22, %v3044_v11  ;;  %v3045_v10 = vld [vmem:[#allocation2 + $0x1bc] sm:$0xff]  ;;  %v3376_v32 = vadd.f32 %v3344_v8, %v3312_v42  ;;  %v3212_v48 = vadd.f32 %v3180_v28, %v3111_v43  ;;  %v3888_v7 = vld [vmem:[#allocation2 + $0x65] sm:$0xff] }
 0x1da   : > { %v2710_v40 = vmul.f32 %v7562_v2, %v2672_v63  ;;  %v2779_v37 = vmul.f32 %v7570_v47, %v2742_v19  ;;  %v7680_v4 = vld [vmem:[%s8782_s1 + $0x20] ss:$0 sm:$0xff]  ;;  %v3484_v51 = vld [vmem:[#allocation2 + $0x61] sm:$0xff]  ;;  %v2911_v56 = vadd.f32 %v2879_v25, %v2810_v38  ;;  %v3182_v21 = vmul.f32 %v7599_v16, %v3145_v29  ;;  %v3485_v46 = vld [vmem:[#allocation2 + $0x69] sm:$0xff] }
 0x1db   : > { %v3345_v27 = vld [vmem:[%s6323_s18 + $0xe0] sm:$0xff]  ;;  %v3112_v30 = vadd.f32 %v3080_v0, %v3011_v55  ;;  %v2880_v58 = vmul.f32 %v7577_v44, %v2843_v14  ;;  %3408 = vst [vmem:[%s6323_s18 + $0xd8] sm:$0xff] %v3376_v32  ;;  %v3313_v57 = vadd.f32 %v3281_v12, %v3212_v48  ;;  %v3283_v54 = vmul.f32 %v7605_v49, %v3246_v15  ;;  %v3346_v31 = vld [vmem:[%s6323_s18 + $0xe8] sm:$0xff]  ;;  %v3416_v29 = vld [vmem:[#allocation2 + $0x78] sm:$0xff] }
 0x1dc   : > { %v7688_v2 = vld [vmem:[%s8782_s1 + $0x21] ss:$0 sm:$0xff]  ;;  %v3585_v47 = vld [vmem:[#allocation2 + $0x62] sm:$0xff]  ;;  %v2811_v61 = vadd.f32 %v2779_v37, %v2710_v40  ;;  %v2981_v18 = vmul.f32 %v7584_v62, %v2944_v60  ;;  %v3012_v28 = vadd.f32 %v2980_v52, %v2911_v56  ;;  %v3082_v6 = vmul.f32 %v7590_v22, %v3045_v10  ;;  %v3586_v25 = vld [vmem:[#allocation2 + $0x6a] sm:$0xff] }
 0x1dd   : > { %v3686_v44 = vld [vmem:[#allocation2 + $0x63] sm:$0xff]  ;;  %v3213_v5 = vadd.f32 %v3181_v13, %v3112_v30  ;;  %v3452_v59 = vmul.f32 %v7680_v4, %v3414_v26  ;;  %v3377_v12 = vadd.f32 %v3345_v27, %v3313_v57  ;;  %v3183_v41 = vmul.f32 %v7599_v16, %v3146_v23  ;;  %v3687_v63 = vld [vmem:[#allocation2 + $0x6b] sm:$0xff]  ;;  %v3486_v60 = vld [vmem:[#allocation2 + $0x79] sm:$0xff] }
 0x1de   : > { %v7708_v62 = vld [vmem:[%s8782_s1 + $0x24] ss:$0 sm:$0xff]  ;;  %v2912_v1 = vadd.f32 %v2880_v58, %v2811_v61  ;;  %v3521_v35 = vmul.f32 %v7688_v2, %v3484_v51  ;;  %v3415_v34 = vld [vmem:[#allocation2 + $0x68] sm:$0xff]  ;;  %v3113_v0 = vadd.f32 %v3081_v3, %v3012_v28  ;;  %v3284_v24 = vmul.f32 %v7605_v49, %v3247_v50  ;;  %v7718_v11 = vld [vmem:[%s8782_s1 + $0x25] ss:$0 sm:$0xff] }
 0x1df   : > { %v3314_v22 = vadd.f32 %v3282_v36, %v3213_v5  ;;  %v3622_v17 = vmul.f32 %v7696_v45, %v3585_v47  ;;  %v3989_v39 = vld [vmem:[#allocation2 + $0x66] sm:$0xff]  ;;  %3409 = vst [vmem:[%s6323_s18 + $0xe0] sm:$0xff] %v3377_v12  ;;  %v3723_v20 = vmul.f32 %v7701_v33, %v3686_v44  ;;  %v3824_v49 = vmul.f32 %v7708_v62, %v3787_v53  ;;  %v3347_v15 = vld [vmem:[%s6323_s18 + $0xf0] sm:$0xff]  ;;  %v3587_v37 = vld [vmem:[#allocation2 + $0x7a] sm:$0xff] }
 0x1e0   : > { %v7723_v16 = vld [vmem:[%s8782_s1 + $0x26] ss:$0 sm:$0xff]  ;;  %v3013_v8 = vadd.f32 %v2981_v18, %v2912_v1  ;;  %v3553_v9 = vadd.f32 %v3521_v35, %v3452_v59  ;;  %v3214_v42 = vadd.f32 %v3182_v21, %v3113_v0  ;;  %v3453_v43 = vmul.f32 %v7680_v4, %v3415_v34  ;;  %v3788_v36 = vld [vmem:[#allocation2 + $0x6c] sm:$0xff]  ;;  %v3688_v30 = vld [vmem:[#allocation2 + $0x7b] sm:$0xff] }
 0x1e1   : > { %v3378_v19 = vadd.f32 %v3346_v31, %v3314_v22  ;;  %v3522_v13 = vmul.f32 %v7688_v2, %v3485_v46  ;;  %v3925_v38 = vmul.f32 %v7718_v11, %v3888_v7  ;;  %v4026_v52 = vmul.f32 %v7723_v16, %v3989_v39  ;;  %v3889_v3 = vld [vmem:[#allocation2 + $0x6d] sm:$0xff]  ;;  %v3789_v56 = vld [vmem:[#allocation2 + $0x7c] sm:$0xff] }
 0x1e2   : > { %v3114_v14 = vadd.f32 %v3082_v6, %v3013_v8  ;;  %v3654_v55 = vadd.f32 %v3622_v17, %v3553_v9  ;;  %v3315_v10 = vadd.f32 %v3283_v54, %v3214_v42  ;;  %v3623_v32 = vmul.f32 %v7696_v45, %v3586_v25  ;;  %v3990_v40 = vld [vmem:[#allocation2 + $0x6e] sm:$0xff]  ;;  %v3348_v58 = vld [vmem:[%s6323_s18 + $0xf8] sm:$0xff]  ;;  %v3417_v61 = vld [vmem:[#allocation2 + $0x80] sm:$0xff] }
 0x1e3   : > { %3410 = vst [vmem:[%s6323_s18 + $0xe8] sm:$0xff] %v3378_v19  ;;  %v3554_v23 = vadd.f32 %v3522_v13, %v3453_v43  ;;  %v3724_v48 = vmul.f32 %v7701_v33, %v3687_v63  ;;  %v3825_v51 = vmul.f32 %v7708_v62, %v3788_v36  ;;  %v3454_v27 = vmul.f32 %v7680_v4, %v3416_v29  ;;  %v3487_v18 = vld [vmem:[#allocation2 + $0x81] sm:$0xff]  ;;  %v3418_v17 = vld [vmem:[#allocation2 + $0x90] sm:$0xff] }
 0x1e4   : > { %v3215_v50 = vadd.f32 %v3183_v41, %v3114_v14  ;;  %v3755_v26 = vadd.f32 %v3723_v20, %v3654_v55  ;;  %v3379_v21 = vadd.f32 %v3347_v15, %v3315_v10  ;;  %v3926_v57 = vmul.f32 %v7718_v11, %v3889_v3  ;;  %v3890_v59 = vld [vmem:[#allocation2 + $0x7d] sm:$0xff]  ;;  %v3891_v25 = vld [vmem:[#allocation2 + $0x85] sm:$0xff]  ;;  %v3488_v63 = vld [vmem:[#allocation2 + $0x91] sm:$0xff] }
 0x1e5   : > { %v3655_v47 = vadd.f32 %v3623_v32, %v3554_v23  ;;  %v3523_v54 = vmul.f32 %v7688_v2, %v3486_v60  ;;  %v4027_v28 = vmul.f32 %v7723_v16, %v3990_v40  ;;  %v3624_v6 = vmul.f32 %v7696_v45, %v3587_v37  ;;  %v3991_v53 = vld [vmem:[#allocation2 + $0x7e] sm:$0xff]  ;;  %v3992_v36 = vld [vmem:[#allocation2 + $0x86] sm:$0xff]  ;;  %v3589_v29 = vld [vmem:[#allocation2 + $0x92] sm:$0xff] }
 0x1e6   : > { %v3316_v44 = vadd.f32 %v3284_v24, %v3215_v50  ;;  %v3856_v5 = vadd.f32 %v3824_v49, %v3755_v26  ;;  %3411 = vst [vmem:[%s6323_s18 + $0xf0] sm:$0xff] %v3379_v21  ;;  %v3725_v31 = vmul.f32 %v7701_v33, %v3688_v30  ;;  %v3826_v1 = vmul.f32 %v7708_v62, %v3789_v56  ;;  %v3588_v41 = vld [vmem:[#allocation2 + $0x82] sm:$0xff]  ;;  %v3690_v3 = vld [vmem:[#allocation2 + $0x93] sm:$0xff] }
 0x1e7   : > { %v3756_v7 = vadd.f32 %v3724_v48, %v3655_v47  ;;  %v3555_v12 = vadd.f32 %v3523_v54, %v3454_v27  ;;  %v3689_v35 = vld [vmem:[#allocation2 + $0x83] sm:$0xff]  ;;  %v3455_v22 = vmul.f32 %v7680_v4, %v3417_v61  ;;  %v3524_v0 = vmul.f32 %v7688_v2, %v3487_v18  ;;  %v3791_v60 = vld [vmem:[#allocation2 + $0x94] sm:$0xff] }
 0x1e8   : > { %v3380_v34 = vadd.f32 %v3348_v58, %v3316_v44  ;;  %v3957_v46 = vadd.f32 %v3925_v38, %v3856_v5  ;;  %v3790_v24 = vld [vmem:[#allocation2 + $0x84] sm:$0xff]  ;;  %v3927_v20 = vmul.f32 %v7718_v11, %v3890_v59  ;;  %v4028_v49 = vmul.f32 %v7723_v16, %v3991_v53  ;;  %v3419_v40 = vld [vmem:[#allocation2 + $0x98] sm:$0xff]  ;;  %v4092_v53 = vld [vmem:[%s6323_s18 + $0x10] sm:$0xff] }
 0x1e9   : > { %v4090_v39 = vld [vmem:[%s6323_s18] sm:$0xff]  ;;  %v3857_v8 = vadd.f32 %v3825_v51, %v3756_v7  ;;  %v3656_v9 = vadd.f32 %v3624_v6, %v3555_v12  ;;  %v3556_v42 = vadd.f32 %v3524_v0, %v3455_v22  ;;  %v3625_v43 = vmul.f32 %v7696_v45, %v3588_v41  ;;  %v4091_v23 = vld [vmem:[%s6323_s18 + $0x8] sm:$0xff]  ;;  %v3892_v30 = vld [vmem:[#allocation2 + $0x95] sm:$0xff] }
 0x1ea   : > { %3412 = vst [vmem:[%s6323_s18 + $0xf8] sm:$0xff] %v3380_v34  ;;  %v4058_v19 = vadd.f32 %v4026_v52, %v3957_v46  ;;  %v3726_v13 = vmul.f32 %v7701_v33, %v3689_v35  ;;  %v3827_v55 = vmul.f32 %v7708_v62, %v3790_v24  ;;  %v3456_v38 = vmul.f32 %v7680_v4, %v3418_v17  ;;  %v3489_v37 = vld [vmem:[#allocation2 + $0x99] sm:$0xff]  ;;  %v3420_v59 = vld [vmem:[#allocation2 + $0xa8] sm:$0xff] }
 0x1eb   : > { %v3958_v15 = vadd.f32 %v3926_v57, %v3857_v8  ;;  %v3757_v14 = vadd.f32 %v3725_v31, %v3656_v9  ;;  %v3657_v32 = vadd.f32 %v3625_v43, %v3556_v42  ;;  %v3928_v52 = vmul.f32 %v7718_v11, %v3891_v25  ;;  %v3993_v56 = vld [vmem:[#allocation2 + $0x96] sm:$0xff]  ;;  %v3490_v35 = vld [vmem:[#allocation2 + $0xa9] sm:$0xff]  ;;  %v3994_v24 = vld [vmem:[#allocation2 + $0x9e] sm:$0xff] }
 0x1ec   : > { %v4122_v10 = vadd.f32 %v4090_v39, %v4058_v19  ;;  %v3525_v48 = vmul.f32 %v7688_v2, %v3488_v63  ;;  %v4029_v51 = vmul.f32 %v7723_v16, %v3992_v36  ;;  %v3626_v27 = vmul.f32 %v7696_v45, %v3589_v29  ;;  %v3590_v54 = vld [vmem:[#allocation2 + $0x9a] sm:$0xff]  ;;  %v3591_v17 = vld [vmem:[#allocation2 + $0xaa] sm:$0xff] }
 0x1ed   : > { %v4059_v50 = vadd.f32 %v4027_v28, %v3958_v15  ;;  %v3858_v26 = vadd.f32 %v3826_v1, %v3757_v14  ;;  %v3758_v21 = vadd.f32 %v3726_v13, %v3657_v32  ;;  %v3727_v47 = vmul.f32 %v7701_v33, %v3690_v3  ;;  %v3691_v61 = vld [vmem:[#allocation2 + $0x9b] sm:$0xff]  ;;  %v3692_v25 = vld [vmem:[#allocation2 + $0xab] sm:$0xff] }
 0x1ee   : > { %4154 = vst [vmem:[%s6323_s18] sm:$0xff] %v4122_v10  ;;  %v3557_v58 = vadd.f32 %v3525_v48, %v3456_v38  ;;  %v3828_v57 = vmul.f32 %v7708_v62, %v3791_v60  ;;  %v3457_v5 = vmul.f32 %v7680_v4, %v3419_v40  ;;  %v3526_v28 = vmul.f32 %v7688_v2, %v3489_v37  ;;  %v3792_v6 = vld [vmem:[#allocation2 + $0x9c] sm:$0xff]  ;;  %v3793_v63 = vld [vmem:[#allocation2 + $0xac] sm:$0xff] }
 0x1ef   : > { %v4123_v18 = vadd.f32 %v4091_v23, %v4059_v50  ;;  %v3959_v44 = vadd.f32 %v3927_v20, %v3858_v26  ;;  %v3859_v7 = vadd.f32 %v3827_v55, %v3758_v21  ;;  %v3929_v31 = vmul.f32 %v7718_v11, %v3892_v30  ;;  %v3893_v41 = vld [vmem:[#allocation2 + $0x9d] sm:$0xff]  ;;  %v3421_v36 = vld [vmem:[#allocation2 + $0xb0] sm:$0xff] }
 0x1f0   : > { %v3658_v12 = vadd.f32 %v3626_v27, %v3557_v58  ;;  %v4030_v1 = vmul.f32 %v7723_v16, %v3993_v56  ;;  %v3558_v46 = vadd.f32 %v3526_v28, %v3457_v5  ;;  %v3627_v22 = vmul.f32 %v7696_v45, %v3590_v54  ;;  %v4093_v42 = vld [vmem:[%s6323_s18 + $0x18] sm:$0xff]  ;;  %v3894_v3 = vld [vmem:[#allocation2 + $0xad] sm:$0xff]  ;;  %v3422_v30 = vld [vmem:[#allocation2 + $0xc0] sm:$0xff] }
 0x1f1   : > { %4155 = vst [vmem:[%s6323_s18 + $0x8] sm:$0xff] %v4123_v18  ;;  %v4060_v34 = vadd.f32 %v4028_v49, %v3959_v44  ;;  %v3728_v0 = vmul.f32 %v7701_v33, %v3691_v61  ;;  %v3960_v39 = vadd.f32 %v3928_v52, %v3859_v7  ;;  %v3829_v9 = vmul.f32 %v7708_v62, %v3792_v6  ;;  %v3491_v29 = vld [vmem:[#allocation2 + $0xb1] sm:$0xff]  ;;  %v4094_v56 = vld [vmem:[%s6323_s18 + $0x20] sm:$0xff] }
 0x1f2   : > { %v3759_v8 = vadd.f32 %v3727_v47, %v3658_v12  ;;  %v3458_v20 = vmul.f32 %v7680_v4, %v3420_v59  ;;  %v3659_v43 = vadd.f32 %v3627_v22, %v3558_v46  ;;  %v3930_v49 = vmul.f32 %v7718_v11, %v3893_v41  ;;  %v3995_v60 = vld [vmem:[#allocation2 + $0xae] sm:$0xff]  ;;  %v3492_v61 = vld [vmem:[#allocation2 + $0xc1] sm:$0xff]  ;;  %v3996_v6 = vld [vmem:[#allocation2 + $0xb6] sm:$0xff] }
 0x1f3   : > { %v4124_v19 = vadd.f32 %v4092_v53, %v4060_v34  ;;  %v3527_v13 = vmul.f32 %v7688_v2, %v3490_v35  ;;  %v4061_v15 = vadd.f32 %v4029_v51, %v3960_v39  ;;  %v4031_v55 = vmul.f32 %v7723_v16, %v3994_v24  ;;  %v3592_v48 = vld [vmem:[#allocation2 + $0xb2] sm:$0xff]  ;;  %v3593_v59 = vld [vmem:[#allocation2 + $0xc2] sm:$0xff] }
 0x1f4   : > { %v3860_v14 = vadd.f32 %v3828_v57, %v3759_v8  ;;  %v3628_v38 = vmul.f32 %v7696_v45, %v3591_v17  ;;  %v3760_v10 = vadd.f32 %v3728_v0, %v3659_v43  ;;  %v3729_v32 = vmul.f32 %v7701_v33, %v3692_v25  ;;  %v3693_v40 = vld [vmem:[#allocation2 + $0xb3] sm:$0xff]  ;;  %v3694_v41 = vld [vmem:[#allocation2 + $0xc3] sm:$0xff] }
 0x1f5   : > { %4156 = vst [vmem:[%s6323_s18 + $0x10] sm:$0xff] %v4124_v19  ;;  %v3559_v23 = vadd.f32 %v3527_v13, %v3458_v20  ;;  %v3830_v52 = vmul.f32 %v7708_v62, %v3793_v63  ;;  %v4125_v37 = vadd.f32 %v4093_v42, %v4061_v15  ;;  %v3459_v26 = vmul.f32 %v7680_v4, %v3421_v36  ;;  %v3794_v27 = vld [vmem:[#allocation2 + $0xb4] sm:$0xff]  ;;  %v3795_v35 = vld [vmem:[#allocation2 + $0xc4] sm:$0xff] }
 0x1f6   : > { %v3961_v50 = vadd.f32 %v3929_v31, %v3860_v14  ;;  %v3528_v51 = vmul.f32 %v7688_v2, %v3491_v29  ;;  %v3861_v21 = vadd.f32 %v3829_v9, %v3760_v10  ;;  %v3931_v47 = vmul.f32 %v7718_v11, %v3894_v3  ;;  %v3895_v54 = vld [vmem:[#allocation2 + $0xb5] sm:$0xff]  ;;  %v4095_v46 = vld [vmem:[%s6323_s18 + $0x28] sm:$0xff] }
 0x1f7   : > { %v3660_v58 = vadd.f32 %v3628_v38, %v3559_v23  ;;  %v4032_v57 = vmul.f32 %v7723_v16, %v3995_v60  ;;  %4157 = vst [vmem:[%s6323_s18 + $0x18] sm:$0xff] %v4125_v37  ;;  %v3629_v5 = vmul.f32 %v7696_v45, %v3592_v48  ;;  %v3730_v28 = vmul.f32 %v7701_v33, %v3693_v40  ;;  %v3423_v24 = vld [vmem:[#allocation2 + $0xc8] sm:$0xff]  ;;  %v3424_v3 = vld [vmem:[#allocation2 + $0xd8] sm:$0xff]  ;;  %v4096_v60 = vld [vmem:[%s6323_s18 + $0x30] sm:$0xff] }
 0x1f8   : > { %v4062_v18 = vadd.f32 %v4030_v1, %v3961_v50  ;;  %v3560_v44 = vadd.f32 %v3528_v51, %v3459_v26  ;;  %v3962_v53 = vadd.f32 %v3930_v49, %v3861_v21  ;;  %v3831_v12 = vmul.f32 %v7708_v62, %v3794_v27  ;;  %v3493_v17 = vld [vmem:[#allocation2 + $0xc9] sm:$0xff]  ;;  %v3494_v40 = vld [vmem:[#allocation2 + $0xd9] sm:$0xff] }
 0x1f9   : > { %v3761_v7 = vadd.f32 %v3729_v32, %v3660_v58  ;;  %v3460_v31 = vmul.f32 %v7680_v4, %v3422_v30  ;;  %v3932_v1 = vmul.f32 %v7718_v11, %v3895_v54  ;;  %v3529_v0 = vmul.f32 %v7688_v2, %v3492_v61  ;;  %v3896_v25 = vld [vmem:[#allocation2 + $0xc5] sm:$0xff]  ;;  %v3897_v48 = vld [vmem:[#allocation2 + $0xcd] sm:$0xff]  ;;  %v3595_v30 = vld [vmem:[#allocation2 + $0xda] sm:$0xff] }
 0x1fa   : > { %v4126_v34 = vadd.f32 %v4094_v56, %v4062_v18  ;;  %v3661_v22 = vadd.f32 %v3629_v5, %v3560_v44  ;;  %v4063_v39 = vadd.f32 %v4031_v55, %v3962_v53  ;;  %v4033_v9 = vmul.f32 %v7723_v16, %v3996_v6  ;;  %v3997_v63 = vld [vmem:[#allocation2 + $0xc6] sm:$0xff]  ;;  %v3998_v27 = vld [vmem:[#allocation2 + $0xce] sm:$0xff]  ;;  %v3696_v54 = vld [vmem:[#allocation2 + $0xdb] sm:$0xff] }
 0x1fb   : > { %v3862_v8 = vadd.f32 %v3830_v52, %v3761_v7  ;;  %v3630_v20 = vmul.f32 %v7696_v45, %v3593_v59  ;;  %v3561_v42 = vadd.f32 %v3529_v0, %v3460_v31  ;;  %v3731_v43 = vmul.f32 %v7701_v33, %v3694_v41  ;;  %v3594_v13 = vld [vmem:[#allocation2 + $0xca] sm:$0xff]  ;;  %v3797_v61 = vld [vmem:[#allocation2 + $0xdc] sm:$0xff] }
 0x1fc   : > { %4158 = vst [vmem:[%s6323_s18 + $0x20] sm:$0xff] %v4126_v34  ;;  %v3762_v19 = vadd.f32 %v3730_v28, %v3661_v22  ;;  %v3832_v49 = vmul.f32 %v7708_v62, %v3795_v35  ;;  %v3695_v36 = vld [vmem:[#allocation2 + $0xcb] sm:$0xff]  ;;  %v4127_v29 = vadd.f32 %v4095_v46, %v4063_v39  ;;  %v3461_v14 = vmul.f32 %v7680_v4, %v3423_v24  ;;  %v4097_v44 = vld [vmem:[%s6323_s18 + $0x38] sm:$0xff]  ;;  %v3425_v6 = vld [vmem:[#allocation2 + $0xe0] sm:$0xff] }
 0x1fd   : > { %v3963_v15 = vadd.f32 %v3931_v47, %v3862_v8  ;;  %v3530_v55 = vmul.f32 %v7688_v2, %v3493_v17  ;;  %v3796_v38 = vld [vmem:[#allocation2 + $0xcc] sm:$0xff]  ;;  %v3662_v23 = vadd.f32 %v3630_v20, %v3561_v42  ;;  %v3933_v32 = vmul.f32 %v7718_v11, %v3896_v25  ;;  %v3495_v59 = vld [vmem:[#allocation2 + $0xe1] sm:$0xff] }
 0x1fe   : > { %v3863_v10 = vadd.f32 %v3831_v12, %v3762_v19  ;;  %v4034_v52 = vmul.f32 %v7723_v16, %v3997_v63  ;;  %4159 = vst [vmem:[%s6323_s18 + $0x28] sm:$0xff] %v4127_v29  ;;  %v3631_v26 = vmul.f32 %v7696_v45, %v3594_v13  ;;  %v3732_v51 = vmul.f32 %v7701_v33, %v3695_v36  ;;  %v3898_v41 = vld [vmem:[#allocation2 + $0xdd] sm:$0xff]  ;;  %v3426_v25 = vld [vmem:[#allocation2 + $0xf0] sm:$0xff]  ;;  %v3899_v13 = vld [vmem:[#allocation2 + $0xe5] sm:$0xff] }
 0x1ff   : > { %v4064_v37 = vadd.f32 %v4032_v57, %v3963_v15  ;;  %v3562_v50 = vadd.f32 %v3530_v55, %v3461_v14  ;;  %v3763_v21 = vadd.f32 %v3731_v43, %v3662_v23  ;;  %v3833_v58 = vmul.f32 %v7708_v62, %v3796_v38  ;;  %v3999_v35 = vld [vmem:[#allocation2 + $0xde] sm:$0xff]  ;;  %v3496_v36 = vld [vmem:[#allocation2 + $0xf1] sm:$0xff]  ;;  %v4000_v38 = vld [vmem:[#allocation2 + $0xe6] sm:$0xff] }
 0x200   : > { %v3964_v56 = vadd.f32 %v3932_v1, %v3863_v10  ;;  %v3462_v47 = vmul.f32 %v7680_v4, %v3424_v3  ;;  %v3934_v57 = vmul.f32 %v7718_v11, %v3897_v48  ;;  %v3531_v28 = vmul.f32 %v7688_v2, %v3494_v40  ;;  %v3596_v0 = vld [vmem:[#allocation2 + $0xe2] sm:$0xff]  ;;  %v3597_v3 = vld [vmem:[#allocation2 + $0xf2] sm:$0xff] }
 0x201   : > { %v4128_v18 = vadd.f32 %v4096_v60, %v4064_v37  ;;  %v3663_v5 = vadd.f32 %v3631_v26, %v3562_v50  ;;  %v3864_v7 = vadd.f32 %v3832_v49, %v3763_v21  ;;  %v4035_v12 = vmul.f32 %v7723_v16, %v3998_v27  ;;  %v3697_v24 = vld [vmem:[#allocation2 + $0xe3] sm:$0xff]  ;;  %v3698_v48 = vld [vmem:[#allocation2 + $0xf3] sm:$0xff] }
 0x202   : > { %v4065_v53 = vadd.f32 %v4033_v9, %v3964_v56  ;;  %v3632_v31 = vmul.f32 %v7696_v45, %v3595_v30  ;;  %v3563_v46 = vadd.f32 %v3531_v28, %v3462_v47  ;;  %v3733_v22 = vmul.f32 %v7701_v33, %v3696_v54  ;;  %v3798_v20 = vld [vmem:[#allocation2 + $0xe4] sm:$0xff]  ;;  %v3799_v40 = vld [vmem:[#allocation2 + $0xf4] sm:$0xff] }
 0x203   : > { %4160 = vst [vmem:[%s6323_s18 + $0x30] sm:$0xff] %v4128_v18  ;;  %v3764_v34 = vadd.f32 %v3732_v51, %v3663_v5  ;;  %v3834_v1 = vmul.f32 %v7708_v62, %v3797_v61  ;;  %v3965_v39 = vadd.f32 %v3933_v32, %v3864_v7  ;;  %v3463_v8 = vmul.f32 %v7680_v4, %v3425_v6  ;;  %v4098_v63 = vld [vmem:[%s6323_s18 + $0x40] sm:$0xff]  ;;  %v4099_v50 = vld [vmem:[%s6323_s18 + $0x48] sm:$0xff]  ;;  %v3427_v27 = vld [vmem:[#allocation2 + $0xf8] sm:$0xff] }
 0x204   : > { %v4129_v17 = vadd.f32 %v4097_v44, %v4065_v53  ;;  %v3532_v9 = vmul.f32 %v7688_v2, %v3495_v59  ;;  %v3664_v42 = vadd.f32 %v3632_v31, %v3563_v46  ;;  %v3935_v43 = vmul.f32 %v7718_v11, %v3898_v41  ;;  %v3497_v30 = vld [vmem:[#allocation2 + $0xf9] sm:$0xff]  ;;  %v3428_v41 = vld [vmem:[#allocation2 + $0x108] sm:$0xff] }
 0x205   : > { %v3865_v19 = vadd.f32 %v3833_v58, %v3764_v34  ;;  %v4036_v49 = vmul.f32 %v7723_v16, %v3999_v35  ;;  %v4066_v29 = vadd.f32 %v4034_v52, %v3965_v39  ;;  %v3633_v14 = vmul.f32 %v7696_v45, %v3596_v0  ;;  %v3900_v54 = vld [vmem:[#allocation2 + $0xf5] sm:$0xff]  ;;  %v3901_v0 = vld [vmem:[#allocation2 + $0xfd] sm:$0xff] }
 0x206   : > { %4161 = vst [vmem:[%s6323_s18 + $0x38] sm:$0xff] %v4129_v17  ;;  %v3564_v15 = vadd.f32 %v3532_v9, %v3463_v8  ;;  %v3734_v55 = vmul.f32 %v7701_v33, %v3697_v24  ;;  %v3765_v10 = vadd.f32 %v3733_v22, %v3664_v42  ;;  %v3835_v23 = vmul.f32 %v7708_v62, %v3798_v20  ;;  %v4001_v61 = vld [vmem:[#allocation2 + $0xf6] sm:$0xff]  ;;  %v3498_v24 = vld [vmem:[#allocation2 + $0x109] sm:$0xff]  ;;  %v4002_v20 = vld [vmem:[#allocation2 + $0xfe] sm:$0xff] }
 0x207   : > { %v3966_v60 = vadd.f32 %v3934_v57, %v3865_v19  ;;  %v3464_v32 = vmul.f32 %v7680_v4, %v3426_v25  ;;  %v4130_v37 = vadd.f32 %v4098_v63, %v4066_v29  ;;  %v3936_v52 = vmul.f32 %v7718_v11, %v3899_v13  ;;  %v3598_v28 = vld [vmem:[#allocation2 + $0xfa] sm:$0xff]  ;;  %v4100_v35 = vld [vmem:[%s6323_s18 + $0x50] sm:$0xff] }
 0x208   : > { %v3665_v26 = vadd.f32 %v3633_v14, %v3564_v15  ;;  %v3533_v51 = vmul.f32 %v7688_v2, %v3496_v36  ;;  %v3866_v21 = vadd.f32 %v3834_v1, %v3765_v10  ;;  %v4037_v58 = vmul.f32 %v7723_v16, %v4000_v38  ;;  %v3699_v6 = vld [vmem:[#allocation2 + $0xfb] sm:$0xff]  ;;  %v3599_v25 = vld [vmem:[#allocation2 + $0x10a] sm:$0xff] }
 0x209   : > { %v4067_v56 = vadd.f32 %v4035_v12, %v3966_v60  ;;  %v3634_v47 = vmul.f32 %v7696_v45, %v3597_v3  ;;  %4162 = vst [vmem:[%s6323_s18 + $0x40] sm:$0xff] %v4130_v37  ;;  %v3735_v5 = vmul.f32 %v7701_v33, %v3698_v48  ;;  %v3836_v57 = vmul.f32 %v7708_v62, %v3799_v40  ;;  %v3800_v31 = vld [vmem:[#allocation2 + $0xfc] sm:$0xff]  ;;  %v3700_v13 = vld [vmem:[#allocation2 + $0x10b] sm:$0xff] }
 0x20a   : > { %v3766_v18 = vadd.f32 %v3734_v55, %v3665_v26  ;;  %v3565_v44 = vadd.f32 %v3533_v51, %v3464_v32  ;;  %v3967_v53 = vadd.f32 %v3935_v43, %v3866_v21  ;;  %v3465_v7 = vmul.f32 %v7680_v4, %v3427_v27  ;;  %v3801_v36 = vld [vmem:[#allocation2 + $0x10c] sm:$0xff]  ;;  %v4101_v15 = vld [vmem:[%s6323_s18 + $0x58] sm:$0xff] }
 0x20b   : > { %v4131_v59 = vadd.f32 %v4099_v50, %v4067_v56  ;;  %v3534_v12 = vmul.f32 %v7688_v2, %v3497_v30  ;;  %v3937_v22 = vmul.f32 %v7718_v11, %v3900_v54  ;;  %v4038_v1 = vmul.f32 %v7723_v16, %v4001_v61  ;;  %v3429_v38 = vld [vmem:[#allocation2 + $0x110] sm:$0xff]  ;;  %v3430_v54 = vld [vmem:[#allocation2 + $0x120] sm:$0xff] }
 0x20c   : > { %v3867_v34 = vadd.f32 %v3835_v23, %v3766_v18  ;;  %v3666_v46 = vadd.f32 %v3634_v47, %v3565_v44  ;;  %v4068_v17 = vadd.f32 %v4036_v49, %v3967_v53  ;;  %v3635_v8 = vmul.f32 %v7696_v45, %v3598_v28  ;;  %v3499_v3 = vld [vmem:[#allocation2 + $0x111] sm:$0xff]  ;;  %v4102_v61 = vld [vmem:[%s6323_s18 + $0x60] sm:$0xff] }
 0x20d   : > { %4163 = vst [vmem:[%s6323_s18 + $0x48] sm:$0xff] %v4131_v59  ;;  %v3566_v39 = vadd.f32 %v3534_v12, %v3465_v7  ;;  %v3736_v9 = vmul.f32 %v7701_v33, %v3699_v6  ;;  %v3837_v42 = vmul.f32 %v7708_v62, %v3800_v31  ;;  %v3466_v43 = vmul.f32 %v7680_v4, %v3428_v41  ;;  %v3902_v48 = vld [vmem:[#allocation2 + $0x10d] sm:$0xff]  ;;  %v3903_v28 = vld [vmem:[#allocation2 + $0x115] sm:$0xff]  ;;  %v3500_v6 = vld [vmem:[#allocation2 + $0x121] sm:$0xff] }
 0x20e   : > { %v3968_v63 = vadd.f32 %v3936_v52, %v3867_v34  ;;  %v3767_v19 = vadd.f32 %v3735_v5, %v3666_v46  ;;  %v4132_v29 = vadd.f32 %v4100_v35, %v4068_v17  ;;  %v3938_v49 = vmul.f32 %v7718_v11, %v3901_v0  ;;  %v4003_v40 = vld [vmem:[#allocation2 + $0x10e] sm:$0xff]  ;;  %v4004_v31 = vld [vmem:[#allocation2 + $0x116] sm:$0xff]  ;;  %v3601_v41 = vld [vmem:[#allocation2 + $0x122] sm:$0xff] }
 0x20f   : > { %v3667_v14 = vadd.f32 %v3635_v8, %v3566_v39  ;;  %v3535_v55 = vmul.f32 %v7688_v2, %v3498_v24  ;;  %v4039_v23 = vmul.f32 %v7723_v16, %v4002_v20  ;;  %v3636_v32 = vmul.f32 %v7696_v45, %v3599_v25  ;;  %v3600_v51 = vld [vmem:[#allocation2 + $0x112] sm:$0xff]  ;;  %v3702_v0 = vld [vmem:[#allocation2 + $0x123] sm:$0xff] }
 0x210   : > { %v4069_v60 = vadd.f32 %v4037_v58, %v3968_v63  ;;  %v3868_v10 = vadd.f32 %v3836_v57, %v3767_v19  ;;  %4164 = vst [vmem:[%s6323_s18 + $0x50] sm:$0xff] %v4132_v29  ;;  %v3737_v26 = vmul.f32 %v7701_v33, %v3700_v13  ;;  %v3838_v52 = vmul.f32 %v7708_v62, %v3801_v36  ;;  %v3701_v27 = vld [vmem:[#allocation2 + $0x113] sm:$0xff]  ;;  %v3803_v24 = vld [vmem:[#allocation2 + $0x124] sm:$0xff] }
 0x211   : > { %v3768_v37 = vadd.f32 %v3736_v9, %v3667_v14  ;;  %v3567_v50 = vadd.f32 %v3535_v55, %v3466_v43  ;;  %v3467_v21 = vmul.f32 %v7680_v4, %v3429_v38  ;;  %v3536_v58 = vmul.f32 %v7688_v2, %v3499_v3  ;;  %v3802_v47 = vld [vmem:[#allocation2 + $0x114] sm:$0xff]  ;;  %v4103_v39 = vld [vmem:[%s6323_s18 + $0x68] sm:$0xff] }
 0x212   : > { %v4133_v30 = vadd.f32 %v4101_v15, %v4069_v60  ;;  %v3969_v56 = vadd.f32 %v3937_v22, %v3868_v10  ;;  %v3939_v5 = vmul.f32 %v7718_v11, %v3902_v48  ;;  %v4040_v57 = vmul.f32 %v7723_v16, %v4003_v40  ;;  %v3431_v20 = vld [vmem:[#allocation2 + $0x128] sm:$0xff]  ;;  %v3432_v48 = vld [vmem:[#allocation2 + $0x138] sm:$0xff]  ;;  %v4104_v40 = vld [vmem:[%s6323_s18 + $0x70] sm:$0xff] }
 0x213   : > { %v3869_v18 = vadd.f32 %v3837_v42, %v3768_v37  ;;  %v3668_v44 = vadd.f32 %v3636_v32, %v3567_v50  ;;  %v3568_v53 = vadd.f32 %v3536_v58, %v3467_v21  ;;  %v3637_v7 = vmul.f32 %v7696_v45, %v3600_v51  ;;  %v3501_v25 = vld [vmem:[#allocation2 + $0x129] sm:$0xff] }
 0x214   : > { %4165 = vst [vmem:[%s6323_s18 + $0x58] sm:$0xff] %v4133_v30  ;;  %v4070_v59 = vadd.f32 %v4038_v1, %v3969_v56  ;;  %v3738_v12 = vmul.f32 %v7701_v33, %v3701_v27  ;;  %v3839_v46 = vmul.f32 %v7708_v62, %v3802_v47  ;;  %v3468_v22 = vmul.f32 %v7680_v4, %v3430_v54  ;;  %v3904_v13 = vld [vmem:[#allocation2 + $0x125] sm:$0xff]  ;;  %v3905_v51 = vld [vmem:[#allocation2 + $0x12d] sm:$0xff]  ;;  %v3502_v27 = vld [vmem:[#allocation2 + $0x139] sm:$0xff] }
 0x215   : > { %v3970_v35 = vadd.f32 %v3938_v49, %v3869_v18  ;;  %v3769_v34 = vadd.f32 %v3737_v26, %v3668_v44  ;;  %v3669_v8 = vadd.f32 %v3637_v7, %v3568_v53  ;;  %v3940_v1 = vmul.f32 %v7718_v11, %v3903_v28  ;;  %v4005_v36 = vld [vmem:[#allocation2 + $0x126] sm:$0xff]  ;;  %v4006_v47 = vld [vmem:[#allocation2 + $0x12e] sm:$0xff]  ;;  %v3603_v54 = vld [vmem:[#allocation2 + $0x13a] sm:$0xff] }
 0x216   : > { %v4134_v17 = vadd.f32 %v4102_v61, %v4070_v59  ;;  %v3537_v9 = vmul.f32 %v7688_v2, %v3500_v6  ;;  %v4041_v42 = vmul.f32 %v7723_v16, %v4004_v31  ;;  %v3638_v43 = vmul.f32 %v7696_v45, %v3601_v41  ;;  %v3602_v55 = vld [vmem:[#allocation2 + $0x12a] sm:$0xff]  ;;  %v3704_v28 = vld [vmem:[#allocation2 + $0x13b] sm:$0xff] }
 0x217   : > { %v4071_v63 = vadd.f32 %v4039_v23, %v3970_v35  ;;  %v3870_v19 = vadd.f32 %v3838_v52, %v3769_v34  ;;  %v3770_v29 = vadd.f32 %v3738_v12, %v3669_v8  ;;  %v3739_v14 = vmul.f32 %v7701_v33, %v3702_v0  ;;  %v3703_v38 = vld [vmem:[#allocation2 + $0x12b] sm:$0xff]  ;;  %v3805_v6 = vld [vmem:[#allocation2 + $0x13c] sm:$0xff] }
 0x218   : > { %4166 = vst [vmem:[%s6323_s18 + $0x60] sm:$0xff] %v4134_v17  ;;  %v3569_v15 = vadd.f32 %v3537_v9, %v3468_v22  ;;  %v3840_v49 = vmul.f32 %v7708_v62, %v3803_v24  ;;  %v3469_v10 = vmul.f32 %v7680_v4, %v3431_v20  ;;  %v3538_v23 = vmul.f32 %v7688_v2, %v3501_v25  ;;  %v3804_v32 = vld [vmem:[#allocation2 + $0x12c] sm:$0xff]  ;;  %v4105_v53 = vld [vmem:[%s6323_s18 + $0x78] sm:$0xff]  ;;  %v3433_v31 = vld [vmem:[#allocation2 + $0x140] sm:$0xff] }
 0x219   : > { %v4135_v3 = vadd.f32 %v4103_v39, %v4071_v63  ;;  %v3971_v60 = vadd.f32 %v3939_v5, %v3870_v19  ;;  %v3871_v37 = vadd.f32 %v3839_v46, %v3770_v29  ;;  %v3941_v26 = vmul.f32 %v7718_v11, %v3904_v13  ;;  %v3503_v41 = vld [vmem:[#allocation2 + $0x141] sm:$0xff]  ;;  %v3434_v13 = vld [vmem:[#allocation2 + $0x150] sm:$0xff] }
 0x21a   : > { %v3670_v50 = vadd.f32 %v3638_v43, %v3569_v15  ;;  %v4042_v52 = vmul.f32 %v7723_v16, %v4005_v36  ;;  %v3570_v56 = vadd.f32 %v3538_v23, %v3469_v10  ;;  %v3639_v21 = vmul.f32 %v7696_v45, %v3602_v55  ;;  %v3906_v0 = vld [vmem:[#allocation2 + $0x13d] sm:$0xff]  ;;  %v3907_v55 = vld [vmem:[#allocation2 + $0x145] sm:$0xff] }
 0x21b   : > { %4167 = vst [vmem:[%s6323_s18 + $0x68] sm:$0xff] %v4135_v3  ;;  %v4072_v30 = vadd.f32 %v4040_v57, %v3971_v60  ;;  %v3740_v58 = vmul.f32 %v7701_v33, %v3703_v38  ;;  %v3972_v61 = vadd.f32 %v3940_v1, %v3871_v37  ;;  %v3841_v44 = vmul.f32 %v7708_v62, %v3804_v32  ;;  %v4007_v24 = vld [vmem:[#allocation2 + $0x13e] sm:$0xff]  ;;  %v3504_v38 = vld [vmem:[#allocation2 + $0x151] sm:$0xff]  ;;  %v4008_v32 = vld [vmem:[#allocation2 + $0x146] sm:$0xff] }
 0x21c   : > { %v3771_v18 = vadd.f32 %v3739_v14, %v3670_v50  ;;  %v3470_v5 = vmul.f32 %v7680_v4, %v3432_v48  ;;  %v3671_v7 = vadd.f32 %v3639_v21, %v3570_v56  ;;  %v3942_v57 = vmul.f32 %v7718_v11, %v3905_v51  ;;  %v3604_v9 = vld [vmem:[#allocation2 + $0x142] sm:$0xff]  ;;  %v3605_v48 = vld [vmem:[#allocation2 + $0x152] sm:$0xff] }
 0x21d   : > { %v4136_v59 = vadd.f32 %v4104_v40, %v4072_v30  ;;  %v3539_v12 = vmul.f32 %v7688_v2, %v3502_v27  ;;  %v4073_v35 = vadd.f32 %v4041_v42, %v3972_v61  ;;  %v4043_v46 = vmul.f32 %v7723_v16, %v4006_v47  ;;  %v3705_v20 = vld [vmem:[#allocation2 + $0x143] sm:$0xff]  ;;  %v3706_v51 = vld [vmem:[#allocation2 + $0x153] sm:$0xff] }
 0x21e   : > { %v3872_v34 = vadd.f32 %v3840_v49, %v3771_v18  ;;  %v3640_v22 = vmul.f32 %v7696_v45, %v3603_v54  ;;  %v3772_v17 = vadd.f32 %v3740_v58, %v3671_v7  ;;  %v3741_v8 = vmul.f32 %v7701_v33, %v3704_v28  ;;  %v3806_v43 = vld [vmem:[#allocation2 + $0x144] sm:$0xff]  ;;  %v3807_v27 = vld [vmem:[#allocation2 + $0x154] sm:$0xff] }
 0x21f   : > { %4168 = vst [vmem:[%s6323_s18 + $0x70] sm:$0xff] %v4136_v59  ;;  %v3571_v39 = vadd.f32 %v3539_v12, %v3470_v5  ;;  %v3842_v1 = vmul.f32 %v7708_v62, %v3805_v6  ;;  %v4137_v25 = vadd.f32 %v4105_v53, %v4073_v35  ;;  %v3471_v19 = vmul.f32 %v7680_v4, %v3433_v31  ;;  %v4106_v36 = vld [vmem:[%s6323_s18 + $0x80] sm:$0xff]  ;;  %v4107_v56 = vld [vmem:[%s6323_s18 + $0x88] sm:$0xff]  ;;  %v3435_v47 = vld [vmem:[#allocation2 + $0x158] sm:$0xff] }
 0x220   : > { %v3973_v63 = vadd.f32 %v3941_v26, %v3872_v34  ;;  %v3540_v42 = vmul.f32 %v7688_v2, %v3503_v41  ;;  %v3873_v29 = vadd.f32 %v3841_v44, %v3772_v17  ;;  %v3943_v14 = vmul.f32 %v7718_v11, %v3906_v0  ;;  %v3505_v54 = vld [vmem:[#allocation2 + $0x159] sm:$0xff]  ;;  %v3436_v0 = vld [vmem:[#allocation2 + $0x168] sm:$0xff] }
 0x221   : > { %v3672_v15 = vadd.f32 %v3640_v22, %v3571_v39  ;;  %v4044_v49 = vmul.f32 %v7723_v16, %v4007_v24  ;;  %4169 = vst [vmem:[%s6323_s18 + $0x78] sm:$0xff] %v4137_v25  ;;  %v3641_v10 = vmul.f32 %v7696_v45, %v3604_v9  ;;  %v3742_v23 = vmul.f32 %v7701_v33, %v3705_v20  ;;  %v3908_v28 = vld [vmem:[#allocation2 + $0x155] sm:$0xff]  ;;  %v3909_v9 = vld [vmem:[#allocation2 + $0x15d] sm:$0xff]  ;;  %v3506_v20 = vld [vmem:[#allocation2 + $0x169] sm:$0xff] }
 0x222   : > { %v4074_v3 = vadd.f32 %v4042_v52, %v3973_v63  ;;  %v3572_v60 = vadd.f32 %v3540_v42, %v3471_v19  ;;  %v3974_v40 = vadd.f32 %v3942_v57, %v3873_v29  ;;  %v3843_v50 = vmul.f32 %v7708_v62, %v3806_v43  ;;  %v4009_v6 = vld [vmem:[#allocation2 + $0x156] sm:$0xff]  ;;  %v3607_v42 = vld [vmem:[#allocation2 + $0x16a] sm:$0xff]  ;;  %v7920_v29 = vld [vmem:[%s8782_s1 + $0x20] ss:$0 sm:$0xff] }
 0x223   : > { %v3773_v37 = vadd.f32 %v3741_v8, %v3672_v15  ;;  %v3472_v26 = vmul.f32 %v7680_v4, %v3434_v13  ;;  %v3944_v52 = vmul.f32 %v7718_v11, %v3907_v55  ;;  %v3541_v58 = vmul.f32 %v7688_v2, %v3504_v38  ;;  %v3606_v12 = vld [vmem:[#allocation2 + $0x15a] sm:$0xff]  ;;  %v4108_v24 = vld [vmem:[%s6323_s18 + $0x90] sm:$0xff] }
 0x224   : > { %v4138_v30 = vadd.f32 %v4106_v36, %v4074_v3  ;;  %v3673_v21 = vadd.f32 %v3641_v10, %v3572_v60  ;;  %v4075_v61 = vadd.f32 %v4043_v46, %v3974_v40  ;;  %v4045_v44 = vmul.f32 %v7723_v16, %v4008_v32  ;;  %v3707_v31 = vld [vmem:[#allocation2 + $0x15b] sm:$0xff]  ;;  %v3437_v60 = vld [vmem:[#allocation2 + $0x170] sm:$0xff] }
 0x225   : > { %v3874_v18 = vadd.f32 %v3842_v1, %v3773_v37  ;;  %v3642_v5 = vmul.f32 %v7696_v45, %v3605_v48  ;;  %v3573_v53 = vadd.f32 %v3541_v58, %v3472_v26  ;;  %v3743_v7 = vmul.f32 %v7701_v33, %v3706_v51  ;;  %v3808_v22 = vld [vmem:[#allocation2 + $0x15c] sm:$0xff]  ;;  %v3507_v10 = vld [vmem:[#allocation2 + $0x171] sm:$0xff] }
 0x226   : > { %4170 = vst [vmem:[%s6323_s18 + $0x80] sm:$0xff] %v4138_v30  ;;  %v3774_v59 = vadd.f32 %v3742_v23, %v3673_v21  ;;  %v3844_v57 = vmul.f32 %v7708_v62, %v3807_v27  ;;  %v4139_v41 = vadd.f32 %v4107_v56, %v4075_v61  ;;  %v3473_v34 = vmul.f32 %v7680_v4, %v3435_v47  ;;  %v7928_v3 = vld [vmem:[%s8782_s1 + $0x21] ss:$0 sm:$0xff]  ;;  %v7935_v40 = vld [vmem:[%s8782_s1 + $0x22] ss:$0 sm:$0xff]  ;;  %v3910_v37 = vld [vmem:[#allocation2 + $0x16d] sm:$0xff] }
 0x227   : > { %v3975_v35 = vadd.f32 %v3943_v14, %v3874_v18  ;;  %v3542_v46 = vmul.f32 %v7688_v2, %v3505_v54  ;;  %v3674_v39 = vadd.f32 %v3642_v5, %v3573_v53  ;;  %v3945_v8 = vmul.f32 %v7718_v11, %v3908_v28  ;;  %v4010_v2 = vld [vmem:[#allocation2 + $0x15e] sm:$0xff]  ;;  %v3708_v14 = vld [vmem:[#allocation2 + $0x16b] sm:$0xff]  ;;  %v3810_v18 = vld [vmem:[#allocation2 + $0x174] sm:$0xff] }
 0x228   : > { %v3875_v17 = vadd.f32 %v3843_v50, %v3774_v59  ;;  %v4046_v1 = vmul.f32 %v7723_v16, %v4009_v6  ;;  %4171 = vst [vmem:[%s6323_s18 + $0x88] sm:$0xff] %v4139_v41  ;;  %v3643_v19 = vmul.f32 %v7696_v45, %v3606_v12  ;;  %v3744_v4 = vmul.f32 %v7701_v33, %v3707_v31  ;;  %v4109_v45 = vld [vmem:[%s6323_s18 + $0x98] sm:$0xff]  ;;  %v4011_v50 = vld [vmem:[#allocation2 + $0x16e] sm:$0xff]  ;;  %v7942_v27 = vld [vmem:[%s8782_s1 + $0x23] ss:$0 sm:$0xff] }
 0x229   : > { %v4076_v25 = vadd.f32 %v4044_v49, %v3975_v35  ;;  %v3574_v63 = vadd.f32 %v3542_v46, %v3473_v34  ;;  %v3775_v13 = vadd.f32 %v3743_v7, %v3674_v39  ;;  %v3845_v36 = vmul.f32 %v7708_v62, %v3808_v22  ;;  %v3809_v49 = vld [vmem:[#allocation2 + $0x16c] sm:$0xff]  ;;  %v7948_v30 = vld [vmem:[%s8782_s1 + $0x24] ss:$0 sm:$0xff]  ;;  %v7957_v59 = vld [vmem:[%s8782_s1 + $0x25] ss:$0 sm:$0xff] }
 0x22a   : > { %v3976_v43 = vadd.f32 %v3944_v52, %v3875_v17  ;;  %v3474_v15 = vmul.f32 %v7920_v29, %v3436_v0  ;;  %v3946_v33 = vmul.f32 %v7718_v11, %v3909_v9  ;;  %v3543_v62 = vmul.f32 %v7928_v3, %v3506_v20  ;;  %v3608_v21 = vld [vmem:[#allocation2 + $0x172] sm:$0xff]  ;;  %v4110_v5 = vld [vmem:[%s6323_s18 + $0xa0] sm:$0xff] }
 0x22b   : > { %v4140_v55 = vadd.f32 %v4108_v24, %v4076_v25  ;;  %v3675_v38 = vadd.f32 %v3643_v19, %v3574_v63  ;;  %v3876_v32 = vadd.f32 %v3844_v57, %v3775_v13  ;;  %v4047_v48 = vmul.f32 %v7723_v16, %v4010_v2  ;;  %v3709_v52 = vld [vmem:[#allocation2 + $0x173] sm:$0xff]  ;;  %v7963_v7 = vld [vmem:[%s8782_s1 + $0x26] ss:$0 sm:$0xff]  ;;  %v4111_v63 = vld [vmem:[%s6323_s18 + $0xa8] sm:$0xff] }
 0x22c   : > { %v4077_v23 = vadd.f32 %v4045_v44, %v3976_v43  ;;  %v3644_v11 = vmul.f32 %v7935_v40, %v3607_v42  ;;  %v3575_v51 = vadd.f32 %v3543_v62, %v3474_v15  ;;  %v3745_v16 = vmul.f32 %v7942_v27, %v3708_v14  ;;  %v3438_v44 = vld [vmem:[#allocation2 + $0x180] sm:$0xff]  ;;  %v3911_v22 = vld [vmem:[#allocation2 + $0x175] sm:$0xff]  ;;  %v3439_v2 = vld [vmem:[#allocation2 + $0x188] sm:$0xff] }
 0x22d   : > { %4172 = vst [vmem:[%s6323_s18 + $0x90] sm:$0xff] %v4140_v55  ;;  %v3776_v26 = vadd.f32 %v3744_v4, %v3675_v38  ;;  %v3846_v56 = vmul.f32 %v7948_v30, %v3809_v49  ;;  %v3977_v47 = vadd.f32 %v3945_v8, %v3876_v32  ;;  %v3475_v54 = vmul.f32 %v7920_v29, %v3437_v60  ;;  %v3508_v12 = vld [vmem:[#allocation2 + $0x181] sm:$0xff]  ;;  %v4012_v0 = vld [vmem:[#allocation2 + $0x176] sm:$0xff]  ;;  %v3509_v42 = vld [vmem:[#allocation2 + $0x189] sm:$0xff] }
 0x22e   : > { %v4141_v58 = vadd.f32 %v4109_v45, %v4077_v23  ;;  %v3544_v61 = vmul.f32 %v7928_v3, %v3507_v10  ;;  %v3676_v6 = vadd.f32 %v3644_v11, %v3575_v51  ;;  %v3947_v53 = vmul.f32 %v7957_v59, %v3910_v37  ;;  %v3609_v31 = vld [vmem:[#allocation2 + $0x182] sm:$0xff]  ;;  %v3610_v49 = vld [vmem:[#allocation2 + $0x18a] sm:$0xff]  ;;  %v3440_v37 = vld [vmem:[#allocation2 + $0x198] sm:$0xff] }
 0x22f   : > { %v3877_v28 = vadd.f32 %v3845_v36, %v3776_v26  ;;  %v4048_v57 = vmul.f32 %v7963_v7, %v4011_v50  ;;  %v4078_v41 = vadd.f32 %v4046_v1, %v3977_v47  ;;  %v3645_v34 = vmul.f32 %v7935_v40, %v3608_v21  ;;  %v3710_v9 = vld [vmem:[#allocation2 + $0x183] sm:$0xff]  ;;  %v3711_v60 = vld [vmem:[#allocation2 + $0x18b] sm:$0xff]  ;;  %v3510_v21 = vld [vmem:[#allocation2 + $0x199] sm:$0xff] }
 0x230   : > { %4173 = vst [vmem:[%s6323_s18 + $0x98] sm:$0xff] %v4141_v58  ;;  %v3576_v35 = vadd.f32 %v3544_v61, %v3475_v54  ;;  %v3746_v46 = vmul.f32 %v7942_v27, %v3709_v52  ;;  %v3777_v17 = vadd.f32 %v3745_v16, %v3676_v6  ;;  %v3847_v39 = vmul.f32 %v7948_v30, %v3810_v18  ;;  %v3811_v20 = vld [vmem:[#allocation2 + $0x184] sm:$0xff]  ;;  %v3812_v11 = vld [vmem:[#allocation2 + $0x18c] sm:$0xff]  ;;  %v3611_v52 = vld [vmem:[#allocation2 + $0x19a] sm:$0xff] }
 0x231   : > { %v3978_v24 = vadd.f32 %v3946_v33, %v3877_v28  ;;  %v3476_v8 = vmul.f32 %v7920_v29, %v3438_v44  ;;  %v4142_v25 = vadd.f32 %v4110_v5, %v4078_v41  ;;  %v3545_v1 = vmul.f32 %v7928_v3, %v3508_v12  ;;  %v3912_v14 = vld [vmem:[#allocation2 + $0x185] sm:$0xff]  ;;  %v4112_v50 = vld [vmem:[%s6323_s18 + $0xb0] sm:$0xff]  ;;  %v3712_v12 = vld [vmem:[#allocation2 + $0x19b] sm:$0xff] }
 0x232   : > { %v3677_v19 = vadd.f32 %v3645_v34, %v3576_v35  ;;  %v3646_v4 = vmul.f32 %v7935_v40, %v3609_v31  ;;  %v3878_v13 = vadd.f32 %v3846_v56, %v3777_v17  ;;  %v3948_v36 = vmul.f32 %v7957_v59, %v3911_v22  ;;  %v4013_v62 = vld [vmem:[#allocation2 + $0x186] sm:$0xff]  ;;  %v4014_v44 = vld [vmem:[#allocation2 + $0x18e] sm:$0xff]  ;;  %v3813_v31 = vld [vmem:[#allocation2 + $0x19c] sm:$0xff] }
 0x233   : > { %v4079_v43 = vadd.f32 %v4047_v48, %v3978_v24  ;;  %v4049_v15 = vmul.f32 %v7963_v7, %v4012_v0  ;;  %4174 = vst [vmem:[%s6323_s18 + $0xa0] sm:$0xff] %v4142_v25  ;;  %v3577_v45 = vadd.f32 %v3545_v1, %v3476_v8  ;;  %v3747_v38 = vmul.f32 %v7942_v27, %v3710_v9  ;;  %v3913_v18 = vld [vmem:[#allocation2 + $0x18d] sm:$0xff]  ;;  %v4113_v35 = vld [vmem:[%s6323_s18 + $0xb8] sm:$0xff]  ;;  %v3441_v22 = vld [vmem:[#allocation2 + $0x1a0] sm:$0xff] }
 0x234   : > { %v3778_v55 = vadd.f32 %v3746_v46, %v3677_v19  ;;  %v3848_v33 = vmul.f32 %v7948_v30, %v3811_v20  ;;  %v3979_v23 = vadd.f32 %v3947_v53, %v3878_v13  ;;  %v3477_v32 = vmul.f32 %v7920_v29, %v3439_v2  ;;  %v3511_v0 = vld [vmem:[#allocation2 + $0x1a1] sm:$0xff] }
 0x235   : > { %v4143_v10 = vadd.f32 %v4111_v63, %v4079_v43  ;;  %v3546_v48 = vmul.f32 %v7928_v3, %v3509_v42  ;;  %v3678_v51 = vadd.f32 %v3646_v4, %v3577_v45  ;;  %v3949_v16 = vmul.f32 %v7957_v59, %v3912_v14  ;;  %v3914_v9 = vld [vmem:[#allocation2 + $0x19d] sm:$0xff]  ;;  %v3442_v14 = vld [vmem:[#allocation2 + $0x1b0] sm:$0xff] }
 0x236   : > { %v3879_v26 = vadd.f32 %v3847_v39, %v3778_v55  ;;  %v3647_v56 = vmul.f32 %v7935_v40, %v3610_v49  ;;  %v4080_v58 = vadd.f32 %v4048_v57, %v3979_v23  ;;  %v4050_v47 = vmul.f32 %v7963_v7, %v4013_v62  ;;  %v3612_v20 = vld [vmem:[#allocation2 + $0x1a2] sm:$0xff]  ;;  %v3512_v62 = vld [vmem:[#allocation2 + $0x1b1] sm:$0xff] }
 0x237   : > { %4175 = vst [vmem:[%s6323_s18 + $0xa8] sm:$0xff] %v4143_v10  ;;  %v3578_v54 = vadd.f32 %v3546_v48, %v3477_v32  ;;  %v3748_v61 = vmul.f32 %v7942_v27, %v3711_v60  ;;  %v3779_v28 = vadd.f32 %v3747_v38, %v3678_v51  ;;  %v3849_v6 = vmul.f32 %v7948_v30, %v3812_v11  ;;  %v4015_v4 = vld [vmem:[#allocation2 + $0x19e] sm:$0xff]  ;;  %v3613_v60 = vld [vmem:[#allocation2 + $0x1b2] sm:$0xff] }
 0x238   : > { %v3980_v5 = vadd.f32 %v3948_v36, %v3879_v26  ;;  %v3478_v53 = vmul.f32 %v7920_v29, %v3440_v37  ;;  %v4144_v41 = vadd.f32 %v4112_v50, %v4080_v58  ;;  %v3547_v57 = vmul.f32 %v7928_v3, %v3510_v21  ;;  %v3713_v2 = vld [vmem:[#allocation2 + $0x1a3] sm:$0xff]  ;;  %v3815_v21 = vld [vmem:[#allocation2 + $0x1b4] sm:$0xff] }
 0x239   : > { %v3679_v34 = vadd.f32 %v3647_v56, %v3578_v54  ;;  %v3648_v46 = vmul.f32 %v7935_v40, %v3611_v52  ;;  %v3880_v17 = vadd.f32 %v3848_v33, %v3779_v28  ;;  %v3950_v39 = vmul.f32 %v7957_v59, %v3913_v18  ;;  %v4114_v49 = vld [vmem:[%s6323_s18 + $0xc0] sm:$0xff]  ;;  %v3714_v56 = vld [vmem:[#allocation2 + $0x1b3] sm:$0xff]  ;;  %v4115_v58 = vld [vmem:[%s6323_s18 + $0xc8] sm:$0xff] }
 0x23a   : > { %v4081_v24 = vadd.f32 %v4049_v15, %v3980_v5  ;;  %v4051_v8 = vmul.f32 %v7963_v7, %v4014_v44  ;;  %4176 = vst [vmem:[%s6323_s18 + $0xb0] sm:$0xff] %v4144_v41  ;;  %v3579_v63 = vadd.f32 %v3547_v57, %v3478_v53  ;;  %v3749_v19 = vmul.f32 %v7942_v27, %v3712_v12  ;;  %v3814_v15 = vld [vmem:[#allocation2 + $0x1a4] sm:$0xff]  ;;  %v3443_v18 = vld [vmem:[#allocation2 + $0x1b8] sm:$0xff] }
 0x23b   : > { %v3780_v25 = vadd.f32 %v3748_v61, %v3679_v34  ;;  %v3850_v1 = vmul.f32 %v7948_v30, %v3813_v31  ;;  %v3981_v43 = vadd.f32 %v3949_v16, %v3880_v17  ;;  %v3479_v13 = vmul.f32 %v7920_v29, %v3441_v22  ;;  %v3915_v11 = vld [vmem:[#allocation2 + $0x1a5] sm:$0xff]  ;;  %v3513_v44 = vld [vmem:[#allocation2 + $0x1b9] sm:$0xff] }
 0x23c   : > { %v4145_v42 = vadd.f32 %v4113_v35, %v4081_v24  ;;  %v3548_v36 = vmul.f32 %v7928_v3, %v3511_v0  ;;  %v3680_v45 = vadd.f32 %v3648_v46, %v3579_v63  ;;  %v3951_v38 = vmul.f32 %v7957_v59, %v3914_v9  ;;  %v4016_v37 = vld [vmem:[#allocation2 + $0x1a6] sm:$0xff]  ;;  %v3916_v12 = vld [vmem:[#allocation2 + $0x1b5] sm:$0xff] }
 0x23d   : > { %v3881_v55 = vadd.f32 %v3849_v6, %v3780_v25  ;;  %v3649_v33 = vmul.f32 %v7935_v40, %v3612_v20  ;;  %v4082_v10 = vadd.f32 %v4050_v47, %v3981_v43  ;;  %v4052_v23 = vmul.f32 %v7963_v7, %v4015_v4  ;;  %v3614_v31 = vld [vmem:[#allocation2 + $0x1ba] sm:$0xff]  ;;  %v4116_v9 = vld [vmem:[%s6323_s18 + $0xd0] sm:$0xff] }
 0x23e   : > { %4177 = vst [vmem:[%s6323_s18 + $0xb8] sm:$0xff] %v4145_v42  ;;  %v3580_v32 = vadd.f32 %v3548_v36, %v3479_v13  ;;  %v3750_v48 = vmul.f32 %v7942_v27, %v3713_v2  ;;  %v3781_v26 = vadd.f32 %v3749_v19, %v3680_v45  ;;  %v3851_v51 = vmul.f32 %v7948_v30, %v3814_v15  ;;  %v4017_v46 = vld [vmem:[#allocation2 + $0x1b6] sm:$0xff]  ;;  %v3615_v4 = vld [vmem:[#allocation2 + $0x1ca] sm:$0xff]  ;;  %v4018_v15 = vld [vmem:[#allocation2 + $0x1be] sm:$0xff] }
 0x23f   : > { %v3982_v50 = vadd.f32 %v3950_v39, %v3881_v55  ;;  %v3480_v16 = vmul.f32 %v7920_v29, %v3442_v14  ;;  %v4146_v52 = vadd.f32 %v4114_v49, %v4082_v10  ;;  %v3549_v47 = vmul.f32 %v7928_v3, %v3512_v62  ;;  %v3715_v22 = vld [vmem:[#allocation2 + $0x1bb] sm:$0xff]  ;;  %v3817_v62 = vld [vmem:[#allocation2 + $0x1cc] sm:$0xff] }
 0x240   : > { %v3681_v54 = vadd.f32 %v3649_v33, %v3580_v32  ;;  %v3650_v61 = vmul.f32 %v7935_v40, %v3613_v60  ;;  %v3882_v28 = vadd.f32 %v3850_v1, %v3781_v26  ;;  %v3952_v6 = vmul.f32 %v7957_v59, %v3915_v11  ;;  %v3514_v1 = vld [vmem:[#allocation2 + $0x1c9] sm:$0xff]  ;;  %v3917_v36 = vld [vmem:[#allocation2 + $0x1bd] sm:$0xff]  ;;  %v3515_v11 = vld [vmem:[#allocation2 + $0x1d1] sm:$0xff] }
 0x241   : > { %v4083_v5 = vadd.f32 %v4051_v8, %v3982_v50  ;;  %v4053_v53 = vmul.f32 %v7963_v7, %v4016_v37  ;;  %4178 = vst [vmem:[%s6323_s18 + $0xc0] sm:$0xff] %v4146_v52  ;;  %v3581_v35 = vadd.f32 %v3549_v47, %v3480_v16  ;;  %v3751_v34 = vmul.f32 %v7942_v27, %v3714_v56  ;;  %v3816_v8 = vld [vmem:[#allocation2 + $0x1bc] sm:$0xff]  ;;  %v3716_v33 = vld [vmem:[#allocation2 + $0x1cb] sm:$0xff]  ;;  %v8033_v52 = vld [vmem:[%s8782_s1 + $0x28] ss:$0 sm:$0xff] }
 0x242   : > { %v3782_v41 = vadd.f32 %v3750_v48, %v3681_v54  ;;  %v3852_v57 = vmul.f32 %v7948_v30, %v3815_v21  ;;  %v3983_v24 = vadd.f32 %v3951_v38, %v3882_v28  ;;  %v3481_v17 = vmul.f32 %v7920_v29, %v3443_v18  ;;  %v6013_v45 = vld [vmem:[#allocation2] sm:$0xff]  ;;  %v4117_v10 = vld [vmem:[%s6323_s18 + $0xd8] sm:$0xff]  ;;  %v3918_v56 = vld [vmem:[#allocation2 + $0x1cd] sm:$0xff] }
 0x243   : > { %v4147_v0 = vadd.f32 %v4115_v58, %v4083_v5  ;;  %v3550_v39 = vmul.f32 %v7928_v3, %v3513_v44  ;;  %v3682_v25 = vadd.f32 %v3650_v61, %v3581_v35  ;;  %v3953_v63 = vmul.f32 %v7957_v59, %v3916_v12  ;;  %v3616_v37 = vld [vmem:[#allocation2 + $0x1d2] sm:$0xff]  ;;  %v8048_v35 = vld [vmem:[%s8782_s1 + $0x2a] ss:$0 sm:$0xff] }
 0x244   : > { %v3883_v20 = vadd.f32 %v3851_v51, %v3782_v41  ;;  %v3651_v19 = vmul.f32 %v7935_v40, %v3614_v31  ;;  %v4084_v2 = vadd.f32 %v4052_v23, %v3983_v24  ;;  %v4054_v42 = vmul.f32 %v7963_v7, %v4017_v46  ;;  %v4187_v21 = vld [vmem:[#allocation2 + $0x78] sm:$0xff]  ;;  %v8043_v31 = vld [vmem:[%s8782_s1 + $0x29] ss:$0 sm:$0xff] }
 0x245   : > { %4179 = vst [vmem:[%s6323_s18 + $0xc8] sm:$0xff] %v4147_v0  ;;  %v3582_v43 = vadd.f32 %v3550_v39, %v3481_v17  ;;  %v3752_v13 = vmul.f32 %v7942_v27, %v3715_v22  ;;  %v3783_v49 = vadd.f32 %v3751_v34, %v3682_v25  ;;  %v3853_v55 = vmul.f32 %v7948_v30, %v3816_v8  ;;  %v3717_v18 = vld [vmem:[#allocation2 + $0x1d3] sm:$0xff]  ;;  %v4118_v34 = vld [vmem:[%s6323_s18 + $0xe0] sm:$0xff] }
 0x246   : > { %v3984_v14 = vadd.f32 %v3952_v6, %v3883_v20  ;;  %v3482_v38 = vmul.f32 %v6013_v45, %v7920_v29  ;;  %v4148_v60 = vadd.f32 %v4116_v9, %v4084_v2  ;;  %v3551_v32 = vmul.f32 %v7928_v3, %v3514_v1  ;;  %v4019_v29 = vld [vmem:[#allocation2 + $0x1ce] sm:$0xff]  ;;  %v4257_v5 = vld [vmem:[#allocation2 + $0x79] sm:$0xff]  ;;  %v8059_v20 = vld [vmem:[%s8782_s1 + $0x2b] ss:$0 sm:$0xff] }
 0x247   : > { %v3683_v23 = vadd.f32 %v3651_v19, %v3582_v43  ;;  %v3652_v48 = vmul.f32 %v7935_v40, %v3615_v4  ;;  %v3884_v26 = vadd.f32 %v3852_v57, %v3783_v49  ;;  %v3954_v51 = vmul.f32 %v7957_v59, %v3917_v36  ;;  %v3818_v44 = vld [vmem:[#allocation2 + $0x1d4] sm:$0xff]  ;;  %v4560_v25 = vld [vmem:[#allocation2 + $0x7c] sm:$0xff]  ;;  %v8066_v2 = vld [vmem:[%s8782_s1 + $0x2c] ss:$0 sm:$0xff] }
 0x248   : > { %v4085_v50 = vadd.f32 %v4053_v53, %v3984_v14  ;;  %v4055_v16 = vmul.f32 %v7963_v7, %v4018_v15  ;;  %4180 = vst [vmem:[%s6323_s18 + $0xd0] sm:$0xff] %v4148_v60  ;;  %v3583_v54 = vadd.f32 %v3551_v32, %v3482_v38  ;;  %v3753_v47 = vmul.f32 %v7942_v27, %v3716_v33  ;;  %v4358_v41 = vld [vmem:[#allocation2 + $0x7a] sm:$0xff]  ;;  %v4119_v43 = vld [vmem:[%s6323_s18 + $0xe8] sm:$0xff] }
 0x249   : > { %v3784_v58 = vadd.f32 %v3752_v13, %v3683_v23  ;;  %v3854_v61 = vmul.f32 %v7948_v30, %v3817_v62  ;;  %v3985_v6 = vadd.f32 %v3953_v63, %v3884_v26  ;;  %v3552_v53 = vmul.f32 %v7928_v3, %v3515_v11  ;;  %v3919_v0 = vld [vmem:[#allocation2 + $0x1d5] sm:$0xff]  ;;  %v8074_v14 = vld [vmem:[%s8782_s1 + $0x2d] ss:$0 sm:$0xff]  ;;  %v4258_v49 = vld [vmem:[#allocation2 + $0x81] sm:$0xff] }
 0x24a   : > { %v4149_v28 = vadd.f32 %v4117_v10, %v4085_v50  ;;  %v3653_v12 = vmul.f32 %v7935_v40, %v3616_v37  ;;  %v3684_v46 = vadd.f32 %v3652_v48, %v3583_v54  ;;  %v3955_v22 = vmul.f32 %v7957_v59, %v3918_v56  ;;  %v4020_v40 = vld [vmem:[#allocation2 + $0x1d6] sm:$0xff]  ;;  %v4762_v62 = vld [vmem:[#allocation2 + $0x7e] sm:$0xff]  ;;  %v8080_v60 = vld [vmem:[%s8782_s1 + $0x2e] ss:$0 sm:$0xff] }
 0x24b   : > { %v3885_v57 = vadd.f32 %v3853_v55, %v3784_v58  ;;  %v4056_v3 = vmul.f32 %v7963_v7, %v4019_v29  ;;  %v4086_v24 = vadd.f32 %v4054_v42, %v3985_v6  ;;  %v3584_v17 = vadd.f32 %v3552_v53, %v3482_v38  ;;  %v4459_v9 = vld [vmem:[#allocation2 + $0x7b] sm:$0xff]  ;;  %v4460_v48 = vld [vmem:[#allocation2 + $0x83] sm:$0xff]  ;;  %v4259_v56 = vld [vmem:[#allocation2 + $0x91] sm:$0xff] }
 0x24c   : > { %4181 = vst [vmem:[%s6323_s18 + $0xd8] sm:$0xff] %v4149_v28  ;;  %v3754_v39 = vmul.f32 %v7942_v27, %v3717_v18  ;;  %v3855_v8 = vmul.f32 %v7948_v30, %v3818_v44  ;;  %v3785_v19 = vadd.f32 %v3753_v47, %v3684_v46  ;;  %v4225_v1 = vmul.f32 %v8033_v52, %v4187_v21  ;;  %v4661_v27 = vld [vmem:[#allocation2 + $0x7d] sm:$0xff]  ;;  %v4120_v29 = vld [vmem:[%s6323_s18 + $0xf0] sm:$0xff]  ;;  %v4763_v6 = vld [vmem:[#allocation2 + $0x86] sm:$0xff] }
 0x24d   : > { %v3986_v63 = vadd.f32 %v3954_v51, %v3885_v57  ;;  %v4294_v4 = vmul.f32 %v8043_v31, %v4257_v5  ;;  %v4188_v30 = vld [vmem:[#allocation2 + $0x80] sm:$0xff]  ;;  %v4150_v42 = vadd.f32 %v4118_v34, %v4086_v24  ;;  %v3685_v13 = vadd.f32 %v3653_v12, %v3584_v17  ;;  %v4360_v53 = vld [vmem:[#allocation2 + $0x92] sm:$0xff] }
 0x24e   : > { %v3956_v36 = vmul.f32 %v7957_v59, %v3919_v0  ;;  %v4057_v15 = vmul.f32 %v7963_v7, %v4020_v40  ;;  %v3886_v45 = vadd.f32 %v3854_v61, %v3785_v19  ;;  %v4395_v33 = vmul.f32 %v8048_v35, %v4358_v41  ;;  %v4359_v59 = vld [vmem:[#allocation2 + $0x82] sm:$0xff]  ;;  %v4461_v46 = vld [vmem:[#allocation2 + $0x93] sm:$0xff] }
 0x24f   : > { %v4087_v55 = vadd.f32 %v4055_v16, %v3986_v63  ;;  %v4326_v38 = vadd.f32 %v4294_v4, %v4225_v1  ;;  %4182 = vst [vmem:[%s6323_s18 + $0xe0] sm:$0xff] %v4150_v42  ;;  %v3786_v7 = vadd.f32 %v3754_v39, %v3685_v13  ;;  %v4496_v10 = vmul.f32 %v8059_v20, %v4459_v9  ;;  %v4561_v51 = vld [vmem:[#allocation2 + $0x84] sm:$0xff]  ;;  %v4189_v16 = vld [vmem:[#allocation2 + $0x90] sm:$0xff]  ;;  %v4121_v40 = vld [vmem:[%s6323_s18 + $0xf8] sm:$0xff] }
 0x250   : > { %v4597_v23 = vmul.f32 %v8066_v2, %v4560_v25  ;;  %v4226_v32 = vmul.f32 %v8033_v52, %v4188_v30  ;;  %v3987_v37 = vadd.f32 %v3955_v22, %v3886_v45  ;;  %v4295_v26 = vmul.f32 %v8043_v31, %v4258_v49  ;;  %v4662_v61 = vld [vmem:[#allocation2 + $0x85] sm:$0xff]  ;;  %v4562_v22 = vld [vmem:[#allocation2 + $0x94] sm:$0xff] }
 0x251   : > { %v4151_v11 = vadd.f32 %v4119_v43, %v4087_v55  ;;  %v4427_v50 = vadd.f32 %v4395_v33, %v4326_v38  ;;  %v3887_v21 = vadd.f32 %v3855_v8, %v3786_v7  ;;  %v4698_v58 = vmul.f32 %v8074_v14, %v4661_v27  ;;  %v4190_v39 = vld [vmem:[#allocation2 + $0x98] sm:$0xff]  ;;  %v4863_v55 = vld [vmem:[%s6323_s18] sm:$0xff] }
 0x252   : > { %v4799_v54 = vmul.f32 %v8080_v60, %v4762_v62  ;;  %v4396_v47 = vmul.f32 %v8048_v35, %v4359_v59  ;;  %v4088_v18 = vadd.f32 %v4056_v3, %v3987_v37  ;;  %v4327_v5 = vadd.f32 %v4295_v26, %v4226_v32  ;;  %v4260_v8 = vld [vmem:[#allocation2 + $0x99] sm:$0xff]  ;;  %v4191_v62 = vld [vmem:[#allocation2 + $0xa8] sm:$0xff] }
 0x253   : > { %4183 = vst [vmem:[%s6323_s18 + $0xe8] sm:$0xff] %v4151_v11  ;;  %v4528_v44 = vadd.f32 %v4496_v10, %v4427_v50  ;;  %v4497_v28 = vmul.f32 %v8059_v20, %v4460_v48  ;;  %v3988_v12 = vadd.f32 %v3956_v36, %v3887_v21  ;;  %v4598_v41 = vmul.f32 %v8066_v2, %v4561_v51  ;;  %v4663_v1 = vld [vmem:[#allocation2 + $0x95] sm:$0xff]  ;;  %v4664_v32 = vld [vmem:[#allocation2 + $0x9d] sm:$0xff]  ;;  %v4261_v48 = vld [vmem:[#allocation2 + $0xa9] sm:$0xff] }
 0x254   : > { %v4227_v34 = vmul.f32 %v8033_v52, %v4189_v16  ;;  %v4296_v57 = vmul.f32 %v8043_v31, %v4259_v56  ;;  %v4152_v0 = vadd.f32 %v4120_v29, %v4088_v18  ;;  %v4428_v3 = vadd.f32 %v4396_v47, %v4327_v5  ;;  %v4764_v4 = vld [vmem:[#allocation2 + $0x96] sm:$0xff]  ;;  %v4765_v51 = vld [vmem:[#allocation2 + $0x9e] sm:$0xff]  ;;  %v4362_v16 = vld [vmem:[#allocation2 + $0xaa] sm:$0xff] }
 0x255   : > { %v4629_v24 = vadd.f32 %v4597_v23, %v4528_v44  ;;  %v4699_v17 = vmul.f32 %v8074_v14, %v4662_v61  ;;  %v4089_v9 = vadd.f32 %v4057_v15, %v3988_v12  ;;  %v4800_v25 = vmul.f32 %v8080_v60, %v4763_v6  ;;  %v4361_v13 = vld [vmem:[#allocation2 + $0x9a] sm:$0xff]  ;;  %v4463_v56 = vld [vmem:[#allocation2 + $0xab] sm:$0xff] }
 0x256   : > { %v4328_v63 = vadd.f32 %v4296_v57, %v4227_v34  ;;  %v4397_v19 = vmul.f32 %v8048_v35, %v4360_v53  ;;  %4184 = vst [vmem:[%s6323_s18 + $0xf0] sm:$0xff] %v4152_v0  ;;  %v4529_v30 = vadd.f32 %v4497_v28, %v4428_v3  ;;  %v4498_v42 = vmul.f32 %v8059_v20, %v4461_v46  ;;  %v4462_v36 = vld [vmem:[#allocation2 + $0x9b] sm:$0xff]  ;;  %v4564_v47 = vld [vmem:[#allocation2 + $0xac] sm:$0xff] }
 0x257   : > { %v4730_v27 = vadd.f32 %v4698_v58, %v4629_v24  ;;  %v4599_v43 = vmul.f32 %v8066_v2, %v4562_v22  ;;  %v4153_v49 = vadd.f32 %v4121_v40, %v4089_v9  ;;  %v4228_v45 = vmul.f32 %v8033_v52, %v4190_v39  ;;  %v4563_v33 = vld [vmem:[#allocation2 + $0x9c] sm:$0xff]  ;;  %v4665_v61 = vld [vmem:[#allocation2 + $0xad] sm:$0xff] }
 0x258   : > { %v4429_v15 = vadd.f32 %v4397_v19, %v4328_v63  ;;  %v4297_v38 = vmul.f32 %v8043_v31, %v4260_v8  ;;  %v4630_v7 = vadd.f32 %v4598_v41, %v4529_v30  ;;  %v4700_v10 = vmul.f32 %v8074_v14, %v4663_v1  ;;  %v4864_v18 = vld [vmem:[%s6323_s18 + $0x8] sm:$0xff]  ;;  %v4192_v53 = vld [vmem:[#allocation2 + $0xb0] sm:$0xff] }
 0x259   : > { %v4831_v59 = vadd.f32 %v4799_v54, %v4730_v27  ;;  %v4801_v23 = vmul.f32 %v8080_v60, %v4764_v4  ;;  %4185 = vst [vmem:[%s6323_s18 + $0xf8] sm:$0xff] %v4153_v49  ;;  %v4398_v50 = vmul.f32 %v8048_v35, %v4361_v13  ;;  %v4499_v26 = vmul.f32 %v8059_v20, %v4462_v36  ;;  %v4262_v12 = vld [vmem:[#allocation2 + $0xb1] sm:$0xff]  ;;  %v4193_v4 = vld [vmem:[#allocation2 + $0xc0] sm:$0xff] }
 0x25a   : > { %v4530_v11 = vadd.f32 %v4498_v42, %v4429_v15  ;;  %v4329_v37 = vadd.f32 %v4297_v38, %v4228_v45  ;;  %v4731_v21 = vadd.f32 %v4699_v17, %v4630_v7  ;;  %v4600_v58 = vmul.f32 %v8066_v2, %v4563_v33  ;;  %v4766_v22 = vld [vmem:[#allocation2 + $0xae] sm:$0xff]  ;;  %v4767_v36 = vld [vmem:[#allocation2 + $0xb6] sm:$0xff]  ;;  %v4263_v49 = vld [vmem:[#allocation2 + $0xc1] sm:$0xff] }
 0x25b   : > { %v4895_v29 = vadd.f32 %v4863_v55, %v4831_v59  ;;  %v4229_v54 = vmul.f32 %v8033_v52, %v4191_v62  ;;  %v4701_v28 = vmul.f32 %v8074_v14, %v4664_v32  ;;  %v4298_v6 = vmul.f32 %v8043_v31, %v4261_v48  ;;  %v4363_v17 = vld [vmem:[#allocation2 + $0xb2] sm:$0xff]  ;;  %v4364_v33 = vld [vmem:[#allocation2 + $0xc2] sm:$0xff] }
 0x25c   : > { %v4631_v44 = vadd.f32 %v4599_v43, %v4530_v11  ;;  %v4430_v5 = vadd.f32 %v4398_v50, %v4329_v37  ;;  %v4832_v41 = vadd.f32 %v4800_v25, %v4731_v21  ;;  %v4802_v34 = vmul.f32 %v8080_v60, %v4765_v51  ;;  %v4464_v39 = vld [vmem:[#allocation2 + $0xb3] sm:$0xff]  ;;  %v4465_v62 = vld [vmem:[#allocation2 + $0xc3] sm:$0xff] }
 0x25d   : > { %4927 = vst [vmem:[%s6323_s18] sm:$0xff] %v4895_v29  ;;  %v4399_v57 = vmul.f32 %v8048_v35, %v4362_v16  ;;  %v4500_v46 = vmul.f32 %v8059_v20, %v4463_v56  ;;  %v4330_v24 = vadd.f32 %v4298_v6, %v4229_v54  ;;  %v4601_v3 = vmul.f32 %v8066_v2, %v4564_v47  ;;  %v4565_v8 = vld [vmem:[#allocation2 + $0xb4] sm:$0xff]  ;;  %v4566_v32 = vld [vmem:[#allocation2 + $0xc4] sm:$0xff] }
 0x25e   : > { %v4732_v0 = vadd.f32 %v4700_v10, %v4631_v44  ;;  %v4531_v40 = vadd.f32 %v4499_v26, %v4430_v5  ;;  %v4896_v9 = vadd.f32 %v4864_v18, %v4832_v41  ;;  %v4865_v63 = vld [vmem:[%s6323_s18 + $0x10] sm:$0xff]  ;;  %v4702_v25 = vmul.f32 %v8074_v14, %v4665_v61  ;;  %v4194_v48 = vld [vmem:[#allocation2 + $0xc8] sm:$0xff]  ;;  %v4866_v11 = vld [vmem:[%s6323_s18 + $0x18] sm:$0xff] }
 0x25f   : > { %v4230_v19 = vmul.f32 %v8033_v52, %v4192_v53  ;;  %v4299_v1 = vmul.f32 %v8043_v31, %v4262_v12  ;;  %v4431_v42 = vadd.f32 %v4399_v57, %v4330_v24  ;;  %v4803_v43 = vmul.f32 %v8080_v60, %v4766_v22  ;;  %v4666_v13 = vld [vmem:[#allocation2 + $0xb5] sm:$0xff]  ;;  %v4667_v16 = vld [vmem:[#allocation2 + $0xc5] sm:$0xff] }
 0x260   : > { %v4833_v27 = vadd.f32 %v4801_v23, %v4732_v0  ;;  %v4632_v30 = vadd.f32 %v4600_v58, %v4531_v40  ;;  %4928 = vst [vmem:[%s6323_s18 + $0x8] sm:$0xff] %v4896_v9  ;;  %v4400_v15 = vmul.f32 %v8048_v35, %v4363_v17  ;;  %v4501_v45 = vmul.f32 %v8059_v20, %v4464_v39  ;;  %v4264_v56 = vld [vmem:[#allocation2 + $0xc9] sm:$0xff]  ;;  %v4265_v22 = vld [vmem:[#allocation2 + $0xd9] sm:$0xff] }
 0x261   : > { %v4331_v55 = vadd.f32 %v4299_v1, %v4230_v19  ;;  %v4602_v38 = vmul.f32 %v8066_v2, %v4565_v8  ;;  %v4532_v10 = vadd.f32 %v4500_v46, %v4431_v42  ;;  %v4231_v23 = vmul.f32 %v8033_v52, %v4193_v4  ;;  %v4768_v47 = vld [vmem:[#allocation2 + $0xc6] sm:$0xff]  ;;  %v4195_v46 = vld [vmem:[#allocation2 + $0xd8] sm:$0xff]  ;;  %v4769_v8 = vld [vmem:[#allocation2 + $0xce] sm:$0xff] }
 0x262   : > { %v4897_v59 = vadd.f32 %v4865_v63, %v4833_v27  ;;  %v4733_v7 = vadd.f32 %v4701_v28, %v4632_v30  ;;  %v4703_v50 = vmul.f32 %v8074_v14, %v4666_v13  ;;  %v4804_v26 = vmul.f32 %v8080_v60, %v4767_v36  ;;  %v4365_v61 = vld [vmem:[#allocation2 + $0xca] sm:$0xff]  ;;  %v4867_v0 = vld [vmem:[%s6323_s18 + $0x20] sm:$0xff] }
 0x263   : > { %v4432_v37 = vadd.f32 %v4400_v15, %v4331_v55  ;;  %v4300_v51 = vmul.f32 %v8043_v31, %v4263_v49  ;;  %v4633_v21 = vadd.f32 %v4601_v3, %v4532_v10  ;;  %v4401_v58 = vmul.f32 %v8048_v35, %v4364_v33  ;;  %v4466_v6 = vld [vmem:[#allocation2 + $0xcb] sm:$0xff]  ;;  %v4366_v1 = vld [vmem:[#allocation2 + $0xda] sm:$0xff] }
 0x264   : > { %4929 = vst [vmem:[%s6323_s18 + $0x10] sm:$0xff] %v4897_v59  ;;  %v4834_v29 = vadd.f32 %v4802_v34, %v4733_v7  ;;  %v4502_v54 = vmul.f32 %v8059_v20, %v4465_v62  ;;  %v4603_v5 = vmul.f32 %v8066_v2, %v4566_v32  ;;  %v4232_v28 = vmul.f32 %v8033_v52, %v4194_v48  ;;  %v4567_v53 = vld [vmem:[#allocation2 + $0xcc] sm:$0xff]  ;;  %v4467_v13 = vld [vmem:[#allocation2 + $0xdb] sm:$0xff] }
 0x265   : > { %v4533_v18 = vadd.f32 %v4501_v45, %v4432_v37  ;;  %v4332_v44 = vadd.f32 %v4300_v51, %v4231_v23  ;;  %v4734_v41 = vadd.f32 %v4702_v25, %v4633_v21  ;;  %v4704_v34 = vmul.f32 %v8074_v14, %v4667_v16  ;;  %v4668_v39 = vld [vmem:[#allocation2 + $0xcd] sm:$0xff]  ;;  %v4568_v36 = vld [vmem:[#allocation2 + $0xdc] sm:$0xff] }
 0x266   : > { %v4898_v12 = vadd.f32 %v4866_v11, %v4834_v29  ;;  %v4301_v57 = vmul.f32 %v8043_v31, %v4264_v56  ;;  %v4805_v3 = vmul.f32 %v8080_v60, %v4768_v47  ;;  %v4402_v17 = vmul.f32 %v8048_v35, %v4365_v61  ;;  %v4196_v49 = vld [vmem:[#allocation2 + $0xe0] sm:$0xff]  ;;  %v4868_v15 = vld [vmem:[%s6323_s18 + $0x28] sm:$0xff]  ;;  %v4267_v47 = vld [vmem:[#allocation2 + $0xf1] sm:$0xff] }
 0x267   : > { %v4634_v40 = vadd.f32 %v4602_v38, %v4533_v18  ;;  %v4433_v24 = vadd.f32 %v4401_v58, %v4332_v44  ;;  %v4835_v9 = vadd.f32 %v4803_v43, %v4734_v41  ;;  %v4503_v25 = vmul.f32 %v8059_v20, %v4466_v6  ;;  %v4266_v33 = vld [vmem:[#allocation2 + $0xe1] sm:$0xff]  ;;  %v4869_v61 = vld [vmem:[%s6323_s18 + $0x30] sm:$0xff] }
 0x268   : > { %4930 = vst [vmem:[%s6323_s18 + $0x18] sm:$0xff] %v4898_v12  ;;  %v4333_v63 = vadd.f32 %v4301_v57, %v4232_v28  ;;  %v4604_v19 = vmul.f32 %v8066_v2, %v4567_v53  ;;  %v4233_v30 = vmul.f32 %v8033_v52, %v4195_v46  ;;  %v4302_v42 = vmul.f32 %v8043_v31, %v4265_v22  ;;  %v4669_v23 = vld [vmem:[#allocation2 + $0xdd] sm:$0xff]  ;;  %v4670_v6 = vld [vmem:[#allocation2 + $0xe5] sm:$0xff]  ;;  %v4368_v46 = vld [vmem:[#allocation2 + $0xf2] sm:$0xff] }
 0x269   : > { %v4735_v4 = vadd.f32 %v4703_v50, %v4634_v40  ;;  %v4534_v27 = vadd.f32 %v4502_v54, %v4433_v24  ;;  %v4899_v55 = vadd.f32 %v4867_v0, %v4835_v9  ;;  %v4705_v43 = vmul.f32 %v8074_v14, %v4668_v39  ;;  %v4770_v32 = vld [vmem:[#allocation2 + $0xde] sm:$0xff]  ;;  %v4197_v54 = vld [vmem:[#allocation2 + $0xf0] sm:$0xff]  ;;  %v4771_v57 = vld [vmem:[#allocation2 + $0xe6] sm:$0xff] }
 0x26a   : > { %v4434_v45 = vadd.f32 %v4402_v17, %v4333_v63  ;;  %v4806_v38 = vmul.f32 %v8080_v60, %v4769_v8  ;;  %v4334_v7 = vadd.f32 %v4302_v42, %v4233_v30  ;;  %v4403_v10 = vmul.f32 %v8048_v35, %v4366_v1  ;;  %v4367_v48 = vld [vmem:[#allocation2 + $0xe2] sm:$0xff]  ;;  %v4469_v17 = vld [vmem:[#allocation2 + $0xf3] sm:$0xff] }
 0x26b   : > { %v4836_v62 = vadd.f32 %v4804_v26, %v4735_v4  ;;  %v4635_v59 = vadd.f32 %v4603_v5, %v4534_v27  ;;  %4931 = vst [vmem:[%s6323_s18 + $0x20] sm:$0xff] %v4899_v55  ;;  %v4504_v37 = vmul.f32 %v8059_v20, %v4467_v13  ;;  %v4605_v50 = vmul.f32 %v8066_v2, %v4568_v36  ;;  %v4468_v16 = vld [vmem:[#allocation2 + $0xe3] sm:$0xff]  ;;  %v4570_v39 = vld [vmem:[#allocation2 + $0xf4] sm:$0xff] }
 0x26c   : > { %v4535_v11 = vadd.f32 %v4503_v25, %v4434_v45  ;;  %v4234_v51 = vmul.f32 %v8033_v52, %v4196_v49  ;;  %v4435_v29 = vadd.f32 %v4403_v10, %v4334_v7  ;;  %v4303_v21 = vmul.f32 %v8043_v31, %v4266_v33  ;;  %v4569_v58 = vld [vmem:[#allocation2 + $0xe4] sm:$0xff]  ;;  %v4870_v9 = vld [vmem:[%s6323_s18 + $0x38] sm:$0xff] }
 0x26d   : > { %v4900_v56 = vadd.f32 %v4868_v15, %v4836_v62  ;;  %v4736_v26 = vadd.f32 %v4704_v34, %v4635_v59  ;;  %v4706_v44 = vmul.f32 %v8074_v14, %v4669_v23  ;;  %v4807_v5 = vmul.f32 %v8080_v60, %v4770_v32  ;;  %v4268_v1 = vld [vmem:[#allocation2 + $0xf9] sm:$0xff]  ;;  %v4199_v32 = vld [vmem:[#allocation2 + $0x108] sm:$0xff] }
 0x26e   : > { %v4636_v18 = vadd.f32 %v4604_v19, %v4535_v11  ;;  %v4404_v28 = vmul.f32 %v8048_v35, %v4367_v48  ;;  %v4536_v12 = vadd.f32 %v4504_v37, %v4435_v29  ;;  %v4335_v41 = vadd.f32 %v4303_v21, %v4234_v51  ;;  %v4198_v19 = vld [vmem:[#allocation2 + $0xf8] sm:$0xff]  ;;  %v4871_v59 = vld [vmem:[%s6323_s18 + $0x40] sm:$0xff] }
 0x26f   : > { %4932 = vst [vmem:[%s6323_s18 + $0x28] sm:$0xff] %v4900_v56  ;;  %v4837_v53 = vadd.f32 %v4805_v3, %v4736_v26  ;;  %v4505_v34 = vmul.f32 %v8059_v20, %v4468_v16  ;;  %v4606_v0 = vmul.f32 %v8066_v2, %v4569_v58  ;;  %v4235_v40 = vmul.f32 %v8033_v52, %v4197_v54  ;;  %v4671_v13 = vld [vmem:[#allocation2 + $0xf5] sm:$0xff]  ;;  %v4672_v51 = vld [vmem:[#allocation2 + $0xfd] sm:$0xff]  ;;  %v4269_v16 = vld [vmem:[#allocation2 + $0x109] sm:$0xff] }
 0x270   : > { %v4737_v22 = vadd.f32 %v4705_v43, %v4636_v18  ;;  %v4304_v24 = vmul.f32 %v8043_v31, %v4267_v47  ;;  %v4637_v63 = vadd.f32 %v4605_v50, %v4536_v12  ;;  %v4436_v3 = vadd.f32 %v4404_v28, %v4335_v41  ;;  %v4772_v36 = vld [vmem:[#allocation2 + $0xf6] sm:$0xff]  ;;  %v4773_v58 = vld [vmem:[#allocation2 + $0xfe] sm:$0xff]  ;;  %v4370_v54 = vld [vmem:[#allocation2 + $0x10a] sm:$0xff] }
 0x271   : > { %v4901_v8 = vadd.f32 %v4869_v61, %v4837_v53  ;;  %v4707_v25 = vmul.f32 %v8074_v14, %v4670_v6  ;;  %v4808_v27 = vmul.f32 %v8080_v60, %v4771_v57  ;;  %v4405_v42 = vmul.f32 %v8048_v35, %v4368_v46  ;;  %v4369_v43 = vld [vmem:[#allocation2 + $0xfa] sm:$0xff]  ;;  %v4471_v47 = vld [vmem:[#allocation2 + $0x10b] sm:$0xff] }
 0x272   : > { %v4838_v4 = vadd.f32 %v4806_v38, %v4737_v22  ;;  %v4336_v30 = vadd.f32 %v4304_v24, %v4235_v40  ;;  %v4738_v49 = vadd.f32 %v4706_v44, %v4637_v63  ;;  %v4537_v55 = vadd.f32 %v4505_v34, %v4436_v3  ;;  %v4470_v33 = vld [vmem:[#allocation2 + $0xfb] sm:$0xff]  ;;  %v4572_v28 = vld [vmem:[#allocation2 + $0x10c] sm:$0xff] }
 0x273   : > { %4933 = vst [vmem:[%s6323_s18 + $0x30] sm:$0xff] %v4901_v8  ;;  %v4506_v15 = vmul.f32 %v8059_v20, %v4469_v17  ;;  %v4607_v45 = vmul.f32 %v8066_v2, %v4570_v39  ;;  %v4236_v7 = vmul.f32 %v8033_v52, %v4198_v19  ;;  %v4305_v10 = vmul.f32 %v8043_v31, %v4268_v1  ;;  %v4571_v23 = vld [vmem:[#allocation2 + $0xfc] sm:$0xff]  ;;  %v4673_v6 = vld [vmem:[#allocation2 + $0x10d] sm:$0xff] }
 0x274   : > { %v4902_v62 = vadd.f32 %v4870_v9, %v4838_v4  ;;  %v4437_v38 = vadd.f32 %v4405_v42, %v4336_v30  ;;  %v4839_v48 = vadd.f32 %v4807_v5, %v4738_v49  ;;  %v4638_v11 = vadd.f32 %v4606_v0, %v4537_v55  ;;  %v4872_v53 = vld [vmem:[%s6323_s18 + $0x48] sm:$0xff]  ;;  %v4200_v46 = vld [vmem:[#allocation2 + $0x110] sm:$0xff] }
 0x275   : > { %v4708_v37 = vmul.f32 %v8074_v14, %v4671_v13  ;;  %v4809_v50 = vmul.f32 %v8080_v60, %v4772_v36  ;;  %v4337_v26 = vadd.f32 %v4305_v10, %v4236_v7  ;;  %v4406_v29 = vmul.f32 %v8048_v35, %v4369_v43  ;;  %v4270_v22 = vld [vmem:[#allocation2 + $0x111] sm:$0xff]  ;;  %v4201_v36 = vld [vmem:[#allocation2 + $0x120] sm:$0xff] }
 0x276   : > { %4934 = vst [vmem:[%s6323_s18 + $0x38] sm:$0xff] %v4902_v62  ;;  %v4538_v56 = vadd.f32 %v4506_v15, %v4437_v38  ;;  %v4507_v21 = vmul.f32 %v8059_v20, %v4470_v33  ;;  %v4903_v61 = vadd.f32 %v4871_v59, %v4839_v48  ;;  %v4739_v18 = vadd.f32 %v4707_v25, %v4638_v11  ;;  %v4774_v39 = vld [vmem:[#allocation2 + $0x10e] sm:$0xff]  ;;  %v4775_v33 = vld [vmem:[#allocation2 + $0x116] sm:$0xff]  ;;  %v4271_v62 = vld [vmem:[#allocation2 + $0x121] sm:$0xff] }
 0x277   : > { %v4608_v44 = vmul.f32 %v8066_v2, %v4571_v23  ;;  %v4237_v5 = vmul.f32 %v8033_v52, %v4199_v32  ;;  %v4438_v41 = vadd.f32 %v4406_v29, %v4337_v26  ;;  %v4709_v34 = vmul.f32 %v8074_v14, %v4672_v51  ;;  %v4371_v25 = vld [vmem:[#allocation2 + $0x112] sm:$0xff]  ;;  %v4372_v23 = vld [vmem:[#allocation2 + $0x122] sm:$0xff] }
 0x278   : > { %v4639_v12 = vadd.f32 %v4607_v45, %v4538_v56  ;;  %v4306_v57 = vmul.f32 %v8043_v31, %v4269_v16  ;;  %4935 = vst [vmem:[%s6323_s18 + $0x40] sm:$0xff] %v4903_v61  ;;  %v4840_v0 = vadd.f32 %v4808_v27, %v4739_v18  ;;  %v4810_v40 = vmul.f32 %v8080_v60, %v4773_v58  ;;  %v4472_v19 = vld [vmem:[#allocation2 + $0x113] sm:$0xff]  ;;  %v4473_v32 = vld [vmem:[#allocation2 + $0x123] sm:$0xff] }
 0x279   : > { %v4407_v24 = vmul.f32 %v8048_v35, %v4370_v54  ;;  %v4508_v17 = vmul.f32 %v8059_v20, %v4471_v47  ;;  %v4539_v9 = vadd.f32 %v4507_v21, %v4438_v41  ;;  %v4609_v3 = vmul.f32 %v8066_v2, %v4572_v28  ;;  %v4573_v1 = vld [vmem:[#allocation2 + $0x114] sm:$0xff]  ;;  %v4574_v51 = vld [vmem:[#allocation2 + $0x124] sm:$0xff] }
 0x27a   : > { %v4740_v8 = vadd.f32 %v4708_v37, %v4639_v12  ;;  %v4338_v63 = vadd.f32 %v4306_v57, %v4237_v5  ;;  %v4904_v4 = vadd.f32 %v4872_v53, %v4840_v0  ;;  %v4873_v30 = vld [vmem:[%s6323_s18 + $0x50] sm:$0xff]  ;;  %v4710_v27 = vmul.f32 %v8074_v14, %v4673_v6  ;;  %v4202_v16 = vld [vmem:[#allocation2 + $0x128] sm:$0xff]  ;;  %v4874_v56 = vld [vmem:[%s6323_s18 + $0x58] sm:$0xff] }
 0x27b   : > { %v4238_v42 = vmul.f32 %v8033_v52, %v4200_v46  ;;  %v4307_v13 = vmul.f32 %v8043_v31, %v4270_v22  ;;  %v4640_v55 = vadd.f32 %v4608_v44, %v4539_v9  ;;  %v4811_v45 = vmul.f32 %v8080_v60, %v4774_v39  ;;  %v4674_v43 = vld [vmem:[#allocation2 + $0x115] sm:$0xff]  ;;  %v4675_v54 = vld [vmem:[#allocation2 + $0x125] sm:$0xff] }
 0x27c   : > { %v4841_v49 = vadd.f32 %v4809_v50, %v4740_v8  ;;  %v4439_v15 = vadd.f32 %v4407_v24, %v4338_v63  ;;  %4936 = vst [vmem:[%s6323_s18 + $0x48] sm:$0xff] %v4904_v4  ;;  %v4408_v38 = vmul.f32 %v8048_v35, %v4371_v25  ;;  %v4509_v7 = vmul.f32 %v8059_v20, %v4472_v19  ;;  %v4272_v47 = vld [vmem:[#allocation2 + $0x129] sm:$0xff]  ;;  %v4273_v39 = vld [vmem:[#allocation2 + $0x139] sm:$0xff] }
 0x27d   : > { %v4339_v59 = vadd.f32 %v4307_v13, %v4238_v42  ;;  %v4610_v10 = vmul.f32 %v8066_v2, %v4573_v1  ;;  %v4741_v11 = vadd.f32 %v4709_v34, %v4640_v55  ;;  %v4239_v50 = vmul.f32 %v8033_v52, %v4201_v36  ;;  %v4776_v28 = vld [vmem:[#allocation2 + $0x126] sm:$0xff]  ;;  %v4777_v1 = vld [vmem:[#allocation2 + $0x12e] sm:$0xff]  ;;  %v4374_v13 = vld [vmem:[#allocation2 + $0x13a] sm:$0xff] }
 0x27e   : > { %v4905_v48 = vadd.f32 %v4873_v30, %v4841_v49  ;;  %v4540_v37 = vadd.f32 %v4508_v17, %v4439_v15  ;;  %v4711_v29 = vmul.f32 %v8074_v14, %v4674_v43  ;;  %v4812_v21 = vmul.f32 %v8080_v60, %v4775_v33  ;;  %v4373_v6 = vld [vmem:[#allocation2 + $0x12a] sm:$0xff]  ;;  %v4203_v17 = vld [vmem:[#allocation2 + $0x138] sm:$0xff]  ;;  %v4875_v8 = vld [vmem:[%s6323_s18 + $0x60] sm:$0xff] }
 0x27f   : > { %v4440_v26 = vadd.f32 %v4408_v38, %v4339_v59  ;;  %v4308_v58 = vmul.f32 %v8043_v31, %v4271_v62  ;;  %v4842_v61 = vadd.f32 %v4810_v40, %v4741_v11  ;;  %v4409_v44 = vmul.f32 %v8048_v35, %v4372_v23  ;;  %v4474_v57 = vld [vmem:[#allocation2 + $0x12b] sm:$0xff]  ;;  %v4475_v43 = vld [vmem:[#allocation2 + $0x13b] sm:$0xff] }
 0x280   : > { %4937 = vst [vmem:[%s6323_s18 + $0x50] sm:$0xff] %v4905_v48  ;;  %v4641_v18 = vadd.f32 %v4609_v3, %v4540_v37  ;;  %v4510_v5 = vmul.f32 %v8059_v20, %v4473_v32  ;;  %v4611_v41 = vmul.f32 %v8066_v2, %v4574_v51  ;;  %v4240_v34 = vmul.f32 %v8033_v52, %v4202_v16  ;;  %v4575_v46 = vld [vmem:[#allocation2 + $0x12c] sm:$0xff]  ;;  %v4576_v33 = vld [vmem:[#allocation2 + $0x13c] sm:$0xff] }
 0x281   : > { %v4541_v53 = vadd.f32 %v4509_v7, %v4440_v26  ;;  %v4340_v12 = vadd.f32 %v4308_v58, %v4239_v50  ;;  %v4906_v22 = vadd.f32 %v4874_v56, %v4842_v61  ;;  %v4712_v40 = vmul.f32 %v8074_v14, %v4675_v54  ;;  %v4676_v19 = vld [vmem:[#allocation2 + $0x12d] sm:$0xff]  ;;  %v4204_v62 = vld [vmem:[#allocation2 + $0x140] sm:$0xff] }
 0x282   : > { %v4742_v0 = vadd.f32 %v4710_v27, %v4641_v18  ;;  %v4309_v24 = vmul.f32 %v8043_v31, %v4272_v47  ;;  %v4813_v3 = vmul.f32 %v8080_v60, %v4776_v28  ;;  %v4410_v25 = vmul.f32 %v8048_v35, %v4373_v6  ;;  %v4876_v38 = vld [vmem:[%s6323_s18 + $0x68] sm:$0xff]  ;;  %v4677_v50 = vld [vmem:[#allocation2 + $0x13d] sm:$0xff]  ;;  %v4275_v28 = vld [vmem:[#allocation2 + $0x151] sm:$0xff] }
 0x283   : > { %v4642_v9 = vadd.f32 %v4610_v10, %v4541_v53  ;;  %v4441_v63 = vadd.f32 %v4409_v44, %v4340_v12  ;;  %4938 = vst [vmem:[%s6323_s18 + $0x58] sm:$0xff] %v4906_v22  ;;  %v4511_v27 = vmul.f32 %v8059_v20, %v4474_v57  ;;  %v4612_v42 = vmul.f32 %v8066_v2, %v4575_v46  ;;  %v4274_v23 = vld [vmem:[#allocation2 + $0x141] sm:$0xff]  ;;  %v4877_v6 = vld [vmem:[%s6323_s18 + $0x70] sm:$0xff] }
 0x284   : > { %v4843_v4 = vadd.f32 %v4811_v45, %v4742_v0  ;;  %v4341_v30 = vadd.f32 %v4309_v24, %v4240_v34  ;;  %v4241_v55 = vmul.f32 %v8033_v52, %v4203_v17  ;;  %v4310_v15 = vmul.f32 %v8043_v31, %v4273_v39  ;;  %v4778_v51 = vld [vmem:[#allocation2 + $0x13e] sm:$0xff]  ;;  %v4779_v24 = vld [vmem:[#allocation2 + $0x146] sm:$0xff]  ;;  %v4376_v17 = vld [vmem:[#allocation2 + $0x152] sm:$0xff] }
 0x285   : > { %v4743_v36 = vadd.f32 %v4711_v29, %v4642_v9  ;;  %v4542_v49 = vadd.f32 %v4510_v5, %v4441_v63  ;;  %v4713_v45 = vmul.f32 %v8074_v14, %v4676_v19  ;;  %v4814_v10 = vmul.f32 %v8080_v60, %v4777_v1  ;;  %v4375_v16 = vld [vmem:[#allocation2 + $0x142] sm:$0xff]  ;;  %v4205_v5 = vld [vmem:[#allocation2 + $0x150] sm:$0xff] }
 0x286   : > { %v4907_v59 = vadd.f32 %v4875_v8, %v4843_v4  ;;  %v4442_v7 = vadd.f32 %v4410_v25, %v4341_v30  ;;  %v4342_v11 = vadd.f32 %v4310_v15, %v4241_v55  ;;  %v4411_v37 = vmul.f32 %v8048_v35, %v4374_v13  ;;  %v4476_v54 = vld [vmem:[#allocation2 + $0x143] sm:$0xff]  ;;  %v4477_v25 = vld [vmem:[#allocation2 + $0x153] sm:$0xff] }
 0x287   : > { %v4844_v32 = vadd.f32 %v4812_v21, %v4743_v36  ;;  %v4643_v48 = vadd.f32 %v4611_v41, %v4542_v49  ;;  %v4512_v26 = vmul.f32 %v8059_v20, %v4475_v43  ;;  %v4613_v29 = vmul.f32 %v8066_v2, %v4576_v33  ;;  %v4577_v44 = vld [vmem:[#allocation2 + $0x144] sm:$0xff]  ;;  %v4578_v19 = vld [vmem:[#allocation2 + $0x154] sm:$0xff] }
 0x288   : > { %4939 = vst [vmem:[%s6323_s18 + $0x60] sm:$0xff] %v4907_v59  ;;  %v4543_v56 = vadd.f32 %v4511_v27, %v4442_v7  ;;  %v4242_v58 = vmul.f32 %v8033_v52, %v4204_v62  ;;  %v4443_v61 = vadd.f32 %v4411_v37, %v4342_v11  ;;  %v4311_v18 = vmul.f32 %v8043_v31, %v4274_v23  ;;  %v4678_v57 = vld [vmem:[#allocation2 + $0x145] sm:$0xff]  ;;  %v4878_v4 = vld [vmem:[%s6323_s18 + $0x78] sm:$0xff] }
 0x289   : > { %v4908_v47 = vadd.f32 %v4876_v38, %v4844_v32  ;;  %v4744_v21 = vadd.f32 %v4712_v40, %v4643_v48  ;;  %v4714_v12 = vmul.f32 %v8074_v14, %v4677_v50  ;;  %v4815_v41 = vmul.f32 %v8080_v60, %v4778_v51  ;;  %v4276_v13 = vld [vmem:[#allocation2 + $0x159] sm:$0xff]  ;;  %v4207_v51 = vld [vmem:[#allocation2 + $0x168] sm:$0xff] }
 0x28a   : > { %v4644_v53 = vadd.f32 %v4612_v42, %v4543_v56  ;;  %v4412_v34 = vmul.f32 %v8048_v35, %v4375_v16  ;;  %v4544_v22 = vadd.f32 %v4512_v26, %v4443_v61  ;;  %v4343_v0 = vadd.f32 %v4311_v18, %v4242_v58  ;;  %v4206_v42 = vld [vmem:[#allocation2 + $0x158] sm:$0xff]  ;;  %v4879_v48 = vld [vmem:[%s6323_s18 + $0x80] sm:$0xff] }
 0x28b   : > { %4940 = vst [vmem:[%s6323_s18 + $0x68] sm:$0xff] %v4908_v47  ;;  %v4845_v46 = vadd.f32 %v4813_v3, %v4744_v21  ;;  %v4513_v40 = vmul.f32 %v8059_v20, %v4476_v54  ;;  %v4614_v8 = vmul.f32 %v8066_v2, %v4577_v44  ;;  %v4243_v9 = vmul.f32 %v8033_v52, %v4205_v5  ;;  %v4679_v43 = vld [vmem:[#allocation2 + $0x155] sm:$0xff]  ;;  %v4680_v58 = vld [vmem:[#allocation2 + $0x15d] sm:$0xff]  ;;  %v4277_v54 = vld [vmem:[#allocation2 + $0x169] sm:$0xff] }
 0x28c   : > { %v4745_v39 = vadd.f32 %v4713_v45, %v4644_v53  ;;  %v4312_v63 = vmul.f32 %v8043_v31, %v4275_v28  ;;  %v4645_v30 = vadd.f32 %v4613_v29, %v4544_v22  ;;  %v4444_v3 = vadd.f32 %v4412_v34, %v4343_v0  ;;  %v4780_v33 = vld [vmem:[#allocation2 + $0x156] sm:$0xff]  ;;  %v4781_v44 = vld [vmem:[#allocation2 + $0x15e] sm:$0xff]  ;;  %v4378_v5 = vld [vmem:[#allocation2 + $0x16a] sm:$0xff] }
 0x28d   : > { %v4909_v1 = vadd.f32 %v4877_v6, %v4845_v46  ;;  %v4715_v27 = vmul.f32 %v8074_v14, %v4678_v57  ;;  %v4816_v49 = vmul.f32 %v8080_v60, %v4779_v24  ;;  %v4413_v15 = vmul.f32 %v8048_v35, %v4376_v17  ;;  %v4377_v45 = vld [vmem:[#allocation2 + $0x15a] sm:$0xff]  ;;  %v4479_v28 = vld [vmem:[#allocation2 + $0x16b] sm:$0xff] }
 0x28e   : > { %v4846_v36 = vadd.f32 %v4814_v10, %v4745_v39  ;;  %v4344_v55 = vadd.f32 %v4312_v63, %v4243_v9  ;;  %v4746_v62 = vadd.f32 %v4714_v12, %v4645_v30  ;;  %v4545_v59 = vadd.f32 %v4513_v40, %v4444_v3  ;;  %v4478_v23 = vld [vmem:[#allocation2 + $0x15b] sm:$0xff]  ;;  %v4580_v34 = vld [vmem:[#allocation2 + $0x16c] sm:$0xff] }
 0x28f   : > { %4941 = vst [vmem:[%s6323_s18 + $0x70] sm:$0xff] %v4909_v1  ;;  %v4514_v38 = vmul.f32 %v8059_v20, %v4477_v25  ;;  %v4615_v7 = vmul.f32 %v8066_v2, %v4578_v19  ;;  %v4244_v11 = vmul.f32 %v8033_v52, %v4206_v42  ;;  %v4313_v37 = vmul.f32 %v8043_v31, %v4276_v13  ;;  %v4579_v50 = vld [vmem:[#allocation2 + $0x15c] sm:$0xff]  ;;  %v4681_v57 = vld [vmem:[#allocation2 + $0x16d] sm:$0xff] }
 0x290   : > { %v4910_v32 = vadd.f32 %v4878_v4, %v4846_v36  ;;  %v4445_v10 = vadd.f32 %v4413_v15, %v4344_v55  ;;  %v4847_v16 = vadd.f32 %v4815_v41, %v4746_v62  ;;  %v4646_v56 = vadd.f32 %v4614_v8, %v4545_v59  ;;  %v4880_v46 = vld [vmem:[%s6323_s18 + $0x88] sm:$0xff]  ;;  %v4208_v17 = vld [vmem:[#allocation2 + $0x170] sm:$0xff] }
 0x291   : > { %v4716_v26 = vmul.f32 %v8074_v14, %v4679_v43  ;;  %v4817_v29 = vmul.f32 %v8080_v60, %v4780_v33  ;;  %v4345_v21 = vadd.f32 %v4313_v37, %v4244_v11  ;;  %v4414_v61 = vmul.f32 %v8048_v35, %v4377_v45  ;;  %v4278_v39 = vld [vmem:[#allocation2 + $0x171] sm:$0xff]  ;;  %v4209_v43 = vld [vmem:[#allocation2 + $0x180] sm:$0xff] }
 0x292   : > { %4942 = vst [vmem:[%s6323_s18 + $0x78] sm:$0xff] %v4910_v32  ;;  %v4546_v47 = vadd.f32 %v4514_v38, %v4445_v10  ;;  %v4515_v18 = vmul.f32 %v8059_v20, %v4478_v23  ;;  %v4911_v6 = vadd.f32 %v4879_v48, %v4847_v16  ;;  %v4747_v53 = vadd.f32 %v4715_v27, %v4646_v56  ;;  %v4782_v25 = vld [vmem:[#allocation2 + $0x16e] sm:$0xff]  ;;  %v4279_v45 = vld [vmem:[#allocation2 + $0x181] sm:$0xff]  ;;  %v8279_v48 = vld [vmem:[%s8782_s1 + $0x2a] ss:$0 sm:$0xff] }
 0x293   : > { %v4616_v12 = vmul.f32 %v8066_v2, %v4579_v50  ;;  %v4245_v41 = vmul.f32 %v8033_v52, %v4207_v51  ;;  %v4446_v0 = vadd.f32 %v4414_v61, %v4345_v21  ;;  %v4717_v40 = vmul.f32 %v8074_v14, %v4680_v58  ;;  %v4379_v3 = vld [vmem:[#allocation2 + $0x172] sm:$0xff]  ;;  %v4380_v23 = vld [vmem:[#allocation2 + $0x182] sm:$0xff] }
 0x294   : > { %v4647_v22 = vadd.f32 %v4615_v7, %v4546_v47  ;;  %v4314_v24 = vmul.f32 %v8043_v31, %v4277_v54  ;;  %4943 = vst [vmem:[%s6323_s18 + $0x80] sm:$0xff] %v4911_v6  ;;  %v4848_v8 = vadd.f32 %v4816_v49, %v4747_v53  ;;  %v4818_v9 = vmul.f32 %v8080_v60, %v4781_v44  ;;  %v4480_v27 = vld [vmem:[#allocation2 + $0x173] sm:$0xff]  ;;  %v4481_v50 = vld [vmem:[#allocation2 + $0x183] sm:$0xff] }
 0x295   : > { %v4415_v63 = vmul.f32 %v8048_v35, %v4378_v5  ;;  %v4516_v52 = vmul.f32 %v8059_v20, %v4479_v28  ;;  %v4547_v1 = vadd.f32 %v4515_v18, %v4446_v0  ;;  %v4617_v30 = vmul.f32 %v8066_v2, %v4580_v34  ;;  %v4581_v42 = vld [vmem:[#allocation2 + $0x174] sm:$0xff]  ;;  %v8270_v35 = vld [vmem:[%s8782_s1 + $0x28] ss:$0 sm:$0xff]  ;;  %v4280_v18 = vld [vmem:[#allocation2 + $0x189] sm:$0xff] }
 0x296   : > { %v4748_v19 = vadd.f32 %v4716_v26, %v4647_v22  ;;  %v4346_v4 = vadd.f32 %v4314_v24, %v4245_v41  ;;  %v4912_v13 = vadd.f32 %v4880_v46, %v4848_v8  ;;  %v4881_v36 = vld [vmem:[%s6323_s18 + $0x90] sm:$0xff]  ;;  %v4718_v49 = vmul.f32 %v8074_v14, %v4681_v57  ;;  %v4210_v58 = vld [vmem:[#allocation2 + $0x188] sm:$0xff]  ;;  %v4882_v54 = vld [vmem:[%s6323_s18 + $0x98] sm:$0xff] }
 0x297   : > { %v4246_v55 = vmul.f32 %v8270_v35, %v4208_v17  ;;  %v4315_v15 = vmul.f32 %v8043_v31, %v4278_v39  ;;  %v4648_v62 = vadd.f32 %v4616_v12, %v4547_v1  ;;  %v4819_v38 = vmul.f32 %v8080_v60, %v4782_v25  ;;  %v4682_v7 = vld [vmem:[#allocation2 + $0x175] sm:$0xff]  ;;  %v4381_v44 = vld [vmem:[#allocation2 + $0x18a] sm:$0xff] }
 0x298   : > { %v4849_v33 = vadd.f32 %v4817_v29, %v4748_v19  ;;  %v4447_v59 = vadd.f32 %v4415_v63, %v4346_v4  ;;  %4944 = vst [vmem:[%s6323_s18 + $0x88] sm:$0xff] %v4912_v13  ;;  %v4416_v10 = vmul.f32 %v8279_v48, %v4379_v3  ;;  %v4517_v31 = vmul.f32 %v8059_v20, %v4480_v27  ;;  %v4783_v37 = vld [vmem:[#allocation2 + $0x176] sm:$0xff]  ;;  %v4582_v29 = vld [vmem:[#allocation2 + $0x184] sm:$0xff]  ;;  %v8305_v46 = vld [vmem:[%s8782_s1 + $0x2c] ss:$0 sm:$0xff] }
 0x299   : > { %v4347_v32 = vadd.f32 %v4315_v15, %v4246_v55  ;;  %v4618_v11 = vmul.f32 %v8066_v2, %v4581_v42  ;;  %v4749_v16 = vadd.f32 %v4717_v40, %v4648_v62  ;;  %v4247_v26 = vmul.f32 %v8270_v35, %v4209_v43  ;;  %v8290_v20 = vld [vmem:[%s8782_s1 + $0x29] ss:$0 sm:$0xff]  ;;  %v4482_v0 = vld [vmem:[#allocation2 + $0x18b] sm:$0xff]  ;;  %v4281_v63 = vld [vmem:[#allocation2 + $0x199] sm:$0xff] }
 0x29a   : > { %v4913_v51 = vadd.f32 %v4881_v36, %v4849_v33  ;;  %v4548_v56 = vadd.f32 %v4516_v52, %v4447_v59  ;;  %v4719_v21 = vmul.f32 %v8074_v14, %v4682_v7  ;;  %v4316_v2 = vmul.f32 %v8290_v20, %v4279_v45  ;;  %v8299_v14 = vld [vmem:[%s8782_s1 + $0x2b] ss:$0 sm:$0xff]  ;;  %v4583_v40 = vld [vmem:[#allocation2 + $0x18c] sm:$0xff]  ;;  %v4883_v52 = vld [vmem:[%s6323_s18 + $0xa0] sm:$0xff] }
 0x29b   : > { %v4448_v47 = vadd.f32 %v4416_v10, %v4347_v32  ;;  %v4417_v61 = vmul.f32 %v8279_v48, %v4380_v23  ;;  %v4850_v5 = vadd.f32 %v4818_v9, %v4749_v16  ;;  %v4820_v6 = vmul.f32 %v8080_v60, %v4783_v37  ;;  %v4683_v12 = vld [vmem:[#allocation2 + $0x185] sm:$0xff]  ;;  %v4211_v9 = vld [vmem:[#allocation2 + $0x198] sm:$0xff]  ;;  %v8315_v1 = vld [vmem:[%s8782_s1 + $0x2d] ss:$0 sm:$0xff] }
 0x29c   : > { %4945 = vst [vmem:[%s6323_s18 + $0x90] sm:$0xff] %v4913_v51  ;;  %v4649_v28 = vadd.f32 %v4617_v30, %v4548_v56  ;;  %v4518_v53 = vmul.f32 %v8299_v14, %v4481_v50  ;;  %v4784_v41 = vld [vmem:[#allocation2 + $0x186] sm:$0xff]  ;;  %v4348_v57 = vadd.f32 %v4316_v2, %v4247_v26  ;;  %v4619_v22 = vmul.f32 %v8305_v46, %v4582_v29  ;;  %v8321_v30 = vld [vmem:[%s8782_s1 + $0x2e] ss:$0 sm:$0xff]  ;;  %v4382_v42 = vld [vmem:[#allocation2 + $0x19a] sm:$0xff] }
 0x29d   : > { %v4549_v34 = vadd.f32 %v4517_v31, %v4448_v47  ;;  %v4248_v60 = vmul.f32 %v8270_v35, %v4210_v58  ;;  %v4914_v24 = vadd.f32 %v4882_v54, %v4850_v5  ;;  %v4317_v39 = vmul.f32 %v8290_v20, %v4280_v18  ;;  %v4684_v27 = vld [vmem:[#allocation2 + $0x18d] sm:$0xff]  ;;  %v4483_v15 = vld [vmem:[#allocation2 + $0x19b] sm:$0xff] }
 0x29e   : > { %v4750_v17 = vadd.f32 %v4718_v49, %v4649_v28  ;;  %v4418_v8 = vmul.f32 %v8279_v48, %v4381_v44  ;;  %v4449_v19 = vadd.f32 %v4417_v61, %v4348_v57  ;;  %v4720_v4 = vmul.f32 %v8315_v1, %v4683_v12  ;;  %v4785_v62 = vld [vmem:[#allocation2 + $0x18e] sm:$0xff]  ;;  %v4584_v45 = vld [vmem:[#allocation2 + $0x19c] sm:$0xff] }
 0x29f   : > { %v4650_v25 = vadd.f32 %v4618_v11, %v4549_v34  ;;  %v4821_v3 = vmul.f32 %v8321_v30, %v4784_v41  ;;  %4946 = vst [vmem:[%s6323_s18 + $0x98] sm:$0xff] %v4914_v24  ;;  %v4349_v36 = vadd.f32 %v4317_v39, %v4248_v60  ;;  %v4519_v49 = vmul.f32 %v8299_v14, %v4482_v0  ;;  %v4212_v23 = vld [vmem:[#allocation2 + $0x1a0] sm:$0xff]  ;;  %v4884_v10 = vld [vmem:[%s6323_s18 + $0xa8] sm:$0xff]  ;;  %v4283_v12 = vld [vmem:[#allocation2 + $0x1b1] sm:$0xff] }
 0x2a0   : > { %v4851_v13 = vadd.f32 %v4819_v38, %v4750_v17  ;;  %v4620_v55 = vmul.f32 %v8305_v46, %v4583_v40  ;;  %v4550_v33 = vadd.f32 %v4518_v53, %v4449_v19  ;;  %v4249_v59 = vmul.f32 %v8270_v35, %v4211_v9  ;;  %v4282_v37 = vld [vmem:[#allocation2 + $0x1a1] sm:$0xff]  ;;  %v4213_v53 = vld [vmem:[#allocation2 + $0x1b0] sm:$0xff] }
 0x2a1   : > { %v4751_v43 = vadd.f32 %v4719_v21, %v4650_v25  ;;  %v4318_v7 = vmul.f32 %v8290_v20, %v4281_v63  ;;  %v4450_v31 = vadd.f32 %v4418_v8, %v4349_v36  ;;  %v4721_v38 = vmul.f32 %v8315_v1, %v4684_v27  ;;  %v4685_v26 = vld [vmem:[#allocation2 + $0x19d] sm:$0xff]  ;;  %v4885_v41 = vld [vmem:[%s6323_s18 + $0xb0] sm:$0xff]  ;;  %v4686_v8 = vld [vmem:[#allocation2 + $0x1a5] sm:$0xff] }
 0x2a2   : > { %v4915_v32 = vadd.f32 %v4883_v52, %v4851_v13  ;;  %v4419_v11 = vmul.f32 %v8279_v48, %v4382_v42  ;;  %v4651_v51 = vadd.f32 %v4619_v22, %v4550_v33  ;;  %v4520_v56 = vmul.f32 %v8299_v14, %v4483_v15  ;;  %v4786_v29 = vld [vmem:[#allocation2 + $0x19e] sm:$0xff]  ;;  %v4384_v0 = vld [vmem:[#allocation2 + $0x1b2] sm:$0xff]  ;;  %v4787_v25 = vld [vmem:[#allocation2 + $0x1a6] sm:$0xff] }
 0x2a3   : > { %v4852_v50 = vadd.f32 %v4820_v6, %v4751_v43  ;;  %v4350_v16 = vadd.f32 %v4318_v7, %v4249_v59  ;;  %v4383_v58 = vld [vmem:[#allocation2 + $0x1a2] sm:$0xff]  ;;  %v4551_v54 = vadd.f32 %v4519_v49, %v4450_v31  ;;  %v4822_v47 = vmul.f32 %v8321_v30, %v4785_v62  ;;  %v4485_v9 = vld [vmem:[#allocation2 + $0x1b3] sm:$0xff] }
 0x2a4   : > { %4947 = vst [vmem:[%s6323_s18 + $0xa0] sm:$0xff] %v4915_v32  ;;  %v4621_v21 = vmul.f32 %v8305_v46, %v4584_v45  ;;  %v4250_v2 = vmul.f32 %v8270_v35, %v4212_v23  ;;  %v4484_v61 = vld [vmem:[#allocation2 + $0x1a3] sm:$0xff]  ;;  %v4752_v44 = vadd.f32 %v4720_v4, %v4651_v51  ;;  %v4319_v28 = vmul.f32 %v8290_v20, %v4282_v37  ;;  %v4586_v27 = vld [vmem:[#allocation2 + $0x1b4] sm:$0xff] }
 0x2a5   : > { %v4916_v18 = vadd.f32 %v4884_v10, %v4852_v50  ;;  %v4451_v5 = vadd.f32 %v4419_v11, %v4350_v16  ;;  %v4585_v6 = vld [vmem:[#allocation2 + $0x1a4] sm:$0xff]  ;;  %v4652_v34 = vadd.f32 %v4620_v55, %v4551_v54  ;;  %v4722_v57 = vmul.f32 %v8315_v1, %v4685_v26  ;;  %v4886_v13 = vld [vmem:[%s6323_s18 + $0xb8] sm:$0xff] }
 0x2a6   : > { %v4823_v22 = vmul.f32 %v8321_v30, %v4786_v29  ;;  %v4420_v60 = vmul.f32 %v8279_v48, %v4383_v58  ;;  %v4853_v40 = vadd.f32 %v4821_v3, %v4752_v44  ;;  %v4351_v17 = vadd.f32 %v4319_v28, %v4250_v2  ;;  %v4214_v55 = vld [vmem:[#allocation2 + $0x1b8] sm:$0xff]  ;;  %v4887_v50 = vld [vmem:[%s6323_s18 + $0xc0] sm:$0xff]  ;;  %v4386_v2 = vld [vmem:[#allocation2 + $0x1ca] sm:$0xff] }
 0x2a7   : > { %4948 = vst [vmem:[%s6323_s18 + $0xa8] sm:$0xff] %v4916_v18  ;;  %v4552_v24 = vadd.f32 %v4520_v56, %v4451_v5  ;;  %v4521_v39 = vmul.f32 %v8299_v14, %v4484_v61  ;;  %v4753_v63 = vadd.f32 %v4721_v38, %v4652_v34  ;;  %v4622_v52 = vmul.f32 %v8305_v46, %v4585_v6  ;;  %v4284_v15 = vld [vmem:[#allocation2 + $0x1b9] sm:$0xff] }
 0x2a8   : > { %v4251_v19 = vmul.f32 %v8270_v35, %v4213_v53  ;;  %v4320_v4 = vmul.f32 %v8290_v20, %v4283_v12  ;;  %v4917_v42 = vadd.f32 %v4885_v41, %v4853_v40  ;;  %v4452_v3 = vadd.f32 %v4420_v60, %v4351_v17  ;;  %v4687_v7 = vld [vmem:[#allocation2 + $0x1b5] sm:$0xff]  ;;  %v4688_v28 = vld [vmem:[#allocation2 + $0x1bd] sm:$0xff] }
 0x2a9   : > { %v4653_v36 = vadd.f32 %v4621_v21, %v4552_v24  ;;  %v4421_v49 = vmul.f32 %v8279_v48, %v4384_v0  ;;  %v4854_v43 = vadd.f32 %v4822_v47, %v4753_v63  ;;  %v4723_v33 = vmul.f32 %v8315_v1, %v4686_v8  ;;  %v4385_v45 = vld [vmem:[#allocation2 + $0x1ba] sm:$0xff]  ;;  %v4285_v21 = vld [vmem:[#allocation2 + $0x1c9] sm:$0xff]  ;;  %v4286_v60 = vld [vmem:[#allocation2 + $0x1d1] sm:$0xff] }
 0x2aa   : > { %v4352_v62 = vadd.f32 %v4320_v4, %v4251_v19  ;;  %v4522_v59 = vmul.f32 %v8299_v14, %v4485_v9  ;;  %4949 = vst [vmem:[%s6323_s18 + $0xb0] sm:$0xff] %v4917_v42  ;;  %v4553_v32 = vadd.f32 %v4521_v39, %v4452_v3  ;;  %v4824_v10 = vmul.f32 %v8321_v30, %v4787_v25  ;;  %v4788_v38 = vld [vmem:[#allocation2 + $0x1b6] sm:$0xff]  ;;  %v4789_v6 = vld [vmem:[#allocation2 + $0x1be] sm:$0xff]  ;;  %v4888_v0 = vld [vmem:[%s6323_s18 + $0xc8] sm:$0xff] }
 0x2ab   : > { %v4754_v23 = vadd.f32 %v4722_v57, %v4653_v36  ;;  %v4623_v31 = vmul.f32 %v8305_v46, %v4586_v27  ;;  %v4486_v11 = vld [vmem:[#allocation2 + $0x1bb] sm:$0xff]  ;;  %v4918_v37 = vadd.f32 %v4886_v13, %v4854_v43  ;;  %v4252_v16 = vmul.f32 %v8270_v35, %v4214_v55  ;;  %v4588_v8 = vld [vmem:[#allocation2 + $0x1cc] sm:$0xff] }
 0x2ac   : > { %v4453_v51 = vadd.f32 %v4421_v49, %v4352_v62  ;;  %v4321_v56 = vmul.f32 %v8290_v20, %v4284_v15  ;;  %v4587_v26 = vld [vmem:[#allocation2 + $0x1bc] sm:$0xff]  ;;  %v4654_v58 = vadd.f32 %v4622_v52, %v4553_v32  ;;  %v4724_v54 = vmul.f32 %v8315_v1, %v4687_v7  ;;  %v4387_v9 = vld [vmem:[#allocation2 + $0x1d2] sm:$0xff] }
 0x2ad   : > { %v4855_v29 = vadd.f32 %v4823_v22, %v4754_v23  ;;  %v4422_v47 = vmul.f32 %v8279_v48, %v4385_v45  ;;  %4950 = vst [vmem:[%s6323_s18 + $0xb8] sm:$0xff] %v4918_v37  ;;  %v4825_v18 = vmul.f32 %v8321_v30, %v4788_v38  ;;  %v4523_v5 = vmul.f32 %v8299_v14, %v4486_v11  ;;  %v6021_v34 = vld [vmem:[#allocation2] sm:$0xff]  ;;  %v4487_v22 = vld [vmem:[#allocation2 + $0x1cb] sm:$0xff]  ;;  %v4488_v36 = vld [vmem:[#allocation2 + $0x1d3] sm:$0xff] }
 0x2ae   : > { %v4554_v61 = vadd.f32 %v4522_v59, %v4453_v51  ;;  %v4353_v44 = vadd.f32 %v4321_v56, %v4252_v16  ;;  %v4755_v12 = vadd.f32 %v4723_v33, %v4654_v58  ;;  %v4624_v41 = vmul.f32 %v8305_v46, %v4587_v26  ;;  %v4790_v13 = vld [vmem:[#allocation2 + $0x1ce] sm:$0xff]  ;;  %v4287_v3 = vld [vmem:[#allocation2 + $0x1e1] sm:$0xff] }
 0x2af   : > { %v4919_v53 = vadd.f32 %v4887_v50, %v4855_v29  ;;  %v8364_v57 = vmul.f32 %v6021_v34, %v8270_v35  ;;  %v4322_v17 = vmul.f32 %v8290_v20, %v4285_v21  ;;  %v4423_v39 = vmul.f32 %v8279_v48, %v4386_v2  ;;  %v4689_v35 = vld [vmem:[#allocation2 + $0x1cd] sm:$0xff]  ;;  %v4388_v62 = vld [vmem:[#allocation2 + $0x1e2] sm:$0xff]  ;;  %v4690_v37 = vld [vmem:[#allocation2 + $0x1d5] sm:$0xff] }
 0x2b0   : > { %v4655_v40 = vadd.f32 %v4623_v31, %v4554_v61  ;;  %v4454_v24 = vadd.f32 %v4422_v47, %v4353_v44  ;;  %v4856_v63 = vadd.f32 %v4824_v10, %v4755_v12  ;;  %v4725_v52 = vmul.f32 %v8315_v1, %v4688_v28  ;;  %v4889_v55 = vld [vmem:[%s6323_s18 + $0xd0] sm:$0xff]  ;;  %v4489_v10 = vld [vmem:[#allocation2 + $0x1e3] sm:$0xff]  ;;  %v4890_v47 = vld [vmem:[%s6323_s18 + $0xd8] sm:$0xff] }
 0x2b1   : > { %4951 = vst [vmem:[%s6323_s18 + $0xc0] sm:$0xff] %v4919_v53  ;;  %v4826_v25 = vmul.f32 %v8321_v30, %v4789_v6  ;;  %v4354_v27 = vadd.f32 %v4322_v17, %v8364_v57  ;;  %v4524_v42 = vmul.f32 %v8299_v14, %v4487_v22  ;;  %v4625_v15 = vmul.f32 %v8305_v46, %v4588_v8  ;;  %v4589_v32 = vld [vmem:[#allocation2 + $0x1d4] sm:$0xff]  ;;  %v4590_v51 = vld [vmem:[#allocation2 + $0x1e4] sm:$0xff]  ;;  %v8395_v22 = vld [vmem:[%s8782_s1 + $0x30] ss:$0 sm:$0xff] }
 0x2b2   : > { %v4756_v19 = vadd.f32 %v4724_v54, %v4655_v40  ;;  %v4555_v4 = vadd.f32 %v4523_v5, %v4454_v24  ;;  %v4920_v49 = vadd.f32 %v4888_v0, %v4856_v63  ;;  %v4323_v43 = vmul.f32 %v8290_v20, %v4286_v60  ;;  %v4288_v58 = vld [vmem:[#allocation2 + $0x1e9] sm:$0xff]  ;;  %v4791_v61 = vld [vmem:[#allocation2 + $0x1d6] sm:$0xff]  ;;  %v8402_v8 = vld [vmem:[%s8782_s1 + $0x31] ss:$0 sm:$0xff] }
 0x2b3   : > { %v4424_v33 = vmul.f32 %v8279_v48, %v4387_v9  ;;  %v4455_v45 = vadd.f32 %v4423_v39, %v4354_v27  ;;  %v4726_v23 = vmul.f32 %v8315_v1, %v4689_v35  ;;  %v4827_v31 = vmul.f32 %v8321_v30, %v4790_v13  ;;  %v4389_v54 = vld [vmem:[#allocation2 + $0x1ea] sm:$0xff] }
 0x2b4   : > { %v4857_v59 = vadd.f32 %v4825_v18, %v4756_v19  ;;  %v4656_v7 = vadd.f32 %v4624_v41, %v4555_v4  ;;  %4952 = vst [vmem:[%s6323_s18 + $0xc8] sm:$0xff] %v4920_v49  ;;  %v4355_v38 = vadd.f32 %v4323_v43, %v8364_v57  ;;  %v4525_v11 = vmul.f32 %v8299_v14, %v4488_v36  ;;  %v4691_v5 = vld [vmem:[#allocation2 + $0x1e5] sm:$0xff]  ;;  %v4960_v34 = vld [vmem:[#allocation2 + $0x90] sm:$0xff] }
 0x2b5   : > { %v4324_v50 = vmul.f32 %v8290_v20, %v4287_v3  ;;  %v4556_v26 = vadd.f32 %v4524_v42, %v4455_v45  ;;  %v4425_v29 = vmul.f32 %v8279_v48, %v4388_v62  ;;  %v4626_v2 = vmul.f32 %v8305_v46, %v4589_v32  ;;  %v4490_v41 = vld [vmem:[#allocation2 + $0x1eb] sm:$0xff]  ;;  %v4891_v4 = vld [vmem:[%s6323_s18 + $0xe0] sm:$0xff]  ;;  %v5333_v45 = vld [vmem:[#allocation2 + $0x94] sm:$0xff] }
 0x2b6   : > { %v4921_v16 = vadd.f32 %v4889_v55, %v4857_v59  ;;  %v4757_v56 = vadd.f32 %v4725_v52, %v4656_v7  ;;  %v4456_v21 = vadd.f32 %v4424_v33, %v4355_v38  ;;  %v4526_v44 = vmul.f32 %v8299_v14, %v4489_v10  ;;  %v4792_v40 = vld [vmem:[#allocation2 + $0x1e6] sm:$0xff]  ;;  %v5030_v39 = vld [vmem:[#allocation2 + $0x91] sm:$0xff]  ;;  %v5031_v32 = vld [vmem:[#allocation2 + $0x99] sm:$0xff] }
 0x2b7   : > { %v4356_v18 = vadd.f32 %v4324_v50, %v8364_v57  ;;  %v4657_v6 = vadd.f32 %v4625_v15, %v4556_v26  ;;  %v4727_v53 = vmul.f32 %v8315_v1, %v4690_v37  ;;  %v4627_v12 = vmul.f32 %v8305_v46, %v4590_v51  ;;  %v4591_v35 = vld [vmem:[#allocation2 + $0x1ec] sm:$0xff]  ;;  %v8430_v50 = vld [vmem:[%s8782_s1 + $0x34] ss:$0 sm:$0xff]  ;;  %v5434_v51 = vld [vmem:[#allocation2 + $0x95] sm:$0xff] }
 0x2b8   : > { %4953 = vst [vmem:[%s6323_s18 + $0xd0] sm:$0xff] %v4921_v16  ;;  %v4858_v28 = vadd.f32 %v4826_v25, %v4757_v56  ;;  %v4557_v60 = vadd.f32 %v4525_v11, %v4456_v21  ;;  %v4325_v24 = vmul.f32 %v8290_v20, %v4288_v58  ;;  %v4426_v17 = vmul.f32 %v8279_v48, %v4389_v54  ;;  %v5131_v19 = vld [vmem:[#allocation2 + $0x92] sm:$0xff]  ;;  %v5132_v58 = vld [vmem:[#allocation2 + $0x9a] sm:$0xff] }
 0x2b9   : > { %v4457_v0 = vadd.f32 %v4425_v29, %v4356_v18  ;;  %v4758_v63 = vadd.f32 %v4726_v23, %v4657_v6  ;;  %v4828_v52 = vmul.f32 %v8321_v30, %v4791_v61  ;;  %v4728_v25 = vmul.f32 %v8315_v1, %v4691_v5  ;;  %v4692_v13 = vld [vmem:[#allocation2 + $0x1ed] sm:$0xff]  ;;  %v4961_v23 = vld [vmem:[#allocation2 + $0x98] sm:$0xff]  ;;  %v8436_v29 = vld [vmem:[%s8782_s1 + $0x35] ss:$0 sm:$0xff] }
 0x2ba   : > { %v4922_v9 = vadd.f32 %v4890_v47, %v4858_v28  ;;  %v4658_v27 = vadd.f32 %v4626_v2, %v4557_v60  ;;  %v4357_v48 = vadd.f32 %v4325_v24, %v8364_v57  ;;  %v4527_v42 = vmul.f32 %v8299_v14, %v4490_v41  ;;  %v8412_v36 = vld [vmem:[%s8782_s1 + $0x32] ss:$0 sm:$0xff]  ;;  %v5232_v33 = vld [vmem:[#allocation2 + $0x93] sm:$0xff]  ;;  %v5233_v18 = vld [vmem:[#allocation2 + $0x9b] sm:$0xff] }
 0x2bb   : > { %v4558_v20 = vadd.f32 %v4526_v44, %v4457_v0  ;;  %v4859_v3 = vadd.f32 %v4827_v31, %v4758_v63  ;;  %v4829_v49 = vmul.f32 %v8321_v30, %v4792_v40  ;;  %v4793_v55 = vld [vmem:[#allocation2 + $0x1ee] sm:$0xff]  ;;  %v4998_v15 = vmul.f32 %v8395_v22, %v4960_v34  ;;  %v8444_v2 = vld [vmem:[%s8782_s1 + $0x36] ss:$0 sm:$0xff]  ;;  %v5334_v40 = vld [vmem:[#allocation2 + $0x9c] sm:$0xff] }
 0x2bc   : > { %4954 = vst [vmem:[%s6323_s18 + $0xd8] sm:$0xff] %v4922_v9  ;;  %v5067_v43 = vmul.f32 %v8402_v8, %v5030_v39  ;;  %v8421_v14 = vld [vmem:[%s8782_s1 + $0x33] ss:$0 sm:$0xff]  ;;  %v4759_v57 = vadd.f32 %v4727_v53, %v4658_v27  ;;  %v4458_v59 = vadd.f32 %v4426_v17, %v4357_v48  ;;  %v4628_v7 = vmul.f32 %v8305_v46, %v4591_v35  ;;  %v4892_v31 = vld [vmem:[%s6323_s18 + $0xe8] sm:$0xff]  ;;  %v5435_v24 = vld [vmem:[#allocation2 + $0x9d] sm:$0xff] }
 0x2bd   : > { %v4659_v62 = vadd.f32 %v4627_v12, %v4558_v20  ;;  %v4923_v10 = vadd.f32 %v4891_v4, %v4859_v3  ;;  %v4729_v38 = vmul.f32 %v8315_v1, %v4692_v13  ;;  %v5168_v37 = vmul.f32 %v8412_v36, %v5131_v19  ;;  %v5535_v1 = vld [vmem:[#allocation2 + $0x96] sm:$0xff]  ;;  %v4962_v53 = vld [vmem:[#allocation2 + $0xa8] sm:$0xff]  ;;  %v5536_v17 = vld [vmem:[#allocation2 + $0x9e] sm:$0xff] }
 0x2be   : > { %v5099_v11 = vadd.f32 %v5067_v43, %v4998_v15  ;;  %v4860_v16 = vadd.f32 %v4828_v52, %v4759_v57  ;;  %v4559_v56 = vadd.f32 %v4527_v42, %v4458_v59  ;;  %v4830_v26 = vmul.f32 %v8321_v30, %v4793_v55  ;;  %v4893_v54 = vld [vmem:[%s6323_s18 + $0xf0] sm:$0xff]  ;;  %v4894_v19 = vld [vmem:[%s6323_s18 + $0xf8] sm:$0xff] }
 0x2bf   : > { %v4760_v46 = vadd.f32 %v4728_v25, %v4659_v62  ;;  %4955 = vst [vmem:[%s6323_s18 + $0xe0] sm:$0xff] %v4923_v10  ;;  %v5269_v21 = vmul.f32 %v8421_v14, %v5232_v33  ;;  %v4999_v61 = vmul.f32 %v8395_v22, %v4961_v23  ;;  %v5068_v30 = vmul.f32 %v8402_v8, %v5031_v32  ;;  %v5032_v12 = vld [vmem:[#allocation2 + $0xa9] sm:$0xff]  ;;  %v5033_v13 = vld [vmem:[#allocation2 + $0xb1] sm:$0xff]  ;;  %v5636_v10 = vld [vmem:[%s6323_s18] sm:$0xff] }
 0x2c0   : > { %v5200_v47 = vadd.f32 %v5168_v37, %v5099_v11  ;;  %v4924_v44 = vadd.f32 %v4892_v31, %v4860_v16  ;;  %v4660_v28 = vadd.f32 %v4628_v7, %v4559_v56  ;;  %v5370_v6 = vmul.f32 %v8430_v50, %v5333_v45  ;;  %v5133_v25 = vld [vmem:[#allocation2 + $0xaa] sm:$0xff]  ;;  %v5134_v23 = vld [vmem:[#allocation2 + $0xb2] sm:$0xff] }
 0x2c1   : > { %v4861_v5 = vadd.f32 %v4829_v49, %v4760_v46  ;;  %v5471_v34 = vmul.f32 %v8436_v29, %v5434_v51  ;;  %v5100_v60 = vadd.f32 %v5068_v30, %v4999_v61  ;;  %v5169_v0 = vmul.f32 %v8412_v36, %v5132_v58  ;;  %v5234_v35 = vld [vmem:[#allocation2 + $0xab] sm:$0xff]  ;;  %v5235_v37 = vld [vmem:[#allocation2 + $0xb3] sm:$0xff]  ;;  %v5034_v58 = vld [vmem:[#allocation2 + $0xc1] sm:$0xff] }
 0x2c2   : > { %v5301_v41 = vadd.f32 %v5269_v21, %v5200_v47  ;;  %4956 = vst [vmem:[%s6323_s18 + $0xe8] sm:$0xff] %v4924_v44  ;;  %v4761_v9 = vadd.f32 %v4729_v38, %v4660_v28  ;;  %v5572_v63 = vmul.f32 %v8444_v2, %v5535_v1  ;;  %v5270_v52 = vmul.f32 %v8421_v14, %v5233_v18  ;;  %v4963_v42 = vld [vmem:[#allocation2 + $0xb0] sm:$0xff]  ;;  %v4964_v1 = vld [vmem:[#allocation2 + $0xc0] sm:$0xff] }
 0x2c3   : > { %v4925_v39 = vadd.f32 %v4893_v54, %v4861_v5  ;;  %v5201_v27 = vadd.f32 %v5169_v0, %v5100_v60  ;;  %v5000_v20 = vmul.f32 %v8395_v22, %v4962_v53  ;;  %v5069_v48 = vmul.f32 %v8402_v8, %v5032_v12  ;;  %v5335_v43 = vld [vmem:[#allocation2 + $0xac] sm:$0xff]  ;;  %v5437_v30 = vld [vmem:[#allocation2 + $0xb5] sm:$0xff]  ;;  %v5135_v53 = vld [vmem:[#allocation2 + $0xc2] sm:$0xff] }
 0x2c4   : > { %v5402_v4 = vadd.f32 %v5370_v6, %v5301_v41  ;;  %v4862_v3 = vadd.f32 %v4830_v26, %v4761_v9  ;;  %v5371_v49 = vmul.f32 %v8430_v50, %v5334_v40  ;;  %v5472_v55 = vmul.f32 %v8436_v29, %v5435_v24  ;;  %v5436_v7 = vld [vmem:[#allocation2 + $0xad] sm:$0xff]  ;;  %v5538_v18 = vld [vmem:[#allocation2 + $0xb6] sm:$0xff]  ;;  %v5236_v12 = vld [vmem:[#allocation2 + $0xc3] sm:$0xff] }
 0x2c5   : > { %4957 = vst [vmem:[%s6323_s18 + $0xf0] sm:$0xff] %v4925_v39  ;;  %v5573_v15 = vmul.f32 %v8444_v2, %v5536_v17  ;;  %v5302_v57 = vadd.f32 %v5270_v52, %v5201_v27  ;;  %v5101_v62 = vadd.f32 %v5069_v48, %v5000_v20  ;;  %v5170_v59 = vmul.f32 %v8412_v36, %v5133_v25  ;;  %v5537_v45 = vld [vmem:[#allocation2 + $0xae] sm:$0xff]  ;;  %v5337_v25 = vld [vmem:[#allocation2 + $0xc4] sm:$0xff] }
 0x2c6   : > { %v5503_v33 = vadd.f32 %v5471_v34, %v5402_v4  ;;  %v4926_v32 = vadd.f32 %v4894_v19, %v4862_v3  ;;  %v5271_v31 = vmul.f32 %v8421_v14, %v5234_v35  ;;  %v5001_v38 = vmul.f32 %v8395_v22, %v4963_v42  ;;  %v5336_v26 = vld [vmem:[#allocation2 + $0xb4] sm:$0xff]  ;;  %v5637_v41 = vld [vmem:[%s6323_s18 + $0x8] sm:$0xff] }
 0x2c7   : > { %v5070_v11 = vmul.f32 %v8402_v8, %v5033_v13  ;;  %v5403_v16 = vadd.f32 %v5371_v49, %v5302_v57  ;;  %v5202_v46 = vadd.f32 %v5170_v59, %v5101_v62  ;;  %v5372_v56 = vmul.f32 %v8430_v50, %v5335_v43  ;;  %v4965_v24 = vld [vmem:[#allocation2 + $0xc8] sm:$0xff]  ;;  %v4966_v43 = vld [vmem:[#allocation2 + $0xd8] sm:$0xff] }
 0x2c8   : > { %v5604_v51 = vadd.f32 %v5572_v63, %v5503_v33  ;;  %4958 = vst [vmem:[%s6323_s18 + $0xf8] sm:$0xff] %v4926_v32  ;;  %v5473_v54 = vmul.f32 %v8436_v29, %v5436_v7  ;;  %v5574_v47 = vmul.f32 %v8444_v2, %v5537_v45  ;;  %v5171_v61 = vmul.f32 %v8412_v36, %v5134_v23  ;;  %v5035_v17 = vld [vmem:[#allocation2 + $0xc9] sm:$0xff]  ;;  %v5036_v23 = vld [vmem:[#allocation2 + $0xd9] sm:$0xff] }
 0x2c9   : > { %v5102_v21 = vadd.f32 %v5070_v11, %v5001_v38  ;;  %v5504_v5 = vadd.f32 %v5472_v55, %v5403_v16  ;;  %v5303_v28 = vadd.f32 %v5271_v31, %v5202_v46  ;;  %v5272_v6 = vmul.f32 %v8421_v14, %v5235_v37  ;;  %v5438_v35 = vld [vmem:[#allocation2 + $0xc5] sm:$0xff]  ;;  %v5638_v33 = vld [vmem:[%s6323_s18 + $0x10] sm:$0xff] }
 0x2ca   : > { %v5668_v44 = vadd.f32 %v5636_v10, %v5604_v51  ;;  %v5373_v60 = vmul.f32 %v8430_v50, %v5336_v26  ;;  %v5002_v0 = vmul.f32 %v8395_v22, %v4964_v1  ;;  %v5071_v40 = vmul.f32 %v8402_v8, %v5034_v58  ;;  %v5539_v48 = vld [vmem:[#allocation2 + $0xc6] sm:$0xff]  ;;  %v5540_v37 = vld [vmem:[#allocation2 + $0xce] sm:$0xff]  ;;  %v5137_v26 = vld [vmem:[#allocation2 + $0xda] sm:$0xff] }
 0x2cb   : > { %v5203_v34 = vadd.f32 %v5171_v61, %v5102_v21  ;;  %v5605_v39 = vadd.f32 %v5573_v15, %v5504_v5  ;;  %v5404_v9 = vadd.f32 %v5372_v56, %v5303_v28  ;;  %v5474_v63 = vmul.f32 %v8436_v29, %v5437_v30  ;;  %v5136_v42 = vld [vmem:[#allocation2 + $0xca] sm:$0xff]  ;;  %v5238_v1 = vld [vmem:[#allocation2 + $0xdb] sm:$0xff] }
 0x2cc   : > { %5700 = vst [vmem:[%s6323_s18] sm:$0xff] %v5668_v44  ;;  %v5575_v52 = vmul.f32 %v8444_v2, %v5538_v18  ;;  %v5103_v4 = vadd.f32 %v5071_v40, %v5002_v0  ;;  %v5172_v27 = vmul.f32 %v8412_v36, %v5135_v53  ;;  %v5273_v20 = vmul.f32 %v8421_v14, %v5236_v12  ;;  %v5237_v15 = vld [vmem:[#allocation2 + $0xcb] sm:$0xff]  ;;  %v4967_v30 = vld [vmem:[#allocation2 + $0xe0] sm:$0xff] }
 0x2cd   : > { %v5304_v19 = vadd.f32 %v5272_v6, %v5203_v34  ;;  %v5669_v13 = vadd.f32 %v5637_v41, %v5605_v39  ;;  %v5505_v3 = vadd.f32 %v5473_v54, %v5404_v9  ;;  %v5003_v49 = vmul.f32 %v8395_v22, %v4965_v24  ;;  %v5338_v45 = vld [vmem:[#allocation2 + $0xcc] sm:$0xff]  ;;  %v5639_v54 = vld [vmem:[%s6323_s18 + $0x18] sm:$0xff]  ;;  %v5037_v18 = vld [vmem:[#allocation2 + $0xe1] sm:$0xff] }
 0x2ce   : > { %v5072_v55 = vmul.f32 %v8402_v8, %v5035_v17  ;;  %v5204_v62 = vadd.f32 %v5172_v27, %v5103_v4  ;;  %v5374_v59 = vmul.f32 %v8430_v50, %v5337_v25  ;;  %v5475_v7 = vmul.f32 %v8436_v29, %v5438_v35  ;;  %v5439_v11 = vld [vmem:[#allocation2 + $0xcd] sm:$0xff]  ;;  %v5339_v53 = vld [vmem:[#allocation2 + $0xdc] sm:$0xff] }
 0x2cf   : > { %v5405_v57 = vadd.f32 %v5373_v60, %v5304_v19  ;;  %5701 = vst [vmem:[%s6323_s18 + $0x8] sm:$0xff] %v5669_v13  ;;  %v5606_v32 = vadd.f32 %v5574_v47, %v5505_v3  ;;  %v5576_v10 = vmul.f32 %v8444_v2, %v5539_v48  ;;  %v5173_v38 = vmul.f32 %v8412_v36, %v5136_v42  ;;  %v5440_v12 = vld [vmem:[#allocation2 + $0xdd] sm:$0xff]  ;;  %v4968_v25 = vld [vmem:[#allocation2 + $0xf0] sm:$0xff] }
 0x2d0   : > { %v5104_v31 = vadd.f32 %v5072_v55, %v5003_v49  ;;  %v5305_v16 = vadd.f32 %v5273_v20, %v5204_v62  ;;  %v5274_v46 = vmul.f32 %v8421_v14, %v5237_v15  ;;  %v5004_v56 = vmul.f32 %v8395_v22, %v4966_v43  ;;  %v5541_v40 = vld [vmem:[#allocation2 + $0xde] sm:$0xff]  ;;  %v5038_v42 = vld [vmem:[#allocation2 + $0xf1] sm:$0xff]  ;;  %v5542_v43 = vld [vmem:[#allocation2 + $0xe6] sm:$0xff] }
 0x2d1   : > { %v5506_v51 = vadd.f32 %v5474_v63, %v5405_v57  ;;  %v5670_v58 = vadd.f32 %v5638_v33, %v5606_v32  ;;  %v5375_v47 = vmul.f32 %v8430_v50, %v5338_v45  ;;  %v5073_v61 = vmul.f32 %v8402_v8, %v5036_v23  ;;  %v5138_v24 = vld [vmem:[#allocation2 + $0xe2] sm:$0xff]  ;;  %v5240_v45 = vld [vmem:[#allocation2 + $0xf3] sm:$0xff] }
 0x2d2   : > { %v5205_v21 = vadd.f32 %v5173_v38, %v5104_v31  ;;  %v5406_v5 = vadd.f32 %v5374_v59, %v5305_v16  ;;  %v5476_v28 = vmul.f32 %v8436_v29, %v5439_v11  ;;  %v5577_v6 = vmul.f32 %v8444_v2, %v5540_v37  ;;  %v5640_v35 = vld [vmem:[%s6323_s18 + $0x20] sm:$0xff]  ;;  %v5641_v32 = vld [vmem:[%s6323_s18 + $0x28] sm:$0xff]  ;;  %v4969_v11 = vld [vmem:[#allocation2 + $0xf8] sm:$0xff] }
 0x2d3   : > { %v5607_v44 = vadd.f32 %v5575_v52, %v5506_v51  ;;  %5702 = vst [vmem:[%s6323_s18 + $0x10] sm:$0xff] %v5670_v58  ;;  %v5105_v34 = vadd.f32 %v5073_v61, %v5004_v56  ;;  %v5174_v60 = vmul.f32 %v8412_v36, %v5137_v26  ;;  %v5275_v0 = vmul.f32 %v8421_v14, %v5238_v1  ;;  %v5239_v52 = vld [vmem:[#allocation2 + $0xe3] sm:$0xff]  ;;  %v5039_v37 = vld [vmem:[#allocation2 + $0xf9] sm:$0xff] }
 0x2d4   : > { %v5306_v41 = vadd.f32 %v5274_v46, %v5205_v21  ;;  %v5507_v39 = vadd.f32 %v5475_v7, %v5406_v5  ;;  %v5005_v9 = vmul.f32 %v8395_v22, %v4967_v30  ;;  %v5074_v63 = vmul.f32 %v8402_v8, %v5037_v18  ;;  %v5340_v48 = vld [vmem:[#allocation2 + $0xe4] sm:$0xff]  ;;  %v5139_v7 = vld [vmem:[#allocation2 + $0xf2] sm:$0xff]  ;;  %v5140_v30 = vld [vmem:[#allocation2 + $0xfa] sm:$0xff] }
 0x2d5   : > { %v5671_v17 = vadd.f32 %v5639_v54, %v5607_v44  ;;  %v5206_v4 = vadd.f32 %v5174_v60, %v5105_v34  ;;  %v5376_v27 = vmul.f32 %v8430_v50, %v5339_v53  ;;  %v5477_v20 = vmul.f32 %v8436_v29, %v5440_v12  ;;  %v5441_v15 = vld [vmem:[#allocation2 + $0xe5] sm:$0xff]  ;;  %v5341_v26 = vld [vmem:[#allocation2 + $0xf4] sm:$0xff] }
 0x2d6   : > { %v5407_v19 = vadd.f32 %v5375_v47, %v5306_v41  ;;  %v5608_v13 = vadd.f32 %v5576_v10, %v5507_v39  ;;  %v5578_v3 = vmul.f32 %v8444_v2, %v5541_v40  ;;  %v5106_v49 = vadd.f32 %v5074_v63, %v5005_v9  ;;  %v5442_v1 = vld [vmem:[#allocation2 + $0xf5] sm:$0xff]  ;;  %v4970_v53 = vld [vmem:[#allocation2 + $0x108] sm:$0xff] }
 0x2d7   : > { %5703 = vst [vmem:[%s6323_s18 + $0x18] sm:$0xff] %v5671_v17  ;;  %v5175_v55 = vmul.f32 %v8412_v36, %v5138_v24  ;;  %v5307_v57 = vadd.f32 %v5275_v0, %v5206_v4  ;;  %v5276_v62 = vmul.f32 %v8421_v14, %v5239_v52  ;;  %v5006_v59 = vmul.f32 %v8395_v22, %v4968_v25  ;;  %v5543_v61 = vld [vmem:[#allocation2 + $0xf6] sm:$0xff]  ;;  %v5040_v24 = vld [vmem:[#allocation2 + $0x109] sm:$0xff]  ;;  %v5544_v25 = vld [vmem:[#allocation2 + $0xfe] sm:$0xff] }
 0x2d8   : > { %v5508_v33 = vadd.f32 %v5476_v28, %v5407_v19  ;;  %v5672_v23 = vadd.f32 %v5640_v35, %v5608_v13  ;;  %v5377_v10 = vmul.f32 %v8430_v50, %v5340_v48  ;;  %v5075_v38 = vmul.f32 %v8402_v8, %v5038_v42  ;;  %v5642_v12 = vld [vmem:[%s6323_s18 + $0x30] sm:$0xff]  ;;  %v5342_v40 = vld [vmem:[#allocation2 + $0xfc] sm:$0xff] }
 0x2d9   : > { %v5207_v31 = vadd.f32 %v5175_v55, %v5106_v49  ;;  %v5408_v16 = vadd.f32 %v5376_v27, %v5307_v57  ;;  %v5478_v46 = vmul.f32 %v8436_v29, %v5441_v15  ;;  %v5579_v56 = vmul.f32 %v8444_v2, %v5542_v43  ;;  %v5443_v52 = vld [vmem:[#allocation2 + $0xfd] sm:$0xff]  ;;  %v5242_v48 = vld [vmem:[#allocation2 + $0x10b] sm:$0xff] }
 0x2da   : > { %v5609_v51 = vadd.f32 %v5577_v6, %v5508_v33  ;;  %5704 = vst [vmem:[%s6323_s18 + $0x20] sm:$0xff] %v5672_v23  ;;  %v5107_v54 = vadd.f32 %v5075_v38, %v5006_v59  ;;  %v5176_v21 = vmul.f32 %v8412_v36, %v5139_v7  ;;  %v5277_v47 = vmul.f32 %v8421_v14, %v5240_v45  ;;  %v5241_v6 = vld [vmem:[#allocation2 + $0xfb] sm:$0xff]  ;;  %v4971_v15 = vld [vmem:[#allocation2 + $0x110] sm:$0xff] }
 0x2db   : > { %v5308_v58 = vadd.f32 %v5276_v62, %v5207_v31  ;;  %v5509_v44 = vadd.f32 %v5477_v20, %v5408_v16  ;;  %v5007_v5 = vmul.f32 %v8395_v22, %v4969_v11  ;;  %v5076_v28 = vmul.f32 %v8402_v8, %v5039_v37  ;;  %v5141_v20 = vld [vmem:[#allocation2 + $0x10a] sm:$0xff]  ;;  %v5643_v13 = vld [vmem:[%s6323_s18 + $0x38] sm:$0xff] }
 0x2dc   : > { %v5673_v18 = vadd.f32 %v5641_v32, %v5609_v51  ;;  %v5208_v34 = vadd.f32 %v5176_v21, %v5107_v54  ;;  %v5378_v60 = vmul.f32 %v8430_v50, %v5341_v26  ;;  %v5479_v0 = vmul.f32 %v8436_v29, %v5442_v1  ;;  %v5041_v43 = vld [vmem:[#allocation2 + $0x111] sm:$0xff]  ;;  %v4972_v26 = vld [vmem:[#allocation2 + $0x120] sm:$0xff] }
 0x2dd   : > { %v5409_v41 = vadd.f32 %v5377_v10, %v5308_v58  ;;  %v5610_v17 = vadd.f32 %v5578_v3, %v5509_v44  ;;  %v5580_v39 = vmul.f32 %v8444_v2, %v5543_v61  ;;  %v5108_v9 = vadd.f32 %v5076_v28, %v5007_v5  ;;  %v5343_v7 = vld [vmem:[#allocation2 + $0x10c] sm:$0xff]  ;;  %v5644_v1 = vld [vmem:[%s6323_s18 + $0x40] sm:$0xff]  ;;  %v5344_v61 = vld [vmem:[#allocation2 + $0x114] sm:$0xff] }
 0x2de   : > { %5705 = vst [vmem:[%s6323_s18 + $0x28] sm:$0xff] %v5673_v18  ;;  %v5177_v63 = vmul.f32 %v8412_v36, %v5140_v30  ;;  %v5309_v19 = vadd.f32 %v5277_v47, %v5208_v34  ;;  %v5278_v4 = vmul.f32 %v8421_v14, %v5241_v6  ;;  %v5008_v27 = vmul.f32 %v8395_v22, %v4970_v53  ;;  %v5444_v45 = vld [vmem:[#allocation2 + $0x10d] sm:$0xff]  ;;  %v5042_v30 = vld [vmem:[#allocation2 + $0x121] sm:$0xff]  ;;  %v5445_v6 = vld [vmem:[#allocation2 + $0x115] sm:$0xff] }
 0x2df   : > { %v5510_v35 = vadd.f32 %v5478_v46, %v5409_v41  ;;  %v5674_v42 = vadd.f32 %v5642_v12, %v5610_v17  ;;  %v5379_v3 = vmul.f32 %v8430_v50, %v5342_v40  ;;  %v5077_v55 = vmul.f32 %v8402_v8, %v5040_v24  ;;  %v5545_v38 = vld [vmem:[#allocation2 + $0x10e] sm:$0xff]  ;;  %v5546_v53 = vld [vmem:[#allocation2 + $0x116] sm:$0xff]  ;;  %v5244_v40 = vld [vmem:[#allocation2 + $0x123] sm:$0xff] }
 0x2e0   : > { %v5209_v49 = vadd.f32 %v5177_v63, %v5108_v9  ;;  %v5410_v57 = vadd.f32 %v5378_v60, %v5309_v19  ;;  %v5480_v62 = vmul.f32 %v8436_v29, %v5443_v52  ;;  %v5581_v59 = vmul.f32 %v8444_v2, %v5544_v25  ;;  %v5142_v11 = vld [vmem:[#allocation2 + $0x112] sm:$0xff]  ;;  %v5645_v17 = vld [vmem:[%s6323_s18 + $0x48] sm:$0xff] }
 0x2e1   : > { %v5611_v33 = vadd.f32 %v5579_v56, %v5510_v35  ;;  %5706 = vst [vmem:[%s6323_s18 + $0x30] sm:$0xff] %v5674_v42  ;;  %v5109_v32 = vadd.f32 %v5077_v55, %v5008_v27  ;;  %v5178_v31 = vmul.f32 %v8412_v36, %v5141_v20  ;;  %v5279_v10 = vmul.f32 %v8421_v14, %v5242_v48  ;;  %v5243_v56 = vld [vmem:[#allocation2 + $0x113] sm:$0xff]  ;;  %v4973_v52 = vld [vmem:[#allocation2 + $0x128] sm:$0xff] }
 0x2e2   : > { %v5310_v23 = vadd.f32 %v5278_v4, %v5209_v49  ;;  %v5511_v51 = vadd.f32 %v5479_v0, %v5410_v57  ;;  %v5009_v16 = vmul.f32 %v8395_v22, %v4971_v15  ;;  %v5078_v46 = vmul.f32 %v8402_v8, %v5041_v43  ;;  %v5143_v0 = vld [vmem:[#allocation2 + $0x122] sm:$0xff]  ;;  %v5144_v15 = vld [vmem:[#allocation2 + $0x12a] sm:$0xff] }
 0x2e3   : > { %v5675_v37 = vadd.f32 %v5643_v13, %v5611_v33  ;;  %v5210_v54 = vadd.f32 %v5178_v31, %v5109_v32  ;;  %v5380_v21 = vmul.f32 %v8430_v50, %v5343_v7  ;;  %v5481_v47 = vmul.f32 %v8436_v29, %v5444_v45  ;;  %v5043_v25 = vld [vmem:[#allocation2 + $0x129] sm:$0xff]  ;;  %v4974_v7 = vld [vmem:[#allocation2 + $0x138] sm:$0xff] }
 0x2e4   : > { %v5411_v58 = vadd.f32 %v5379_v3, %v5310_v23  ;;  %v5612_v18 = vadd.f32 %v5580_v39, %v5511_v51  ;;  %v5582_v44 = vmul.f32 %v8444_v2, %v5545_v38  ;;  %v5110_v5 = vadd.f32 %v5078_v46, %v5009_v16  ;;  %v5345_v20 = vld [vmem:[#allocation2 + $0x124] sm:$0xff]  ;;  %v5646_v45 = vld [vmem:[%s6323_s18 + $0x50] sm:$0xff] }
 0x2e5   : > { %5707 = vst [vmem:[%s6323_s18 + $0x38] sm:$0xff] %v5675_v37  ;;  %v5179_v28 = vmul.f32 %v8412_v36, %v5142_v11  ;;  %v5311_v41 = vadd.f32 %v5279_v10, %v5210_v54  ;;  %v5280_v34 = vmul.f32 %v8421_v14, %v5243_v56  ;;  %v5010_v60 = vmul.f32 %v8395_v22, %v4972_v26  ;;  %v5446_v48 = vld [vmem:[#allocation2 + $0x125] sm:$0xff]  ;;  %v5044_v11 = vld [vmem:[#allocation2 + $0x139] sm:$0xff]  ;;  %v5447_v56 = vld [vmem:[#allocation2 + $0x12d] sm:$0xff] }
 0x2e6   : > { %v5512_v12 = vadd.f32 %v5480_v62, %v5411_v58  ;;  %v5676_v24 = vadd.f32 %v5644_v1, %v5612_v18  ;;  %v5381_v39 = vmul.f32 %v8430_v50, %v5344_v61  ;;  %v5079_v63 = vmul.f32 %v8402_v8, %v5042_v30  ;;  %v5547_v55 = vld [vmem:[#allocation2 + $0x126] sm:$0xff]  ;;  %v5548_v26 = vld [vmem:[#allocation2 + $0x12e] sm:$0xff]  ;;  %v5246_v61 = vld [vmem:[#allocation2 + $0x13b] sm:$0xff] }
 0x2e7   : > { %v5211_v9 = vadd.f32 %v5179_v28, %v5110_v5  ;;  %v5412_v19 = vadd.f32 %v5380_v21, %v5311_v41  ;;  %v5482_v4 = vmul.f32 %v8436_v29, %v5445_v6  ;;  %v5583_v27 = vmul.f32 %v8444_v2, %v5546_v53  ;;  %v5346_v38 = vld [vmem:[#allocation2 + $0x12c] sm:$0xff]  ;;  %v5647_v18 = vld [vmem:[%s6323_s18 + $0x58] sm:$0xff]  ;;  %v4975_v6 = vld [vmem:[#allocation2 + $0x140] sm:$0xff] }
 0x2e8   : > { %v5613_v35 = vadd.f32 %v5581_v59, %v5512_v12  ;;  %5708 = vst [vmem:[%s6323_s18 + $0x40] sm:$0xff] %v5676_v24  ;;  %v5111_v13 = vadd.f32 %v5079_v63, %v5010_v60  ;;  %v5180_v49 = vmul.f32 %v8412_v36, %v5143_v0  ;;  %v5281_v3 = vmul.f32 %v8421_v14, %v5244_v40  ;;  %v5245_v59 = vld [vmem:[#allocation2 + $0x12b] sm:$0xff]  ;;  %v5045_v53 = vld [vmem:[#allocation2 + $0x141] sm:$0xff] }
 0x2e9   : > { %v5312_v42 = vadd.f32 %v5280_v34, %v5211_v9  ;;  %v5513_v33 = vadd.f32 %v5481_v47, %v5412_v19  ;;  %v5011_v57 = vmul.f32 %v8395_v22, %v4973_v52  ;;  %v5080_v62 = vmul.f32 %v8402_v8, %v5043_v25  ;;  %v5145_v47 = vld [vmem:[#allocation2 + $0x13a] sm:$0xff]  ;;  %v5146_v52 = vld [vmem:[#allocation2 + $0x142] sm:$0xff] }
 0x2ea   : > { %v5677_v43 = vadd.f32 %v5645_v17, %v5613_v35  ;;  %v5212_v32 = vadd.f32 %v5180_v49, %v5111_v13  ;;  %v5382_v31 = vmul.f32 %v8430_v50, %v5345_v20  ;;  %v5483_v10 = vmul.f32 %v8436_v29, %v5446_v48  ;;  %v5347_v0 = vld [vmem:[#allocation2 + $0x13c] sm:$0xff]  ;;  %v4976_v20 = vld [vmem:[#allocation2 + $0x150] sm:$0xff] }
 0x2eb   : > { %v5413_v23 = vadd.f32 %v5381_v39, %v5312_v42  ;;  %v5614_v37 = vadd.f32 %v5582_v44, %v5513_v33  ;;  %v5584_v51 = vmul.f32 %v8444_v2, %v5547_v55  ;;  %v5112_v16 = vadd.f32 %v5080_v62, %v5011_v57  ;;  %v5448_v40 = vld [vmem:[#allocation2 + $0x13d] sm:$0xff] }
 0x2ec   : > { %5709 = vst [vmem:[%s6323_s18 + $0x48] sm:$0xff] %v5677_v43  ;;  %v5181_v46 = vmul.f32 %v8412_v36, %v5144_v15  ;;  %v5313_v58 = vadd.f32 %v5281_v3, %v5212_v32  ;;  %v5282_v54 = vmul.f32 %v8421_v14, %v5245_v59  ;;  %v5012_v21 = vmul.f32 %v8395_v22, %v4974_v7  ;;  %v5549_v63 = vld [vmem:[#allocation2 + $0x13e] sm:$0xff]  ;;  %v5046_v15 = vld [vmem:[#allocation2 + $0x151] sm:$0xff]  ;;  %v5550_v7 = vld [vmem:[#allocation2 + $0x146] sm:$0xff] }
 0x2ed   : > { %v5514_v1 = vadd.f32 %v5482_v4, %v5413_v23  ;;  %v5678_v30 = vadd.f32 %v5646_v45, %v5614_v37  ;;  %v5383_v44 = vmul.f32 %v8430_v50, %v5346_v38  ;;  %v5081_v28 = vmul.f32 %v8402_v8, %v5044_v11  ;;  %v5648_v48 = vld [vmem:[%s6323_s18 + $0x60] sm:$0xff]  ;;  %v5248_v38 = vld [vmem:[#allocation2 + $0x153] sm:$0xff]  ;;  %v5649_v37 = vld [vmem:[%s6323_s18 + $0x68] sm:$0xff] }
 0x2ee   : > { %v5213_v5 = vadd.f32 %v5181_v46, %v5112_v16  ;;  %v5414_v41 = vadd.f32 %v5382_v31, %v5313_v58  ;;  %v5484_v34 = vmul.f32 %v8436_v29, %v5447_v56  ;;  %v5585_v60 = vmul.f32 %v8444_v2, %v5548_v26  ;;  %v5348_v55 = vld [vmem:[#allocation2 + $0x144] sm:$0xff]  ;;  %v4977_v56 = vld [vmem:[#allocation2 + $0x158] sm:$0xff] }
 0x2ef   : > { %v5615_v12 = vadd.f32 %v5583_v27, %v5514_v1  ;;  %5710 = vst [vmem:[%s6323_s18 + $0x50] sm:$0xff] %v5678_v30  ;;  %v5113_v17 = vadd.f32 %v5081_v28, %v5012_v21  ;;  %v5182_v9 = vmul.f32 %v8412_v36, %v5145_v47  ;;  %v5283_v39 = vmul.f32 %v8421_v14, %v5246_v61  ;;  %v5247_v27 = vld [vmem:[#allocation2 + $0x143] sm:$0xff]  ;;  %v5047_v26 = vld [vmem:[#allocation2 + $0x159] sm:$0xff] }
 0x2f0   : > { %v5314_v24 = vadd.f32 %v5282_v54, %v5213_v5  ;;  %v5515_v35 = vadd.f32 %v5483_v10, %v5414_v41  ;;  %v5013_v19 = vmul.f32 %v8395_v22, %v4975_v6  ;;  %v5082_v4 = vmul.f32 %v8402_v8, %v5045_v53  ;;  %v5449_v59 = vld [vmem:[#allocation2 + $0x145] sm:$0xff]  ;;  %v5147_v10 = vld [vmem:[#allocation2 + $0x152] sm:$0xff]  ;;  %v5148_v6 = vld [vmem:[#allocation2 + $0x15a] sm:$0xff] }
 0x2f1   : > { %v5679_v25 = vadd.f32 %v5647_v18, %v5615_v12  ;;  %v5214_v13 = vadd.f32 %v5182_v9, %v5113_v17  ;;  %v5384_v49 = vmul.f32 %v8430_v50, %v5347_v0  ;;  %v5485_v3 = vmul.f32 %v8436_v29, %v5448_v40  ;;  %v5349_v47 = vld [vmem:[#allocation2 + $0x154] sm:$0xff]  ;;  %v4978_v0 = vld [vmem:[#allocation2 + $0x168] sm:$0xff] }
 0x2f2   : > { %v5415_v42 = vadd.f32 %v5383_v44, %v5314_v24  ;;  %v5616_v43 = vadd.f32 %v5584_v51, %v5515_v35  ;;  %v5586_v33 = vmul.f32 %v8444_v2, %v5549_v63  ;;  %v5114_v57 = vadd.f32 %v5082_v4, %v5013_v19  ;;  %v5450_v61 = vld [vmem:[#allocation2 + $0x155] sm:$0xff] }
 0x2f3   : > { %5711 = vst [vmem:[%s6323_s18 + $0x58] sm:$0xff] %v5679_v25  ;;  %v5183_v62 = vmul.f32 %v8412_v36, %v5146_v52  ;;  %v5315_v23 = vadd.f32 %v5283_v39, %v5214_v13  ;;  %v5284_v32 = vmul.f32 %v8421_v14, %v5247_v27  ;;  %v5014_v31 = vmul.f32 %v8395_v22, %v4976_v20  ;;  %v5551_v28 = vld [vmem:[#allocation2 + $0x156] sm:$0xff]  ;;  %v5048_v52 = vld [vmem:[#allocation2 + $0x169] sm:$0xff]  ;;  %v5552_v20 = vld [vmem:[#allocation2 + $0x15e] sm:$0xff] }
 0x2f4   : > { %v5516_v45 = vadd.f32 %v5484_v34, %v5415_v42  ;;  %v5680_v11 = vadd.f32 %v5648_v48, %v5616_v43  ;;  %v5385_v51 = vmul.f32 %v8430_v50, %v5348_v55  ;;  %v5083_v46 = vmul.f32 %v8402_v8, %v5046_v15  ;;  %v5650_v40 = vld [vmem:[%s6323_s18 + $0x70] sm:$0xff]  ;;  %v5350_v63 = vld [vmem:[#allocation2 + $0x15c] sm:$0xff] }
 0x2f5   : > { %v5215_v16 = vadd.f32 %v5183_v62, %v5114_v57  ;;  %v5416_v58 = vadd.f32 %v5384_v49, %v5315_v23  ;;  %v5486_v54 = vmul.f32 %v8436_v29, %v5449_v59  ;;  %v5587_v21 = vmul.f32 %v8444_v2, %v5550_v7  ;;  %v5451_v27 = vld [vmem:[#allocation2 + $0x15d] sm:$0xff]  ;;  %v5250_v55 = vld [vmem:[#allocation2 + $0x16b] sm:$0xff] }
 0x2f6   : > { %v5617_v1 = vadd.f32 %v5585_v60, %v5516_v45  ;;  %5712 = vst [vmem:[%s6323_s18 + $0x60] sm:$0xff] %v5680_v11  ;;  %v5115_v18 = vadd.f32 %v5083_v46, %v5014_v31  ;;  %v5184_v5 = vmul.f32 %v8412_v36, %v5147_v10  ;;  %v5285_v44 = vmul.f32 %v8421_v14, %v5248_v38  ;;  %v5249_v60 = vld [vmem:[#allocation2 + $0x15b] sm:$0xff]  ;;  %v4979_v59 = vld [vmem:[#allocation2 + $0x170] sm:$0xff] }
 0x2f7   : > { %v5316_v30 = vadd.f32 %v5284_v32, %v5215_v16  ;;  %v5517_v12 = vadd.f32 %v5485_v3, %v5416_v58  ;;  %v5015_v41 = vmul.f32 %v8395_v22, %v4977_v56  ;;  %v5084_v34 = vmul.f32 %v8402_v8, %v5047_v26  ;;  %v5149_v3 = vld [vmem:[#allocation2 + $0x16a] sm:$0xff]  ;;  %v5651_v43 = vld [vmem:[%s6323_s18 + $0x78] sm:$0xff] }
 0x2f8   : > { %v5681_v53 = vadd.f32 %v5649_v37, %v5617_v1  ;;  %v5216_v17 = vadd.f32 %v5184_v5, %v5115_v18  ;;  %v5386_v9 = vmul.f32 %v8430_v50, %v5349_v47  ;;  %v5487_v39 = vmul.f32 %v8436_v29, %v5450_v61  ;;  %v5049_v7 = vld [vmem:[#allocation2 + $0x171] sm:$0xff]  ;;  %v4980_v47 = vld [vmem:[#allocation2 + $0x180] sm:$0xff] }
 0x2f9   : > { %v5417_v24 = vadd.f32 %v5385_v51, %v5316_v30  ;;  %v5618_v25 = vadd.f32 %v5586_v33, %v5517_v12  ;;  %v5588_v35 = vmul.f32 %v8444_v2, %v5551_v28  ;;  %v5116_v19 = vadd.f32 %v5084_v34, %v5015_v41  ;;  %v5351_v10 = vld [vmem:[#allocation2 + $0x16c] sm:$0xff]  ;;  %v5652_v61 = vld [vmem:[%s6323_s18 + $0x80] sm:$0xff] }
 0x2fa   : > { %5713 = vst [vmem:[%s6323_s18 + $0x68] sm:$0xff] %v5681_v53  ;;  %v5185_v4 = vmul.f32 %v8412_v36, %v5148_v6  ;;  %v5317_v42 = vadd.f32 %v5285_v44, %v5216_v17  ;;  %v5286_v13 = vmul.f32 %v8421_v14, %v5249_v60  ;;  %v5016_v49 = vmul.f32 %v8395_v22, %v4978_v0  ;;  %v5452_v38 = vld [vmem:[#allocation2 + $0x16d] sm:$0xff]  ;;  %v5050_v28 = vld [vmem:[#allocation2 + $0x181] sm:$0xff]  ;;  %v5453_v0 = vld [vmem:[#allocation2 + $0x175] sm:$0xff] }
 0x2fb   : > { %v5518_v48 = vadd.f32 %v5486_v54, %v5417_v24  ;;  %v5682_v15 = vadd.f32 %v5650_v40, %v5618_v25  ;;  %v5387_v33 = vmul.f32 %v8430_v50, %v5350_v63  ;;  %v5085_v62 = vmul.f32 %v8402_v8, %v5048_v52  ;;  %v5553_v46 = vld [vmem:[#allocation2 + $0x16e] sm:$0xff]  ;;  %v5151_v6 = vld [vmem:[#allocation2 + $0x182] sm:$0xff] }
 0x2fc   : > { %v5217_v57 = vadd.f32 %v5185_v4, %v5116_v19  ;;  %v5418_v23 = vadd.f32 %v5386_v9, %v5317_v42  ;;  %v5488_v32 = vmul.f32 %v8436_v29, %v5451_v27  ;;  %v5589_v31 = vmul.f32 %v8444_v2, %v5552_v20  ;;  %v5150_v56 = vld [vmem:[#allocation2 + $0x172] sm:$0xff]  ;;  %v5252_v63 = vld [vmem:[#allocation2 + $0x183] sm:$0xff] }
 0x2fd   : > { %v5619_v45 = vadd.f32 %v5587_v21, %v5518_v48  ;;  %5714 = vst [vmem:[%s6323_s18 + $0x70] sm:$0xff] %v5682_v15  ;;  %v5117_v37 = vadd.f32 %v5085_v62, %v5016_v49  ;;  %v5186_v16 = vmul.f32 %v8412_v36, %v5149_v3  ;;  %v5287_v51 = vmul.f32 %v8421_v14, %v5250_v55  ;;  %v5251_v21 = vld [vmem:[#allocation2 + $0x173] sm:$0xff]  ;;  %v5653_v25 = vld [vmem:[%s6323_s18 + $0x88] sm:$0xff] }
 0x2fe   : > { %v5318_v11 = vadd.f32 %v5286_v13, %v5217_v57  ;;  %v5519_v1 = vadd.f32 %v5487_v39, %v5418_v23  ;;  %v5017_v58 = vmul.f32 %v8395_v22, %v4979_v59  ;;  %v5086_v54 = vmul.f32 %v8402_v8, %v5049_v7  ;;  %v5352_v60 = vld [vmem:[#allocation2 + $0x174] sm:$0xff]  ;;  %v4981_v27 = vld [vmem:[#allocation2 + $0x188] sm:$0xff] }
 0x2ff   : > { %v5683_v26 = vadd.f32 %v5651_v43, %v5619_v45  ;;  %v5218_v18 = vadd.f32 %v5186_v16, %v5117_v37  ;;  %v5388_v5 = vmul.f32 %v8430_v50, %v5351_v10  ;;  %v5489_v44 = vmul.f32 %v8436_v29, %v5452_v38  ;;  %v5554_v9 = vld [vmem:[#allocation2 + $0x176] sm:$0xff]  ;;  %v5051_v20 = vld [vmem:[#allocation2 + $0x189] sm:$0xff] }
 0x300   : > { %v5419_v30 = vadd.f32 %v5387_v33, %v5318_v11  ;;  %v5620_v53 = vadd.f32 %v5588_v35, %v5519_v1  ;;  %v5590_v12 = vmul.f32 %v8444_v2, %v5553_v46  ;;  %v5118_v41 = vadd.f32 %v5086_v54, %v5017_v58  ;;  %v5353_v3 = vld [vmem:[#allocation2 + $0x184] sm:$0xff]  ;;  %v8628_v45 = vld [vmem:[%s8782_s1 + $0x30] ss:$0 sm:$0xff]  ;;  %v4982_v10 = vld [vmem:[#allocation2 + $0x198] sm:$0xff] }
 0x301   : > { %5715 = vst [vmem:[%s6323_s18 + $0x78] sm:$0xff] %v5683_v26  ;;  %v5187_v34 = vmul.f32 %v8412_v36, %v5150_v56  ;;  %v5319_v24 = vadd.f32 %v5287_v51, %v5218_v18  ;;  %v5288_v17 = vmul.f32 %v8421_v14, %v5251_v21  ;;  %v5018_v39 = vmul.f32 %v8395_v22, %v4980_v47  ;;  %v5152_v55 = vld [vmem:[#allocation2 + $0x18a] sm:$0xff]  ;;  %v5052_v46 = vld [vmem:[#allocation2 + $0x199] sm:$0xff] }
 0x302   : > { %v5520_v40 = vadd.f32 %v5488_v32, %v5419_v30  ;;  %v5684_v52 = vadd.f32 %v5652_v61, %v5620_v53  ;;  %v5087_v35 = vmul.f32 %v8402_v8, %v5050_v28  ;;  %v5188_v4 = vmul.f32 %v8412_v36, %v5151_v6  ;;  %v5454_v33 = vld [vmem:[#allocation2 + $0x185] sm:$0xff]  ;;  %v5654_v38 = vld [vmem:[%s6323_s18 + $0x90] sm:$0xff]  ;;  %v5153_v56 = vld [vmem:[#allocation2 + $0x19a] sm:$0xff] }
 0x303   : > { %v5219_v19 = vadd.f32 %v5187_v34, %v5118_v41  ;;  %v5420_v42 = vadd.f32 %v5388_v5, %v5319_v24  ;;  %v5389_v13 = vmul.f32 %v8430_v50, %v5352_v60  ;;  %v5490_v49 = vmul.f32 %v8436_v29, %v5453_v0  ;;  %v5253_v62 = vld [vmem:[#allocation2 + $0x18b] sm:$0xff]  ;;  %v5655_v28 = vld [vmem:[%s6323_s18 + $0x98] sm:$0xff]  ;;  %v4983_v41 = vld [vmem:[#allocation2 + $0x1a0] sm:$0xff] }
 0x304   : > { %v5621_v48 = vadd.f32 %v5589_v31, %v5520_v40  ;;  %5716 = vst [vmem:[%s6323_s18 + $0x80] sm:$0xff] %v5684_v52  ;;  %v5591_v15 = vmul.f32 %v8444_v2, %v5554_v9  ;;  %v5119_v43 = vadd.f32 %v5087_v35, %v5018_v39  ;;  %v5289_v57 = vmul.f32 %v8421_v14, %v5252_v63  ;;  %v5354_v31 = vld [vmem:[#allocation2 + $0x18c] sm:$0xff]  ;;  %v5053_v34 = vld [vmem:[#allocation2 + $0x1a1] sm:$0xff] }
 0x305   : > { %v5320_v22 = vadd.f32 %v5288_v17, %v5219_v19  ;;  %v5521_v7 = vadd.f32 %v5489_v44, %v5420_v42  ;;  %v5019_v23 = vmul.f32 %v8628_v45, %v4981_v27  ;;  %v5088_v32 = vmul.f32 %v8402_v8, %v5051_v20  ;;  %v5555_v58 = vld [vmem:[#allocation2 + $0x186] sm:$0xff]  ;;  %v5556_v18 = vld [vmem:[#allocation2 + $0x18e] sm:$0xff]  ;;  %v5355_v17 = vld [vmem:[#allocation2 + $0x19c] sm:$0xff] }
 0x306   : > { %v5685_v59 = vadd.f32 %v5653_v25, %v5621_v48  ;;  %v5220_v37 = vadd.f32 %v5188_v4, %v5119_v43  ;;  %v5390_v16 = vmul.f32 %v8430_v50, %v5353_v3  ;;  %v5189_v51 = vmul.f32 %v8412_v36, %v5152_v55  ;;  %v5455_v21 = vld [vmem:[#allocation2 + $0x18d] sm:$0xff]  ;;  %v5254_v36 = vld [vmem:[#allocation2 + $0x19b] sm:$0xff]  ;;  %v5255_v4 = vld [vmem:[#allocation2 + $0x1a3] sm:$0xff] }
 0x307   : > { %v5421_v11 = vadd.f32 %v5389_v13, %v5320_v22  ;;  %v5622_v26 = vadd.f32 %v5590_v12, %v5521_v7  ;;  %v5491_v1 = vmul.f32 %v8436_v29, %v5454_v33  ;;  %v5120_v54 = vadd.f32 %v5088_v32, %v5019_v23  ;;  %v8644_v53 = vld [vmem:[%s8782_s1 + $0x31] ss:$0 sm:$0xff]  ;;  %v8650_v12 = vld [vmem:[%s8782_s1 + $0x32] ss:$0 sm:$0xff]  ;;  %v5154_v9 = vld [vmem:[#allocation2 + $0x1a2] sm:$0xff] }
 0x308   : > { %5717 = vst [vmem:[%s6323_s18 + $0x88] sm:$0xff] %v5685_v59  ;;  %v5290_v8 = vmul.f32 %v8421_v14, %v5253_v62  ;;  %v5321_v61 = vadd.f32 %v5289_v57, %v5220_v37  ;;  %v5391_v30 = vmul.f32 %v8430_v50, %v5354_v31  ;;  %v5020_v5 = vmul.f32 %v8628_v45, %v4982_v10  ;;  %v8660_v25 = vld [vmem:[%s8782_s1 + $0x33] ss:$0 sm:$0xff]  ;;  %v5456_v35 = vld [vmem:[#allocation2 + $0x19d] sm:$0xff]  ;;  %v8669_v55 = vld [vmem:[%s8782_s1 + $0x34] ss:$0 sm:$0xff] }
 0x309   : > { %v5522_v47 = vadd.f32 %v5490_v49, %v5421_v11  ;;  %v5686_v44 = vadd.f32 %v5654_v38, %v5622_v26  ;;  %v5221_v6 = vadd.f32 %v5189_v51, %v5120_v54  ;;  %v5089_v14 = vmul.f32 %v8644_v53, %v5052_v46  ;;  %v5356_v42 = vld [vmem:[#allocation2 + $0x1a4] sm:$0xff]  ;;  %v4984_v13 = vld [vmem:[#allocation2 + $0x1b0] sm:$0xff]  ;;  %v4985_v54 = vld [vmem:[#allocation2 + $0x1b8] sm:$0xff] }
 0x30a   : > { %v5190_v50 = vmul.f32 %v8650_v12, %v5153_v56  ;;  %v5422_v0 = vadd.f32 %v5390_v16, %v5321_v61  ;;  %v5592_v40 = vmul.f32 %v8444_v2, %v5555_v58  ;;  %v5492_v24 = vmul.f32 %v8436_v29, %v5455_v21  ;;  %v5054_v43 = vld [vmem:[#allocation2 + $0x1b1] sm:$0xff]  ;;  %v5557_v7 = vld [vmem:[#allocation2 + $0x19e] sm:$0xff]  ;;  %v5558_v37 = vld [vmem:[#allocation2 + $0x1a6] sm:$0xff] }
 0x30b   : > { %v5623_v60 = vadd.f32 %v5591_v15, %v5522_v47  ;;  %5718 = vst [vmem:[%s6323_s18 + $0x90] sm:$0xff] %v5686_v44  ;;  %v5322_v39 = vadd.f32 %v5290_v8, %v5221_v6  ;;  %v5593_v63 = vmul.f32 %v8444_v2, %v5556_v18  ;;  %v5121_v52 = vadd.f32 %v5089_v14, %v5020_v5  ;;  %v5656_v2 = vld [vmem:[%s6323_s18 + $0xa0] sm:$0xff]  ;;  %v5155_v57 = vld [vmem:[#allocation2 + $0x1b2] sm:$0xff]  ;;  %v5657_v56 = vld [vmem:[%s6323_s18 + $0xa8] sm:$0xff] }
 0x30c   : > { %v5291_v19 = vmul.f32 %v8660_v25, %v5254_v36  ;;  %v5523_v29 = vadd.f32 %v5491_v1, %v5422_v0  ;;  %v5021_v20 = vmul.f32 %v8628_v45, %v4983_v41  ;;  %v5090_v48 = vmul.f32 %v8644_v53, %v5053_v34  ;;  %v8677_v62 = vld [vmem:[%s8782_s1 + $0x35] ss:$0 sm:$0xff]  ;;  %v5457_v31 = vld [vmem:[#allocation2 + $0x1a5] sm:$0xff]  ;;  %v5055_v8 = vld [vmem:[#allocation2 + $0x1b9] sm:$0xff] }
 0x30d   : > { %v5687_v27 = vadd.f32 %v5655_v28, %v5623_v60  ;;  %v5423_v49 = vadd.f32 %v5391_v30, %v5322_v39  ;;  %v5222_v3 = vadd.f32 %v5190_v50, %v5121_v52  ;;  %v5392_v22 = vmul.f32 %v8669_v55, %v5355_v17  ;;  %v5256_v51 = vld [vmem:[#allocation2 + $0x1b3] sm:$0xff]  ;;  %v5257_v41 = vld [vmem:[#allocation2 + $0x1bb] sm:$0xff] }
 0x30e   : > { %v5191_v15 = vmul.f32 %v8650_v12, %v5154_v9  ;;  %v5624_v33 = vadd.f32 %v5592_v40, %v5523_v29  ;;  %v5493_v59 = vmul.f32 %v8677_v62, %v5456_v35  ;;  %v5122_v23 = vadd.f32 %v5090_v48, %v5021_v20  ;;  %v8689_v61 = vld [vmem:[%s8782_s1 + $0x36] ss:$0 sm:$0xff]  ;;  %v5156_v36 = vld [vmem:[#allocation2 + $0x1ba] sm:$0xff]  ;;  %v5157_v35 = vld [vmem:[#allocation2 + $0x1ca] sm:$0xff] }
 0x30f   : > { %5719 = vst [vmem:[%s6323_s18 + $0x98] sm:$0xff] %v5687_v27  ;;  %v5292_v32 = vmul.f32 %v8660_v25, %v5255_v4  ;;  %v5524_v10 = vadd.f32 %v5492_v24, %v5423_v49  ;;  %v5323_v38 = vadd.f32 %v5291_v19, %v5222_v3  ;;  %v5393_v11 = vmul.f32 %v8669_v55, %v5356_v42  ;;  %v5357_v5 = vld [vmem:[#allocation2 + $0x1b4] sm:$0xff]  ;;  %v5358_v24 = vld [vmem:[#allocation2 + $0x1bc] sm:$0xff]  ;;  %v5056_v19 = vld [vmem:[#allocation2 + $0x1c9] sm:$0xff] }
 0x310   : > { %v5022_v16 = vmul.f32 %v8628_v45, %v4984_v13  ;;  %v5688_v46 = vadd.f32 %v5656_v2, %v5624_v33  ;;  %v5223_v26 = vadd.f32 %v5191_v15, %v5122_v23  ;;  %v5091_v1 = vmul.f32 %v8644_v53, %v5054_v43  ;;  %v5458_v50 = vld [vmem:[#allocation2 + $0x1b5] sm:$0xff]  ;;  %v5459_v42 = vld [vmem:[#allocation2 + $0x1bd] sm:$0xff]  ;;  %v5258_v43 = vld [vmem:[#allocation2 + $0x1cb] sm:$0xff] }
 0x311   : > { %v5192_v58 = vmul.f32 %v8650_v12, %v5155_v57  ;;  %v5625_v21 = vadd.f32 %v5593_v63, %v5524_v10  ;;  %v5424_v47 = vadd.f32 %v5392_v22, %v5323_v38  ;;  %v5594_v30 = vmul.f32 %v8689_v61, %v5557_v7  ;;  %v5658_v17 = vld [vmem:[%s6323_s18 + $0xb0] sm:$0xff]  ;;  %v5560_v3 = vld [vmem:[#allocation2 + $0x1be] sm:$0xff] }
 0x312   : > { %v5494_v18 = vmul.f32 %v8677_v62, %v5457_v31  ;;  %5720 = vst [vmem:[%s6323_s18 + $0xa0] sm:$0xff] %v5688_v46  ;;  %v5324_v44 = vadd.f32 %v5292_v32, %v5223_v26  ;;  %v5595_v28 = vmul.f32 %v8689_v61, %v5558_v37  ;;  %v5123_v6 = vadd.f32 %v5091_v1, %v5022_v16  ;;  %v5559_v29 = vld [vmem:[#allocation2 + $0x1b6] sm:$0xff]  ;;  %v6029_v22 = vld [vmem:[#allocation2] sm:$0xff]  ;;  %v5359_v16 = vld [vmem:[#allocation2 + $0x1cc] sm:$0xff] }
 0x313   : > { %v5293_v14 = vmul.f32 %v8660_v25, %v5256_v51  ;;  %v5689_v34 = vadd.f32 %v5657_v56, %v5625_v21  ;;  %v5525_v60 = vadd.f32 %v5493_v59, %v5424_v47  ;;  %v5023_v0 = vmul.f32 %v8628_v45, %v4985_v54  ;;  %v5659_v33 = vld [vmem:[%s6323_s18 + $0xb8] sm:$0xff]  ;;  %v5561_v1 = vld [vmem:[#allocation2 + $0x1ce] sm:$0xff] }
 0x314   : > { %v5092_v40 = vmul.f32 %v8644_v53, %v5055_v8  ;;  %v5425_v9 = vadd.f32 %v5393_v11, %v5324_v44  ;;  %v5224_v39 = vadd.f32 %v5192_v58, %v5123_v6  ;;  %v5394_v63 = vmul.f32 %v8669_v55, %v5357_v5  ;;  %v5057_v32 = vld [vmem:[#allocation2 + $0x1d1] sm:$0xff]  ;;  %v5660_v5 = vld [vmem:[%s6323_s18 + $0xc0] sm:$0xff] }
 0x315   : > { %v5193_v52 = vmul.f32 %v8650_v12, %v5156_v36  ;;  %5721 = vst [vmem:[%s6323_s18 + $0xa8] sm:$0xff] %v5689_v34  ;;  %v5626_v4 = vadd.f32 %v5594_v30, %v5525_v60  ;;  %v5495_v27 = vmul.f32 %v8677_v62, %v5458_v50  ;;  %v5294_v48 = vmul.f32 %v8660_v25, %v5257_v41  ;;  %v5158_v31 = vld [vmem:[#allocation2 + $0x1d2] sm:$0xff]  ;;  %v5058_v30 = vld [vmem:[#allocation2 + $0x1e1] sm:$0xff] }
 0x316   : > { %v5124_v20 = vadd.f32 %v5092_v40, %v5023_v0  ;;  %v5526_v13 = vadd.f32 %v5494_v18, %v5425_v9  ;;  %v5325_v2 = vadd.f32 %v5293_v14, %v5224_v39  ;;  %v5395_v49 = vmul.f32 %v8669_v55, %v5358_v24  ;;  %v5259_v58 = vld [vmem:[#allocation2 + $0x1d3] sm:$0xff]  ;;  %v5159_v18 = vld [vmem:[#allocation2 + $0x1e2] sm:$0xff] }
 0x317   : > { %v8706_v15 = vmul.f32 %v6029_v22, %v8628_v45  ;;  %v5690_v57 = vadd.f32 %v5658_v17, %v5626_v4  ;;  %v5093_v7 = vmul.f32 %v8644_v53, %v5056_v19  ;;  %v5194_v23 = vmul.f32 %v8650_v12, %v5157_v35  ;;  %v5460_v45 = vld [vmem:[#allocation2 + $0x1cd] sm:$0xff]  ;;  %v5461_v50 = vld [vmem:[#allocation2 + $0x1d5] sm:$0xff]  ;;  %v5260_v40 = vld [vmem:[#allocation2 + $0x1e3] sm:$0xff] }
 0x318   : > { %v5225_v59 = vadd.f32 %v5193_v52, %v5124_v20  ;;  %v5627_v10 = vadd.f32 %v5595_v28, %v5526_v13  ;;  %v5426_v38 = vadd.f32 %v5394_v63, %v5325_v2  ;;  %v5596_v11 = vmul.f32 %v8689_v61, %v5559_v29  ;;  %v5360_v14 = vld [vmem:[#allocation2 + $0x1d4] sm:$0xff]  ;;  %v5059_v52 = vld [vmem:[#allocation2 + $0x1e9] sm:$0xff] }
 0x319   : > { %v5496_v37 = vmul.f32 %v8677_v62, %v5459_v42  ;;  %5722 = vst [vmem:[%s6323_s18 + $0xb0] sm:$0xff] %v5690_v57  ;;  %v5597_v46 = vmul.f32 %v8689_v61, %v5560_v3  ;;  %v5125_v56 = vadd.f32 %v5093_v7, %v8706_v15  ;;  %v5295_v26 = vmul.f32 %v8660_v25, %v5258_v43  ;;  %v5562_v9 = vld [vmem:[#allocation2 + $0x1d6] sm:$0xff]  ;;  %v5160_v19 = vld [vmem:[#allocation2 + $0x1ea] sm:$0xff] }
 0x31a   : > { %v5326_v51 = vadd.f32 %v5294_v48, %v5225_v59  ;;  %v5691_v54 = vadd.f32 %v5659_v33, %v5627_v10  ;;  %v5527_v8 = vadd.f32 %v5495_v27, %v5426_v38  ;;  %v5094_v21 = vmul.f32 %v8644_v53, %v5057_v32  ;;  %v5661_v4 = vld [vmem:[%s6323_s18 + $0xc8] sm:$0xff] }
 0x31b   : > { %v5195_v47 = vmul.f32 %v8650_v12, %v5158_v31  ;;  %v5226_v44 = vadd.f32 %v5194_v23, %v5125_v56  ;;  %v5396_v28 = vmul.f32 %v8669_v55, %v5359_v16  ;;  %v5497_v6 = vmul.f32 %v8677_v62, %v5460_v45  ;;  %v5361_v48 = vld [vmem:[#allocation2 + $0x1e4] sm:$0xff]  ;;  %v5060_v23 = vld [vmem:[#allocation2 + $0x1f9] sm:$0xff]  ;;  %v5662_v16 = vld [vmem:[%s6323_s18 + $0xd0] sm:$0xff] }
 0x31c   : > { %v5427_v36 = vadd.f32 %v5395_v49, %v5326_v51  ;;  %5723 = vst [vmem:[%s6323_s18 + $0xb8] sm:$0xff] %v5691_v54  ;;  %v5628_v41 = vadd.f32 %v5596_v11, %v5527_v8  ;;  %v5598_v34 = vmul.f32 %v8689_v61, %v5561_v1  ;;  %v5126_v60 = vadd.f32 %v5094_v21, %v8706_v15  ;;  %v5462_v3 = vld [vmem:[#allocation2 + $0x1e5] sm:$0xff]  ;;  %v5463_v8 = vld [vmem:[#allocation2 + $0x1ed] sm:$0xff] }
 0x31d   : > { %v5296_v0 = vmul.f32 %v8660_v25, %v5259_v58  ;;  %v5327_v17 = vadd.f32 %v5295_v26, %v5226_v44  ;;  %v5095_v39 = vmul.f32 %v8644_v53, %v5058_v30  ;;  %v5196_v63 = vmul.f32 %v8650_v12, %v5159_v18  ;;  %v5261_v22 = vld [vmem:[#allocation2 + $0x1eb] sm:$0xff]  ;;  %v5262_v26 = vld [vmem:[#allocation2 + $0x1fb] sm:$0xff] }
 0x31e   : > { %v5528_v24 = vadd.f32 %v5496_v37, %v5427_v36  ;;  %v5692_v35 = vadd.f32 %v5660_v5, %v5628_v41  ;;  %v5227_v27 = vadd.f32 %v5195_v47, %v5126_v60  ;;  %v5397_v29 = vmul.f32 %v8669_v55, %v5360_v14  ;;  %v5563_v33 = vld [vmem:[#allocation2 + $0x1e6] sm:$0xff]  ;;  %v5161_v37 = vld [vmem:[#allocation2 + $0x1fa] sm:$0xff]  ;;  %v5564_v41 = vld [vmem:[#allocation2 + $0x1ee] sm:$0xff] }
 0x31f   : > { %v5498_v20 = vmul.f32 %v8677_v62, %v5461_v50  ;;  %v5428_v13 = vadd.f32 %v5396_v28, %v5327_v17  ;;  %v5127_v2 = vadd.f32 %v5095_v39, %v8706_v15  ;;  %v5297_v49 = vmul.f32 %v8660_v25, %v5260_v40  ;;  %v5362_v11 = vld [vmem:[#allocation2 + $0x1ec] sm:$0xff]  ;;  %v5363_v47 = vld [vmem:[#allocation2 + $0x1fc] sm:$0xff] }
 0x320   : > { %v5629_v42 = vadd.f32 %v5597_v46, %v5528_v24  ;;  %5724 = vst [vmem:[%s6323_s18 + $0xc0] sm:$0xff] %v5692_v35  ;;  %v5328_v43 = vadd.f32 %v5296_v0, %v5227_v27  ;;  %v5599_v57 = vmul.f32 %v8689_v61, %v5562_v9  ;;  %v5096_v59 = vmul.f32 %v8644_v53, %v5059_v52  ;;  %v5061_v44 = vld [vmem:[#allocation2 + $0x201] sm:$0xff]  ;;  %v5663_v14 = vld [vmem:[%s6323_s18 + $0xd8] sm:$0xff] }
 0x321   : > { %v5197_v7 = vmul.f32 %v8650_v12, %v5160_v19  ;;  %v5529_v31 = vadd.f32 %v5497_v6, %v5428_v13  ;;  %v5228_v10 = vadd.f32 %v5196_v63, %v5127_v2  ;;  %v5398_v38 = vmul.f32 %v8669_v55, %v5361_v48  ;;  %v5162_v28 = vld [vmem:[#allocation2 + $0x202] sm:$0xff] }
 0x322   : > { %v5693_v32 = vadd.f32 %v5661_v4, %v5629_v42  ;;  %v5429_v45 = vadd.f32 %v5397_v29, %v5328_v43  ;;  %v5499_v51 = vmul.f32 %v8677_v62, %v5462_v3  ;;  %v5128_v46 = vadd.f32 %v5096_v59, %v8706_v15  ;;  %v5464_v0 = vld [vmem:[#allocation2 + $0x1fd] sm:$0xff]  ;;  %v5465_v43 = vld [vmem:[#allocation2 + $0x205] sm:$0xff] }
 0x323   : > { %v5298_v56 = vmul.f32 %v8660_v25, %v5261_v22  ;;  %v5630_v1 = vadd.f32 %v5598_v34, %v5529_v31  ;;  %v5329_v58 = vadd.f32 %v5297_v49, %v5228_v10  ;;  %v5600_v54 = vmul.f32 %v8689_v61, %v5563_v33  ;;  %v5263_v39 = vld [vmem:[#allocation2 + $0x203] sm:$0xff] }
 0x324   : > { %5725 = vst [vmem:[%s6323_s18 + $0xc8] sm:$0xff] %v5693_v32  ;;  %v5097_v21 = vmul.f32 %v8644_v53, %v5060_v23  ;;  %v5530_v30 = vadd.f32 %v5498_v20, %v5429_v45  ;;  %v5229_v18 = vadd.f32 %v5197_v7, %v5128_v46  ;;  %v5399_v5 = vmul.f32 %v8669_v55, %v5362_v11  ;;  %v5565_v19 = vld [vmem:[#allocation2 + $0x1fe] sm:$0xff]  ;;  %v5665_v33 = vld [vmem:[%s6323_s18 + $0xe8] sm:$0xff]  ;;  %v5666_v11 = vld [vmem:[%s6323_s18 + $0xf0] sm:$0xff] }
 0x325   : > { %v5198_v36 = vmul.f32 %v8650_v12, %v5161_v37  ;;  %v5694_v6 = vadd.f32 %v5662_v16, %v5630_v1  ;;  %v5430_v50 = vadd.f32 %v5398_v38, %v5329_v58  ;;  %v5299_v60 = vmul.f32 %v8660_v25, %v5262_v26  ;;  %v5664_v29 = vld [vmem:[%s6323_s18 + $0xe0] sm:$0xff] }
 0x326   : > { %v5129_v34 = vadd.f32 %v5097_v21, %v8706_v15  ;;  %v5631_v40 = vadd.f32 %v5599_v57, %v5530_v30  ;;  %v5330_v24 = vadd.f32 %v5298_v56, %v5229_v18  ;;  %v5500_v17 = vmul.f32 %v8677_v62, %v5463_v8  ;;  %v5364_v13 = vld [vmem:[#allocation2 + $0x204] sm:$0xff]  ;;  %v5667_v56 = vld [vmem:[%s6323_s18 + $0xf8] sm:$0xff] }
 0x327   : > { %v5400_v9 = vmul.f32 %v8669_v55, %v5363_v47  ;;  %5726 = vst [vmem:[%s6323_s18 + $0xd0] sm:$0xff] %v5694_v6  ;;  %v5531_v63 = vadd.f32 %v5499_v51, %v5430_v50  ;;  %v5098_v35 = vmul.f32 %v8644_v53, %v5061_v44  ;;  %v5199_v4 = vmul.f32 %v8650_v12, %v5162_v28  ;;  %v5566_v31 = vld [vmem:[#allocation2 + $0x206] sm:$0xff] }
 0x328   : > { %v5230_v52 = vadd.f32 %v5198_v36, %v5129_v34  ;;  %v5695_v27 = vadd.f32 %v5663_v14, %v5631_v40  ;;  %v5431_v20 = vadd.f32 %v5399_v5, %v5330_v24  ;;  %v5601_v48 = vmul.f32 %v8689_v61, %v5564_v41 }
 0x329   : > { %v5501_v42 = vmul.f32 %v8677_v62, %v5464_v0  ;;  %v5632_v2 = vadd.f32 %v5600_v54, %v5531_v63  ;;  %v5130_v3 = vadd.f32 %v5098_v35, %v8706_v15  ;;  %v5300_v22 = vmul.f32 %v8660_v25, %v5263_v39 }
 0x32a   : > { %v5331_v49 = vadd.f32 %v5299_v60, %v5230_v52  ;;  %5727 = vst [vmem:[%s6323_s18 + $0xd8] sm:$0xff] %v5695_v27  ;;  %v5532_v53 = vadd.f32 %v5500_v17, %v5431_v20  ;;  %v5602_v12 = vmul.f32 %v8689_v61, %v5565_v19  ;;  %v5401_v23 = vmul.f32 %v8669_v55, %v5364_v13 }
 0x32b   : > { %v5696_v57 = vadd.f32 %v5664_v29, %v5632_v2  ;;  %v5231_v7 = vadd.f32 %v5199_v4, %v5130_v3  ;;  %v5502_v10 = vmul.f32 %v8677_v62, %v5465_v43  ;;  %v5603_v45 = vmul.f32 %v8689_v61, %v5566_v31 }
 0x32c   : > { %v5432_v59 = vadd.f32 %v5400_v9, %v5331_v49  ;;  %v5633_v32 = vadd.f32 %v5601_v48, %v5532_v53 }
 0x32d   : > { %5728 = vst [vmem:[%s6323_s18 + $0xe0] sm:$0xff] %v5696_v57  ;;  %v5332_v15 = vadd.f32 %v5300_v22, %v5231_v7 }
 0x32e   : > { %v5533_v25 = vadd.f32 %v5501_v42, %v5432_v59  ;;  %v5697_v38 = vadd.f32 %v5665_v33, %v5633_v32 }
 0x32f   : > { %v5433_v16 = vadd.f32 %v5401_v23, %v5332_v15 }
 0x330   : > { %v5634_v37 = vadd.f32 %v5602_v12, %v5533_v25  ;;  %5729 = vst [vmem:[%s6323_s18 + $0xe8] sm:$0xff] %v5697_v38 }
 0x331   : > { %v5534_v46 = vadd.f32 %v5502_v10, %v5433_v16 }
 0x332   : > { %v5698_v51 = vadd.f32 %v5666_v11, %v5634_v37 }
 0x333   : > { %v5635_v55 = vadd.f32 %v5603_v45, %v5534_v46 }
 0x334   : > { %5730 = vst [vmem:[%s6323_s18 + $0xf0] sm:$0xff] %v5698_v51 }
 0x335   : > { %v5699_v26 = vadd.f32 %v5667_v56, %v5635_v55 }
 0x337   : > { %5731 = vst [vmem:[%s6323_s18 + $0xf8] sm:$0xff] %v5699_v26 }
 0x338 PF: > { %s13_s14 = sadd.s32 1, %s6052_s14   ;;  %s8785_s12 = smov %s6048_s13 }
 0x339   : > { %p10_p5 = scmp.ge.s32.totalorder %s13_s14, 4   ;;  %s8786_s13 = smov %s8788_s15 }
 0x33b   :  { %12 = sbr.rel (!%p10_p5) target bundleno = 2 (0x2), region = 81 }

</bundles_post_ra>
